<compile_context>
chip_gen: v7x
topology: tpu7x:2x2x1
jax: 0.10.0
libtpu: 0.0.40
codegen_flags: <defaults>
</compile_context>

<pallas_src>
import numpy as np
import jax
import jax.numpy as jnp
from jax.experimental import pallas as pl
from jax.experimental.pallas import tpu as pltpu

# ---------------- module hyper-parameters (use_Z=False) ----------------------
N = 20
CON_N = 4            # 4 + use_Z
JNT_N = 3            # 3 + use_Z
XYZ_N = 12
TANH_FEATURES = 10
OUT_DIM = 1          # critic head -> scalar value
HID = 128
N2 = 2 * N + 1       # 41

BRANCH_IN_DIMS = [
    (N + 1) * CON_N,   # contacts_binary : 84
    N * CON_N,         # delta_contacts  : 80
    (N + 1) * JNT_N,   # joint_angles    : 63
    N * JNT_N,         # delta_joints    : 60
    (N + 1) * XYZ_N,   # contacts_xyz    : 252
    N * XYZ_N,         # delta_xyz       : 240
]
OBS_DIM = (CON_N + JNT_N + XYZ_N) * N2   # 779

NB = 6                                   # number of branch nets
BW = HID                                 # per-branch lane block (128)
FEAT_TOTAL = NB * BW                     # 768
FEAT_PACK = NB * TANH_FEATURES           # 60 (lanes 0..59 of the packed feature slab)


def _round_up(x, m):
    return ((x + m - 1) // m) * m


BRANCH_IN_PAD = [_round_up(d, 128) for d in BRANCH_IN_DIMS]   # [128,128,128,128,256,256]
K_TOTAL = sum(BRANCH_IN_PAD)                                  # 1024
OUT_PAD = 128                                                 # lane-dense output slab


# ---------------- Pallas kernel ----------------------------------------------
def netcritic_kernel(x_ref, w1_ref, wbd_ref, w4_ref, wm_ref, bb_ref, bm_ref, out_ref):
    """One batch tile.  bf16 operands, f32 MXU accumulation.

    x_ref   : (TB, 1024)      packed + zero-padded branch inputs, bf16
    w1_ref  : (1024, 768)     block-diagonal branch layer-1 weights, bf16
    wbd_ref : (2, 768, 768)   block-diagonal branch layers 2..3, bf16
    w4_ref  : (768, 128)      branch layer-4 weights packed column-wise (10 per branch), bf16
    wm_ref  : (4, 128, 128)   main layers 1..4 (rows>=60 of layer1 and cols>=1 of layer4 are 0), bf16
    bb_ref  : (3, 768)        branch biases layers 1..3, f32
    bm_ref  : (5, 128)        [branch layer-4 bias packed, main biases 1..4], f32
    out_ref : (TB, 128)       padded output slab (value in lane 0), f32
    """
    bb = bb_ref[...]
    bm = bm_ref[...]

    def mm(a, w):
        return jnp.dot(a.astype(jnp.bfloat16), w, preferred_element_type=jnp.float32)

    # six branch MLPs fused into block-diagonal matmuls over a 768-wide slab
    h = jnp.maximum(mm(x_ref[...], w1_ref[...]) + bb[0:1], 0.0)
    h = jnp.maximum(mm(h, wbd_ref[0]) + bb[1:2], 0.0)
    h = jnp.maximum(mm(h, wbd_ref[1]) + bb[2:3], 0.0)
    # branch layer 4 goes straight into a lane-dense packed feature slab:
    # lanes 0..59 hold the 6x10 tanh features, lanes >=60 are tanh(0)=0.
    feat = jnp.tanh(mm(h, w4_ref[...]) + bm[0:1])

    # main net (the concat is free: wm[0] rows >= 60 are zero)
    h = jnp.maximum(mm(feat, wm_ref[0]) + bm[1:2], 0.0)
    h = jnp.maximum(mm(h, wm_ref[1]) + bm[2:3], 0.0)
    h = jnp.maximum(mm(h, wm_ref[2]) + bm[3:4], 0.0)
    out_ref[...] = mm(h, wm_ref[3]) + bm[4:5]


# ---------------- glue: observation split (matches torch split_obs) ----------
def _strided_indices(channels, even):
    if even:
        return np.array(
            sum([list(range(N2 * i, N2 * (i + 1), 2)) for i in range(channels)], []),
            dtype=np.int32)
    return np.array(
        sum([list(range(1 + N2 * i, N2 * (i + 1) - 1, 2)) for i in range(channels)], []),
        dtype=np.int32)


CON_IND = _strided_indices(CON_N, True)
DCON_IND = _strided_indices(CON_N, False)
JNT_IND = _strided_indices(JNT_N, True)
DJNT_IND = _strided_indices(JNT_N, False)
XYZ_IND = _strided_indices(XYZ_N, True)
DXYZ_IND = _strided_indices(XYZ_N, False)


def split_obs(obs):
    con_len = CON_N * N2
    jnt_len = JNT_N * N2
    all_con = obs[:, :con_len]
    all_jnt = obs[:, con_len:con_len + jnt_len]
    all_xyz = obs[:, con_len + jnt_len:]
    return (all_con[:, CON_IND], all_con[:, DCON_IND],
            all_jnt[:, JNT_IND], all_jnt[:, DJNT_IND],
            all_xyz[:, XYZ_IND], all_xyz[:, DXYZ_IND])


def pack_obs(obs, b_pad):
    """Split, zero-pad each branch to its 128-aligned width, concat, pad batch, bf16."""
    parts = split_obs(obs)
    cols = []
    for i, p in enumerate(parts):
        cols.append(p)
        pad = BRANCH_IN_PAD[i] - BRANCH_IN_DIMS[i]
        if pad:
            cols.append(jnp.zeros((p.shape[0], pad), p.dtype))
    x = jnp.concatenate(cols, axis=1)                       # (B, 1024)
    if b_pad > x.shape[0]:
        x = jnp.concatenate(
            [x, jnp.zeros((b_pad - x.shape[0], x.shape[1]), x.dtype)], axis=0)
    return x.astype(jnp.bfloat16)


# ---------------- host wrapper -------------------------------------------------
def netcritic_forward(obs, packed_params, block_b=128):
    """NetCritic.forward: squeeze(v_net(obs), -1)."""
    B = obs.shape[0]
    tb = min(block_b, _round_up(max(B, 1), 16))
    b_pad = _round_up(B, tb)
    x = pack_obs(obs, b_pad)
    w1bd, wbd, w4, wm, bb, bm = packed_params

    flops_per_row = 2 * (K_TOTAL * FEAT_TOTAL + 2 * FEAT_TOTAL * FEAT_TOTAL
                         + FEAT_TOTAL * HID + 4 * HID * HID)
    weight_bytes = 2 * (w1bd.size + wbd.size + w4.size + wm.size) + 4 * (bb.size + bm.size)
    cost = pl.CostEstimate(
        flops=int(flops_per_row * b_pad),
        transcendentals=int(b_pad * OUT_PAD),
        bytes_accessed=int(b_pad * K_TOTAL * 2 + b_pad * OUT_PAD * 4 + weight_bytes))

    out = pl.pallas_call(
        netcritic_kernel,
        out_shape=jax.ShapeDtypeStruct((b_pad, OUT_PAD), jnp.float32),
        grid=(b_pad // tb,),
        in_specs=[
            pl.BlockSpec((tb, K_TOTAL), lambda i: (i, 0)),
            pl.BlockSpec((K_TOTAL, FEAT_TOTAL), lambda i: (0, 0)),
            pl.BlockSpec((2, FEAT_TOTAL, FEAT_TOTAL), lambda i: (0, 0, 0)),
            pl.BlockSpec((FEAT_TOTAL, HID), lambda i: (0, 0)),
            pl.BlockSpec((4, HID, HID), lambda i: (0, 0, 0)),
            pl.BlockSpec((3, FEAT_TOTAL), lambda i: (0, 0)),
            pl.BlockSpec((5, HID), lambda i: (0, 0)),
        ],
        out_specs=pl.BlockSpec((tb, OUT_PAD), lambda i: (i, 0)),
        compiler_params=pltpu.CompilerParams(
            dimension_semantics=("parallel",),
            vmem_limit_bytes=32 * 1024 * 1024),
        cost_estimate=cost,
    )(x, w1bd, wbd, w4, wm, bb, bm)
    return out[:B, 0]            # squeeze(-1): value per sample, shape (B,)


# ---------------- deterministic parameter init (PyTorch-like uniform) --------
def init_linear(key, fan_in, fan_out):
    k = 1.0 / np.sqrt(fan_in)
    kw, kb = jax.random.split(key)
    w = jax.random.uniform(kw, (fan_in, fan_out), jnp.float32, -k, k)
    b = jax.random.uniform(kb, (fan_out,), jnp.float32, -k, k)
    return w, b


def init_params(key):
    flat = []
    layer_dims = [[d, HID, HID, HID, TANH_FEATURES] for d in BRANCH_IN_DIMS]
    layer_dims.append([TANH_FEATURES * NB, HID, HID, HID, OUT_DIM])
    for dims in layer_dims:
        for i in range(4):
            key, sub = jax.random.split(key)
            w, b = init_linear(sub, dims[i], dims[i + 1])
            flat.extend([w, b])
    return flat   # 7 nets x 4 layers x (W, b) = 56 arrays


# ---------------- parameter packing into fused buffers -----------------------
def pack_params(flat_params):
    fp = [np.asarray(p, np.float32) for p in flat_params]
    w1bd = np.zeros((K_TOTAL, FEAT_TOTAL), np.float32)
    wbd = np.zeros((2, FEAT_TOTAL, FEAT_TOTAL), np.float32)
    w4 = np.zeros((FEAT_TOTAL, HID), np.float32)
    wm = np.zeros((4, HID, HID), np.float32)
    bb = np.zeros((3, FEAT_TOTAL), np.float32)
    bm = np.zeros((5, HID), np.float32)

    row = 0
    for br in range(NB):
        base = br * 8
        col = br * BW
        w1, b1 = fp[base + 0], fp[base + 1]
        w1bd[row:row + w1.shape[0], col:col + w1.shape[1]] = w1
        bb[0, col:col + b1.shape[0]] = b1
        row += BRANCH_IN_PAD[br]
        for li in (1, 2):                                   # block-diagonal layers 2..3
            w, b = fp[base + 2 * li], fp[base + 2 * li + 1]
            wbd[li - 1, col:col + w.shape[0], col:col + w.shape[1]] = w
            bb[li, col:col + b.shape[0]] = b
        w, b = fp[base + 6], fp[base + 7]                   # layer 4: (128, 10)
        w4[col:col + w.shape[0], br * TANH_FEATURES:(br + 1) * TANH_FEATURES] = w
        bm[0, br * TANH_FEATURES:(br + 1) * TANH_FEATURES] = b

    w, b = fp[48], fp[49]                                   # main layer 1: (60, 128)
    wm[0, :w.shape[0], :w.shape[1]] = w
    bm[1, :b.shape[0]] = b
    for li in (1, 2, 3):                                    # main layers 2..4
        w, b = fp[48 + 2 * li], fp[48 + 2 * li + 1]
        wm[li, :w.shape[0], :w.shape[1]] = w
        bm[li + 1, :b.shape[0]] = b

    return (jnp.asarray(w1bd, jnp.bfloat16),
            jnp.asarray(wbd, jnp.bfloat16),
            jnp.asarray(w4, jnp.bfloat16),
            jnp.asarray(wm, jnp.bfloat16),
            jnp.asarray(bb, jnp.float32),
            jnp.asarray(bm, jnp.float32))


# ---------------- pure-JAX reference (same bf16/f32 numerics) -----------------
def netcritic_reference(obs, flat_params):
    def mm(a, w):
        return jnp.dot(a.astype(jnp.bfloat16), w.astype(jnp.bfloat16),
                       preferred_element_type=jnp.float32)

    def net(x, params, final_tanh):
        for li in range(4):
            w, b = params[2 * li], params[2 * li + 1]
            x = mm(x, w) + b
            if li < 3:
                x = jnp.maximum(x, 0.0)
        return jnp.tanh(x) if final_tanh else x

    parts = split_obs(obs)
    feats = [net(parts[br], flat_params[br * 8:(br + 1) * 8], True) for br in range(NB)]
    feat = jnp.concatenate(feats, axis=1)
    v = net(feat, flat_params[48:56], False)        # (B, 1)
    return jnp.squeeze(v, -1)                       # NetCritic.forward squeeze


# ---------------- main --------------------------------------------------------
if __name__ == "__main__":
    B = 200                                          # exercises grid=2 + padded rows
    key = jax.random.PRNGKey(0)
    obs = jax.random.normal(key, (B, OBS_DIM), dtype=jnp.float32)

    flat_params = init_params(jax.random.PRNGKey(1))
    packed = pack_params(flat_params)

    out = jax.block_until_ready(netcritic_forward(obs, packed))
    ref = jax.block_until_ready(netcritic_reference(obs, flat_params))

    np.testing.assert_allclose(np.asarray(out), np.asarray(ref), rtol=5e-3, atol=5e-3)
    assert out.shape == (B,)
    print("KERNEL_OK")
</pallas_src>

<mosaic_0001>
module attributes {stable_mosaic.version = 11 : i64} {
  func.func @netcritic_kernel(%arg0: i32, %arg1: memref<128x1024xbf16, #tpu.memory_space<vmem>>, %arg2: memref<1024x768xbf16, #tpu.memory_space<vmem>>, %arg3: memref<2x768x768xbf16, #tpu.memory_space<vmem>>, %arg4: memref<768x128xbf16, #tpu.memory_space<vmem>>, %arg5: memref<4x128x128xbf16, #tpu.memory_space<vmem>>, %arg6: memref<3x768xf32, #tpu.memory_space<vmem>>, %arg7: memref<5x128xf32, #tpu.memory_space<vmem>>, %arg8: memref<128x128xf32, #tpu.memory_space<vmem>>) attributes {dimension_semantics = [#tpu.dimension_semantics<parallel>], iteration_bounds = array<i64: 2>, scalar_prefetch = 0 : i64, scratch_operands = 0 : i64, tpu.core_type = #tpu.core_type<tc>, window_params = [{transform_indices = @transform_0, window_bounds = array<i64: 128, 1024>}, {pipeline_mode = #tpu.pipeline_mode<synchronous>, transform_indices = @transform_1, window_bounds = array<i64: 1024, 768>}, {pipeline_mode = #tpu.pipeline_mode<synchronous>, transform_indices = @transform_2, window_bounds = array<i64: 2, 768, 768>}, {pipeline_mode = #tpu.pipeline_mode<synchronous>, transform_indices = @transform_3, window_bounds = array<i64: 768, 128>}, {pipeline_mode = #tpu.pipeline_mode<synchronous>, transform_indices = @transform_4, window_bounds = array<i64: 4, 128, 128>}, {pipeline_mode = #tpu.pipeline_mode<synchronous>, transform_indices = @transform_5, window_bounds = array<i64: 3, 768>}, {pipeline_mode = #tpu.pipeline_mode<synchronous>, transform_indices = @transform_6, window_bounds = array<i64: 5, 128>}, {transform_indices = @transform_7, window_bounds = array<i64: 128, 128>}]} {
    %c0 = arith.constant 0 : index
    %c0_0 = arith.constant 0 : index
    %0 = vector.load %arg6[%c0, %c0_0] : memref<3x768xf32, #tpu.memory_space<vmem>>, vector<3x768xf32>
    %c0_1 = arith.constant 0 : index
    %c0_2 = arith.constant 0 : index
    %1 = vector.load %arg7[%c0_1, %c0_2] : memref<5x128xf32, #tpu.memory_space<vmem>>, vector<5x128xf32>
    %c0_3 = arith.constant 0 : index
    %c0_4 = arith.constant 0 : index
    %2 = vector.load %arg1[%c0_3, %c0_4] : memref<128x1024xbf16, #tpu.memory_space<vmem>>, vector<128x1024xbf16>
    %c0_5 = arith.constant 0 : index
    %c0_6 = arith.constant 0 : index
    %3 = vector.load %arg2[%c0_5, %c0_6] : memref<1024x768xbf16, #tpu.memory_space<vmem>>, vector<1024x768xbf16>
    %cst = arith.constant dense<0.000000e+00> : vector<128x768xf32>
    %4 = tpu.matmul %2, %3, %cst {dimension_numbers = #tpu.dot_dimension_numbers<[1], [0], [0], [1], [0, 0, 1, 1], [], []>} : vector<128x1024xbf16>, vector<1024x768xbf16>, vector<128x768xf32> -> vector<128x768xf32>
    %5 = vector.extract_strided_slice %0 {offsets = [0, 0], sizes = [1, 768], strides = [1, 1]} : vector<3x768xf32> to vector<1x768xf32>
    %6 = vector.broadcast %5 : vector<1x768xf32> to vector<128x768xf32>
    %7 = arith.addf %4, %6 : vector<128x768xf32>
    %cst_7 = arith.constant 0.000000e+00 : f32
    %8 = vector.broadcast %cst_7 : f32 to vector<128x768xf32>
    %9 = arith.maximumf %7, %8 : vector<128x768xf32>
    %c0_8 = arith.constant 0 : index
    %c0_9 = arith.constant 0 : index
    %c0_10 = arith.constant 0 : index
    %10 = vector.load %arg3[%c0_8, %c0_9, %c0_10] : memref<2x768x768xbf16, #tpu.memory_space<vmem>>, vector<1x768x768xbf16>
    %11 = vector.shape_cast %10 : vector<1x768x768xbf16> to vector<768x768xbf16>
    %12 = arith.truncf %9 : vector<128x768xf32> to vector<128x768xbf16>
    %cst_11 = arith.constant dense<0.000000e+00> : vector<128x768xf32>
    %13 = tpu.matmul %12, %11, %cst_11 {dimension_numbers = #tpu.dot_dimension_numbers<[1], [0], [0], [1], [0, 0, 1, 1], [], []>} : vector<128x768xbf16>, vector<768x768xbf16>, vector<128x768xf32> -> vector<128x768xf32>
    %14 = vector.extract_strided_slice %0 {offsets = [1, 0], sizes = [1, 768], strides = [1, 1]} : vector<3x768xf32> to vector<1x768xf32>
    %15 = vector.broadcast %14 : vector<1x768xf32> to vector<128x768xf32>
    %16 = arith.addf %13, %15 : vector<128x768xf32>
    %cst_12 = arith.constant 0.000000e+00 : f32
    %17 = vector.broadcast %cst_12 : f32 to vector<128x768xf32>
    %18 = arith.maximumf %16, %17 : vector<128x768xf32>
    %c1 = arith.constant 1 : index
    %c0_13 = arith.constant 0 : index
    %c0_14 = arith.constant 0 : index
    %19 = vector.load %arg3[%c1, %c0_13, %c0_14] : memref<2x768x768xbf16, #tpu.memory_space<vmem>>, vector<1x768x768xbf16>
    %20 = vector.shape_cast %19 : vector<1x768x768xbf16> to vector<768x768xbf16>
    %21 = arith.truncf %18 : vector<128x768xf32> to vector<128x768xbf16>
    %cst_15 = arith.constant dense<0.000000e+00> : vector<128x768xf32>
    %22 = tpu.matmul %21, %20, %cst_15 {dimension_numbers = #tpu.dot_dimension_numbers<[1], [0], [0], [1], [0, 0, 1, 1], [], []>} : vector<128x768xbf16>, vector<768x768xbf16>, vector<128x768xf32> -> vector<128x768xf32>
    %23 = vector.extract_strided_slice %0 {offsets = [2, 0], sizes = [1, 768], strides = [1, 1]} : vector<3x768xf32> to vector<1x768xf32>
    %24 = vector.broadcast %23 : vector<1x768xf32> to vector<128x768xf32>
    %25 = arith.addf %22, %24 : vector<128x768xf32>
    %cst_16 = arith.constant 0.000000e+00 : f32
    %26 = vector.broadcast %cst_16 : f32 to vector<128x768xf32>
    %27 = arith.maximumf %25, %26 : vector<128x768xf32>
    %c0_17 = arith.constant 0 : index
    %c0_18 = arith.constant 0 : index
    %28 = vector.load %arg4[%c0_17, %c0_18] : memref<768x128xbf16, #tpu.memory_space<vmem>>, vector<768x128xbf16>
    %29 = arith.truncf %27 : vector<128x768xf32> to vector<128x768xbf16>
    %cst_19 = arith.constant dense<0.000000e+00> : vector<128x128xf32>
    %30 = tpu.matmul %29, %28, %cst_19 {dimension_numbers = #tpu.dot_dimension_numbers<[1], [0], [0], [1], [0, 0, 1, 1], [], []>} : vector<128x768xbf16>, vector<768x128xbf16>, vector<128x128xf32> -> vector<128x128xf32>
    %31 = vector.extract_strided_slice %1 {offsets = [0, 0], sizes = [1, 128], strides = [1, 1]} : vector<5x128xf32> to vector<1x128xf32>
    %32 = vector.broadcast %31 : vector<1x128xf32> to vector<128x128xf32>
    %33 = arith.addf %30, %32 : vector<128x128xf32>
    %34 = math.tanh %33 : vector<128x128xf32>
    %c0_20 = arith.constant 0 : index
    %c0_21 = arith.constant 0 : index
    %c0_22 = arith.constant 0 : index
    %35 = vector.load %arg5[%c0_20, %c0_21, %c0_22] : memref<4x128x128xbf16, #tpu.memory_space<vmem>>, vector<1x128x128xbf16>
    %36 = vector.shape_cast %35 : vector<1x128x128xbf16> to vector<128x128xbf16>
    %37 = arith.truncf %34 : vector<128x128xf32> to vector<128x128xbf16>
    %cst_23 = arith.constant dense<0.000000e+00> : vector<128x128xf32>
    %38 = tpu.matmul %37, %36, %cst_23 {dimension_numbers = #tpu.dot_dimension_numbers<[1], [0], [0], [1], [0, 0, 1, 1], [], []>} : vector<128x128xbf16>, vector<128x128xbf16>, vector<128x128xf32> -> vector<128x128xf32>
    %39 = vector.extract_strided_slice %1 {offsets = [1, 0], sizes = [1, 128], strides = [1, 1]} : vector<5x128xf32> to vector<1x128xf32>
    %40 = vector.broadcast %39 : vector<1x128xf32> to vector<128x128xf32>
    %41 = arith.addf %38, %40 : vector<128x128xf32>
    %cst_24 = arith.constant 0.000000e+00 : f32
    %42 = vector.broadcast %cst_24 : f32 to vector<128x128xf32>
    %43 = arith.maximumf %41, %42 : vector<128x128xf32>
    %c1_25 = arith.constant 1 : index
    %c0_26 = arith.constant 0 : index
    %c0_27 = arith.constant 0 : index
    %44 = vector.load %arg5[%c1_25, %c0_26, %c0_27] : memref<4x128x128xbf16, #tpu.memory_space<vmem>>, vector<1x128x128xbf16>
    %45 = vector.shape_cast %44 : vector<1x128x128xbf16> to vector<128x128xbf16>
    %46 = arith.truncf %43 : vector<128x128xf32> to vector<128x128xbf16>
    %cst_28 = arith.constant dense<0.000000e+00> : vector<128x128xf32>
    %47 = tpu.matmul %46, %45, %cst_28 {dimension_numbers = #tpu.dot_dimension_numbers<[1], [0], [0], [1], [0, 0, 1, 1], [], []>} : vector<128x128xbf16>, vector<128x128xbf16>, vector<128x128xf32> -> vector<128x128xf32>
    %48 = vector.extract_strided_slice %1 {offsets = [2, 0], sizes = [1, 128], strides = [1, 1]} : vector<5x128xf32> to vector<1x128xf32>
    %49 = vector.broadcast %48 : vector<1x128xf32> to vector<128x128xf32>
    %50 = arith.addf %47, %49 : vector<128x128xf32>
    %cst_29 = arith.constant 0.000000e+00 : f32
    %51 = vector.broadcast %cst_29 : f32 to vector<128x128xf32>
    %52 = arith.maximumf %50, %51 : vector<128x128xf32>
    %c2 = arith.constant 2 : index
    %c0_30 = arith.constant 0 : index
    %c0_31 = arith.constant 0 : index
    %53 = vector.load %arg5[%c2, %c0_30, %c0_31] : memref<4x128x128xbf16, #tpu.memory_space<vmem>>, vector<1x128x128xbf16>
    %54 = vector.shape_cast %53 : vector<1x128x128xbf16> to vector<128x128xbf16>
    %55 = arith.truncf %52 : vector<128x128xf32> to vector<128x128xbf16>
    %cst_32 = arith.constant dense<0.000000e+00> : vector<128x128xf32>
    %56 = tpu.matmul %55, %54, %cst_32 {dimension_numbers = #tpu.dot_dimension_numbers<[1], [0], [0], [1], [0, 0, 1, 1], [], []>} : vector<128x128xbf16>, vector<128x128xbf16>, vector<128x128xf32> -> vector<128x128xf32>
    %57 = vector.extract_strided_slice %1 {offsets = [3, 0], sizes = [1, 128], strides = [1, 1]} : vector<5x128xf32> to vector<1x128xf32>
    %58 = vector.broadcast %57 : vector<1x128xf32> to vector<128x128xf32>
    %59 = arith.addf %56, %58 : vector<128x128xf32>
    %cst_33 = arith.constant 0.000000e+00 : f32
    %60 = vector.broadcast %cst_33 : f32 to vector<128x128xf32>
    %61 = arith.maximumf %59, %60 : vector<128x128xf32>
    %c3 = arith.constant 3 : index
    %c0_34 = arith.constant 0 : index
    %c0_35 = arith.constant 0 : index
    %62 = vector.load %arg5[%c3, %c0_34, %c0_35] : memref<4x128x128xbf16, #tpu.memory_space<vmem>>, vector<1x128x128xbf16>
    %63 = vector.shape_cast %62 : vector<1x128x128xbf16> to vector<128x128xbf16>
    %64 = arith.truncf %61 : vector<128x128xf32> to vector<128x128xbf16>
    %cst_36 = arith.constant dense<0.000000e+00> : vector<128x128xf32>
    %65 = tpu.matmul %64, %63, %cst_36 {dimension_numbers = #tpu.dot_dimension_numbers<[1], [0], [0], [1], [0, 0, 1, 1], [], []>} : vector<128x128xbf16>, vector<128x128xbf16>, vector<128x128xf32> -> vector<128x128xf32>
    %66 = vector.extract_strided_slice %1 {offsets = [4, 0], sizes = [1, 128], strides = [1, 1]} : vector<5x128xf32> to vector<1x128xf32>
    %67 = vector.broadcast %66 : vector<1x128xf32> to vector<128x128xf32>
    %68 = arith.addf %65, %67 : vector<128x128xf32>
    %c0_37 = arith.constant 0 : index
    %c0_38 = arith.constant 0 : index
    %69 = vector.load %arg8[%c0_37, %c0_38] : memref<128x128xf32, #tpu.memory_space<vmem>>, vector<128x128xf32>
    tpu.vector_store %arg8[%c0_37, %c0_38], %68 {strides = array<i32>} : memref<128x128xf32, #tpu.memory_space<vmem>>, vector<128x128xf32>,
    return
  }
  func.func @transform_0(%arg0: i32) -> (i32, i32) {
    %c0_i32 = arith.constant 0 : i32
    %c0_i32_0 = arith.constant 0 : i32
    return %arg0, %c0_i32 : i32, i32
  }
  func.func @transform_1(%arg0: i32) -> (i32, i32) {
    %c0_i32 = arith.constant 0 : i32
    %c0_i32_0 = arith.constant 0 : i32
    %c0_i32_1 = arith.constant 0 : i32
    return %c0_i32, %c0_i32_0 : i32, i32
  }
  func.func @transform_2(%arg0: i32) -> (i32, i32, i32) {
    %c0_i32 = arith.constant 0 : i32
    %c0_i32_0 = arith.constant 0 : i32
    %c0_i32_1 = arith.constant 0 : i32
    %c0_i32_2 = arith.constant 0 : i32
    return %c0_i32, %c0_i32_0, %c0_i32_1 : i32, i32, i32
  }
  func.func @transform_3(%arg0: i32) -> (i32, i32) {
    %c0_i32 = arith.constant 0 : i32
    %c0_i32_0 = arith.constant 0 : i32
    %c0_i32_1 = arith.constant 0 : i32
    return %c0_i32, %c0_i32_0 : i32, i32
  }
  func.func @transform_4(%arg0: i32) -> (i32, i32, i32) {
    %c0_i32 = arith.constant 0 : i32
    %c0_i32_0 = arith.constant 0 : i32
    %c0_i32_1 = arith.constant 0 : i32
    %c0_i32_2 = arith.constant 0 : i32
    return %c0_i32, %c0_i32_0, %c0_i32_1 : i32, i32, i32
  }
  func.func @transform_5(%arg0: i32) -> (i32, i32) {
    %c0_i32 = arith.constant 0 : i32
    %c0_i32_0 = arith.constant 0 : i32
    %c0_i32_1 = arith.constant 0 : i32
    return %c0_i32, %c0_i32_0 : i32, i32
  }
  func.func @transform_6(%arg0: i32) -> (i32, i32) {
    %c0_i32 = arith.constant 0 : i32
    %c0_i32_0 = arith.constant 0 : i32
    %c0_i32_1 = arith.constant 0 : i32
    return %c0_i32, %c0_i32_0 : i32, i32
  }
  func.func @transform_7(%arg0: i32) -> (i32, i32) {
    %c0_i32 = arith.constant 0 : i32
    %c0_i32_0 = arith.constant 0 : i32
    return %arg0, %c0_i32 : i32, i32
  }
}

</mosaic_0001>

<bundles_post_ra>
// kernel: tpu_custom_call.1
= control target key start
LH: loop header
LB: loop body
LE: loop exit
PB: predicated region body
PF: predicated region fallthrough
CT: control target
= control target key end

     0   :  { %12 = vsyncpa [#allocation3], 0  ;;  %s18375_s0 = inlined_call_operand.hbm [shape: bf16[256,1024], index: 0, kind: input, shape index: {}]   ;;  %s18376_s1 = inlined_call_operand.hbm [shape: bf16[1024,768], index: 1, kind: input, shape index: {}]   ;;  %s18377_s2 = inlined_call_operand.hbm [shape: bf16[2,768,768], index: 2, kind: input, shape index: {}]   ;;  %s18378_s3 = inlined_call_operand.hbm [shape: bf16[768,128], index: 3, kind: input, shape index: {}]   ;;  %s18379_s4 = inlined_call_operand.hbm [shape: bf16[4,128,128], index: 4, kind: input, shape index: {}]   ;;  %s18380_s5 = inlined_call_operand.hbm [shape: f32[3,768], index: 5, kind: input, shape index: {}]   ;;  %s18381_s6 = inlined_call_operand.hbm [shape: f32[5,128], index: 6, kind: input, shape index: {}]   ;;  %s18382_s7 = inlined_call_operand.hbm [shape: f32[256,128], index: 7, kind: output, shape index: {}]  }
   0x1   :  { %14 = vsyncpa [#allocation3 + $0x1], 0 }
   0x2   :  { %15 = vsyncpa [#allocation6], 0 }
   0x3   :  { %16 = vsyncpa [#allocation9], 0 }
   0x4   :  { %17 = vsyncpa [#allocation12], 0 }
   0x5   :  { %18 = vsyncpa [#allocation4], 0 }
   0x6   :  { %20 = vsyncpa [#allocation4 + $0x1], 0  ;;  %s16602_s24 = smov 0   ;;  %s16604_s25 = smov 0  }
   0x7   :  { %s16606_s26 = smov 0   ;;  %s16608_s27 = smov 0  }
   0x8 LB: > { %s16546_s28 = smov [#allocation5]   ;;  %s16623_s30 = sadd.s32 4294967295, %s16544_s27   ;;  %s16544_s27 = sphi %s16608_s27, %s18491_s27   ;;  %s16540_s26 = sphi %s16606_s26, %s18490_s26   ;;  %s16536_s25 = sphi %s16604_s25, %s18489_s25   ;;  %s16532_s24 = sphi %s16602_s24, %s18488_s24  }
   0x9   : > { %s221_s29 = sshll.u32 %s16546_s28, 4  ;;  %p12119_p0 = scmp.ge.s32.totalorder %s16544_s27, 1  ;;  %s16628_s29 = int_to_ptr.vmem [resolvable:$true] %s221_s29 }
   0xa   : > { %p18383_p1 = scmp.eq.s32.totalorder %s16623_s30, 0  ;;  %p209_p2 = scmp.lt.s32.totalorder %s16544_s27, 3 }
   0xb   : > { %s16547_s9 = smov [#allocation8]   ;;  %s16548_s12 = smov [#allocation11]  }
   0xc   : > { %p16630_p3 = pnand %p12119_p0, %p209_p2  ;;  %s247_s10 = sshll.u32 %s16547_s9, 4  ;;  %s16643_s10 = int_to_ptr.vmem [resolvable:$true] %s247_s10 }
   0xd   : > { %s16645_s13 = sshll.u32 %s16548_s12, 4  ;;  %s16268_s16 = scalar_lea.hbm %s18376_s1, 49152  ;;  %s275_s13 = int_to_ptr.vmem [resolvable:$true] %s16645_s13 }
   0xe   : > { %s18415_s8 = scalar_select %p16630_p3, 1, 0 }
   0xf   : > { %p14624_p5 = pneg %p16630_p3  ;;  %p16269_p7 = scmp.ne.s32.totalorder %s18376_s1, %s16268_s16 }
  0x10   : > { %p16275_p11 = scmp.lt.u32.totalorder %s16268_s16, %s18376_s1 }
  0x11   : > { %p16639_p6 = pnand %p14624_p5, %p18383_p1 }
  0x13   : > { %p16655_p8 = pneg %p16639_p6 }
  0x15   : > { %p16271_p9 = pnand %p16655_p8, %p16269_p7 }
  0x17   : > { %p16272_p10 = pneg %p16271_p9 }
  0x19   : > { %p16277_p12 = pnand %p16275_p11, %p16272_p10 }
  0x1b   : > { %16280 = shalt.err (!%p16277_p12)
}
  0x1c   : > { %s16281_s22 = scalar_lea.vmem %s16628_s29, 49152  ;;  %p16289_p5 = scmp.lt.s32.totalorder %s16628_s29, %s16628_s29 }
  0x1d   : > { %p16282_p13 = scmp.ne.s32.totalorder %s16628_s29, %s16281_s22  ;;  %p16290_p4 = scmp.lt.s32.totalorder %s16281_s22, %s16281_s22 }
  0x1f   : > { %p16284_p0 = pnand %p16282_p13, %p16655_p8  ;;  %p16291_p7 = por %p16290_p4, %p16289_p5 }
  0x21   : > { %p16285_p2 = pneg %p16284_p0 }
  0x23   : > { %p16292_p9 = pnand %p16291_p7, %p16285_p2 }
  0x25   : > { %16295 = shalt.err (!%p16292_p9)
}
  0x26   : > { %s16549_s23 = smov 384   ;;  %s16550_s28 = smov 24  }
  0x27   : > { %14627 = dma.hbm_to_vmem [thread:$0]  (!%p16639_p6), %s18376_s1, 49152, %s16628_s29, [#allocation6], %s16549_s23, %s16549_s23, %s16550_s28  }
  0x28   : > { %s16296_s16 = scalar_lea.hbm %s18378_s3, 6144 }
  0x29   : > { %p16297_p4 = scmp.ne.s32.totalorder %s18378_s3, %s16296_s16  ;;  %p16303_p12 = scmp.lt.u32.totalorder %s16296_s16, %s18378_s3 }
  0x2b   : > { %p16299_p10 = pnand %p16297_p4, %p16655_p8 }
  0x2d   : > { %p16300_p11 = pneg %p16299_p10 }
  0x2f   : > { %p16305_p13 = pnand %p16303_p12, %p16300_p11 }
  0x31   : > { %16308 = shalt.err (!%p16305_p13)
}
  0x32   : > { %s16309_s29 = scalar_lea.vmem %s16643_s10, 6144  ;;  %p16317_p7 = scmp.lt.s32.totalorder %s16643_s10, %s16643_s10 }
  0x33   : > { %p16310_p0 = scmp.ne.s32.totalorder %s16643_s10, %s16309_s29  ;;  %p16318_p9 = scmp.lt.s32.totalorder %s16309_s29, %s16309_s29 }
  0x35   : > { %p16312_p2 = pnand %p16310_p0, %p16655_p8  ;;  %p16319_p4 = por %p16318_p9, %p16317_p7 }
  0x37   : > { %p16313_p5 = pneg %p16312_p2 }
  0x39   : > { %p16320_p10 = pnand %p16319_p4, %p16313_p5 }
  0x3b   : > { %16323 = shalt.err (!%p16320_p10)
}
  0x3c   : > { %s18385_s22 = smov 64   ;;  %s18386_s9 = smov 4  }
  0x3d   : > { %14633 = dma.hbm_to_vmem [thread:$0]  (!%p16639_p6), %s18378_s3, 6144, %s16643_s10, [#allocation9], %s18385_s22, %s18385_s22, %s18386_s9  }
  0x3e   : > { %s16324_s17 = scalar_lea.hbm %s18380_s5, 384 }
  0x3f   : > { %p16325_p11 = scmp.ne.s32.totalorder %s18380_s5, %s16324_s17  ;;  %p16331_p0 = scmp.lt.u32.totalorder %s16324_s17, %s18380_s5 }
  0x41   : > { %p16327_p12 = pnand %p16325_p11, %p16655_p8 }
  0x43   : > { %p16328_p13 = pneg %p16327_p12 }
  0x45   : > { %p16333_p2 = pnand %p16331_p0, %p16328_p13 }
  0x47   : > { %16336 = shalt.err (!%p16333_p2)
}
  0x48   : > { %s16337_s12 = scalar_lea.vmem %s275_s13, 384  ;;  %p16345_p4 = scmp.lt.s32.totalorder %s275_s13, %s275_s13 }
  0x49   : > { %p16338_p5 = scmp.ne.s32.totalorder %s275_s13, %s16337_s12  ;;  %p16346_p10 = scmp.lt.s32.totalorder %s16337_s12, %s16337_s12 }
  0x4b   : > { %p16340_p7 = pnand %p16338_p5, %p16655_p8  ;;  %p16347_p1 = por %p16346_p10, %p16345_p4 }
  0x4d   : > { %p16341_p9 = pneg %p16340_p7 }
  0x4f   : > { %p16348_p3 = pnand %p16347_p1, %p16341_p9 }
  0x51   : > { %16351 = shalt.err (!%p16348_p3)
}
  0x52   : > { %14639 = dma.hbm_to_vmem [thread:$0]  (!%p16639_p6), %s18380_s5, 384, %s275_s13, [#allocation12]  }
  0x53   : > { %s16553_s15 = smov [#allocation7]   ;;  %s16554_s17 = smov [#allocation10]  }
  0x54   : > { %s234_s16 = sshll.u32 %s16553_s15, 4  ;;  %s260_s18 = sshll.u32 %s16554_s17, 4  ;;  %s235_s16 = int_to_ptr.vmem [resolvable:$true] %s234_s16  ;;  %s261_s18 = int_to_ptr.vmem [resolvable:$true] %s260_s18 }
  0x55   : > { %s16352_s29 = scalar_lea.hbm %s18377_s2, 73728 }
  0x56   : > { %p16353_p1 = scmp.ne.s32.totalorder %s18377_s2, %s16352_s29  ;;  %p16359_p12 = scmp.lt.u32.totalorder %s16352_s29, %s18377_s2 }
  0x58   : > { %p16355_p3 = pnand %p16353_p1, %p16655_p8 }
  0x5a   : > { %p16356_p11 = pneg %p16355_p3 }
  0x5c   : > { %p16361_p13 = pnand %p16359_p12, %p16356_p11 }
  0x5e   : > { %16364 = shalt.err (!%p16361_p13)
}
  0x5f   : > { %s16365_s13 = scalar_lea.vmem %s235_s16, 73728  ;;  %p16373_p7 = scmp.lt.s32.totalorder %s235_s16, %s235_s16 }
  0x60   : > { %p16366_p0 = scmp.ne.s32.totalorder %s235_s16, %s16365_s13  ;;  %p16374_p9 = scmp.lt.s32.totalorder %s16365_s13, %s16365_s13 }
  0x62   : > { %p16368_p2 = pnand %p16366_p0, %p16655_p8  ;;  %p16375_p4 = por %p16374_p9, %p16373_p7 }
  0x64   : > { %p16369_p5 = pneg %p16368_p2 }
  0x66   : > { %p16376_p10 = pnand %p16375_p4, %p16369_p5 }
  0x68   : > { %16379 = shalt.err (!%p16376_p10)
}
  0x69   : > { %14630 = dma.hbm_to_vmem [thread:$0]  (!%p16639_p6), %s18377_s2, 73728, %s235_s16, [#allocation6], %s16549_s23, %s16549_s23, %s16550_s28  }
  0x6a   : > { %s16380_s17 = scalar_lea.hbm %s18379_s4, 4096 }
  0x6b   : > { %p16381_p1 = scmp.ne.s32.totalorder %s18379_s4, %s16380_s17  ;;  %p16387_p12 = scmp.lt.u32.totalorder %s16380_s17, %s18379_s4 }
  0x6d   : > { %p16383_p3 = pnand %p16381_p1, %p16655_p8 }
  0x6f   : > { %p16384_p11 = pneg %p16383_p3 }
  0x71   : > { %p16389_p13 = pnand %p16387_p12, %p16384_p11 }
  0x73   : > { %16392 = shalt.err (!%p16389_p13)
}
  0x74   : > { %s16393_s10 = scalar_lea.vmem %s261_s18, 4096  ;;  %p16401_p7 = scmp.lt.s32.totalorder %s261_s18, %s261_s18 }
  0x75   : > { %p16394_p0 = scmp.ne.s32.totalorder %s261_s18, %s16393_s10  ;;  %p16402_p9 = scmp.lt.s32.totalorder %s16393_s10, %s16393_s10 }
  0x77   : > { %p16396_p2 = pnand %p16394_p0, %p16655_p8  ;;  %p16403_p4 = por %p16402_p9, %p16401_p7 }
  0x79   : > { %p16397_p5 = pneg %p16396_p2 }
  0x7b   : > { %p16404_p10 = pnand %p16403_p4, %p16397_p5 }
  0x7d   : > { %16407 = shalt.err (!%p16404_p10)
}
  0x7e   : > { %s18418_s23 = smov 4   ;;  %s18419_s28 = smov 64  }
  0x7f   : > { %14636 = dma.hbm_to_vmem [thread:$0]  (!%p16639_p6), %s18379_s4, 4096, %s261_s18, [#allocation9], %s18419_s28, %s18419_s28, %s18418_s23  }
  0x80   : > { %s16555_s22 = smov [#allocation13]   ;;  %s16408_s17 = scalar_lea.hbm %s18381_s6, 128 }
  0x81   : > { %s285_s9 = sshll.u32 %s16555_s22, 4  ;;  %p16409_p1 = scmp.ne.s32.totalorder %s18381_s6, %s16408_s17  ;;  %s286_s9 = int_to_ptr.vmem [resolvable:$true] %s285_s9 }
  0x82   : > { %p16415_p12 = scmp.lt.u32.totalorder %s16408_s17, %s18381_s6 }
  0x83   : > { %p16411_p3 = pnand %p16409_p1, %p16655_p8 }
  0x85   : > { %p16412_p11 = pneg %p16411_p3 }
  0x87   : > { %p16417_p13 = pnand %p16415_p12, %p16412_p11 }
  0x89   : > { %16420 = shalt.err (!%p16417_p13)
}
  0x8a   : > { %s16421_s18 = scalar_lea.vmem %s286_s9, 128  ;;  %p16429_p7 = scmp.lt.s32.totalorder %s286_s9, %s286_s9 }
  0x8b   : > { %p16422_p0 = scmp.ne.s32.totalorder %s286_s9, %s16421_s18  ;;  %p16430_p9 = scmp.lt.s32.totalorder %s16421_s18, %s16421_s18 }
  0x8d   : > { %p16424_p2 = pnand %p16422_p0, %p16655_p8  ;;  %p16431_p4 = por %p16430_p9, %p16429_p7 }
  0x8f   : > { %p16425_p5 = pneg %p16424_p2 }
  0x91   : > { %p16432_p10 = pnand %p16431_p4, %p16425_p5 }
  0x93   : > { %16435 = shalt.err (!%p16432_p10)
}
  0x94   : > { %14642 = dma.hbm_to_vmem [thread:$0]  (!%p16639_p6), %s18381_s6, 128, %s286_s9, [#allocation12]  }
  0x95   : > { %s12118_s19 = sadd.s32 4294967294, %s16544_s27   ;;  %s16786_s11 = sadd.s32 1, %s16544_s27  }
  0x96   : > { %s30_s28 = ssub.s32 %s16544_s27, %s16786_s11  ;;  %s33_s16 = sadd.s32 1, %s16540_s26 }
  0x97   : > { %p31_p8 = scmp.eq.s32.totalorder %s30_s28, 0  ;;  %p40_p1 = scmp.ne.s32.totalorder %s16540_s26, %s16536_s25 }
  0x98   : > { %p41_p3 = scmp.eq.s32.totalorder %s16544_s27, 0  ;;  %p46_p11 = scmp.ne.s32.totalorder %s16536_s25, %s16532_s24 }
  0x99   : > { %s16797_s13 = scalar_select %p31_p8, %s16540_s26, %s33_s16  }
  0x9a   : > { %p16799_p12 = por %p41_p3, %p40_p1  ;;  %p18421_p13 = scmp.eq.s32.totalorder %s16623_s30, 0 }
  0x9b   : > { %p196_p0 = scmp.eq.s32.totalorder %s16623_s30, 1  ;;  %p202_p2 = scmp.eq.s32.totalorder %s12118_s19, 1 }
  0x9c   : > { %p16805_p6 = por %p18421_p13, %p46_p11  ;;  %p14657_p5 = scmp.lt.s32.totalorder %s16544_s27, 2 }
  0x9d   : > { %s296_s14 = sand.u32 1, %s16540_s26   ;;  %p16812_p7 = por %p196_p0, %p40_p1 }
  0x9e   : > { %p16816_p9 = por %p202_p2, %p46_p11  ;;  %s12127_s20 = sshll.u32 %s296_s14, 9 }
  0x9f   : > { %s18423_s15 = scalar_select %p16812_p7, 1, 0 }
  0xa0   : > { %s18424_s17 = scalar_select %p16816_p9, 1, 0 }
  0xa1   : > { %s13250_s21 = sshll.u32 %s16544_s27, 13  ;;  %s300_s10 = scalar_lea.vmem [#allocation2], %s12127_s20 }
  0xa2   : > { %s16824_s18 = scalar_lea.hbm %s18375_s0, %s13250_s21  ;;  %s308_s23 = sshll.u32 %s300_s10, 4  ;;  %s16826_s23 = int_to_ptr.vmem [resolvable:$true] %s308_s23 }
  0xa3   : > { %p16830_p4 = pnand %p14657_p5, %p16799_p12  ;;  %s16834_s28 = scalar_lea.sflag [#allocation3], %s296_s14 }
  0xa4   : > { %s16436_s16 = scalar_lea.hbm %s16824_s18, 8192  ;;  %s16441_s22 = scalar_lea.hbm %s18375_s0, 16384 }
  0xa5   : > { %p16437_p10 = scmp.ne.s32.totalorder %s16824_s18, %s16436_s16  ;;  %p16438_p8 = pneg %p16830_p4 }
  0xa6   : > { %p16442_p11 = scmp.lt.u32.totalorder %s16824_s18, %s18375_s0  ;;  %p16443_p12 = scmp.lt.u32.totalorder %s16441_s22, %s16436_s16 }
  0xa7   : > { %p16439_p1 = pnand %p16438_p8, %p16437_p10  ;;  %p16445_p0 = scmp.lt.u32.totalorder %s16436_s16, %s16824_s18 }
  0xa8   : > { %p16444_p13 = por %p16443_p12, %p16442_p11 }
  0xa9   : > { %p16440_p3 = pneg %p16439_p1 }
  0xaa   : > { %p16446_p2 = por %p16445_p0, %p16444_p13 }
  0xac   : > { %p16447_p5 = pnand %p16446_p2, %p16440_p3 }
  0xae   : > { %16450 = shalt.err (!%p16447_p5)
}
  0xaf   : > { %s16451_s14 = scalar_lea.vmem %s16826_s23, 8192  ;;  %s16556_s10 = smov [#allocation2]  }
  0xb0   : > { %p16452_p10 = scmp.ne.s32.totalorder %s16826_s23, %s16451_s14  ;;  %s16456_s20 = sshll.u32 %s16556_s10, 4  ;;  %s16457_s20 = int_to_ptr.vmem [resolvable:$false] %s16456_s20 }
  0xb1   : > { %s16458_s21 = scalar_lea.vmem %s16457_s20, 16384  ;;  %p16459_p7 = scmp.lt.s32.totalorder %s16826_s23, %s16457_s20 }
  0xb2   : > { %p16454_p1 = pnand %p16452_p10, %p16438_p8  ;;  %p16460_p11 = scmp.lt.s32.totalorder %s16458_s21, %s16451_s14 }
  0xb4   : > { %p16455_p9 = pneg %p16454_p1  ;;  %p16461_p12 = por %p16460_p11, %p16459_p7 }
  0xb6   : > { %p16462_p13 = pnand %p16461_p12, %p16455_p9 }
  0xb8   : > { %16465 = shalt.err (!%p16462_p13)
}
  0xb9   : > { %s16557_s16 = smov 512   ;;  %s16558_s22 = smov 32  }
  0xba   : > { %14646 = dma.hbm_to_vmem [thread:$0]  (!%p16830_p4), %s16824_s18, 8192, %s16826_s23, %s16834_s28, %s16557_s16, %s16557_s16, %s16558_s22  }
  0xbb   : > { %p18426_p8 = scmp.ne.s32.totalorder %s18415_s8, 0 }
  0xbd   : > { %320 = sbr.rel (%p18426_p8) target bundleno = 3024 (0xbd0), region = 48 }
  0xc4   : > { %s16865_s29 = sand.u32 1, %s16536_s25  }
  0xc5   : > { %s12132_s12 = sshll.u32 %s16865_s29, 9  ;;  %s323_s14 = scalar_lea.sflag [#allocation3], %s16865_s29 }
  0xc6   : > { %s16869_s10 = scalar_lea.vmem [#allocation2], %s12132_s12 }
  0xc7   : > { %16511 = dma.done.wait (%p16805_p6), %s323_s14, 8192  }
  0xc8   : > { %16513 = vsyncadd (%p16805_p6), %s323_s14, 4294959104  ;;  %p18427_p7 = scmp.eq.s32.totalorder %s16623_s30, 0 }
  0xca   : > { %16515 = dma.done.wait (%p18427_p7), [#allocation6], 122880   ;;  %p18428_p9 = pmov %p18427_p7 }
  0xcb   : > { %p18429_p4 = pmov %p18427_p7 }
  0xcc   : > { %16517 = vsyncadd (%p18428_p9), [#allocation6], 4294844416 }
  0xcd   : > { %16519 = dma.done.wait (%p18429_p4), [#allocation9], 10240   ;;  %p18430_p3 = pmov %p18429_p4 }
  0xcf   : > { %16521 = vsyncadd (%p18430_p3), [#allocation9], 4294957056  ;;  %p18431_p0 = pmov %p18430_p3 }
  0xd1   : > { %16523 = dma.done.wait (%p18431_p0), [#allocation12], 512   ;;  %p18432_p2 = pmov %p18431_p0 }
  0xd2   : > { %v14711_v0 = vld [vmem:[#allocation5 + $0x4] ss:$24 sps:$4 sm:$0xff]   ;;  %v14715_v2 = vld [vmem:[#allocation5] ss:$24 sps:$4 sm:$0xff]   ;;  %v14717_v4 = vld [vmem:[#allocation5 + $0x34] ss:$24 sps:$4 sm:$0xff]  }
  0xd3   : > { %16525 = vsyncadd (%p18432_p2), [#allocation12], 4294966784  ;;  %v14713_v1 = vld [vmem:[#allocation5 + $0xc] ss:$24 sps:$4 sm:$0xff]   ;;  %3133 = vmatprep.subr.bf16.mxu0 %v14711_v0  ;;  %v14716_v3 = vld [vmem:[#allocation5 + $0x8] ss:$24 sps:$4 sm:$0xff]  }
  0xd4   : > { %3585 = vmatprep.subr.bf16.mxu1 %v14713_v1  ;;  %3134 = vmatpush1.bf16.msra.mxu0 %v14715_v2  ;;  %v14719_v5 = vld [vmem:[#allocation5 + $0x3c] ss:$24 sps:$4 sm:$0xff]   ;;  %v14721_v6 = vld [vmem:[#allocation5 + $0x30] ss:$24 sps:$4 sm:$0xff]   ;;  %v14725_v9 = vld [vmem:[#allocation5 + $0x6c] ss:$24 sps:$4 sm:$0xff]  }
  0xd5   : > { %3586 = vmatpush1.bf16.msra.mxu1 %v14716_v3  ;;  %3135 = vmatprep.subr.bf16.mxu0 %v14717_v4  ;;  %v14722_v7 = vld [vmem:[#allocation5 + $0x38] ss:$24 sps:$4 sm:$0xff]   ;;  %v14723_v8 = vld [vmem:[#allocation5 + $0x64] ss:$24 sps:$4 sm:$0xff]   ;;  %v14728_v11 = vld [vmem:[#allocation5 + $0x68] ss:$24 sps:$4 sm:$0xff]  }
  0xd6   : > { %3587 = vmatprep.subr.bf16.mxu1 %v14719_v5  ;;  %v14727_v10 = vld [vmem:[#allocation5 + $0x60] ss:$24 sps:$4 sm:$0xff]   ;;  %v14729_v12 = vld [vmem:[#allocation5 + $0x94] ss:$24 sps:$4 sm:$0xff]   ;;  %v14733_v14 = vld [vmem:[#allocation5 + $0x90] ss:$24 sps:$4 sm:$0xff]  }
  0xd7   : > { %v14731_v13 = vld [vmem:[#allocation5 + $0x9c] ss:$24 sps:$4 sm:$0xff]   ;;  %v14734_v15 = vld [vmem:[#allocation5 + $0x98] ss:$24 sps:$4 sm:$0xff]   ;;  %v14737_v17 = vld [vmem:[#allocation5 + $0xcc] ss:$24 sps:$4 sm:$0xff]  }
  0xd8   : > { %3136 = vmatpush1.bf16.msra.mxu0 %v14721_v6  ;;  %v14735_v16 = vld [vmem:[#allocation5 + $0xc4] ss:$24 sps:$4 sm:$0xff]   ;;  %v14739_v18 = vld [vmem:[#allocation5 + $0xc0] ss:$24 sps:$4 sm:$0xff]   ;;  %v14741_v20 = vld [vmem:[#allocation5 + $0xf4] ss:$24 sps:$4 sm:$0xff]  }
  0xd9   : > { %3588 = vmatpush1.bf16.msra.mxu1 %v14722_v7  ;;  %3137 = vmatprep.subr.bf16.mxu0 %v14723_v8  ;;  %v14740_v19 = vld [vmem:[#allocation5 + $0xc8] ss:$24 sps:$4 sm:$0xff]   ;;  %v14743_v21 = vld [vmem:[#allocation5 + $0xfc] ss:$24 sps:$4 sm:$0xff]   ;;  %v14746_v23 = vld [vmem:[#allocation5 + $0xf8] ss:$24 sps:$4 sm:$0xff]  }
  0xda   : > { %3589 = vmatprep.subr.bf16.mxu1 %v14725_v9  ;;  %v14745_v22 = vld [vmem:[#allocation5 + $0xf0] ss:$24 sps:$4 sm:$0xff]   ;;  %v14747_v24 = vld [vmem:[#allocation5 + $0x124] ss:$24 sps:$4 sm:$0xff]   ;;  %v14751_v26 = vld [vmem:[#allocation5 + $0x120] ss:$24 sps:$4 sm:$0xff]  }
  0xdb   : > { %v14749_v25 = vld [vmem:[#allocation5 + $0x12c] ss:$24 sps:$4 sm:$0xff]   ;;  %v14752_v27 = vld [vmem:[#allocation5 + $0x128] ss:$24 sps:$4 sm:$0xff]   ;;  %v14755_v29 = vld [vmem:[#allocation5 + $0x15c] ss:$24 sps:$4 sm:$0xff]  }
  0xdc   : > { %3138 = vmatpush1.bf16.msra.mxu0 %v14727_v10  ;;  %v14753_v28 = vld [vmem:[#allocation5 + $0x154] ss:$24 sps:$4 sm:$0xff]   ;;  %v14757_v30 = vld [vmem:[#allocation5 + $0x150] ss:$24 sps:$4 sm:$0xff]   ;;  %v14759_v32 = vld [vmem:[#allocation5 + $0x184] ss:$24 sps:$4 sm:$0xff]  }
  0xdd   : > { %3590 = vmatpush1.bf16.msra.mxu1 %v14728_v11  ;;  %3139 = vmatprep.subr.bf16.mxu0 %v14729_v12  ;;  %v14758_v31 = vld [vmem:[#allocation5 + $0x158] ss:$24 sps:$4 sm:$0xff]   ;;  %v14761_v33 = vld [vmem:[#allocation5 + $0x18c] ss:$24 sps:$4 sm:$0xff]   ;;  %v14764_v35 = vld [vmem:[#allocation5 + $0x188] ss:$24 sps:$4 sm:$0xff]  }
  0xde   : > { %3591 = vmatprep.subr.bf16.mxu1 %v14731_v13  ;;  %v14763_v34 = vld [vmem:[#allocation5 + $0x180] ss:$24 sps:$4 sm:$0xff]   ;;  %v14765_v36 = vld [vmem:[#allocation5 + $0x1b4] ss:$24 sps:$4 sm:$0xff]   ;;  %v14769_v38 = vld [vmem:[#allocation5 + $0x1b0] ss:$24 sps:$4 sm:$0xff]  }
  0xdf   : > { %v14767_v37 = vld [vmem:[#allocation5 + $0x1bc] ss:$24 sps:$4 sm:$0xff]   ;;  %v14770_v39 = vld [vmem:[#allocation5 + $0x1b8] ss:$24 sps:$4 sm:$0xff]   ;;  %v14773_v41 = vld [vmem:[#allocation5 + $0x1ec] ss:$24 sps:$4 sm:$0xff]  }
  0xe0   : > { %3140 = vmatpush1.bf16.msra.mxu0 %v14733_v14  ;;  %v14771_v40 = vld [vmem:[#allocation5 + $0x1e4] ss:$24 sps:$4 sm:$0xff]   ;;  %v14775_v42 = vld [vmem:[#allocation5 + $0x1e0] ss:$24 sps:$4 sm:$0xff]   ;;  %v14777_v44 = vld [vmem:[#allocation5 + $0x214] ss:$24 sps:$4 sm:$0xff]  }
  0xe1   : > { %3592 = vmatpush1.bf16.msra.mxu1 %v14734_v15  ;;  %3141 = vmatprep.subr.bf16.mxu0 %v14735_v16  ;;  %v14776_v43 = vld [vmem:[#allocation5 + $0x1e8] ss:$24 sps:$4 sm:$0xff]   ;;  %v14779_v45 = vld [vmem:[#allocation5 + $0x21c] ss:$24 sps:$4 sm:$0xff]   ;;  %v14782_v49 = vld [vmem:[#allocation5 + $0x218] ss:$24 sps:$4 sm:$0xff]  }
  0xe2   : > { %3593 = vmatprep.subr.bf16.mxu1 %v14737_v17  ;;  %v388_v46 = vld [vmem:[%s16869_s10] sm:$0xff]  ;;  %v14781_v48 = vld [vmem:[#allocation5 + $0x210] ss:$24 sps:$4 sm:$0xff]   ;;  %v14789_v55 = vld [vmem:[#allocation5 + $0x274] ss:$24 sps:$4 sm:$0xff]   ;;  %s12139_s8 = sshll.u32 %s16865_s29, 7 }
  0xe3   : > { %v392_v47 = vld [vmem:[%s16869_s10 + $0x20] sm:$0xff]  ;;  %v14791_v56 = vld [vmem:[#allocation5 + $0x27c] ss:$24 sps:$4 sm:$0xff]   ;;  %v14793_v57 = vld [vmem:[#allocation5 + $0x270] ss:$24 sps:$4 sm:$0xff]   ;;  %s18306_s9 = scalar_lea.vmem [#allocation14], %s12139_s8 }
  0xe4   : > { %3142 = vmatpush1.bf16.msra.mxu0 %v14739_v18  ;;  %v16889_v50 = vcombine.high %v388_v46, %v392_v47  ;;  %v14783_v51 = vld [vmem:[#allocation5 + $0x244] ss:$24 sps:$4 sm:$0xff]   ;;  %v14787_v53 = vld [vmem:[#allocation5 + $0x240] ss:$24 sps:$4 sm:$0xff]   ;;  %v14801_v63 = vld [vmem:[#allocation5 + $0x2d4] ss:$24 sps:$4 sm:$0xff]   ;;  %v16893_v7 = vcombine.low %v388_v46, %v392_v47 }
  0xe5   : > { %3594 = vmatpush1.bf16.msra.mxu1 %v14740_v19  ;;  %3143 = vmatprep.subr.bf16.mxu0 %v14741_v20  ;;  %v14785_v52 = vld [vmem:[#allocation5 + $0x24c] ss:$24 sps:$4 sm:$0xff]   ;;  %v14788_v54 = vld [vmem:[#allocation5 + $0x248] ss:$24 sps:$4 sm:$0xff]   ;;  %v14794_v58 = vld [vmem:[#allocation5 + $0x278] ss:$24 sps:$4 sm:$0xff]  }
  0xe6   : > { %3595 = vmatprep.subr.bf16.mxu1 %v14743_v21  ;;  %3165 = vmatprep.mubr.bf16.mxu0 %v16889_v50  ;;  %v14795_v59 = vld [vmem:[#allocation5 + $0x2a4] ss:$24 sps:$4 sm:$0xff]   ;;  %v14799_v61 = vld [vmem:[#allocation5 + $0x2a0] ss:$24 sps:$4 sm:$0xff]   ;;  %v14805_v1 = vld [vmem:[#allocation5 + $0x2d0] ss:$24 sps:$4 sm:$0xff]  }
  0xe7   : > { %3617 = vmatprep.mubr.bf16.mxu1 %v16889_v50  ;;  %v14797_v60 = vld [vmem:[#allocation5 + $0x2ac] ss:$24 sps:$4 sm:$0xff]   ;;  %v14800_v62 = vld [vmem:[#allocation5 + $0x2a8] ss:$24 sps:$4 sm:$0xff]   ;;  %v14803_v0 = vld [vmem:[#allocation5 + $0x2dc] ss:$24 sps:$4 sm:$0xff]  }
  0xe8   : > { %3144 = vmatpush1.bf16.msra.mxu0 %v14745_v22  ;;  %v14806_v2 = vld [vmem:[#allocation5 + $0x2d8] ss:$24 sps:$4 sm:$0xff]   ;;  %v14809_v3 = vld [vmem:[#allocation5 + $0x304] ss:$24 sps:$4 sm:$0xff]   ;;  %v14810_v6 = vld [vmem:[#allocation5 + $0x308] ss:$24 sps:$4 sm:$0xff]  }
  0xe9   : > { %3596 = vmatpush1.bf16.msra.mxu1 %v14746_v23  ;;  %3145 = vmatprep.subr.bf16.mxu0 %v14747_v24  ;;  %v14812_v4 = vld [vmem:[#allocation5 + $0x30c] ss:$24 sps:$4 sm:$0xff]   ;;  %v14807_v5 = vld [vmem:[#allocation5 + $0x300] ss:$24 sps:$4 sm:$0xff]   ;;  %v14818_v11 = vld [vmem:[#allocation5 + $0x33c] ss:$24 sps:$4 sm:$0xff]  }
  0xea   : > { %3597 = vmatprep.subr.bf16.mxu1 %v14749_v25  ;;  %v396_v8 = vld [vmem:[%s16869_s10 + $0x40] sm:$0xff]  ;;  %v14815_v10 = vld [vmem:[#allocation5 + $0x334] ss:$24 sps:$4 sm:$0xff]   ;;  %v14813_v13 = vld [vmem:[#allocation5 + $0x330] ss:$24 sps:$4 sm:$0xff]   ;;  %s13251_s18 = sshll.u32 %s16623_s30, 11 }
  0xeb   : > { %v400_v9 = vld [vmem:[%s16869_s10 + $0x60] sm:$0xff]  ;;  %v14816_v14 = vld [vmem:[#allocation5 + $0x338] ss:$24 sps:$4 sm:$0xff]   ;;  %v14827_v22 = vld [vmem:[#allocation5 + $0x394] ss:$24 sps:$4 sm:$0xff]   ;;  %s11988_s23 = sshll.u32 %s18306_s9, 4  ;;  %s18326_s20 = scalar_lea.hbm %s18382_s7, %s13251_s18  ;;  %s18328_s23 = int_to_ptr.vmem [resolvable:$true] %s11988_s23 }
  0xec   : > { %3146 = vmatpush1.bf16.msra.mxu0 %v14751_v26  ;;  %v16897_v12 = vcombine.high %v396_v8, %v400_v9  ;;  %v14821_v15 = vld [vmem:[#allocation5 + $0x364] ss:$24 sps:$4 sm:$0xff]   ;;  %v16904_v18 = vcombine.low %v396_v8, %v400_v9  ;;  %v14819_v20 = vld [vmem:[#allocation5 + $0x360] ss:$24 sps:$4 sm:$0xff]   ;;  %v14825_v25 = vld [vmem:[#allocation5 + $0x390] ss:$24 sps:$4 sm:$0xff]  }
  0xed   : > { %3598 = vmatpush1.bf16.msra.mxu1 %v14752_v27  ;;  %3147 = vmatprep.subr.bf16.mxu0 %v14753_v28  ;;  %v14824_v16 = vld [vmem:[#allocation5 + $0x36c] ss:$24 sps:$4 sm:$0xff]   ;;  %v14822_v21 = vld [vmem:[#allocation5 + $0x368] ss:$24 sps:$4 sm:$0xff]   ;;  %v14830_v23 = vld [vmem:[#allocation5 + $0x39c] ss:$24 sps:$4 sm:$0xff]  }
  0xee   : > { %3599 = vmatprep.subr.bf16.mxu1 %v14755_v29  ;;  %v404_v17 = vld [vmem:[%s16869_s10 + $0x80] sm:$0xff]  ;;  %v14828_v26 = vld [vmem:[#allocation5 + $0x398] ss:$24 sps:$4 sm:$0xff]   ;;  %v14851_v46 = vld [vmem:[#allocation5 + $0x454] ss:$24 sps:$4 sm:$0xff]   ;;  %s11975_s30 = scalar_lea.sflag [#allocation4], %s16865_s29 }
  0xef   : > { %v408_v19 = vld [vmem:[%s16869_s10 + $0xa0] sm:$0xff]  ;;  %v14854_v47 = vld [vmem:[#allocation5 + $0x45c] ss:$24 sps:$4 sm:$0xff]   ;;  %s16466_s21 = scalar_lea.vmem %s18328_s23, 2048  ;;  %p18485_p5 = scmp.ne.s32.totalorder %s18423_s15, 0 }
  0xf0   : > { %3148 = vmatpush1.bf16.msra.mxu0 %v14757_v30  ;;  %v16907_v24 = vcombine.high %v404_v17, %v408_v19  ;;  %v14833_v27 = vld [vmem:[#allocation5 + $0x3c4] ss:$24 sps:$4 sm:$0xff]   ;;  %v16914_v30 = vcombine.low %v404_v17, %v408_v19  ;;  %v14875_v8 = vld [vmem:[#allocation5 + $0x514] ss:$24 sps:$4 sm:$0xff]   ;;  %v14882_v17 = vld [vmem:[#allocation5 + $0x548] ss:$24 sps:$4 sm:$0xff]   ;;  %p16467_p6 = scmp.ne.s32.totalorder %s18328_s23, %s16466_s21 }
  0xf1   : > { %3600 = vmatpush1.bf16.msra.mxu1 %v14758_v31  ;;  %3149 = vmatprep.subr.bf16.mxu0 %v14759_v32  ;;  %v14836_v28 = vld [vmem:[#allocation5 + $0x3cc] ss:$24 sps:$4 sm:$0xff]   ;;  %v14831_v32 = vld [vmem:[#allocation5 + $0x3c0] ss:$24 sps:$4 sm:$0xff]   ;;  %v14878_v9 = vld [vmem:[#allocation5 + $0x51c] ss:$24 sps:$4 sm:$0xff]  }
  0xf2   : > { %3601 = vmatprep.subr.bf16.mxu1 %v14761_v33  ;;  %v412_v29 = vld [vmem:[%s16869_s10 + $0xc0] sm:$0xff]  ;;  %p16468_p10 = pnand %p16467_p6, %p18485_p5  ;;  %s16559_s16 = smov [#allocation14]  }
  0xf3   : > { %v416_v31 = vld [vmem:[%s16869_s10 + $0xe0] sm:$0xff]  ;;  %s16470_s22 = sshll.u32 %s16559_s16, 4  ;;  %s16471_s22 = int_to_ptr.vmem [resolvable:$false] %s16470_s22 }
  0xf4   : > { %3150 = vmatpush1.bf16.msra.mxu0 %v14763_v34  ;;  %v14834_v33 = vld [vmem:[#allocation5 + $0x3c8] ss:$24 sps:$4 sm:$0xff]   ;;  %v14839_v34 = vld [vmem:[#allocation5 + $0x3f4] ss:$24 sps:$4 sm:$0xff]   ;;  %p16469_p1 = pneg %p16468_p10  ;;  %s16472_s12 = scalar_lea.vmem %s16471_s22, 4096 }
  0xf5   : > { %3602 = vmatpush1.bf16.msra.mxu1 %v14764_v35  ;;  %3151 = vmatprep.subr.bf16.mxu0 %v14765_v36  ;;  %v14842_v35 = vld [vmem:[#allocation5 + $0x3fc] ss:$24 sps:$4 sm:$0xff]   ;;  %v16917_v36 = vcombine.high %v412_v29, %v416_v31  ;;  %p16473_p11 = scmp.lt.s32.totalorder %s18328_s23, %s16471_s22  ;;  %p16474_p12 = scmp.lt.s32.totalorder %s16472_s12, %s16466_s21 }
  0xf6   : > { %3603 = vmatprep.subr.bf16.mxu1 %v14767_v37  ;;  %v14837_v37 = vld [vmem:[#allocation5 + $0x3f0] ss:$24 sps:$4 sm:$0xff]  }
  0xf7   : > { %p16475_p13 = por %p16474_p12, %p16473_p11 }
  0xf8   : > { %3152 = vmatpush1.bf16.msra.mxu0 %v14769_v38  ;;  %v14840_v38 = vld [vmem:[#allocation5 + $0x3f8] ss:$24 sps:$4 sm:$0xff]  }
  0xf9   : > { %3604 = vmatpush1.bf16.msra.mxu1 %v14770_v39  ;;  %3153 = vmatprep.subr.bf16.mxu0 %v14771_v40  ;;  %v14845_v39 = vld [vmem:[#allocation5 + $0x424] ss:$24 sps:$4 sm:$0xff]   ;;  %p16476_p8 = pnand %p16475_p13, %p16469_p1 }
  0xfa   : > { %3605 = vmatprep.subr.bf16.mxu1 %v14773_v41  ;;  %v14848_v40 = vld [vmem:[#allocation5 + $0x42c] ss:$24 sps:$4 sm:$0xff]   ;;  %v14843_v41 = vld [vmem:[#allocation5 + $0x420] ss:$24 sps:$4 sm:$0xff]  }
  0xfc   : > { %3154 = vmatpush1.bf16.msra.mxu0 %v14775_v42  ;;  %v14846_v42 = vld [vmem:[#allocation5 + $0x428] ss:$24 sps:$4 sm:$0xff]  }
  0xfd   : > { %3606 = vmatpush1.bf16.msra.mxu1 %v14776_v43  ;;  %3155 = vmatprep.subr.bf16.mxu0 %v14777_v44  ;;  %v16923_v43 = vcombine.low %v412_v29, %v416_v31  ;;  %v420_v44 = vld [vmem:[%s16869_s10 + $0x100] sm:$0xff]  ;;  %v389_v31 = vld [vmem:[%s16869_s10 + $0x8] sm:$0xff] }
  0xfe   : > { %3607 = vmatprep.subr.bf16.mxu1 %v14779_v45  ;;  %v424_v45 = vld [vmem:[%s16869_s10 + $0x120] sm:$0xff] }
  0xff   : > { %v14896_v29 = vld [vmem:[#allocation5 + $0x5ac] ss:$24 sps:$4 sm:$0xff]  }
 0x100   : > { %3156 = vmatpush1.bf16.msra.mxu0 %v14781_v48  ;;  %v16927_v48 = vcombine.high %v420_v44, %v424_v45 }
 0x101   : > { %3608 = vmatpush1.bf16.msra.mxu1 %v14782_v49  ;;  %3157 = vmatprep.subr.bf16.mxu0 %v14783_v51  ;;  %v14849_v49 = vld [vmem:[#allocation5 + $0x450] ss:$24 sps:$4 sm:$0xff]  }
 0x102   : > { %3609 = vmatprep.subr.bf16.mxu1 %v14785_v52  ;;  %v14852_v51 = vld [vmem:[#allocation5 + $0x458] ss:$24 sps:$4 sm:$0xff]   ;;  %v14857_v52 = vld [vmem:[#allocation5 + $0x484] ss:$24 sps:$4 sm:$0xff]  }
 0x104   : > { %3158 = vmatpush1.bf16.msra.mxu0 %v14787_v53  ;;  %v14860_v53 = vld [vmem:[#allocation5 + $0x48c] ss:$24 sps:$4 sm:$0xff]  }
 0x105   : > { %3610 = vmatpush1.bf16.msra.mxu1 %v14788_v54  ;;  %3159 = vmatprep.subr.bf16.mxu0 %v14789_v55  ;;  %v428_v54 = vld [vmem:[%s16869_s10 + $0x140] sm:$0xff]  ;;  %v16934_v55 = vcombine.low %v420_v44, %v424_v45  ;;  %v397_v45 = vld [vmem:[%s16869_s10 + $0x48] sm:$0xff] }
 0x106   : > { %3611 = vmatprep.subr.bf16.mxu1 %v14791_v56  ;;  %v432_v56 = vld [vmem:[%s16869_s10 + $0x160] sm:$0xff] }
 0x107   : > { %v14908_v44 = vld [vmem:[#allocation5 + $0x60c] ss:$24 sps:$4 sm:$0xff]  }
 0x108   : > { %3160 = vmatpush1.bf16.msra.mxu0 %v14793_v57  ;;  %v14855_v57 = vld [vmem:[#allocation5 + $0x480] ss:$24 sps:$4 sm:$0xff]  }
 0x109   : > { %3612 = vmatpush1.bf16.msra.mxu1 %v14794_v58  ;;  %3161 = vmatprep.subr.bf16.mxu0 %v14795_v59  ;;  %v14858_v58 = vld [vmem:[#allocation5 + $0x488] ss:$24 sps:$4 sm:$0xff]   ;;  %v14863_v59 = vld [vmem:[#allocation5 + $0x4b4] ss:$24 sps:$4 sm:$0xff]  }
 0x10a   : > { %3613 = vmatprep.subr.bf16.mxu1 %v14797_v60  ;;  %v14866_v60 = vld [vmem:[#allocation5 + $0x4bc] ss:$24 sps:$4 sm:$0xff]  }
 0x10c   : > { %3162 = vmatpush1.bf16.msra.mxu0 %v14799_v61  ;;  %v16937_v61 = vcombine.high %v428_v54, %v432_v56 }
 0x10d   : > { %3614 = vmatpush1.bf16.msra.mxu1 %v14800_v62  ;;  %3163 = vmatprep.subr.bf16.mxu0 %v14801_v63  ;;  %v14861_v62 = vld [vmem:[#allocation5 + $0x4b0] ss:$24 sps:$4 sm:$0xff]  }
 0x10e   : > { %3615 = vmatprep.subr.bf16.mxu1 %v14803_v0  ;;  %v14864_v63 = vld [vmem:[#allocation5 + $0x4b8] ss:$24 sps:$4 sm:$0xff]   ;;  %v14869_v0 = vld [vmem:[#allocation5 + $0x4e4] ss:$24 sps:$4 sm:$0xff]  }
 0x110   : > { %3164 = vmatpush1.bf16.msra.mxu0 %v14805_v1  ;;  %v14872_v1 = vld [vmem:[#allocation5 + $0x4ec] ss:$24 sps:$4 sm:$0xff]  }
 0x111   : > { %3616 = vmatpush1.bf16.msra.mxu1 %v14806_v2  ;;  %3246 = vmatprep.subr.bf16.mxu0 %v14809_v3  ;;  %v436_v2 = vld [vmem:[%s16869_s10 + $0x180] sm:$0xff]  ;;  %v16944_v3 = vcombine.low %v428_v54, %v432_v56  ;;  %v14909_v56 = vld [vmem:[#allocation5 + $0x630] ss:$24 sps:$4 sm:$0xff]  }
 0x112   : > { %3698 = vmatprep.subr.bf16.mxu1 %v14812_v4  ;;  %v440_v4 = vld [vmem:[%s16869_s10 + $0x1a0] sm:$0xff] }
 0x113   : > { %3166 = vmatmul.mubr.bf16.vlgmr.msra.gmra.mrb[0].mxu0 %v16893_v7  ;;  %v16953_v19 = vcombine.low %v436_v2, %v440_v4 }
 0x114   : > { %3618 = vmatmul.mubr.bf16.vlgmr.msra.gmra.mrb[0].mxu1 %v16893_v7  ;;  %3247 = vmatpush1.bf16.msra.mxu0 %v14807_v5  ;;  %v14867_v5 = vld [vmem:[#allocation5 + $0x4e0] ss:$24 sps:$4 sm:$0xff]  }
 0x115   : > { %3699 = vmatpush1.bf16.msra.mxu1 %v14810_v6  ;;  %3248 = vmatprep.subr.bf16.mxu0 %v14815_v10  ;;  %v14870_v6 = vld [vmem:[#allocation5 + $0x4e8] ss:$24 sps:$4 sm:$0xff]   ;;  %v16947_v10 = vcombine.high %v436_v2, %v440_v4  ;;  %v14923_v2 = vld [vmem:[#allocation5 + $0x694] ss:$24 sps:$4 sm:$0xff]  }
 0x116   : > { %3700 = vmatprep.subr.bf16.mxu1 %v14818_v11  ;;  %3175 = vmatprep.mubr.bf16.mxu0 %v16897_v12  ;;  %v14873_v11 = vld [vmem:[#allocation5 + $0x510] ss:$24 sps:$4 sm:$0xff]   ;;  %v14926_v4 = vld [vmem:[#allocation5 + $0x69c] ss:$24 sps:$4 sm:$0xff]  }
 0x117   : > { %3627 = vmatprep.mubr.bf16.mxu1 %v16897_v12 }
 0x118   : > { %3249 = vmatpush1.bf16.msra.mxu0 %v14813_v13  ;;  %v14876_v13 = vld [vmem:[#allocation5 + $0x518] ss:$24 sps:$4 sm:$0xff]  }
 0x119   : > { %3701 = vmatpush1.bf16.msra.mxu1 %v14816_v14  ;;  %3250 = vmatprep.subr.bf16.mxu0 %v14821_v15  ;;  %v14881_v14 = vld [vmem:[#allocation5 + $0x544] ss:$24 sps:$4 sm:$0xff]  }
 0x11a   : > { %3702 = vmatprep.subr.bf16.mxu1 %v14824_v16  ;;  %v14884_v15 = vld [vmem:[#allocation5 + $0x54c] ss:$24 sps:$4 sm:$0xff]   ;;  %v14879_v16 = vld [vmem:[#allocation5 + $0x540] ss:$24 sps:$4 sm:$0xff]  }
 0x11b   : > { %3176 = vmatmul.mubr.bf16.gmra.mrb[4].mxu0 %v16904_v18 }
 0x11c   : > { %3628 = vmatmul.mubr.bf16.gmra.mrb[4].mxu1 %v16904_v18  ;;  %3251 = vmatpush1.bf16.msra.mxu0 %v14819_v20  ;;  %v444_v20 = vld [vmem:[%s16869_s10 + $0x1c0] sm:$0xff] }
 0x11d   : > { %3703 = vmatpush1.bf16.msra.mxu1 %v14822_v21  ;;  %3252 = vmatprep.subr.bf16.mxu0 %v14827_v22  ;;  %v448_v21 = vld [vmem:[%s16869_s10 + $0x1e0] sm:$0xff]  ;;  %v14887_v22 = vld [vmem:[#allocation5 + $0x574] ss:$24 sps:$4 sm:$0xff]  }
 0x11e   : > { %3704 = vmatprep.subr.bf16.mxu1 %v14830_v23  ;;  %3185 = vmatprep.mubr.bf16.mxu0 %v16907_v24  ;;  %v14890_v23 = vld [vmem:[#allocation5 + $0x57c] ss:$24 sps:$4 sm:$0xff]  }
 0x11f   : > { %3637 = vmatprep.mubr.bf16.mxu1 %v16907_v24 }
 0x120   : > { %3253 = vmatpush1.bf16.msra.mxu0 %v14825_v25  ;;  %v16957_v25 = vcombine.high %v444_v20, %v448_v21 }
 0x121   : > { %3705 = vmatpush1.bf16.msra.mxu1 %v14828_v26  ;;  %3254 = vmatprep.subr.bf16.mxu0 %v14833_v27  ;;  %v14885_v26 = vld [vmem:[#allocation5 + $0x570] ss:$24 sps:$4 sm:$0xff]  }
 0x122   : > { %3706 = vmatprep.subr.bf16.mxu1 %v14836_v28  ;;  %v14888_v27 = vld [vmem:[#allocation5 + $0x578] ss:$24 sps:$4 sm:$0xff]   ;;  %v14893_v28 = vld [vmem:[#allocation5 + $0x5a4] ss:$24 sps:$4 sm:$0xff]  }
 0x123   : > { %3186 = vmatmul.mubr.bf16.gmra.mrb[8].mxu0 %v16914_v30 }
 0x124   : > { %3638 = vmatmul.mubr.bf16.gmra.mrb[8].mxu1 %v16914_v30  ;;  %3255 = vmatpush1.bf16.msra.mxu0 %v14831_v32  ;;  %v16964_v32 = vcombine.low %v444_v20, %v448_v21  ;;  %v14935_v20 = vld [vmem:[#allocation5 + $0x6f4] ss:$24 sps:$4 sm:$0xff]  }
 0x125   : > { %3707 = vmatpush1.bf16.msra.mxu1 %v14834_v33  ;;  %3256 = vmatprep.subr.bf16.mxu0 %v14839_v34  ;;  %v393_v33 = vld [vmem:[%s16869_s10 + $0x28] sm:$0xff]  ;;  %v14891_v34 = vld [vmem:[#allocation5 + $0x5a0] ss:$24 sps:$4 sm:$0xff]   ;;  %v14938_v21 = vld [vmem:[#allocation5 + $0x6fc] ss:$24 sps:$4 sm:$0xff]  }
 0x126   : > { %3708 = vmatprep.subr.bf16.mxu1 %v14842_v35  ;;  %3195 = vmatprep.mubr.bf16.mxu0 %v16917_v36  ;;  %v14894_v35 = vld [vmem:[#allocation5 + $0x5a8] ss:$24 sps:$4 sm:$0xff]  }
 0x127   : > { %3647 = vmatprep.mubr.bf16.mxu1 %v16917_v36 }
 0x128   : > { %3257 = vmatpush1.bf16.msra.mxu0 %v14837_v37  ;;  %v14899_v37 = vld [vmem:[#allocation5 + $0x5d4] ss:$24 sps:$4 sm:$0xff]  }
 0x129   : > { %3709 = vmatpush1.bf16.msra.mxu1 %v14840_v38  ;;  %3258 = vmatprep.subr.bf16.mxu0 %v14845_v39  ;;  %v14902_v38 = vld [vmem:[#allocation5 + $0x5dc] ss:$24 sps:$4 sm:$0xff]   ;;  %v16967_v39 = vcombine.high %v389_v31, %v393_v33 }
 0x12a   : > { %3710 = vmatprep.subr.bf16.mxu1 %v14848_v40  ;;  %v14897_v40 = vld [vmem:[#allocation5 + $0x5d0] ss:$24 sps:$4 sm:$0xff]  }
 0x12b   : > { %3196 = vmatmul.mubr.bf16.gmra.mrb[12].mxu0 %v16923_v43 }
 0x12c   : > { %3648 = vmatmul.mubr.bf16.gmra.mrb[12].mxu1 %v16923_v43  ;;  %3259 = vmatpush1.bf16.msra.mxu0 %v14843_v41  ;;  %v14900_v41 = vld [vmem:[#allocation5 + $0x5d8] ss:$24 sps:$4 sm:$0xff]  }
 0x12d   : > { %3711 = vmatpush1.bf16.msra.mxu1 %v14846_v42  ;;  %3260 = vmatprep.subr.bf16.mxu0 %v14851_v46  ;;  %v14905_v42 = vld [vmem:[#allocation5 + $0x604] ss:$24 sps:$4 sm:$0xff]   ;;  %v16974_v46 = vcombine.low %v389_v31, %v393_v33  ;;  %v425_v33 = vld [vmem:[%s16869_s10 + $0x128] sm:$0xff] }
 0x12e   : > { %3712 = vmatprep.subr.bf16.mxu1 %v14854_v47  ;;  %3205 = vmatprep.mubr.bf16.mxu0 %v16927_v48  ;;  %v401_v47 = vld [vmem:[%s16869_s10 + $0x68] sm:$0xff] }
 0x12f   : > { %3657 = vmatprep.mubr.bf16.mxu1 %v16927_v48  ;;  %v16977_v54 = vcombine.high %v397_v45, %v401_v47 }
 0x130   : > { %3261 = vmatpush1.bf16.msra.mxu0 %v14849_v49  ;;  %v14903_v49 = vld [vmem:[#allocation5 + $0x600] ss:$24 sps:$4 sm:$0xff]  }
 0x131   : > { %3713 = vmatpush1.bf16.msra.mxu1 %v14852_v51  ;;  %3262 = vmatprep.subr.bf16.mxu0 %v14857_v52  ;;  %v14906_v51 = vld [vmem:[#allocation5 + $0x608] ss:$24 sps:$4 sm:$0xff]   ;;  %v14911_v52 = vld [vmem:[#allocation5 + $0x634] ss:$24 sps:$4 sm:$0xff]  }
 0x132   : > { %3714 = vmatprep.subr.bf16.mxu1 %v14860_v53  ;;  %v14914_v53 = vld [vmem:[#allocation5 + $0x63c] ss:$24 sps:$4 sm:$0xff]  }
 0x133   : > { %3206 = vmatmul.mubr.bf16.gmra.mrb[16].mxu0 %v16934_v55 }
 0x134   : > { %3658 = vmatmul.mubr.bf16.gmra.mrb[16].mxu1 %v16934_v55  ;;  %3263 = vmatpush1.bf16.msra.mxu0 %v14855_v57  ;;  %v14912_v57 = vld [vmem:[#allocation5 + $0x638] ss:$24 sps:$4 sm:$0xff]  }
 0x135   : > { %3715 = vmatpush1.bf16.msra.mxu1 %v14858_v58  ;;  %3264 = vmatprep.subr.bf16.mxu0 %v14863_v59  ;;  %v14917_v58 = vld [vmem:[#allocation5 + $0x664] ss:$24 sps:$4 sm:$0xff]  }
 0x136   : > { %3716 = vmatprep.subr.bf16.mxu1 %v14866_v60  ;;  %3215 = vmatprep.mubr.bf16.mxu0 %v16937_v61  ;;  %v14920_v59 = vld [vmem:[#allocation5 + $0x66c] ss:$24 sps:$4 sm:$0xff]   ;;  %v14915_v60 = vld [vmem:[#allocation5 + $0x660] ss:$24 sps:$4 sm:$0xff]  }
 0x137   : > { %3667 = vmatprep.mubr.bf16.mxu1 %v16937_v61 }
 0x138   : > { %3265 = vmatpush1.bf16.msra.mxu0 %v14861_v62  ;;  %v14918_v62 = vld [vmem:[#allocation5 + $0x668] ss:$24 sps:$4 sm:$0xff]  }
 0x139   : > { %3717 = vmatpush1.bf16.msra.mxu1 %v14864_v63  ;;  %3266 = vmatprep.subr.bf16.mxu0 %v14869_v0  ;;  %v16983_v63 = vcombine.low %v397_v45, %v401_v47  ;;  %v405_v0 = vld [vmem:[%s16869_s10 + $0x88] sm:$0xff]  ;;  %v14951_v47 = vld [vmem:[#allocation5 + $0x780] ss:$24 sps:$4 sm:$0xff]  }
 0x13a   : > { %3718 = vmatprep.subr.bf16.mxu1 %v14872_v1  ;;  %v409_v1 = vld [vmem:[%s16869_s10 + $0xa8] sm:$0xff] }
 0x13b   : > { %3216 = vmatmul.mubr.bf16.gmra.mrb[20].mxu0 %v16944_v3  ;;  %v14956_v45 = vld [vmem:[#allocation5 + $0x78c] ss:$24 sps:$4 sm:$0xff]  }
 0x13c   : > { %3668 = vmatmul.mubr.bf16.gmra.mrb[20].mxu1 %v16944_v3  ;;  %3267 = vmatpush1.bf16.msra.mxu0 %v14867_v5  ;;  %v16987_v5 = vcombine.high %v405_v0, %v409_v1 }
 0x13d   : > { %3719 = vmatpush1.bf16.msra.mxu1 %v14870_v6  ;;  %3268 = vmatprep.subr.bf16.mxu0 %v14875_v8  ;;  %v14921_v6 = vld [vmem:[#allocation5 + $0x690] ss:$24 sps:$4 sm:$0xff]  }
 0x13e   : > { %3720 = vmatprep.subr.bf16.mxu1 %v14878_v9  ;;  %3225 = vmatprep.mubr.bf16.mxu0 %v16947_v10  ;;  %v14924_v8 = vld [vmem:[#allocation5 + $0x698] ss:$24 sps:$4 sm:$0xff]   ;;  %v14929_v9 = vld [vmem:[#allocation5 + $0x6c4] ss:$24 sps:$4 sm:$0xff]  }
 0x13f   : > { %3677 = vmatprep.mubr.bf16.mxu1 %v16947_v10 }
 0x140   : > { %3269 = vmatpush1.bf16.msra.mxu0 %v14873_v11  ;;  %v14932_v11 = vld [vmem:[#allocation5 + $0x6cc] ss:$24 sps:$4 sm:$0xff]  }
 0x141   : > { %3721 = vmatpush1.bf16.msra.mxu1 %v14876_v13  ;;  %3270 = vmatprep.subr.bf16.mxu0 %v14881_v14  ;;  %v413_v13 = vld [vmem:[%s16869_s10 + $0xc8] sm:$0xff]  ;;  %v16994_v14 = vcombine.low %v405_v0, %v409_v1 }
 0x142   : > { %3722 = vmatprep.subr.bf16.mxu1 %v14884_v15  ;;  %v417_v15 = vld [vmem:[%s16869_s10 + $0xe8] sm:$0xff] }
 0x143   : > { %3226 = vmatmul.mubr.bf16.gmra.mrb[24].mxu0 %v16953_v19  ;;  %v17004_v31 = vcombine.low %v413_v13, %v417_v15  ;;  %v14968_v0 = vld [vmem:[#allocation5 + $0x7ec] ss:$24 sps:$4 sm:$0xff]  }
 0x144   : > { %3678 = vmatmul.mubr.bf16.gmra.mrb[24].mxu1 %v16953_v19  ;;  %3271 = vmatpush1.bf16.msra.mxu0 %v14879_v16  ;;  %v14927_v16 = vld [vmem:[#allocation5 + $0x6c0] ss:$24 sps:$4 sm:$0xff]   ;;  %v437_v1 = vld [vmem:[%s16869_s10 + $0x188] sm:$0xff] }
 0x145   : > { %3723 = vmatpush1.bf16.msra.mxu1 %v14882_v17  ;;  %3272 = vmatprep.subr.bf16.mxu0 %v14887_v22  ;;  %v14930_v17 = vld [vmem:[#allocation5 + $0x6c8] ss:$24 sps:$4 sm:$0xff]   ;;  %v16997_v22 = vcombine.high %v413_v13, %v417_v15 }
 0x146   : > { %3724 = vmatprep.subr.bf16.mxu1 %v14890_v23  ;;  %3235 = vmatprep.mubr.bf16.mxu0 %v16957_v25  ;;  %v14933_v23 = vld [vmem:[#allocation5 + $0x6f0] ss:$24 sps:$4 sm:$0xff]  }
 0x147   : > { %3687 = vmatprep.mubr.bf16.mxu1 %v16957_v25  ;;  %v14969_v15 = vld [vmem:[#allocation5 + $0x810] ss:$24 sps:$4 sm:$0xff]  }
 0x148   : > { %3273 = vmatpush1.bf16.msra.mxu0 %v14885_v26  ;;  %v14936_v26 = vld [vmem:[#allocation5 + $0x6f8] ss:$24 sps:$4 sm:$0xff]  }
 0x149   : > { %3725 = vmatpush1.bf16.msra.mxu1 %v14888_v27  ;;  %3274 = vmatprep.subr.bf16.mxu0 %v14893_v28  ;;  %v14941_v27 = vld [vmem:[#allocation5 + $0x724] ss:$24 sps:$4 sm:$0xff]  }
 0x14a   : > { %3726 = vmatprep.subr.bf16.mxu1 %v14896_v29  ;;  %v14944_v28 = vld [vmem:[#allocation5 + $0x72c] ss:$24 sps:$4 sm:$0xff]  }
 0x14b   : > { %3236 = vmatmul.mubr.bf16.gmra.mrb[28].mxu0 %v16964_v32  ;;  %v421_v29 = vld [vmem:[%s16869_s10 + $0x108] sm:$0xff] }
 0x14c   : > { %3688 = vmatmul.mubr.bf16.gmra.mrb[28].mxu1 %v16964_v32  ;;  %3275 = vmatpush1.bf16.msra.mxu0 %v14891_v34  ;;  %v14939_v34 = vld [vmem:[#allocation5 + $0x720] ss:$24 sps:$4 sm:$0xff]  }
 0x14d   : > { %3727 = vmatpush1.bf16.msra.mxu1 %v14894_v35  ;;  %3276 = vmatprep.subr.bf16.mxu0 %v14899_v37  ;;  %v14942_v35 = vld [vmem:[#allocation5 + $0x728] ss:$24 sps:$4 sm:$0xff]   ;;  %v14947_v37 = vld [vmem:[#allocation5 + $0x754] ss:$24 sps:$4 sm:$0xff]  }
 0x14e   : > { %3728 = vmatprep.subr.bf16.mxu1 %v14902_v38  ;;  %3278 = vmatprep.mubr.bf16.mxu0 %v16967_v39  ;;  %v14950_v38 = vld [vmem:[#allocation5 + $0x75c] ss:$24 sps:$4 sm:$0xff]  }
 0x14f   : > { %3730 = vmatprep.mubr.bf16.mxu1 %v16967_v39 }
 0x150   : > { %3277 = vmatpush1.bf16.msra.mxu0 %v14897_v40  ;;  %v17007_v40 = vcombine.high %v421_v29, %v425_v33 }
 0x151   : > { %3729 = vmatpush1.bf16.msra.mxu1 %v14900_v41  ;;  %3359 = vmatprep.subr.bf16.mxu0 %v14905_v42  ;;  %v14945_v41 = vld [vmem:[#allocation5 + $0x750] ss:$24 sps:$4 sm:$0xff]  }
 0x152   : > { %3811 = vmatprep.subr.bf16.mxu1 %v14908_v44  ;;  %v14948_v42 = vld [vmem:[#allocation5 + $0x758] ss:$24 sps:$4 sm:$0xff]   ;;  %v14953_v44 = vld [vmem:[#allocation5 + $0x784] ss:$24 sps:$4 sm:$0xff]  }
 0x153   : > { %3279 = vmatmul.mubr.bf16.vlgmr.msra.gmra.mrb[0].mxu0 %v16974_v46 }
 0x154   : > { %3731 = vmatmul.mubr.bf16.vlgmr.msra.gmra.mrb[0].mxu1 %v16974_v46  ;;  %3360 = vmatpush1.bf16.msra.mxu0 %v14903_v49  ;;  %v14954_v49 = vld [vmem:[#allocation5 + $0x788] ss:$24 sps:$4 sm:$0xff]  }
 0x155   : > { %3812 = vmatpush1.bf16.msra.mxu1 %v14906_v51  ;;  %3361 = vmatprep.subr.bf16.mxu0 %v14911_v52  ;;  %v17013_v51 = vcombine.low %v421_v29, %v425_v33  ;;  %v429_v52 = vld [vmem:[%s16869_s10 + $0x148] sm:$0xff]  ;;  %v14986_v33 = vld [vmem:[#allocation5 + $0x87c] ss:$24 sps:$4 sm:$0xff]  }
 0x156   : > { %3813 = vmatprep.subr.bf16.mxu1 %v14914_v53  ;;  %3288 = vmatprep.mubr.bf16.mxu0 %v16977_v54  ;;  %v433_v53 = vld [vmem:[%s16869_s10 + $0x168] sm:$0xff] }
 0x157   : > { %3740 = vmatprep.mubr.bf16.mxu1 %v16977_v54  ;;  %v14983_v29 = vld [vmem:[#allocation5 + $0x874] ss:$24 sps:$4 sm:$0xff]  }
 0x158   : > { %3362 = vmatpush1.bf16.msra.mxu0 %v14909_v56  ;;  %v14959_v56 = vld [vmem:[#allocation5 + $0x7b4] ss:$24 sps:$4 sm:$0xff]  }
 0x159   : > { %3814 = vmatpush1.bf16.msra.mxu1 %v14912_v57  ;;  %3363 = vmatprep.subr.bf16.mxu0 %v14917_v58  ;;  %v14962_v57 = vld [vmem:[#allocation5 + $0x7bc] ss:$24 sps:$4 sm:$0xff]   ;;  %v17017_v58 = vcombine.high %v429_v52, %v433_v53 }
 0x15a   : > { %3815 = vmatprep.subr.bf16.mxu1 %v14920_v59  ;;  %v14957_v59 = vld [vmem:[#allocation5 + $0x7b0] ss:$24 sps:$4 sm:$0xff]  }
 0x15b   : > { %3289 = vmatmul.mubr.bf16.gmra.mrb[4].mxu0 %v16983_v63 }
 0x15c   : > { %3741 = vmatmul.mubr.bf16.gmra.mrb[4].mxu1 %v16983_v63  ;;  %3364 = vmatpush1.bf16.msra.mxu0 %v14915_v60  ;;  %v14960_v60 = vld [vmem:[#allocation5 + $0x7b8] ss:$24 sps:$4 sm:$0xff]  }
 0x15d   : > { %3816 = vmatpush1.bf16.msra.mxu1 %v14918_v62  ;;  %3365 = vmatprep.subr.bf16.mxu0 %v14923_v2  ;;  %v14965_v62 = vld [vmem:[#allocation5 + $0x7e4] ss:$24 sps:$4 sm:$0xff]   ;;  %v17024_v2 = vcombine.low %v429_v52, %v433_v53  ;;  %v14995_v52 = vld [vmem:[#allocation5 + $0x8d4] ss:$24 sps:$4 sm:$0xff]  }
 0x15e   : > { %3817 = vmatprep.subr.bf16.mxu1 %v14926_v4  ;;  %3298 = vmatprep.mubr.bf16.mxu0 %v16987_v5  ;;  %v441_v4 = vld [vmem:[%s16869_s10 + $0x1a8] sm:$0xff]  ;;  %v14998_v53 = vld [vmem:[#allocation5 + $0x8dc] ss:$24 sps:$4 sm:$0xff]  }
 0x15f   : > { %3750 = vmatprep.mubr.bf16.mxu1 %v16987_v5  ;;  %v17027_v13 = vcombine.high %v437_v1, %v441_v4 }
 0x160   : > { %3366 = vmatpush1.bf16.msra.mxu0 %v14921_v6  ;;  %v14963_v6 = vld [vmem:[#allocation5 + $0x7e0] ss:$24 sps:$4 sm:$0xff]  }
 0x161   : > { %3818 = vmatpush1.bf16.msra.mxu1 %v14924_v8  ;;  %3367 = vmatprep.subr.bf16.mxu0 %v14929_v9  ;;  %v14966_v8 = vld [vmem:[#allocation5 + $0x7e8] ss:$24 sps:$4 sm:$0xff]   ;;  %v14971_v9 = vld [vmem:[#allocation5 + $0x814] ss:$24 sps:$4 sm:$0xff]  }
 0x162   : > { %3819 = vmatprep.subr.bf16.mxu1 %v14932_v11  ;;  %v14974_v11 = vld [vmem:[#allocation5 + $0x81c] ss:$24 sps:$4 sm:$0xff]  }
 0x163   : > { %3299 = vmatmul.mubr.bf16.gmra.mrb[8].mxu0 %v16994_v14 }
 0x164   : > { %3751 = vmatmul.mubr.bf16.gmra.mrb[8].mxu1 %v16994_v14  ;;  %3368 = vmatpush1.bf16.msra.mxu0 %v14927_v16  ;;  %v14972_v16 = vld [vmem:[#allocation5 + $0x818] ss:$24 sps:$4 sm:$0xff]  }
 0x165   : > { %3820 = vmatpush1.bf16.msra.mxu1 %v14930_v17  ;;  %3369 = vmatprep.subr.bf16.mxu0 %v14935_v20  ;;  %v14977_v17 = vld [vmem:[#allocation5 + $0x844] ss:$24 sps:$4 sm:$0xff]  }
 0x166   : > { %3821 = vmatprep.subr.bf16.mxu1 %v14938_v21  ;;  %3308 = vmatprep.mubr.bf16.mxu0 %v16997_v22  ;;  %v14980_v20 = vld [vmem:[#allocation5 + $0x84c] ss:$24 sps:$4 sm:$0xff]  }
 0x167   : > { %3760 = vmatprep.mubr.bf16.mxu1 %v16997_v22  ;;  %v445_v21 = vld [vmem:[%s16869_s10 + $0x1c8] sm:$0xff] }
 0x168   : > { %3370 = vmatpush1.bf16.msra.mxu0 %v14933_v23  ;;  %v17034_v23 = vcombine.low %v437_v1, %v441_v4  ;;  %v398_v4 = vld [vmem:[%s16869_s10 + $0x50] sm:$0xff] }
 0x169   : > { %3822 = vmatpush1.bf16.msra.mxu1 %v14936_v26  ;;  %3371 = vmatprep.subr.bf16.mxu0 %v14941_v27  ;;  %v449_v26 = vld [vmem:[%s16869_s10 + $0x1e8] sm:$0xff]  ;;  %v14975_v27 = vld [vmem:[#allocation5 + $0x840] ss:$24 sps:$4 sm:$0xff]  }
 0x16a   : > { %3823 = vmatprep.subr.bf16.mxu1 %v14944_v28  ;;  %v14978_v28 = vld [vmem:[#allocation5 + $0x848] ss:$24 sps:$4 sm:$0xff]  }
 0x16b   : > { %3309 = vmatmul.mubr.bf16.gmra.mrb[12].mxu0 %v17004_v31 }
 0x16c   : > { %3761 = vmatmul.mubr.bf16.gmra.mrb[12].mxu1 %v17004_v31  ;;  %3372 = vmatpush1.bf16.msra.mxu0 %v14939_v34  ;;  %v17037_v34 = vcombine.high %v445_v21, %v449_v26 }
 0x16d   : > { %3824 = vmatpush1.bf16.msra.mxu1 %v14942_v35  ;;  %3373 = vmatprep.subr.bf16.mxu0 %v14947_v37  ;;  %v14981_v35 = vld [vmem:[#allocation5 + $0x870] ss:$24 sps:$4 sm:$0xff]  }
 0x16e   : > { %3825 = vmatprep.subr.bf16.mxu1 %v14950_v38  ;;  %3318 = vmatprep.mubr.bf16.mxu0 %v17007_v40  ;;  %v14984_v37 = vld [vmem:[#allocation5 + $0x878] ss:$24 sps:$4 sm:$0xff]   ;;  %v14989_v38 = vld [vmem:[#allocation5 + $0x8a4] ss:$24 sps:$4 sm:$0xff]  }
 0x16f   : > { %3770 = vmatprep.mubr.bf16.mxu1 %v17007_v40 }
 0x170   : > { %3374 = vmatpush1.bf16.msra.mxu0 %v14945_v41  ;;  %v14992_v41 = vld [vmem:[#allocation5 + $0x8ac] ss:$24 sps:$4 sm:$0xff]  }
 0x171   : > { %3826 = vmatpush1.bf16.msra.mxu1 %v14948_v42  ;;  %3375 = vmatprep.subr.bf16.mxu0 %v14953_v44  ;;  %v14987_v42 = vld [vmem:[#allocation5 + $0x8a0] ss:$24 sps:$4 sm:$0xff]  }
 0x172   : > { %3827 = vmatprep.subr.bf16.mxu1 %v14956_v45  ;;  %v14990_v44 = vld [vmem:[#allocation5 + $0x8a8] ss:$24 sps:$4 sm:$0xff]   ;;  %v17043_v45 = vcombine.low %v445_v21, %v449_v26  ;;  %v15016_v21 = vld [vmem:[#allocation5 + $0x96c] ss:$24 sps:$4 sm:$0xff]  }
 0x173   : > { %3319 = vmatmul.mubr.bf16.gmra.mrb[16].mxu0 %v17013_v51 }
 0x174   : > { %3771 = vmatmul.mubr.bf16.gmra.mrb[16].mxu1 %v17013_v51  ;;  %3376 = vmatpush1.bf16.msra.mxu0 %v14951_v47  ;;  %v390_v47 = vld [vmem:[%s16869_s10 + $0x10] sm:$0xff] }
 0x175   : > { %3828 = vmatpush1.bf16.msra.mxu1 %v14954_v49  ;;  %3377 = vmatprep.subr.bf16.mxu0 %v14959_v56  ;;  %v394_v49 = vld [vmem:[%s16869_s10 + $0x30] sm:$0xff] }
 0x176   : > { %3829 = vmatprep.subr.bf16.mxu1 %v14962_v57  ;;  %3328 = vmatprep.mubr.bf16.mxu0 %v17017_v58  ;;  %v17047_v56 = vcombine.high %v390_v47, %v394_v49  ;;  %v14993_v57 = vld [vmem:[#allocation5 + $0x8d0] ss:$24 sps:$4 sm:$0xff]   ;;  %v17053_v1 = vcombine.low %v390_v47, %v394_v49  ;;  %v15028_v47 = vld [vmem:[#allocation5 + $0x9cc] ss:$24 sps:$4 sm:$0xff]  }
 0x177   : > { %3780 = vmatprep.mubr.bf16.mxu1 %v17017_v58  ;;  %v414_v49 = vld [vmem:[%s16869_s10 + $0xd0] sm:$0xff] }
 0x178   : > { %3378 = vmatpush1.bf16.msra.mxu0 %v14957_v59  ;;  %v14996_v59 = vld [vmem:[#allocation5 + $0x8d8] ss:$24 sps:$4 sm:$0xff]  }
 0x179   : > { %3830 = vmatpush1.bf16.msra.mxu1 %v14960_v60  ;;  %3379 = vmatprep.subr.bf16.mxu0 %v14965_v62  ;;  %v15001_v60 = vld [vmem:[#allocation5 + $0x904] ss:$24 sps:$4 sm:$0xff]  }
 0x17a   : > { %3831 = vmatprep.subr.bf16.mxu1 %v14968_v0  ;;  %v15004_v62 = vld [vmem:[#allocation5 + $0x90c] ss:$24 sps:$4 sm:$0xff]   ;;  %v14999_v0 = vld [vmem:[#allocation5 + $0x900] ss:$24 sps:$4 sm:$0xff]  }
 0x17b   : > { %3329 = vmatmul.mubr.bf16.gmra.mrb[20].mxu0 %v17024_v2 }
 0x17c   : > { %3781 = vmatmul.mubr.bf16.gmra.mrb[20].mxu1 %v17024_v2  ;;  %3380 = vmatpush1.bf16.msra.mxu0 %v14963_v6  ;;  %v402_v6 = vld [vmem:[%s16869_s10 + $0x70] sm:$0xff] }
 0x17d   : > { %3832 = vmatpush1.bf16.msra.mxu1 %v14966_v8  ;;  %3381 = vmatprep.subr.bf16.mxu0 %v14971_v9  ;;  %v15002_v8 = vld [vmem:[#allocation5 + $0x908] ss:$24 sps:$4 sm:$0xff]   ;;  %v15007_v9 = vld [vmem:[#allocation5 + $0x934] ss:$24 sps:$4 sm:$0xff]   ;;  %v17063_v26 = vcombine.low %v398_v4, %v402_v6 }
 0x17e   : > { %3833 = vmatprep.subr.bf16.mxu1 %v14974_v11  ;;  %3338 = vmatprep.mubr.bf16.mxu0 %v17027_v13  ;;  %v15010_v11 = vld [vmem:[#allocation5 + $0x93c] ss:$24 sps:$4 sm:$0xff]  }
 0x17f   : > { %3790 = vmatprep.mubr.bf16.mxu1 %v17027_v13 }
 0x180   : > { %3382 = vmatpush1.bf16.msra.mxu0 %v14969_v15  ;;  %v17057_v15 = vcombine.high %v398_v4, %v402_v6  ;;  %v15029_v4 = vld [vmem:[#allocation5 + $0x9f0] ss:$24 sps:$4 sm:$0xff]  }
 0x181   : > { %3834 = vmatpush1.bf16.msra.mxu1 %v14972_v16  ;;  %3383 = vmatprep.subr.bf16.mxu0 %v14977_v17  ;;  %v15005_v16 = vld [vmem:[#allocation5 + $0x930] ss:$24 sps:$4 sm:$0xff]  }
 0x182   : > { %3835 = vmatprep.subr.bf16.mxu1 %v14980_v20  ;;  %v15008_v17 = vld [vmem:[#allocation5 + $0x938] ss:$24 sps:$4 sm:$0xff]   ;;  %v15013_v20 = vld [vmem:[#allocation5 + $0x964] ss:$24 sps:$4 sm:$0xff]  }
 0x183   : > { %3339 = vmatmul.mubr.bf16.gmra.mrb[24].mxu0 %v17034_v23  ;;  %v15032_v6 = vld [vmem:[#allocation5 + $0x9f8] ss:$24 sps:$4 sm:$0xff]  }
 0x184   : > { %3791 = vmatmul.mubr.bf16.gmra.mrb[24].mxu1 %v17034_v23  ;;  %3384 = vmatpush1.bf16.msra.mxu0 %v14975_v27  ;;  %v406_v27 = vld [vmem:[%s16869_s10 + $0x90] sm:$0xff] }
 0x185   : > { %3836 = vmatpush1.bf16.msra.mxu1 %v14978_v28  ;;  %3385 = vmatprep.subr.bf16.mxu0 %v14983_v29  ;;  %v410_v28 = vld [vmem:[%s16869_s10 + $0xb0] sm:$0xff]  ;;  %v15011_v29 = vld [vmem:[#allocation5 + $0x960] ss:$24 sps:$4 sm:$0xff]  }
 0x186   : > { %3837 = vmatprep.subr.bf16.mxu1 %v14986_v33  ;;  %3348 = vmatprep.mubr.bf16.mxu0 %v17037_v34  ;;  %v15014_v33 = vld [vmem:[#allocation5 + $0x968] ss:$24 sps:$4 sm:$0xff]  }
 0x187   : > { %3800 = vmatprep.mubr.bf16.mxu1 %v17037_v34 }
 0x188   : > { %3386 = vmatpush1.bf16.msra.mxu0 %v14981_v35  ;;  %v15019_v35 = vld [vmem:[#allocation5 + $0x994] ss:$24 sps:$4 sm:$0xff]  }
 0x189   : > { %3838 = vmatpush1.bf16.msra.mxu1 %v14984_v37  ;;  %3387 = vmatprep.subr.bf16.mxu0 %v14989_v38  ;;  %v15022_v37 = vld [vmem:[#allocation5 + $0x99c] ss:$24 sps:$4 sm:$0xff]   ;;  %v17067_v38 = vcombine.high %v406_v27, %v410_v28 }
 0x18a   : > { %3839 = vmatprep.subr.bf16.mxu1 %v14992_v41  ;;  %v15017_v41 = vld [vmem:[#allocation5 + $0x990] ss:$24 sps:$4 sm:$0xff]  }
 0x18b   : > { %3349 = vmatmul.mubr.bf16.gmra.mrb[28].mxu0 %v17043_v45 }
 0x18c   : > { %3801 = vmatmul.mubr.bf16.gmra.mrb[28].mxu1 %v17043_v45  ;;  %3388 = vmatpush1.bf16.msra.mxu0 %v14987_v42  ;;  %v15020_v42 = vld [vmem:[#allocation5 + $0x998] ss:$24 sps:$4 sm:$0xff]  }
 0x18d   : > { %3840 = vmatpush1.bf16.msra.mxu1 %v14990_v44  ;;  %3389 = vmatprep.subr.bf16.mxu0 %v14995_v52  ;;  %v15025_v44 = vld [vmem:[#allocation5 + $0x9c4] ss:$24 sps:$4 sm:$0xff]   ;;  %v17074_v52 = vcombine.low %v406_v27, %v410_v28  ;;  %v15043_v27 = vld [vmem:[#allocation5 + $0xa54] ss:$24 sps:$4 sm:$0xff]  }
 0x18e   : > { %3841 = vmatprep.subr.bf16.mxu1 %v14998_v53  ;;  %3391 = vmatprep.mubr.bf16.mxu0 %v17047_v56  ;;  %v418_v53 = vld [vmem:[%s16869_s10 + $0xf0] sm:$0xff] }
 0x18f   : > { %3843 = vmatprep.mubr.bf16.mxu1 %v17047_v56  ;;  %v15046_v28 = vld [vmem:[#allocation5 + $0xa5c] ss:$24 sps:$4 sm:$0xff]  }
 0x190   : > { %3390 = vmatpush1.bf16.msra.mxu0 %v14993_v57  ;;  %v15023_v57 = vld [vmem:[#allocation5 + $0x9c0] ss:$24 sps:$4 sm:$0xff]  }
 0x191   : > { %3842 = vmatpush1.bf16.msra.mxu1 %v14996_v59  ;;  %3472 = vmatprep.subr.bf16.mxu0 %v15001_v60  ;;  %v15026_v59 = vld [vmem:[#allocation5 + $0x9c8] ss:$24 sps:$4 sm:$0xff]   ;;  %v15031_v60 = vld [vmem:[#allocation5 + $0x9f4] ss:$24 sps:$4 sm:$0xff]  }
 0x192   : > { %3924 = vmatprep.subr.bf16.mxu1 %v15004_v62  ;;  %v15034_v62 = vld [vmem:[#allocation5 + $0x9fc] ss:$24 sps:$4 sm:$0xff]  }
 0x193   : > { %3392 = vmatmul.mubr.bf16.vlgmr.msra.gmra.mrb[0].mxu0 %v17053_v1 }
 0x194   : > { %3844 = vmatmul.mubr.bf16.vlgmr.msra.gmra.mrb[0].mxu1 %v17053_v1  ;;  %3473 = vmatpush1.bf16.msra.mxu0 %v14999_v0  ;;  %v17077_v0 = vcombine.high %v414_v49, %v418_v53 }
 0x195   : > { %3925 = vmatpush1.bf16.msra.mxu1 %v15002_v8  ;;  %3474 = vmatprep.subr.bf16.mxu0 %v15007_v9  ;;  %v15037_v8 = vld [vmem:[#allocation5 + $0xa24] ss:$24 sps:$4 sm:$0xff]  }
 0x196   : > { %3926 = vmatprep.subr.bf16.mxu1 %v15010_v11  ;;  %3401 = vmatprep.mubr.bf16.mxu0 %v17057_v15  ;;  %v15040_v9 = vld [vmem:[#allocation5 + $0xa2c] ss:$24 sps:$4 sm:$0xff]   ;;  %v15035_v11 = vld [vmem:[#allocation5 + $0xa20] ss:$24 sps:$4 sm:$0xff]  }
 0x197   : > { %3853 = vmatprep.mubr.bf16.mxu1 %v17057_v15 }
 0x198   : > { %3475 = vmatpush1.bf16.msra.mxu0 %v15005_v16  ;;  %v15038_v16 = vld [vmem:[#allocation5 + $0xa28] ss:$24 sps:$4 sm:$0xff]  }
 0x199   : > { %3927 = vmatpush1.bf16.msra.mxu1 %v15008_v17  ;;  %3476 = vmatprep.subr.bf16.mxu0 %v15013_v20  ;;  %v17083_v17 = vcombine.low %v414_v49, %v418_v53  ;;  %v422_v20 = vld [vmem:[%s16869_s10 + $0x110] sm:$0xff] }
 0x19a   : > { %3928 = vmatprep.subr.bf16.mxu1 %v15016_v21  ;;  %v426_v21 = vld [vmem:[%s16869_s10 + $0x130] sm:$0xff] }
 0x19b   : > { %3402 = vmatmul.mubr.bf16.gmra.mrb[4].mxu0 %v17063_v26  ;;  %v15055_v49 = vld [vmem:[#allocation5 + $0xab4] ss:$24 sps:$4 sm:$0xff]  }
 0x19c   : > { %3854 = vmatmul.mubr.bf16.gmra.mrb[4].mxu1 %v17063_v26  ;;  %3477 = vmatpush1.bf16.msra.mxu0 %v15011_v29  ;;  %v17087_v29 = vcombine.high %v422_v20, %v426_v21  ;;  %v430_v53 = vld [vmem:[%s16869_s10 + $0x150] sm:$0xff] }
 0x19d   : > { %3929 = vmatpush1.bf16.msra.mxu1 %v15014_v33  ;;  %3478 = vmatprep.subr.bf16.mxu0 %v15019_v35  ;;  %v15041_v33 = vld [vmem:[#allocation5 + $0xa50] ss:$24 sps:$4 sm:$0xff]  }
 0x19e   : > { %3930 = vmatprep.subr.bf16.mxu1 %v15022_v37  ;;  %3411 = vmatprep.mubr.bf16.mxu0 %v17067_v38  ;;  %v15044_v35 = vld [vmem:[#allocation5 + $0xa58] ss:$24 sps:$4 sm:$0xff]   ;;  %v15049_v37 = vld [vmem:[#allocation5 + $0xa84] ss:$24 sps:$4 sm:$0xff]  }
 0x19f   : > { %3863 = vmatprep.mubr.bf16.mxu1 %v17067_v38 }
 0x1a0   : > { %3479 = vmatpush1.bf16.msra.mxu0 %v15017_v41  ;;  %v15052_v41 = vld [vmem:[#allocation5 + $0xa8c] ss:$24 sps:$4 sm:$0xff]  }
 0x1a1   : > { %3931 = vmatpush1.bf16.msra.mxu1 %v15020_v42  ;;  %3480 = vmatprep.subr.bf16.mxu0 %v15025_v44  ;;  %v15047_v42 = vld [vmem:[#allocation5 + $0xa80] ss:$24 sps:$4 sm:$0xff]  }
 0x1a2   : > { %3932 = vmatprep.subr.bf16.mxu1 %v15028_v47  ;;  %v15050_v44 = vld [vmem:[#allocation5 + $0xa88] ss:$24 sps:$4 sm:$0xff]   ;;  %v17093_v47 = vcombine.low %v422_v20, %v426_v21 }
 0x1a3   : > { %3412 = vmatmul.mubr.bf16.gmra.mrb[8].mxu0 %v17074_v52  ;;  %v15062_v20 = vld [vmem:[#allocation5 + $0xae8] ss:$24 sps:$4 sm:$0xff]  }
 0x1a4   : > { %3864 = vmatmul.mubr.bf16.gmra.mrb[8].mxu1 %v17074_v52  ;;  %3481 = vmatpush1.bf16.msra.mxu0 %v15023_v57  ;;  %v434_v57 = vld [vmem:[%s16869_s10 + $0x170] sm:$0xff] }
 0x1a5   : > { %3933 = vmatpush1.bf16.msra.mxu1 %v15026_v59  ;;  %3482 = vmatprep.subr.bf16.mxu0 %v15031_v60  ;;  %v15058_v59 = vld [vmem:[#allocation5 + $0xabc] ss:$24 sps:$4 sm:$0xff]   ;;  %v15053_v60 = vld [vmem:[#allocation5 + $0xab0] ss:$24 sps:$4 sm:$0xff]   ;;  %v17105_v21 = vcombine.low %v430_v53, %v434_v57 }
 0x1a6   : > { %3934 = vmatprep.subr.bf16.mxu1 %v15034_v62  ;;  %3421 = vmatprep.mubr.bf16.mxu0 %v17077_v0  ;;  %v15056_v62 = vld [vmem:[#allocation5 + $0xab8] ss:$24 sps:$4 sm:$0xff]  }
 0x1a7   : > { %3873 = vmatprep.mubr.bf16.mxu1 %v17077_v0 }
 0x1a8   : > { %3483 = vmatpush1.bf16.msra.mxu0 %v15029_v4  ;;  %v17097_v4 = vcombine.high %v430_v53, %v434_v57  ;;  %v15071_v53 = vld [vmem:[#allocation5 + $0xb40] ss:$24 sps:$4 sm:$0xff]  }
 0x1a9   : > { %3935 = vmatpush1.bf16.msra.mxu1 %v15032_v6  ;;  %3484 = vmatprep.subr.bf16.mxu0 %v15037_v8  ;;  %v15061_v6 = vld [vmem:[#allocation5 + $0xae4] ss:$24 sps:$4 sm:$0xff]   ;;  %v15074_v57 = vld [vmem:[#allocation5 + $0xb48] ss:$24 sps:$4 sm:$0xff]  }
 0x1aa   : > { %3936 = vmatprep.subr.bf16.mxu1 %v15040_v9  ;;  %v15064_v8 = vld [vmem:[#allocation5 + $0xaec] ss:$24 sps:$4 sm:$0xff]   ;;  %v438_v9 = vld [vmem:[%s16869_s10 + $0x190] sm:$0xff] }
 0x1ab   : > { %3422 = vmatmul.mubr.bf16.gmra.mrb[12].mxu0 %v17083_v17 }
 0x1ac   : > { %3874 = vmatmul.mubr.bf16.gmra.mrb[12].mxu1 %v17083_v17  ;;  %3485 = vmatpush1.bf16.msra.mxu0 %v15035_v11  ;;  %v442_v11 = vld [vmem:[%s16869_s10 + $0x1b0] sm:$0xff] }
 0x1ad   : > { %3937 = vmatpush1.bf16.msra.mxu1 %v15038_v16  ;;  %3486 = vmatprep.subr.bf16.mxu0 %v15043_v27  ;;  %v15059_v16 = vld [vmem:[#allocation5 + $0xae0] ss:$24 sps:$4 sm:$0xff]   ;;  %v15067_v27 = vld [vmem:[#allocation5 + $0xb14] ss:$24 sps:$4 sm:$0xff]  }
 0x1ae   : > { %3938 = vmatprep.subr.bf16.mxu1 %v15046_v28  ;;  %3431 = vmatprep.mubr.bf16.mxu0 %v17087_v29  ;;  %v15070_v28 = vld [vmem:[#allocation5 + $0xb1c] ss:$24 sps:$4 sm:$0xff]  }
 0x1af   : > { %3883 = vmatprep.mubr.bf16.mxu1 %v17087_v29 }
 0x1b0   : > { %3487 = vmatpush1.bf16.msra.mxu0 %v15041_v33  ;;  %v15065_v33 = vld [vmem:[#allocation5 + $0xb10] ss:$24 sps:$4 sm:$0xff]  }
 0x1b1   : > { %3939 = vmatpush1.bf16.msra.mxu1 %v15044_v35  ;;  %3488 = vmatprep.subr.bf16.mxu0 %v15049_v37  ;;  %v15068_v35 = vld [vmem:[#allocation5 + $0xb18] ss:$24 sps:$4 sm:$0xff]   ;;  %v17107_v37 = vcombine.high %v438_v9, %v442_v11 }
 0x1b2   : > { %3940 = vmatprep.subr.bf16.mxu1 %v15052_v41  ;;  %v15073_v41 = vld [vmem:[#allocation5 + $0xb44] ss:$24 sps:$4 sm:$0xff]  }
 0x1b3   : > { %3432 = vmatmul.mubr.bf16.gmra.mrb[16].mxu0 %v17093_v47 }
 0x1b4   : > { %3884 = vmatmul.mubr.bf16.gmra.mrb[16].mxu1 %v17093_v47  ;;  %3489 = vmatpush1.bf16.msra.mxu0 %v15047_v42  ;;  %v15076_v42 = vld [vmem:[#allocation5 + $0xb4c] ss:$24 sps:$4 sm:$0xff]  }
 0x1b5   : > { %3941 = vmatpush1.bf16.msra.mxu1 %v15050_v44  ;;  %3490 = vmatprep.subr.bf16.mxu0 %v15055_v49  ;;  %v446_v44 = vld [vmem:[%s16869_s10 + $0x1d0] sm:$0xff] }
 0x1b6   : > { %3942 = vmatprep.subr.bf16.mxu1 %v15058_v59  ;;  %3441 = vmatprep.mubr.bf16.mxu0 %v17097_v4  ;;  %v450_v49 = vld [vmem:[%s16869_s10 + $0x1f0] sm:$0xff]  ;;  %v17115_v59 = vcombine.low %v438_v9, %v442_v11  ;;  %v15085_v9 = vld [vmem:[#allocation5 + $0xba4] ss:$24 sps:$4 sm:$0xff]  }
 0x1b7   : > { %3893 = vmatprep.mubr.bf16.mxu1 %v17097_v4  ;;  %v15088_v11 = vld [vmem:[#allocation5 + $0xbac] ss:$24 sps:$4 sm:$0xff]  }
 0x1b8   : > { %3491 = vmatpush1.bf16.msra.mxu0 %v15053_v60  ;;  %v15079_v60 = vld [vmem:[#allocation5 + $0xb74] ss:$24 sps:$4 sm:$0xff]  }
 0x1b9   : > { %3943 = vmatpush1.bf16.msra.mxu1 %v15056_v62  ;;  %3492 = vmatprep.subr.bf16.mxu0 %v15061_v6  ;;  %v15082_v62 = vld [vmem:[#allocation5 + $0xb7c] ss:$24 sps:$4 sm:$0xff]   ;;  %v15077_v6 = vld [vmem:[#allocation5 + $0xb70] ss:$24 sps:$4 sm:$0xff]  }
 0x1ba   : > { %3944 = vmatprep.subr.bf16.mxu1 %v15064_v8  ;;  %v15080_v8 = vld [vmem:[#allocation5 + $0xb78] ss:$24 sps:$4 sm:$0xff]  }
 0x1bb   : > { %3442 = vmatmul.mubr.bf16.gmra.mrb[20].mxu0 %v17105_v21 }
 0x1bc   : > { %3894 = vmatmul.mubr.bf16.gmra.mrb[20].mxu1 %v17105_v21  ;;  %3493 = vmatpush1.bf16.msra.mxu0 %v15059_v16  ;;  %v17117_v16 = vcombine.high %v446_v44, %v450_v49 }
 0x1bd   : > { %3945 = vmatpush1.bf16.msra.mxu1 %v15062_v20  ;;  %3494 = vmatprep.subr.bf16.mxu0 %v15067_v27  ;;  %v391_v20 = vld [vmem:[%s16869_s10 + $0x18] sm:$0xff] }
 0x1be   : > { %3946 = vmatprep.subr.bf16.mxu1 %v15070_v28  ;;  %3451 = vmatprep.mubr.bf16.mxu0 %v17107_v37  ;;  %v395_v27 = vld [vmem:[%s16869_s10 + $0x38] sm:$0xff] }
 0x1bf   : > { %3903 = vmatprep.mubr.bf16.mxu1 %v17107_v37  ;;  %v15083_v28 = vld [vmem:[#allocation5 + $0xba0] ss:$24 sps:$4 sm:$0xff]  }
 0x1c0   : > { %3495 = vmatpush1.bf16.msra.mxu0 %v15065_v33  ;;  %v15086_v33 = vld [vmem:[#allocation5 + $0xba8] ss:$24 sps:$4 sm:$0xff]  }
 0x1c1   : > { %3947 = vmatpush1.bf16.msra.mxu1 %v15068_v35  ;;  %3496 = vmatprep.subr.bf16.mxu0 %v15073_v41  ;;  %v17125_v35 = vcombine.low %v446_v44, %v450_v49  ;;  %v15091_v41 = vld [vmem:[#allocation5 + $0xbd4] ss:$24 sps:$4 sm:$0xff]   ;;  %v399_v44 = vld [vmem:[%s16869_s10 + $0x58] sm:$0xff] }
 0x1c2   : > { %3948 = vmatprep.subr.bf16.mxu1 %v15076_v42  ;;  %v15094_v42 = vld [vmem:[#allocation5 + $0xbdc] ss:$24 sps:$4 sm:$0xff]  }
 0x1c3   : > { %3452 = vmatmul.mubr.bf16.gmra.mrb[24].mxu0 %v17115_v59  ;;  %18433 = vst [vmem:[#allocation20_spill] sm:$0xff] %v17125_v35  ;;  %v403_v49 = vld [vmem:[%s16869_s10 + $0x78] sm:$0xff] }
 0x1c4   : > { %3904 = vmatmul.mubr.bf16.gmra.mrb[24].mxu1 %v17115_v59  ;;  %3497 = vmatpush1.bf16.msra.mxu0 %v15071_v53  ;;  %v15089_v53 = vld [vmem:[#allocation5 + $0xbd0] ss:$24 sps:$4 sm:$0xff]  }
 0x1c5   : > { %3949 = vmatpush1.bf16.msra.mxu1 %v15074_v57  ;;  %3498 = vmatprep.subr.bf16.mxu0 %v15079_v60  ;;  %v15092_v57 = vld [vmem:[#allocation5 + $0xbd8] ss:$24 sps:$4 sm:$0xff]   ;;  %v17127_v60 = vcombine.high %v391_v20, %v395_v27 }
 0x1c6   : > { %3950 = vmatprep.subr.bf16.mxu1 %v15082_v62  ;;  %3461 = vmatprep.mubr.bf16.mxu0 %v17117_v16  ;;  %v15097_v62 = vld [vmem:[#allocation5 + $0x14] ss:$24 sps:$4 sm:$0xff]  }
 0x1c7   : > { %3913 = vmatprep.mubr.bf16.mxu1 %v17117_v16  ;;  %18434 = vst [vmem:[#allocation21_spill] sm:$0xff] %v17127_v60 }
 0x1c8   : > { %3499 = vmatpush1.bf16.msra.mxu0 %v15077_v6  ;;  %v15095_v6 = vld [vmem:[#allocation5 + $0x10] ss:$24 sps:$4 sm:$0xff]  }
 0x1c9   : > { %3951 = vmatpush1.bf16.msra.mxu1 %v15080_v8  ;;  %3500 = vmatprep.subr.bf16.mxu0 %v15085_v9  ;;  %v17135_v8 = vcombine.low %v391_v20, %v395_v27  ;;  %v17137_v9 = vcombine.high %v399_v44, %v403_v49  ;;  %v15101_v20 = vld [vmem:[#allocation5 + $0x70] ss:$24 sps:$4 sm:$0xff]   ;;  %v17145_v27 = vcombine.low %v399_v44, %v403_v49 }
 0x1ca   : > { %3952 = vmatprep.subr.bf16.mxu1 %v15088_v11  ;;  %v15100_v11 = vld [vmem:[#allocation5 + $0x44] ss:$24 sps:$4 sm:$0xff]   ;;  %v15107_v44 = vld [vmem:[#allocation5 + $0xd0] ss:$24 sps:$4 sm:$0xff]  }
 0x1cb   : > { %3462 = vmatmul.mubr.bf16.gmra.mrb[28].mxu0 %v17125_v35  ;;  %18435 = vst [vmem:[#allocation22_spill] sm:$0xff] %v17135_v8  ;;  %18436 = vst [vmem:[#allocation23_spill] sm:$0xff] %v17137_v9 }
 0x1cc   : > { %3914 = vmatmul.mubr.bf16.gmra.mrb[28].mxu1 %v17125_v35  ;;  %3501 = vmatpush1.bf16.msra.mxu0 %v15083_v28  ;;  %v15098_v28 = vld [vmem:[#allocation5 + $0x40] ss:$24 sps:$4 sm:$0xff]   ;;  %18437 = vst [vmem:[#allocation24_spill] sm:$0xff] %v17145_v27 }
 0x1cd   : > { %3953 = vmatpush1.bf16.msra.mxu1 %v15086_v33  ;;  %3502 = vmatprep.subr.bf16.mxu0 %v15091_v41  ;;  %v15103_v33 = vld [vmem:[#allocation5 + $0x74] ss:$24 sps:$4 sm:$0xff]   ;;  %v407_v41 = vld [vmem:[%s16869_s10 + $0x98] sm:$0xff] }
 0x1ce   : > { %3954 = vmatprep.subr.bf16.mxu1 %v15094_v42  ;;  %3504 = vmatprep.mubr.bf16.mxu0 %v17127_v60  ;;  %v411_v42 = vld [vmem:[%s16869_s10 + $0xb8] sm:$0xff] }
 0x1cf   : > { %3956 = vmatprep.mubr.bf16.mxu1 %v17127_v60  ;;  %v17155_v49 = vcombine.low %v407_v41, %v411_v42  ;;  %v15128_v60 = vld [vmem:[#allocation5 + $0x220] ss:$24 sps:$4 sm:$0xff]  }
 0x1d0   : > { %3503 = vmatpush1.bf16.msra.mxu0 %v15089_v53  ;;  %v17147_v53 = vcombine.high %v407_v41, %v411_v42  ;;  %v15113_v41 = vld [vmem:[#allocation5 + $0x130] ss:$24 sps:$4 sm:$0xff]   ;;  %v15227_v35 = vld [vmem:[#allocation7 + $0x60] ss:$24 sps:$4 sm:$0xff]  }
 0x1d1   : > { %3955 = vmatpush1.bf16.msra.mxu1 %v15092_v57  ;;  %4037 = vmatprep.subr.bf16.mxu0 %v15097_v62  ;;  %v15106_v57 = vld [vmem:[#allocation5 + $0xa4] ss:$24 sps:$4 sm:$0xff]   ;;  %v15104_v62 = vld [vmem:[#allocation5 + $0xa0] ss:$24 sps:$4 sm:$0xff]   ;;  %18439 = vst [vmem:[#allocation26_spill] sm:$0xff] %v17155_v49 }
 0x1d2   : > { %18438 = vst [vmem:[#allocation25_spill] sm:$0xff] %v17147_v53 }
 0x1d3   : > { %3505 = vmatmul.mubr.bf16.vlgmr.msra.gmra.mrb[0].mxu0 %v17135_v8 }
 0x1d4   : > { %3957 = vmatmul.mubr.bf16.vlgmr.msra.gmra.mrb[0].mxu1 %v17135_v8  ;;  %4038 = vmatpush1.bf16.msra.mxu0 %v15095_v6  ;;  %v15109_v6 = vld [vmem:[#allocation5 + $0xd4] ss:$24 sps:$4 sm:$0xff]   ;;  %v435_v8 = vld [vmem:[%s16869_s10 + $0x178] sm:$0xff] }
 0x1d5   : > { %3514 = vmatprep.mubr.bf16.mxu0 %v17137_v9  ;;  %4039 = vmatprep.subr.bf16.mxu0 %v15100_v11  ;;  %v415_v11 = vld [vmem:[%s16869_s10 + $0xd8] sm:$0xff] }
 0x1d6   : > { %3966 = vmatprep.mubr.bf16.mxu1 %v17137_v9  ;;  %v419_v9 = vld [vmem:[%s16869_s10 + $0xf8] sm:$0xff] }
 0x1d7   : > { %v17165_v42 = vcombine.low %v415_v11, %v419_v9 }
 0x1d8   : > { %4040 = vmatpush1.bf16.msra.mxu0 %v15098_v28  ;;  %v17157_v28 = vcombine.high %v415_v11, %v419_v9  ;;  %v15119_v9 = vld [vmem:[#allocation5 + $0x190] ss:$24 sps:$4 sm:$0xff]   ;;  %v15217_v11 = vld [vmem:[#allocation7 + $0x4] ss:$24 sps:$4 sm:$0xff]  }
 0x1d9   : > { %4041 = vmatprep.subr.bf16.mxu0 %v15103_v33  ;;  %v15112_v33 = vld [vmem:[#allocation5 + $0x104] ss:$24 sps:$4 sm:$0xff]   ;;  %18441 = vst [vmem:[#allocation28_spill] sm:$0xff] %v17165_v42  ;;  %6415 = vmatprep.subr.bf16.mxu1 %v15217_v11  ;;  %v15125_v11 = vld [vmem:[#allocation5 + $0x1f0] ss:$24 sps:$4 sm:$0xff]  }
 0x1da   : > { %18440 = vst [vmem:[#allocation27_spill] sm:$0xff] %v17157_v28 }
 0x1db   : > { %3515 = vmatmul.mubr.bf16.gmra.mrb[4].mxu0 %v17145_v27 }
 0x1dc   : > { %3967 = vmatmul.mubr.bf16.gmra.mrb[4].mxu1 %v17145_v27  ;;  %4042 = vmatpush1.bf16.msra.mxu0 %v15101_v20  ;;  %v15110_v27 = vld [vmem:[#allocation5 + $0x100] ss:$24 sps:$4 sm:$0xff]   ;;  %v15115_v20 = vld [vmem:[#allocation5 + $0x134] ss:$24 sps:$4 sm:$0xff]  }
 0x1dd   : > { %3524 = vmatprep.mubr.bf16.mxu0 %v17147_v53  ;;  %4043 = vmatprep.subr.bf16.mxu0 %v15106_v57  ;;  %v423_v57 = vld [vmem:[%s16869_s10 + $0x118] sm:$0xff] }
 0x1de   : > { %3976 = vmatprep.mubr.bf16.mxu1 %v17147_v53  ;;  %v427_v53 = vld [vmem:[%s16869_s10 + $0x138] sm:$0xff] }
 0x1e0   : > { %4044 = vmatpush1.bf16.msra.mxu0 %v15104_v62  ;;  %v17167_v62 = vcombine.high %v423_v57, %v427_v53 }
 0x1e1   : > { %4045 = vmatprep.subr.bf16.mxu0 %v15109_v6  ;;  %v15118_v6 = vld [vmem:[#allocation5 + $0x164] ss:$24 sps:$4 sm:$0xff]  }
 0x1e2   : > { %18442 = vst [vmem:[#allocation29_spill] sm:$0xff] %v17167_v62 }
 0x1e3   : > { %3525 = vmatmul.mubr.bf16.gmra.mrb[8].mxu0 %v17155_v49 }
 0x1e4   : > { %3977 = vmatmul.mubr.bf16.gmra.mrb[8].mxu1 %v17155_v49  ;;  %4046 = vmatpush1.bf16.msra.mxu0 %v15107_v44  ;;  %v15116_v49 = vld [vmem:[#allocation5 + $0x160] ss:$24 sps:$4 sm:$0xff]   ;;  %v15121_v44 = vld [vmem:[#allocation5 + $0x194] ss:$24 sps:$4 sm:$0xff]  }
 0x1e5   : > { %3534 = vmatprep.mubr.bf16.mxu0 %v17157_v28  ;;  %4047 = vmatprep.subr.bf16.mxu0 %v15112_v33  ;;  %v431_v33 = vld [vmem:[%s16869_s10 + $0x158] sm:$0xff] }
 0x1e6   : > { %3986 = vmatprep.mubr.bf16.mxu1 %v17157_v28  ;;  %v15215_v28 = vld [vmem:[#allocation7] ss:$24 sps:$4 sm:$0xff]  }
 0x1e7   : > { %6416 = vmatpush1.bf16.msra.mxu1 %v15215_v28  ;;  %v15229_v28 = vld [vmem:[#allocation7 + $0x64] ss:$24 sps:$4 sm:$0xff]  }
 0x1e8   : > { %4048 = vmatpush1.bf16.msra.mxu0 %v15110_v27  ;;  %v17175_v27 = vcombine.low %v423_v57, %v427_v53  ;;  %v439_v53 = vld [vmem:[%s16869_s10 + $0x198] sm:$0xff] }
 0x1e9   : > { %4049 = vmatprep.subr.bf16.mxu0 %v15115_v20  ;;  %v17177_v20 = vcombine.high %v431_v33, %v435_v8  ;;  %v443_v57 = vld [vmem:[%s16869_s10 + $0x1b8] sm:$0xff] }
 0x1ea   : > { %18443 = vst [vmem:[#allocation30_spill] sm:$0xff] %v17175_v27 }
 0x1eb   : > { %3535 = vmatmul.mubr.bf16.gmra.mrb[12].mxu0 %v17165_v42  ;;  %18444 = vst [vmem:[#allocation31_spill] sm:$0xff] %v17177_v20 }
 0x1ec   : > { %3987 = vmatmul.mubr.bf16.gmra.mrb[12].mxu1 %v17165_v42  ;;  %4050 = vmatpush1.bf16.msra.mxu0 %v15113_v41  ;;  %v15124_v42 = vld [vmem:[#allocation5 + $0x1c4] ss:$24 sps:$4 sm:$0xff]   ;;  %v15122_v41 = vld [vmem:[#allocation5 + $0x1c0] ss:$24 sps:$4 sm:$0xff]  }
 0x1ed   : > { %3544 = vmatprep.mubr.bf16.mxu0 %v17167_v62  ;;  %4051 = vmatprep.subr.bf16.mxu0 %v15118_v6  ;;  %v15127_v6 = vld [vmem:[#allocation5 + $0x1f4] ss:$24 sps:$4 sm:$0xff]  }
 0x1ee   : > { %3996 = vmatprep.mubr.bf16.mxu1 %v17167_v62  ;;  %v15223_v62 = vld [vmem:[#allocation7 + $0x34] ss:$24 sps:$4 sm:$0xff]  }
 0x1ef   : > { %6417 = vmatprep.subr.bf16.mxu1 %v15223_v62  ;;  %v447_v62 = vld [vmem:[%s16869_s10 + $0x1d8] sm:$0xff] }
 0x1f0   : > { %4052 = vmatpush1.bf16.msra.mxu0 %v15116_v49  ;;  %v15221_v49 = vld [vmem:[#allocation7 + $0x30] ss:$24 sps:$4 sm:$0xff]  }
 0x1f1   : > { %4053 = vmatprep.subr.bf16.mxu0 %v15121_v44  ;;  %v17185_v44 = vcombine.low %v431_v33, %v435_v8  ;;  %6418 = vmatpush1.bf16.msra.mxu1 %v15221_v49  ;;  %v15235_v8 = vld [vmem:[#allocation7 + $0x94] ss:$24 sps:$4 sm:$0xff]   ;;  %v451_v33 = vld [vmem:[%s16869_s10 + $0x1f8] sm:$0xff]  ;;  %v15131_v49 = vld [vmem:[#allocation5 + $0x250] ss:$24 sps:$4 sm:$0xff]  }
 0x1f2   : > { %6419 = vmatprep.subr.bf16.mxu1 %v15229_v28  ;;  %v17197_v28 = vcombine.high %v447_v62, %v451_v33 }
 0x1f3   : > { %3545 = vmatmul.mubr.bf16.gmra.mrb[16].mxu0 %v17175_v27  ;;  %18445 = vst [vmem:[#allocation32_spill] sm:$0xff] %v17185_v44 }
 0x1f4   : > { %3997 = vmatmul.mubr.bf16.gmra.mrb[16].mxu1 %v17175_v27  ;;  %4054 = vmatpush1.bf16.msra.mxu0 %v15119_v9  ;;  %v17187_v27 = vcombine.high %v439_v53, %v443_v57  ;;  %v15130_v9 = vld [vmem:[#allocation5 + $0x224] ss:$24 sps:$4 sm:$0xff]  }
 0x1f5   : > { %3554 = vmatprep.mubr.bf16.mxu0 %v17177_v20  ;;  %4055 = vmatprep.subr.bf16.mxu0 %v15124_v42  ;;  %v15133_v42 = vld [vmem:[#allocation5 + $0x254] ss:$24 sps:$4 sm:$0xff]  }
 0x1f6   : > { %4006 = vmatprep.mubr.bf16.mxu1 %v17177_v20  ;;  %6420 = vmatpush1.bf16.msra.mxu1 %v15227_v35  ;;  %v15239_v20 = vld [vmem:[#allocation7 + $0xc0] ss:$24 sps:$4 sm:$0xff]   ;;  %v15139_v35 = vld [vmem:[#allocation5 + $0x2b4] ss:$24 sps:$4 sm:$0xff]  }
 0x1f7   : > { %6421 = vmatprep.subr.bf16.mxu1 %v15235_v8  ;;  %v15245_v8 = vld [vmem:[#allocation7 + $0xf0] ss:$24 sps:$4 sm:$0xff]  }
 0x1f8   : > { %4056 = vmatpush1.bf16.msra.mxu0 %v15122_v41  ;;  %v15233_v41 = vld [vmem:[#allocation7 + $0x90] ss:$24 sps:$4 sm:$0xff]  }
 0x1f9   : > { %4057 = vmatprep.subr.bf16.mxu0 %v15127_v6  ;;  %v17195_v6 = vcombine.low %v439_v53, %v443_v57  ;;  %v15247_v53 = vld [vmem:[#allocation7 + $0xf4] ss:$24 sps:$4 sm:$0xff]   ;;  %v15137_v57 = vld [vmem:[#allocation5 + $0x2b0] ss:$24 sps:$4 sm:$0xff]  }
 0x1fa   : > { %6422 = vmatpush1.bf16.msra.mxu1 %v15233_v41  ;;  %v15253_v41 = vld [vmem:[#allocation7 + $0x124] ss:$24 sps:$4 sm:$0xff]  }
 0x1fb   : > { %3555 = vmatmul.mubr.bf16.gmra.mrb[20].mxu0 %v17185_v44 }
 0x1fc   : > { %4007 = vmatmul.mubr.bf16.gmra.mrb[20].mxu1 %v17185_v44  ;;  %4058 = vmatpush1.bf16.msra.mxu0 %v15125_v11  ;;  %v15136_v44 = vld [vmem:[#allocation5 + $0x284] ss:$24 sps:$4 sm:$0xff]  }
 0x1fd   : > { %3564 = vmatprep.mubr.bf16.mxu0 %v17187_v27  ;;  %4059 = vmatprep.subr.bf16.mxu0 %v15130_v9  ;;  %v15241_v11 = vld [vmem:[#allocation7 + $0xc4] ss:$24 sps:$4 sm:$0xff]   ;;  %v15134_v9 = vld [vmem:[#allocation5 + $0x280] ss:$24 sps:$4 sm:$0xff]  }
 0x1fe   : > { %4016 = vmatprep.mubr.bf16.mxu1 %v17187_v27  ;;  %6423 = vmatprep.subr.bf16.mxu1 %v15241_v11  ;;  %v15251_v11 = vld [vmem:[#allocation7 + $0x120] ss:$24 sps:$4 sm:$0xff]  }
 0x1ff   : > { %6424 = vmatpush1.bf16.msra.mxu1 %v15239_v20  ;;  %v15143_v20 = vld [vmem:[#allocation5 + $0x310] ss:$24 sps:$4 sm:$0xff]  }
 0x200   : > { %4060 = vmatpush1.bf16.msra.mxu0 %v15128_v60  ;;  %v17203_v60 = vcombine.low %v447_v62, %v451_v33  ;;  %6425 = vmatprep.subr.bf16.mxu1 %v15247_v53  ;;  %v15259_v62 = vld [vmem:[#allocation7 + $0x154] ss:$24 sps:$4 sm:$0xff]   ;;  %v15148_v33 = vld [vmem:[#allocation5 + $0x344] ss:$24 sps:$4 sm:$0xff]   ;;  %v15146_v53 = vld [vmem:[#allocation5 + $0x340] ss:$24 sps:$4 sm:$0xff]  }
 0x201   : > { %4061 = vmatprep.subr.bf16.mxu0 %v15133_v42  ;;  %v15142_v42 = vld [vmem:[#allocation5 + $0x2e4] ss:$24 sps:$4 sm:$0xff]  }
 0x202   : > { %18446 = vst [vmem:[#allocation33_spill] sm:$0xff] %v17203_v60 }
 0x203   : > { %3565 = vmatmul.mubr.bf16.gmra.mrb[24].mxu0 %v17195_v6  ;;  %6426 = vmatpush1.bf16.msra.mxu1 %v15245_v8  ;;  %v15154_v8 = vld [vmem:[#allocation5 + $0x3a4] ss:$24 sps:$4 sm:$0xff]  }
 0x204   : > { %4017 = vmatmul.mubr.bf16.gmra.mrb[24].mxu1 %v17195_v6  ;;  %4062 = vmatpush1.bf16.msra.mxu0 %v15131_v49  ;;  %v15140_v49 = vld [vmem:[#allocation5 + $0x2e0] ss:$24 sps:$4 sm:$0xff]  }
 0x205   : > { %3574 = vmatprep.mubr.bf16.mxu0 %v17197_v28  ;;  %4063 = vmatprep.subr.bf16.mxu0 %v15136_v44  ;;  %v15145_v44 = vld [vmem:[#allocation5 + $0x314] ss:$24 sps:$4 sm:$0xff]  }
 0x206   : > { %4026 = vmatprep.mubr.bf16.mxu1 %v17197_v28  ;;  %6427 = vmatprep.subr.bf16.mxu1 %v15253_v41  ;;  %v15269_v41 = vld [vmem:[#allocation7 + $0x1b0] ss:$24 sps:$4 sm:$0xff]  }
 0x207   : > { %6428 = vmatpush1.bf16.msra.mxu1 %v15251_v11  ;;  %v15283_v11 = vld [vmem:[#allocation7 + $0x214] ss:$24 sps:$4 sm:$0xff]  }
 0x208   : > { %4064 = vmatpush1.bf16.msra.mxu0 %v15134_v9  ;;  %v15257_v9 = vld [vmem:[#allocation7 + $0x150] ss:$24 sps:$4 sm:$0xff]   ;;  %6429 = vmatprep.subr.bf16.mxu1 %v15259_v62 }
 0x209   : > { %4065 = vmatprep.subr.bf16.mxu0 %v15139_v35  ;;  %v15265_v35 = vld [vmem:[#allocation7 + $0x184] ss:$24 sps:$4 sm:$0xff]   ;;  %v15155_v62 = vld [vmem:[#allocation5 + $0x3d0] ss:$24 sps:$4 sm:$0xff]  }
 0x20b   : > { %3575 = vmatmul.mubr.bf16.gmra.mrb[28].mxu0 %v17203_v60  ;;  %6430 = vmatpush1.bf16.msra.mxu1 %v15257_v9  ;;  %v15287_v9 = vld [vmem:[#allocation7 + $0x240] ss:$24 sps:$4 sm:$0xff]  }
 0x20c   : > { %4027 = vmatmul.mubr.bf16.gmra.mrb[28].mxu1 %v17203_v60  ;;  %4066 = vmatpush1.bf16.msra.mxu0 %v15137_v57  ;;  %v15263_v57 = vld [vmem:[#allocation7 + $0x180] ss:$24 sps:$4 sm:$0xff]   ;;  %v15271_v60 = vld [vmem:[#allocation7 + $0x1b4] ss:$24 sps:$4 sm:$0xff]  }
 0x20d   : > { %4069 = vmatprep.mubr.bf16.mxu0 %v16889_v50  ;;  %4067 = vmatprep.subr.bf16.mxu0 %v15142_v42  ;;  %v15151_v50 = vld [vmem:[#allocation5 + $0x374] ss:$24 sps:$4 sm:$0xff]   ;;  %v15149_v42 = vld [vmem:[#allocation5 + $0x370] ss:$24 sps:$4 sm:$0xff]  }
 0x20e   : > { %6431 = vmatprep.subr.bf16.mxu1 %v15265_v35  ;;  %v15295_v35 = vld [vmem:[#allocation7 + $0x274] ss:$24 sps:$4 sm:$0xff]  }
 0x20f   : > { %6432 = vmatpush1.bf16.msra.mxu1 %v15263_v57  ;;  %v15293_v57 = vld [vmem:[#allocation7 + $0x270] ss:$24 sps:$4 sm:$0xff]  }
 0x210   : > { %4068 = vmatpush1.bf16.msra.mxu0 %v15140_v49  ;;  %6433 = vmatprep.subr.bf16.mxu1 %v15271_v60  ;;  %v15277_v49 = vld [vmem:[#allocation7 + $0x1e4] ss:$24 sps:$4 sm:$0xff]  }
 0x211   : > { %4150 = vmatprep.subr.bf16.mxu0 %v15145_v44  ;;  %v15275_v44 = vld [vmem:[#allocation7 + $0x1e0] ss:$24 sps:$4 sm:$0xff]   ;;  %v15289_v60 = vld [vmem:[#allocation7 + $0x244] ss:$24 sps:$4 sm:$0xff]  }
 0x213   : > { %4070 = vmatmul.mubr.bf16.vlgmr.msra.gmra.mrb[32].mxu0 %v16893_v7  ;;  %v15152_v7 = vld [vmem:[#allocation5 + $0x3a0] ss:$24 sps:$4 sm:$0xff]   ;;  %6434 = vmatpush1.bf16.msra.mxu1 %v15269_v41  ;;  %v15307_v41 = vld [vmem:[#allocation7 + $0x2d4] ss:$24 sps:$4 sm:$0xff]  }
 0x214   : > { %4151 = vmatpush1.bf16.msra.mxu0 %v15143_v20  ;;  %4079 = vmatprep.mubr.bf16.mxu0 %v16897_v12  ;;  %v15157_v12 = vld [vmem:[#allocation5 + $0x3d4] ss:$24 sps:$4 sm:$0xff]   ;;  %v15160_v20 = vld [vmem:[#allocation5 + $0x404] ss:$24 sps:$4 sm:$0xff]  }
 0x215   : > { %4152 = vmatprep.subr.bf16.mxu0 %v15148_v33  ;;  %6435 = vmatprep.subr.bf16.mxu1 %v15277_v49  ;;  %v15281_v33 = vld [vmem:[#allocation7 + $0x210] ss:$24 sps:$4 sm:$0xff]  }
 0x216   : > { %v15167_v49 = vld [vmem:[#allocation5 + $0x490] ss:$24 sps:$4 sm:$0xff]  }
 0x217   : > { %6436 = vmatpush1.bf16.msra.mxu1 %v15275_v44  ;;  %v15313_v44 = vld [vmem:[#allocation7 + $0x304] ss:$24 sps:$4 sm:$0xff]  }
 0x218   : > { %4153 = vmatpush1.bf16.msra.mxu0 %v15146_v53  ;;  %6437 = vmatprep.subr.bf16.mxu1 %v15283_v11  ;;  %v15161_v53 = vld [vmem:[#allocation5 + $0x430] ss:$24 sps:$4 sm:$0xff]  }
 0x219   : > { %4154 = vmatprep.subr.bf16.mxu0 %v15151_v50  ;;  %v15166_v50 = vld [vmem:[#allocation5 + $0x464] ss:$24 sps:$4 sm:$0xff]   ;;  %v15173_v11 = vld [vmem:[#allocation5 + $0x4f0] ss:$24 sps:$4 sm:$0xff]  }
 0x21b   : > { %4080 = vmatmul.mubr.bf16.gmra.mrb[36].mxu0 %v16904_v18  ;;  %v15158_v18 = vld [vmem:[#allocation5 + $0x400] ss:$24 sps:$4 sm:$0xff]   ;;  %6438 = vmatpush1.bf16.msra.mxu1 %v15281_v33  ;;  %v15179_v33 = vld [vmem:[#allocation5 + $0x550] ss:$24 sps:$4 sm:$0xff]  }
 0x21c   : > { %4155 = vmatpush1.bf16.msra.mxu0 %v15149_v42  ;;  %4089 = vmatprep.mubr.bf16.mxu0 %v16907_v24  ;;  %v15163_v24 = vld [vmem:[#allocation5 + $0x434] ss:$24 sps:$4 sm:$0xff]   ;;  %v15301_v42 = vld [vmem:[#allocation7 + $0x2a4] ss:$24 sps:$4 sm:$0xff]  }
 0x21d   : > { %4156 = vmatprep.subr.bf16.mxu0 %v15154_v8  ;;  %6439 = vmatprep.subr.bf16.mxu1 %v15289_v60  ;;  %v15299_v8 = vld [vmem:[#allocation7 + $0x2a0] ss:$24 sps:$4 sm:$0xff]  }
 0x21e   : > { %v15182_v60 = vld [vmem:[#allocation5 + $0x580] ss:$24 sps:$4 sm:$0xff]  }
 0x21f   : > { %6440 = vmatpush1.bf16.msra.mxu1 %v15287_v9  ;;  %v15193_v9 = vld [vmem:[#allocation5 + $0x614] ss:$24 sps:$4 sm:$0xff]  }
 0x220   : > { %4157 = vmatpush1.bf16.msra.mxu0 %v15152_v7  ;;  %6441 = vmatprep.subr.bf16.mxu1 %v15295_v35  ;;  %v15172_v7 = vld [vmem:[#allocation5 + $0x4c4] ss:$24 sps:$4 sm:$0xff]  }
 0x221   : > { %4158 = vmatprep.subr.bf16.mxu0 %v15157_v12  ;;  %v15305_v12 = vld [vmem:[#allocation7 + $0x2d0] ss:$24 sps:$4 sm:$0xff]   ;;  %v15196_v35 = vld [vmem:[#allocation5 + $0x644] ss:$24 sps:$4 sm:$0xff]  }
 0x223   : > { %4090 = vmatmul.mubr.bf16.gmra.mrb[40].mxu0 %v16914_v30  ;;  %v15164_v30 = vld [vmem:[#allocation5 + $0x460] ss:$24 sps:$4 sm:$0xff]   ;;  %6442 = vmatpush1.bf16.msra.mxu1 %v15293_v57  ;;  %v15205_v57 = vld [vmem:[#allocation5 + $0x6d4] ss:$24 sps:$4 sm:$0xff]  }
 0x224   : > { %4159 = vmatpush1.bf16.msra.mxu0 %v15155_v62  ;;  %4099 = vmatprep.mubr.bf16.mxu0 %v16917_v36  ;;  %v15169_v36 = vld [vmem:[#allocation5 + $0x494] ss:$24 sps:$4 sm:$0xff]   ;;  %v15178_v62 = vld [vmem:[#allocation5 + $0x524] ss:$24 sps:$4 sm:$0xff]  }
 0x225   : > { %4160 = vmatprep.subr.bf16.mxu0 %v15160_v20  ;;  %6443 = vmatprep.subr.bf16.mxu1 %v15301_v42  ;;  %v15176_v20 = vld [vmem:[#allocation5 + $0x520] ss:$24 sps:$4 sm:$0xff]   ;;  %v15208_v42 = vld [vmem:[#allocation5 + $0x704] ss:$24 sps:$4 sm:$0xff]  }
 0x227   : > { %6444 = vmatpush1.bf16.msra.mxu1 %v15299_v8  ;;  %v15220_v8 = vld [vmem:[#allocation5 + $0x794] ss:$24 sps:$4 sm:$0xff]  }
 0x228   : > { %4161 = vmatpush1.bf16.msra.mxu0 %v15158_v18  ;;  %6445 = vmatprep.subr.bf16.mxu1 %v15307_v41  ;;  %v15187_v18 = vld [vmem:[#allocation5 + $0x5b4] ss:$24 sps:$4 sm:$0xff]   ;;  %v15218_v41 = vld [vmem:[#allocation5 + $0x790] ss:$24 sps:$4 sm:$0xff]  }
 0x229   : > { %4162 = vmatprep.subr.bf16.mxu0 %v15163_v24  ;;  %v15190_v24 = vld [vmem:[#allocation5 + $0x5e4] ss:$24 sps:$4 sm:$0xff]  }
 0x22b   : > { %4100 = vmatmul.mubr.bf16.gmra.mrb[44].mxu0 %v16923_v43  ;;  %v15170_v43 = vld [vmem:[#allocation5 + $0x4c0] ss:$24 sps:$4 sm:$0xff]   ;;  %6446 = vmatpush1.bf16.msra.mxu1 %v15305_v12  ;;  %v15244_v12 = vld [vmem:[#allocation5 + $0x854] ss:$24 sps:$4 sm:$0xff]  }
 0x22c   : > { %4163 = vmatpush1.bf16.msra.mxu0 %v15161_v53  ;;  %4109 = vmatprep.mubr.bf16.mxu0 %v16927_v48  ;;  %v15175_v48 = vld [vmem:[#allocation5 + $0x4f4] ss:$24 sps:$4 sm:$0xff]  }
 0x22d   : > { %4164 = vmatprep.subr.bf16.mxu0 %v15166_v50  ;;  %6528 = vmatprep.subr.bf16.mxu1 %v15313_v44  ;;  %v15199_v53 = vld [vmem:[#allocation5 + $0x674] ss:$24 sps:$4 sm:$0xff]   ;;  %v15202_v50 = vld [vmem:[#allocation5 + $0x6a4] ss:$24 sps:$4 sm:$0xff]   ;;  %v15242_v44 = vld [vmem:[#allocation5 + $0x850] ss:$24 sps:$4 sm:$0xff]  }
 0x230   : > { %4165 = vmatpush1.bf16.msra.mxu0 %v15164_v30  ;;  %v15211_v30 = vld [vmem:[#allocation5 + $0x734] ss:$24 sps:$4 sm:$0xff]  }
 0x231   : > { %4166 = vmatprep.subr.bf16.mxu0 %v15169_v36  ;;  %v15214_v36 = vld [vmem:[#allocation5 + $0x764] ss:$24 sps:$4 sm:$0xff]  }
 0x233   : > { %4110 = vmatmul.mubr.bf16.gmra.mrb[48].mxu0 %v16934_v55  ;;  %v15181_v55 = vld [vmem:[#allocation5 + $0x554] ss:$24 sps:$4 sm:$0xff]  }
 0x234   : > { %4167 = vmatpush1.bf16.msra.mxu0 %v15167_v49  ;;  %4119 = vmatprep.mubr.bf16.mxu0 %v16937_v61  ;;  %v15184_v61 = vld [vmem:[#allocation5 + $0x584] ss:$24 sps:$4 sm:$0xff]   ;;  %v15232_v49 = vld [vmem:[#allocation5 + $0x7f4] ss:$24 sps:$4 sm:$0xff]  }
 0x235   : > { %4168 = vmatprep.subr.bf16.mxu0 %v15172_v7  ;;  %v15230_v7 = vld [vmem:[#allocation5 + $0x7f0] ss:$24 sps:$4 sm:$0xff]  }
 0x238   : > { %4169 = vmatpush1.bf16.msra.mxu0 %v15170_v43  ;;  %v15256_v43 = vld [vmem:[#allocation5 + $0x8b4] ss:$24 sps:$4 sm:$0xff]  }
 0x239   : > { %4170 = vmatprep.subr.bf16.mxu0 %v15175_v48  ;;  %v15254_v48 = vld [vmem:[#allocation5 + $0x8b0] ss:$24 sps:$4 sm:$0xff]  }
 0x23b   : > { %4120 = vmatmul.mubr.bf16.gmra.mrb[52].mxu0 %v16944_v3  ;;  %v15185_v3 = vld [vmem:[#allocation5 + $0x5b0] ss:$24 sps:$4 sm:$0xff]  }
 0x23c   : > { %4171 = vmatpush1.bf16.msra.mxu0 %v15173_v11  ;;  %4129 = vmatprep.mubr.bf16.mxu0 %v16947_v10  ;;  %v15188_v10 = vld [vmem:[#allocation5 + $0x5e0] ss:$24 sps:$4 sm:$0xff]   ;;  %v15268_v11 = vld [vmem:[#allocation5 + $0x914] ss:$24 sps:$4 sm:$0xff]  }
 0x23d   : > { %4172 = vmatprep.subr.bf16.mxu0 %v15178_v62  ;;  %v15266_v62 = vld [vmem:[#allocation5 + $0x910] ss:$24 sps:$4 sm:$0xff]  }
 0x240   : > { %4173 = vmatpush1.bf16.msra.mxu0 %v15176_v20  ;;  %v15272_v20 = vld [vmem:[#allocation5 + $0x940] ss:$24 sps:$4 sm:$0xff]  }
 0x241   : > { %4174 = vmatprep.subr.bf16.mxu0 %v15181_v55  ;;  %v15280_v55 = vld [vmem:[#allocation5 + $0x974] ss:$24 sps:$4 sm:$0xff]  }
 0x243   : > { %4130 = vmatmul.mubr.bf16.gmra.mrb[56].mxu0 %v16953_v19  ;;  %v15191_v19 = vld [vmem:[#allocation5 + $0x610] ss:$24 sps:$4 sm:$0xff]  }
 0x244   : > { %4175 = vmatpush1.bf16.msra.mxu0 %v15179_v33  ;;  %4139 = vmatprep.mubr.bf16.mxu0 %v16957_v25  ;;  %v15194_v25 = vld [vmem:[#allocation5 + $0x640] ss:$24 sps:$4 sm:$0xff]  }
 0x245   : > { %4176 = vmatprep.subr.bf16.mxu0 %v15184_v61  ;;  %v15284_v61 = vld [vmem:[#allocation5 + $0x9a0] ss:$24 sps:$4 sm:$0xff]  }
 0x248   : > { %4177 = vmatpush1.bf16.msra.mxu0 %v15182_v60  ;;  %v15292_v60 = vld [vmem:[#allocation5 + $0x9d4] ss:$24 sps:$4 sm:$0xff]  }
 0x249   : > { %4178 = vmatprep.subr.bf16.mxu0 %v15187_v18 }
 0x24b   : > { %4140 = vmatmul.mubr.bf16.gmra.mrb[60].mxu0 %v16964_v32  ;;  %v15197_v32 = vld [vmem:[#allocation5 + $0x670] ss:$24 sps:$4 sm:$0xff]  }
 0x24c   : > { %4179 = vmatpush1.bf16.msra.mxu0 %v15185_v3  ;;  %4182 = vmatprep.mubr.bf16.mxu0 %v16967_v39  ;;  %v15200_v39 = vld [vmem:[#allocation5 + $0x6a0] ss:$24 sps:$4 sm:$0xff]  }
 0x24d   : > { %4180 = vmatprep.subr.bf16.mxu0 %v15190_v24  ;;  %v15290_v24 = vld [vmem:[#allocation5 + $0x9d0] ss:$24 sps:$4 sm:$0xff]  }
 0x250   : > { %4181 = vmatpush1.bf16.msra.mxu0 %v15188_v10 }
 0x251   : > { %4263 = vmatprep.subr.bf16.mxu0 %v15193_v9 }
 0x253   : > { %4183 = vmatmul.mubr.bf16.vlgmr.msra.gmra.mrb[32].mxu0 %v16974_v46  ;;  %v15203_v46 = vld [vmem:[#allocation5 + $0x6d0] ss:$24 sps:$4 sm:$0xff]  }
 0x254   : > { %4264 = vmatpush1.bf16.msra.mxu0 %v15191_v19  ;;  %4192 = vmatprep.mubr.bf16.mxu0 %v16977_v54  ;;  %v15206_v54 = vld [vmem:[#allocation5 + $0x700] ss:$24 sps:$4 sm:$0xff]  }
 0x255   : > { %4265 = vmatprep.subr.bf16.mxu0 %v15196_v35  ;;  %v15298_v35 = vld [vmem:[#allocation5 + $0xa04] ss:$24 sps:$4 sm:$0xff]  }
 0x258   : > { %4266 = vmatpush1.bf16.msra.mxu0 %v15194_v25 }
 0x259   : > { %4267 = vmatprep.subr.bf16.mxu0 %v15199_v53 }
 0x25b   : > { %4193 = vmatmul.mubr.bf16.gmra.mrb[36].mxu0 %v16983_v63  ;;  %v15209_v63 = vld [vmem:[#allocation5 + $0x730] ss:$24 sps:$4 sm:$0xff]  }
 0x25c   : > { %4268 = vmatpush1.bf16.msra.mxu0 %v15197_v32  ;;  %4202 = vmatprep.mubr.bf16.mxu0 %v16987_v5  ;;  %v15212_v5 = vld [vmem:[#allocation5 + $0x760] ss:$24 sps:$4 sm:$0xff]  }
 0x25d   : > { %4269 = vmatprep.subr.bf16.mxu0 %v15202_v50  ;;  %v15296_v50 = vld [vmem:[#allocation5 + $0xa00] ss:$24 sps:$4 sm:$0xff]  }
 0x260   : > { %4270 = vmatpush1.bf16.msra.mxu0 %v15200_v39  ;;  %v15304_v39 = vld [vmem:[#allocation5 + $0xa34] ss:$24 sps:$4 sm:$0xff]  }
 0x261   : > { %4271 = vmatprep.subr.bf16.mxu0 %v15205_v57 }
 0x263   : > { %4203 = vmatmul.mubr.bf16.gmra.mrb[40].mxu0 %v16994_v14  ;;  %v15226_v14 = vld [vmem:[#allocation5 + $0x7c4] ss:$24 sps:$4 sm:$0xff]  }
 0x264   : > { %4272 = vmatpush1.bf16.msra.mxu0 %v15203_v46  ;;  %4212 = vmatprep.mubr.bf16.mxu0 %v16997_v22  ;;  %v15224_v22 = vld [vmem:[#allocation5 + $0x7c0] ss:$24 sps:$4 sm:$0xff]   ;;  %v15302_v46 = vld [vmem:[#allocation5 + $0xa30] ss:$24 sps:$4 sm:$0xff]  }
 0x265   : > { %4273 = vmatprep.subr.bf16.mxu0 %v15208_v42 }
 0x268   : > { %4274 = vmatpush1.bf16.msra.mxu0 %v15206_v54 }
 0x269   : > { %4275 = vmatprep.subr.bf16.mxu0 %v15211_v30 }
 0x26b   : > { %4213 = vmatmul.mubr.bf16.gmra.mrb[44].mxu0 %v17004_v31  ;;  %v15238_v31 = vld [vmem:[#allocation5 + $0x824] ss:$24 sps:$4 sm:$0xff]  }
 0x26c   : > { %4276 = vmatpush1.bf16.msra.mxu0 %v15209_v63  ;;  %4222 = vmatprep.mubr.bf16.mxu0 %v17007_v40  ;;  %v15236_v40 = vld [vmem:[#allocation5 + $0x820] ss:$24 sps:$4 sm:$0xff]  }
 0x26d   : > { %4277 = vmatprep.subr.bf16.mxu0 %v15214_v36 }
 0x270   : > { %4278 = vmatpush1.bf16.msra.mxu0 %v15212_v5 }
 0x271   : > { %4279 = vmatprep.subr.bf16.mxu0 %v15220_v8 }
 0x273   : > { %4223 = vmatmul.mubr.bf16.gmra.mrb[48].mxu0 %v17013_v51  ;;  %v15250_v51 = vld [vmem:[#allocation5 + $0x884] ss:$24 sps:$4 sm:$0xff]  }
 0x274   : > { %4280 = vmatpush1.bf16.msra.mxu0 %v15218_v41  ;;  %4232 = vmatprep.mubr.bf16.mxu0 %v17017_v58  ;;  %v15248_v58 = vld [vmem:[#allocation5 + $0x880] ss:$24 sps:$4 sm:$0xff]  }
 0x275   : > { %4281 = vmatprep.subr.bf16.mxu0 %v15226_v14 }
 0x278   : > { %4282 = vmatpush1.bf16.msra.mxu0 %v15224_v22 }
 0x279   : > { %4283 = vmatprep.subr.bf16.mxu0 %v15232_v49 }
 0x27b   : > { %4233 = vmatmul.mubr.bf16.gmra.mrb[52].mxu0 %v17024_v2  ;;  %v15262_v2 = vld [vmem:[#allocation5 + $0x8e4] ss:$24 sps:$4 sm:$0xff]  }
 0x27c   : > { %4284 = vmatpush1.bf16.msra.mxu0 %v15230_v7  ;;  %4242 = vmatprep.mubr.bf16.mxu0 %v17027_v13  ;;  %v15260_v13 = vld [vmem:[#allocation5 + $0x8e0] ss:$24 sps:$4 sm:$0xff]   ;;  %v15310_v7 = vld [vmem:[#allocation5 + $0xa64] ss:$24 sps:$4 sm:$0xff]  }
 0x27d   : > { %4285 = vmatprep.subr.bf16.mxu0 %v15238_v31 }
 0x280   : > { %4286 = vmatpush1.bf16.msra.mxu0 %v15236_v40 }
 0x281   : > { %4287 = vmatprep.subr.bf16.mxu0 %v15244_v12 }
 0x283   : > { %4243 = vmatmul.mubr.bf16.gmra.mrb[56].mxu0 %v17034_v23  ;;  %v15274_v23 = vld [vmem:[#allocation5 + $0x944] ss:$24 sps:$4 sm:$0xff]  }
 0x284   : > { %4288 = vmatpush1.bf16.msra.mxu0 %v15242_v44  ;;  %4252 = vmatprep.mubr.bf16.mxu0 %v17037_v34  ;;  %v839_v34 = vlaneseq  ;;  %v15308_v44 = vld [vmem:[#allocation5 + $0xa60] ss:$24 sps:$4 sm:$0xff]  }
 0x285   : > { %4289 = vmatprep.subr.bf16.mxu0 %v15250_v51 }
 0x286   : > { %v17242_v33 = vshrl.u32 %v839_v34, 7 }
 0x288   : > { %4290 = vmatpush1.bf16.msra.mxu0 %v15248_v58  ;;  %18447 = vst [vmem:[#allocation34_spill] sm:$0xff] %v17242_v33  ;;  %v17246_v18 = vsub.s32 0, %v17242_v33  ;;  %v17250_v3 = vsub.s32 4, %v17242_v33 }
 0x289   : > { %4291 = vmatprep.subr.bf16.mxu0 %v15256_v43 }
 0x28a   : > { %18448 = vst [vmem:[#allocation35_spill] sm:$0xff] %v17246_v18  ;;  %18449 = vst [vmem:[#allocation36_spill] sm:$0xff] %v17250_v3 }
 0x28b   : > { %4253 = vmatmul.mubr.bf16.gmra.mrb[60].mxu0 %v17043_v45  ;;  %v15278_v45 = vld [vmem:[#allocation5 + $0x970] ss:$24 sps:$4 sm:$0xff]  }
 0x28c   : > { %4292 = vmatpush1.bf16.msra.mxu0 %v15254_v48  ;;  %4295 = vmatprep.mubr.bf16.mxu0 %v17047_v56  ;;  %v15286_v56 = vld [vmem:[#allocation5 + $0x9a4] ss:$24 sps:$4 sm:$0xff]  }
 0x28d   : > { %4293 = vmatprep.subr.bf16.mxu0 %v15262_v2 }
 0x290   : > { %4294 = vmatpush1.bf16.msra.mxu0 %v15260_v13 }
 0x291   : > { %4376 = vmatprep.subr.bf16.mxu0 %v15268_v11 }
 0x293   : > { %4296 = vmatmul.mubr.bf16.vlgmr.msra.gmra.mrb[32].mxu0 %v17053_v1  ;;  %v384_v1 = vld [vmem:[#allocation11] sm:$0x77] }
 0x294   : > { %4377 = vmatpush1.bf16.msra.mxu0 %v15266_v62  ;;  %4305 = vmatprep.mubr.bf16.mxu0 %v17057_v15  ;;  %v385_v15 = vld [vmem:[#allocation11 + $0x8] sm:$0x77]  ;;  %v842_v10 = vrot.slane %v384_v1, %v17246_v18  ;;  %v15311_v62 = vld [vmem:[#allocation7 + $0x300] ss:$24 sps:$4 sm:$0xff]  }
 0x295   : > { %4378 = vmatprep.subr.bf16.mxu0 %v15274_v23  ;;  %v850_v9 = vrot.slane %v385_v15, %v17246_v18  ;;  %v854_v19 = vrot.slane %v385_v15, %v17250_v3  ;;  %v15316_v23 = vld [vmem:[#allocation5 + $0xa94] ss:$24 sps:$4 sm:$0xff]  }
 0x297   : > { %v17261_v25 = vrot.slane %v850_v9, %v17246_v18  ;;  %v17267_v32 = vrot.slane %v854_v19, %v17246_v18 }
 0x298   : > { %4379 = vmatpush1.bf16.msra.mxu0 %v15272_v20 }
 0x299   : > { %4380 = vmatprep.subr.bf16.mxu0 %v15280_v55  ;;  %v15319_v55 = vld [vmem:[#allocation7 + $0x334] ss:$24 sps:$4 sm:$0xff]  }
 0x29b   : > { %4306 = vmatmul.mubr.bf16.gmra.mrb[36].mxu0 %v17063_v26  ;;  %v846_v26 = vrot.slane %v384_v1, %v17250_v3 }
 0x29c   : > { %4381 = vmatpush1.bf16.msra.mxu0 %v15278_v45  ;;  %4315 = vmatprep.mubr.bf16.mxu0 %v17067_v38  ;;  %v17258_v38 = vrot.slane %v842_v10, %v17246_v18 }
 0x29d   : > { %4382 = vmatprep.subr.bf16.mxu0 %v15286_v56  ;;  %v17264_v53 = vrot.slane %v846_v26, %v17246_v18 }
 0x2a0   : > { %4383 = vmatpush1.bf16.msra.mxu0 %v15284_v61 }
 0x2a1   : > { %4384 = vmatprep.subr.bf16.mxu0 %v15292_v60  ;;  %v15314_v60 = vld [vmem:[#allocation5 + $0xa90] ss:$24 sps:$4 sm:$0xff]  }
 0x2a3   : > { %4316 = vmatmul.mubr.bf16.gmra.mrb[40].mxu0 %v17074_v52 }
 0x2a4   : > { %4385 = vmatpush1.bf16.msra.mxu0 %v15290_v24  ;;  %4325 = vmatprep.mubr.bf16.mxu0 %v17077_v0 }
 0x2a5   : > { %4386 = vmatprep.subr.bf16.mxu0 %v15298_v35 }
 0x2a6   : > { %v3506_v57 = vpop.f32.mrb[0].mxu0 }
 0x2a7   : > { %v3958_v52 = vpop.f32.mrb[0].mxu1  ;;  %v13636_v42 = vadd.f32 %v3506_v57, %v17258_v38  ;;  %v3508_v30 = vpop.f32.mrb[1].mxu0 }
 0x2a8   : > { %v13668_v54 = vadd.f32 %v3958_v52, %v17261_v25  ;;  %v3960_v63 = vpop.f32.mrb[1].mxu1  ;;  %v13637_v36 = vadd.f32 %v3508_v30, %v17264_v53  ;;  %v3510_v8 = vpop.f32.mrb[2].mxu0  ;;  %4387 = vmatpush1.bf16.msra.mxu0 %v15296_v50  ;;  %v15317_v52 = vld [vmem:[#allocation7 + $0x330] ss:$24 sps:$4 sm:$0xff]  }
 0x2a9   : > { %v13669_v5 = vadd.f32 %v3960_v63, %v17267_v32  ;;  %v3962_v41 = vpop.f32.mrb[2].mxu1  ;;  %v13638_v0 = vadd.f32 %v3510_v8, %v17258_v38  ;;  %v3512_v22 = vpop.f32.mrb[3].mxu0  ;;  %4388 = vmatprep.subr.bf16.mxu0 %v15304_v39  ;;  %v4489_v31 = vmax.f32 %v13636_v42, 0.0  ;;  %v15320_v63 = vld [vmem:[#allocation5 + $0xac0] ss:$24 sps:$4 sm:$0xff]  }
 0x2aa   : > { %v13670_v14 = vadd.f32 %v3962_v41, %v17261_v25  ;;  %v3964_v49 = vpop.f32.mrb[3].mxu1  ;;  %v13639_v40 = vadd.f32 %v3512_v22, %v17264_v53  ;;  %v4491_v51 = vmax.f32 %v13668_v54, 0.0  ;;  %v4490_v48 = vmax.f32 %v13637_v36, 0.0  ;;  %v15325_v36 = vld [vmem:[#allocation7 + $0x364] ss:$24 sps:$4 sm:$0xff]  }
 0x2ab   : > { %v13671_v12 = vadd.f32 %v3964_v49, %v17267_v32  ;;  %v4495_v58 = vmax.f32 %v13638_v0, 0.0  ;;  %4326 = vmatmul.mubr.bf16.gmra.mrb[44].mxu0 %v17083_v17  ;;  %v4492_v2 = vmax.f32 %v13669_v5, 0.0 }
 0x2ac   : > { %v4497_v43 = vmax.f32 %v13670_v14, 0.0  ;;  %v4496_v13 = vmax.f32 %v13639_v40, 0.0  ;;  %4389 = vmatpush1.bf16.msra.mxu0 %v15302_v46  ;;  %4335 = vmatprep.mubr.bf16.mxu0 %v17087_v29  ;;  %v15322_v46 = vld [vmem:[#allocation5 + $0xac4] ss:$24 sps:$4 sm:$0xff]  }
 0x2ad   : > { %v4498_v11 = vmax.f32 %v13671_v12, 0.0  ;;  %v17280_v34 = vpack.c.bf16 %v4495_v58, %v4489_v31  ;;  %4390 = vmatprep.subr.bf16.mxu0 %v15310_v7  ;;  %v15323_v7 = vld [vmem:[#allocation7 + $0x360] ss:$24 sps:$4 sm:$0xff]   ;;  %v15328_v31 = vld [vmem:[#allocation5 + $0xaf4] ss:$24 sps:$4 sm:$0xff]  }
 0x2ae   : > { %v17282_v20 = vpack.c.bf16 %v4497_v43, %v4491_v51  ;;  %v17284_v45 = vpack.c.bf16 %v4496_v13, %v4490_v48  ;;  %v3516_v17 = vpop.f32.mrb[4].mxu0  ;;  %v15326_v48 = vld [vmem:[#allocation5 + $0xaf0] ss:$24 sps:$4 sm:$0xff]  }
 0x2af   : > { %v17286_v56 = vpack.c.bf16 %v4498_v11, %v4492_v2  ;;  %v3968_v61 = vpop.f32.mrb[4].mxu1  ;;  %v13640_v1 = vadd.f32 %v3516_v17, %v17258_v38  ;;  %v3518_v24 = vpop.f32.mrb[5].mxu0 }
 0x2b0   : > { %v13672_v15 = vadd.f32 %v3968_v61, %v17261_v25  ;;  %v3970_v29 = vpop.f32.mrb[5].mxu1  ;;  %v13641_v10 = vadd.f32 %v3518_v24, %v17264_v53  ;;  %v3520_v26 = vpop.f32.mrb[6].mxu0  ;;  %4391 = vmatpush1.bf16.msra.mxu0 %v15308_v44  ;;  %6447 = vmatprep.mubr.bf16.mxu1 %v17284_v45  ;;  %v15331_v44 = vld [vmem:[#allocation7 + $0x394] ss:$24 sps:$4 sm:$0xff]   ;;  %v15329_v24 = vld [vmem:[#allocation7 + $0x390] ss:$24 sps:$4 sm:$0xff]  }
 0x2b1   : > { %v13673_v9 = vadd.f32 %v3970_v29, %v17267_v32  ;;  %v3972_v19 = vpop.f32.mrb[6].mxu1  ;;  %v13642_v35 = vadd.f32 %v3520_v26, %v17258_v38  ;;  %v3522_v39 = vpop.f32.mrb[7].mxu0  ;;  %6448 = vmatmul.mubr.bf16.vlgmr.msra.gmra.mrb[32].mxu1 %v17280_v34  ;;  %4392 = vmatprep.subr.bf16.mxu0 %v15316_v23  ;;  %v4501_v42 = vmax.f32 %v13640_v1, 0.0  ;;  %v15334_v29 = vld [vmem:[#allocation5 + $0xb24] ss:$24 sps:$4 sm:$0xff]  }
 0x2b2   : > { %v13674_v50 = vadd.f32 %v3972_v19, %v17261_v25  ;;  %v3974_v57 = vpop.f32.mrb[7].mxu1  ;;  %v13643_v54 = vadd.f32 %v3522_v39, %v17264_v53  ;;  %6529 = vmatpush1.bf16.msra.mxu1 %v15311_v62  ;;  %v4503_v5 = vmax.f32 %v13672_v15, 0.0  ;;  %v4502_v0 = vmax.f32 %v13641_v10, 0.0  ;;  %v15332_v19 = vld [vmem:[#allocation5 + $0xb20] ss:$24 sps:$4 sm:$0xff]  }
 0x2b3   : > { %v13675_v30 = vadd.f32 %v3974_v57, %v17267_v32  ;;  %v4507_v8 = vmax.f32 %v13642_v35, 0.0  ;;  %4336 = vmatmul.mubr.bf16.gmra.mrb[48].mxu0 %v17093_v47  ;;  %6530 = vmatprep.subr.bf16.mxu1 %v15319_v55  ;;  %v4504_v14 = vmax.f32 %v13673_v9, 0.0  ;;  %v15337_v35 = vld [vmem:[#allocation7 + $0x3c4] ss:$24 sps:$4 sm:$0xff]  }
 0x2b4   : > { %v4509_v41 = vmax.f32 %v13674_v50, 0.0  ;;  %v4508_v22 = vmax.f32 %v13643_v54, 0.0  ;;  %4393 = vmatpush1.bf16.msra.mxu0 %v15314_v60  ;;  %4345 = vmatprep.mubr.bf16.mxu0 %v17097_v4 }
 0x2b5   : > { %v4510_v49 = vmax.f32 %v13675_v30, 0.0  ;;  %v17300_v40 = vpack.c.bf16 %v4507_v8, %v4501_v42  ;;  %4394 = vmatprep.subr.bf16.mxu0 %v15322_v46  ;;  %v15335_v30 = vld [vmem:[#allocation7 + $0x3c0] ss:$24 sps:$4 sm:$0xff]   ;;  %v15343_v8 = vld [vmem:[#allocation7 + $0x3f4] ss:$24 sps:$4 sm:$0xff]  }
 0x2b6   : > { %v17302_v12 = vpack.c.bf16 %v4509_v41, %v4503_v5  ;;  %v17304_v51 = vpack.c.bf16 %v4508_v22, %v4502_v0  ;;  %v3526_v47 = vpop.f32.mrb[8].mxu0  ;;  %6531 = vmatpush1.bf16.msra.mxu1 %v15317_v52  ;;  %v15338_v22 = vld [vmem:[#allocation5 + $0xb50] ss:$24 sps:$4 sm:$0xff]  }
 0x2b7   : > { %v17306_v58 = vpack.c.bf16 %v4510_v49, %v4504_v14  ;;  %v3978_v43 = vpop.f32.mrb[8].mxu1  ;;  %v13644_v2 = vadd.f32 %v3526_v47, %v17258_v38  ;;  %v3528_v4 = vpop.f32.mrb[9].mxu0  ;;  %6532 = vmatprep.subr.bf16.mxu1 %v15325_v36 }
 0x2b8   : > { %v13676_v13 = vadd.f32 %v3978_v43, %v17261_v25  ;;  %v3980_v11 = vpop.f32.mrb[9].mxu1  ;;  %v13645_v62 = vadd.f32 %v3528_v4, %v17264_v53  ;;  %v3530_v55 = vpop.f32.mrb[10].mxu0  ;;  %4395 = vmatpush1.bf16.msra.mxu0 %v15320_v63  ;;  %6457 = vmatprep.mubr.bf16.mxu1 %v17304_v51  ;;  %v15340_v63 = vld [vmem:[#allocation5 + $0xb54] ss:$24 sps:$4 sm:$0xff]  }
 0x2b9   : > { %v13677_v23 = vadd.f32 %v3980_v11, %v17267_v32  ;;  %v3982_v17 = vpop.f32.mrb[10].mxu1  ;;  %v13646_v61 = vadd.f32 %v3530_v55, %v17258_v38  ;;  %v3532_v1 = vpop.f32.mrb[11].mxu0  ;;  %6458 = vmatmul.mubr.bf16.gmra.mrb[36].mxu1 %v17300_v40  ;;  %4396 = vmatprep.subr.bf16.mxu0 %v15328_v31  ;;  %v4513_v10 = vmax.f32 %v13644_v2, 0.0 }
 0x2ba   : > { %v13678_v60 = vadd.f32 %v3982_v17, %v17261_v25  ;;  %v3984_v15 = vpop.f32.mrb[11].mxu1  ;;  %v13647_v9 = vadd.f32 %v3532_v1, %v17264_v53  ;;  %6533 = vmatpush1.bf16.msra.mxu1 %v15323_v7  ;;  %v4515_v50 = vmax.f32 %v13676_v13, 0.0  ;;  %v4514_v52 = vmax.f32 %v13645_v62, 0.0  ;;  %v15341_v62 = vld [vmem:[#allocation7 + $0x3f0] ss:$24 sps:$4 sm:$0xff]  }
 0x2bb   : > { %v13679_v26 = vadd.f32 %v3984_v15, %v17267_v32  ;;  %v4519_v39 = vmax.f32 %v13646_v61, 0.0  ;;  %4346 = vmatmul.mubr.bf16.gmra.mrb[52].mxu0 %v17105_v21  ;;  %6534 = vmatprep.subr.bf16.mxu1 %v15331_v44  ;;  %v4516_v46 = vmax.f32 %v13677_v23, 0.0  ;;  %v15346_v23 = vld [vmem:[#allocation5 + $0xb84] ss:$24 sps:$4 sm:$0xff]  }
 0x2bc   : > { %v4521_v57 = vmax.f32 %v13678_v60, 0.0  ;;  %v4520_v42 = vmax.f32 %v13647_v9, 0.0  ;;  %4397 = vmatpush1.bf16.msra.mxu0 %v15326_v48  ;;  %4355 = vmatprep.mubr.bf16.mxu0 %v17107_v37  ;;  %v15344_v60 = vld [vmem:[#allocation5 + $0xb80] ss:$24 sps:$4 sm:$0xff]   ;;  %v15349_v1 = vld [vmem:[#allocation7 + $0x424] ss:$24 sps:$4 sm:$0xff]  }
 0x2bd   : > { %v4522_v54 = vmax.f32 %v13679_v26, 0.0  ;;  %v17320_v36 = vpack.c.bf16 %v4519_v39, %v4513_v10  ;;  %4398 = vmatprep.subr.bf16.mxu0 %v15334_v29 }
 0x2be   : > { %v17322_v5 = vpack.c.bf16 %v4521_v57, %v4515_v50  ;;  %v17324_v41 = vpack.c.bf16 %v4520_v42, %v4514_v52  ;;  %v3536_v21 = vpop.f32.mrb[12].mxu0  ;;  %6535 = vmatpush1.bf16.msra.mxu1 %v15329_v24  ;;  %v15352_v50 = vld [vmem:[#allocation5 + $0xbb4] ss:$24 sps:$4 sm:$0xff]  }
 0x2bf   : > { %v17326_v0 = vpack.c.bf16 %v4522_v54, %v4516_v46  ;;  %v3988_v14 = vpop.f32.mrb[12].mxu1  ;;  %v13648_v49 = vadd.f32 %v3536_v21, %v17258_v38  ;;  %v3538_v37 = vpop.f32.mrb[13].mxu0  ;;  %6536 = vmatprep.subr.bf16.mxu1 %v15337_v35  ;;  %v15347_v35 = vld [vmem:[#allocation7 + $0x420] ss:$24 sps:$4 sm:$0xff]   ;;  %v15355_v52 = vld [vmem:[#allocation7 + $0x454] ss:$24 sps:$4 sm:$0xff]  }
 0x2c0   : > { %v13680_v7 = vadd.f32 %v3988_v14, %v17261_v25  ;;  %v3990_v31 = vpop.f32.mrb[13].mxu1  ;;  %v13649_v44 = vadd.f32 %v3538_v37, %v17264_v53  ;;  %v3540_v43 = vpop.f32.mrb[14].mxu0  ;;  %4399 = vmatpush1.bf16.msra.mxu0 %v15332_v19  ;;  %6467 = vmatprep.mubr.bf16.mxu1 %v17324_v41 }
 0x2c1   : > { %v13681_v47 = vadd.f32 %v3990_v31, %v17267_v32  ;;  %v3992_v48 = vpop.f32.mrb[14].mxu1  ;;  %v13650_v2 = vadd.f32 %v3540_v43, %v17258_v38  ;;  %v3542_v4 = vpop.f32.mrb[15].mxu0  ;;  %6468 = vmatmul.mubr.bf16.gmra.mrb[40].mxu1 %v17320_v36  ;;  %4400 = vmatprep.subr.bf16.mxu0 %v15340_v63  ;;  %v4525_v55 = vmax.f32 %v13648_v49, 0.0  ;;  %v15353_v43 = vld [vmem:[#allocation7 + $0x450] ss:$24 sps:$4 sm:$0xff]  }
 0x2c2   : > { %v13682_v13 = vadd.f32 %v3992_v48, %v17261_v25  ;;  %v3994_v11 = vpop.f32.mrb[15].mxu1  ;;  %v13651_v17 = vadd.f32 %v3542_v4, %v17264_v53  ;;  %6537 = vmatpush1.bf16.msra.mxu1 %v15335_v30  ;;  %v4527_v15 = vmax.f32 %v13680_v7, 0.0  ;;  %v4526_v10 = vmax.f32 %v13649_v44, 0.0  ;;  %v15350_v30 = vld [vmem:[#allocation5 + $0xbb0] ss:$24 sps:$4 sm:$0xff]  }
 0x2c3   : > { %v13683_v61 = vadd.f32 %v3994_v11, %v17267_v32  ;;  %v4531_v24 = vmax.f32 %v13650_v2, 0.0  ;;  %4356 = vmatmul.mubr.bf16.gmra.mrb[56].mxu0 %v17115_v59  ;;  %6538 = vmatprep.subr.bf16.mxu1 %v15343_v8  ;;  %v4528_v9 = vmax.f32 %v13681_v47, 0.0  ;;  %v15358_v48 = vld [vmem:[#allocation5 + $0xbe4] ss:$24 sps:$4 sm:$0xff]   ;;  %v15356_v11 = vld [vmem:[#allocation5 + $0xbe0] ss:$24 sps:$4 sm:$0xff]  }
 0x2c4   : > { %v4533_v29 = vmax.f32 %v13682_v13, 0.0  ;;  %v4532_v26 = vmax.f32 %v13651_v17, 0.0  ;;  %4401 = vmatpush1.bf16.msra.mxu0 %v15338_v22  ;;  %4365 = vmatprep.mubr.bf16.mxu0 %v17117_v16 }
 0x2c5   : > { %v4534_v19 = vmax.f32 %v13683_v61, 0.0  ;;  %v17340_v39 = vpack.c.bf16 %v4531_v24, %v4525_v55  ;;  %4402 = vmatprep.subr.bf16.mxu0 %v15346_v23  ;;  %v18450_v61 = vld [vmem:[#allocation20_spill] sm:$0xff] }
 0x2c6   : > { %v17342_v57 = vpack.c.bf16 %v4533_v29, %v4527_v15  ;;  %v17344_v46 = vpack.c.bf16 %v4532_v26, %v4526_v10  ;;  %v3546_v59 = vpop.f32.mrb[16].mxu0  ;;  %6539 = vmatpush1.bf16.msra.mxu1 %v15341_v62  ;;  %v15361_v62 = vld [vmem:[#allocation7 + $0x484] ss:$24 sps:$4 sm:$0xff]   ;;  %v15359_v29 = vld [vmem:[#allocation7 + $0x480] ss:$24 sps:$4 sm:$0xff]   ;;  %v18451_v10 = vld [vmem:[#allocation21_spill] sm:$0xff] }
 0x2c7   : > { %v17346_v42 = vpack.c.bf16 %v4534_v19, %v4528_v9  ;;  %v3998_v54 = vpop.f32.mrb[16].mxu1  ;;  %v13652_v63 = vadd.f32 %v3546_v59, %v17258_v38  ;;  %v3548_v16 = vpop.f32.mrb[17].mxu0  ;;  %6540 = vmatprep.subr.bf16.mxu1 %v15349_v1  ;;  %v15364_v9 = vld [vmem:[#allocation7 + $0x14] ss:$24 sps:$4 sm:$0xff]  }
 0x2c8   : > { %v13684_v8 = vadd.f32 %v3998_v54, %v17261_v25  ;;  %v4000_v21 = vpop.f32.mrb[17].mxu1  ;;  %v13653_v14 = vadd.f32 %v3548_v16, %v17264_v53  ;;  %v3550_v49 = vpop.f32.mrb[18].mxu0  ;;  %4403 = vmatpush1.bf16.msra.mxu0 %v15344_v60  ;;  %6477 = vmatprep.mubr.bf16.mxu1 %v17344_v46 }
 0x2c9   : > { %v13685_v22 = vadd.f32 %v4000_v21, %v17267_v32  ;;  %v4002_v7 = vpop.f32.mrb[18].mxu1  ;;  %v13654_v37 = vadd.f32 %v3550_v49, %v17258_v38  ;;  %v3552_v44 = vpop.f32.mrb[19].mxu0  ;;  %6478 = vmatmul.mubr.bf16.gmra.mrb[44].mxu1 %v17340_v39  ;;  %4404 = vmatprep.subr.bf16.mxu0 %v15352_v50  ;;  %v4537_v2 = vmax.f32 %v13652_v63, 0.0  ;;  %v15362_v63 = vld [vmem:[#allocation7 + $0x10] ss:$24 sps:$4 sm:$0xff]  }
 0x2ca   : > { %v13686_v31 = vadd.f32 %v4002_v7, %v17261_v25  ;;  %v4004_v47 = vpop.f32.mrb[19].mxu1  ;;  %v13655_v13 = vadd.f32 %v3552_v44, %v17264_v53  ;;  %6541 = vmatpush1.bf16.msra.mxu1 %v15347_v35  ;;  %v4539_v23 = vmax.f32 %v13684_v8, 0.0  ;;  %v4538_v60 = vmax.f32 %v13653_v14, 0.0  ;;  %v15367_v35 = vld [vmem:[#allocation7 + $0x4b4] ss:$24 sps:$4 sm:$0xff]  }
 0x2cb   : > { %v13687_v4 = vadd.f32 %v4004_v47, %v17267_v32  ;;  %v4543_v55 = vmax.f32 %v13654_v37, 0.0  ;;  %4366 = vmatmul.mubr.bf16.gmra.mrb[60].mxu0 %v18450_v61  ;;  %6542 = vmatprep.subr.bf16.mxu1 %v15355_v52  ;;  %v4540_v1 = vmax.f32 %v13685_v22, 0.0  ;;  %v15370_v14 = vld [vmem:[#allocation7 + $0x44] ss:$24 sps:$4 sm:$0xff]  }
 0x2cc   : > { %v4545_v17 = vmax.f32 %v13686_v31, 0.0  ;;  %v4544_v15 = vmax.f32 %v13655_v13, 0.0  ;;  %4405 = vmatpush1.bf16.msra.mxu0 %v15350_v30  ;;  %4408 = vmatprep.mubr.bf16.mxu0 %v18451_v10  ;;  %v15365_v31 = vld [vmem:[#allocation7 + $0x4b0] ss:$24 sps:$4 sm:$0xff]  }
 0x2cd   : > { %v4546_v24 = vmax.f32 %v13687_v4, 0.0  ;;  %v17360_v26 = vpack.c.bf16 %v4543_v55, %v4537_v2  ;;  %4406 = vmatprep.subr.bf16.mxu0 %v15358_v48  ;;  %v15373_v2 = vld [vmem:[#allocation7 + $0x4e4] ss:$24 sps:$4 sm:$0xff]  }
 0x2ce   : > { %v17362_v19 = vpack.c.bf16 %v4545_v17, %v4539_v23  ;;  %v17364_v50 = vpack.c.bf16 %v4544_v15, %v4538_v60  ;;  %v3556_v52 = vpop.f32.mrb[20].mxu0  ;;  %6543 = vmatpush1.bf16.msra.mxu1 %v15353_v43  ;;  %v18452_v60 = vld [vmem:[#allocation22_spill] sm:$0xff] }
 0x2cf   : > { %v17366_v59 = vpack.c.bf16 %v4546_v24, %v4540_v1  ;;  %v4008_v54 = vpop.f32.mrb[20].mxu1  ;;  %v13656_v30 = vadd.f32 %v3556_v52, %v17258_v38  ;;  %v3558_v16 = vpop.f32.mrb[21].mxu0  ;;  %6544 = vmatprep.subr.bf16.mxu1 %v15361_v62  ;;  %v15376_v1 = vld [vmem:[#allocation7 + $0x74] ss:$24 sps:$4 sm:$0xff]   ;;  %v18453_v52 = vld [vmem:[#allocation23_spill] sm:$0xff] }
 0x2d0   : > { %v13688_v8 = vadd.f32 %v4008_v54, %v17261_v25  ;;  %v4010_v21 = vpop.f32.mrb[21].mxu1  ;;  %v13657_v22 = vadd.f32 %v3558_v16, %v17264_v53  ;;  %v3560_v7 = vpop.f32.mrb[22].mxu0  ;;  %4407 = vmatpush1.bf16.msra.mxu0 %v15356_v11  ;;  %6487 = vmatprep.mubr.bf16.mxu1 %v17364_v50  ;;  %v15368_v11 = vld [vmem:[#allocation7 + $0x40] ss:$24 sps:$4 sm:$0xff]  }
 0x2d1   : > { %v13689_v49 = vadd.f32 %v4010_v21, %v17267_v32  ;;  %v4012_v37 = vpop.f32.mrb[22].mxu1  ;;  %v13658_v44 = vadd.f32 %v3560_v7, %v17258_v38  ;;  %v3562_v43 = vpop.f32.mrb[23].mxu0  ;;  %6488 = vmatmul.mubr.bf16.gmra.mrb[48].mxu1 %v17360_v26  ;;  %7093 = vmatprep.subr.bf16.mxu0 %v15364_v9  ;;  %v4549_v13 = vmax.f32 %v13656_v30, 0.0  ;;  %v15371_v9 = vld [vmem:[#allocation7 + $0x4e0] ss:$24 sps:$4 sm:$0xff]  }
 0x2d2   : > { %v13690_v47 = vadd.f32 %v4012_v37, %v17261_v25  ;;  %v4014_v48 = vpop.f32.mrb[23].mxu1  ;;  %v4551_v4 = vmax.f32 %v13688_v8, 0.0  ;;  %v13659_v62 = vadd.f32 %v3562_v43, %v17264_v53  ;;  %6545 = vmatpush1.bf16.msra.mxu1 %v15359_v29  ;;  %v4550_v55 = vmax.f32 %v13657_v22, 0.0  ;;  %v15379_v29 = vld [vmem:[#allocation7 + $0x514] ss:$24 sps:$4 sm:$0xff]  }
 0x2d3   : > { %v13691_v23 = vadd.f32 %v4014_v48, %v17267_v32  ;;  %v4555_v17 = vmax.f32 %v13658_v44, 0.0  ;;  %4409 = vmatmul.mubr.bf16.vlgmr.msra.gmra.mrb[32].mxu0 %v18452_v60  ;;  %6546 = vmatprep.subr.bf16.mxu1 %v15367_v35  ;;  %v4552_v15 = vmax.f32 %v13689_v49, 0.0  ;;  %v15374_v22 = vld [vmem:[#allocation7 + $0x70] ss:$24 sps:$4 sm:$0xff]   ;;  %v15382_v44 = vld [vmem:[#allocation7 + $0xa4] ss:$24 sps:$4 sm:$0xff]  }
 0x2d4   : > { %v4557_v61 = vmax.f32 %v13690_v47, 0.0  ;;  %v4556_v24 = vmax.f32 %v13659_v62, 0.0  ;;  %7094 = vmatpush1.bf16.msra.mxu0 %v15362_v63  ;;  %4418 = vmatprep.mubr.bf16.mxu0 %v18453_v52 }
 0x2d5   : > { %v4558_v10 = vmax.f32 %v13691_v23, 0.0  ;;  %v17380_v54 = vpack.c.bf16 %v4555_v17, %v4549_v13  ;;  %7095 = vmatprep.subr.bf16.mxu0 %v15370_v14  ;;  %v15377_v13 = vld [vmem:[#allocation7 + $0x510] ss:$24 sps:$4 sm:$0xff]  }
 0x2d6   : > { %v17382_v30 = vpack.c.bf16 %v4557_v61, %v4551_v4  ;;  %v17384_v8 = vpack.c.bf16 %v4556_v24, %v4550_v55  ;;  %v3566_v21 = vpop.f32.mrb[24].mxu0  ;;  %6547 = vmatpush1.bf16.msra.mxu1 %v15365_v31 }
 0x2d7   : > { %v17386_v16 = vpack.c.bf16 %v4558_v10, %v4552_v15  ;;  %v4018_v35 = vpop.f32.mrb[24].mxu1  ;;  %v13660_v49 = vadd.f32 %v3566_v21, %v17258_v38  ;;  %v3568_v7 = vpop.f32.mrb[25].mxu0  ;;  %6548 = vmatprep.subr.bf16.mxu1 %v15373_v2  ;;  %v15385_v2 = vld [vmem:[#allocation7 + $0x544] ss:$24 sps:$4 sm:$0xff]  }
 0x2d8   : > { %v13692_v63 = vadd.f32 %v4018_v35, %v17261_v25  ;;  %v4020_v37 = vpop.f32.mrb[25].mxu1  ;;  %v13661_v47 = vadd.f32 %v3568_v7, %v17264_v53  ;;  %v3570_v43 = vpop.f32.mrb[26].mxu0  ;;  %6497 = vmatprep.mubr.bf16.mxu1 %v17384_v8  ;;  %7096 = vmatpush1.bf16.msra.mxu0 %v15368_v11  ;;  %v15380_v11 = vld [vmem:[#allocation7 + $0xa0] ss:$24 sps:$4 sm:$0xff]   ;;  %v15388_v35 = vld [vmem:[#allocation7 + $0xd4] ss:$24 sps:$4 sm:$0xff]  }
 0x2d9   : > { %v13693_v14 = vadd.f32 %v4020_v37, %v17267_v32  ;;  %v4022_v48 = vpop.f32.mrb[26].mxu1  ;;  %v4561_v31 = vmax.f32 %v13660_v49, 0.0  ;;  %v13662_v62 = vadd.f32 %v3570_v43, %v17258_v38  ;;  %v3572_v55 = vpop.f32.mrb[27].mxu0  ;;  %6498 = vmatmul.mubr.bf16.gmra.mrb[52].mxu1 %v17380_v54  ;;  %7097 = vmatprep.subr.bf16.mxu0 %v15376_v1  ;;  %v18454_v21 = vld [vmem:[#allocation24_spill] sm:$0xff]  ;;  %v18455_v1 = vld [vmem:[#allocation25_spill] sm:$0xff] }
 0x2da   : > { %v4563_v4 = vmax.f32 %v13692_v63, 0.0  ;;  %v13694_v23 = vadd.f32 %v4022_v48, %v17261_v25  ;;  %v4024_v17 = vpop.f32.mrb[27].mxu1  ;;  %v4562_v61 = vmax.f32 %v13661_v47, 0.0  ;;  %v13663_v15 = vadd.f32 %v3572_v55, %v17264_v53  ;;  %6549 = vmatpush1.bf16.msra.mxu1 %v15371_v9  ;;  %v15383_v7 = vld [vmem:[#allocation7 + $0x540] ss:$24 sps:$4 sm:$0xff]  }
 0x2db   : > { %v4564_v60 = vmax.f32 %v13693_v14, 0.0  ;;  %v13695_v24 = vadd.f32 %v4024_v17, %v17267_v32  ;;  %v4567_v10 = vmax.f32 %v13662_v62, 0.0  ;;  %4419 = vmatmul.mubr.bf16.gmra.mrb[36].mxu0 %v18454_v21  ;;  %6550 = vmatprep.subr.bf16.mxu1 %v15379_v29  ;;  %v15391_v14 = vld [vmem:[#allocation7 + $0x574] ss:$24 sps:$4 sm:$0xff]   ;;  %v15386_v29 = vld [vmem:[#allocation7 + $0xd0] ss:$24 sps:$4 sm:$0xff]  }
 0x2dc   : > { %v4569_v52 = vmax.f32 %v13694_v23, 0.0  ;;  %v4568_v49 = vmax.f32 %v13663_v15, 0.0  ;;  %7098 = vmatpush1.bf16.msra.mxu0 %v15374_v22  ;;  %4428 = vmatprep.mubr.bf16.mxu0 %v18455_v1 }
 0x2dd   : > { %v4570_v63 = vmax.f32 %v13695_v24, 0.0  ;;  %v17400_v37 = vpack.c.bf16 %v4567_v10, %v4561_v31  ;;  %7099 = vmatprep.subr.bf16.mxu0 %v15382_v44  ;;  %v15394_v31 = vld [vmem:[#allocation7 + $0x104] ss:$24 sps:$4 sm:$0xff]  }
 0x2de   : > { %v17402_v47 = vpack.c.bf16 %v4569_v52, %v4563_v4  ;;  %v17404_v9 = vpack.c.bf16 %v4568_v49, %v4562_v61  ;;  %v3576_v48 = vpop.f32.mrb[28].mxu0  ;;  %6551 = vmatpush1.bf16.msra.mxu1 %v15377_v13 }
 0x2df   : > { %v17406_v43 = vpack.c.bf16 %v4570_v63, %v4564_v60  ;;  %v4028_v62 = vpop.f32.mrb[28].mxu1  ;;  %v13664_v23 = vadd.f32 %v3576_v48, %v17258_v38  ;;  %v3578_v55 = vpop.f32.mrb[29].mxu0  ;;  %6552 = vmatprep.subr.bf16.mxu1 %v15385_v2  ;;  %v15389_v60 = vld [vmem:[#allocation7 + $0x570] ss:$24 sps:$4 sm:$0xff]   ;;  %v15397_v2 = vld [vmem:[#allocation7 + $0x5a4] ss:$24 sps:$4 sm:$0xff]  }
 0x2e0   : > { %v13696_v22 = vadd.f32 %v4028_v62, %v17261_v25  ;;  %v4030_v17 = vpop.f32.mrb[29].mxu1  ;;  %v13665_v4 = vadd.f32 %v3578_v55, %v17264_v53  ;;  %v3580_v61 = vpop.f32.mrb[30].mxu0  ;;  %6507 = vmatprep.mubr.bf16.mxu1 %v17404_v9  ;;  %7100 = vmatpush1.bf16.msra.mxu0 %v15380_v11  ;;  %v15392_v11 = vld [vmem:[#allocation7 + $0x100] ss:$24 sps:$4 sm:$0xff]   ;;  %v18456_v55 = vld [vmem:[#allocation26_spill] sm:$0xff] }
 0x2e1   : > { %v13697_v44 = vadd.f32 %v4030_v17, %v17267_v32  ;;  %v4032_v15 = vpop.f32.mrb[30].mxu1  ;;  %v4573_v13 = vmax.f32 %v13664_v23, 0.0  ;;  %v13666_v10 = vadd.f32 %v3580_v61, %v17258_v38  ;;  %v3582_v21 = vpop.f32.mrb[31].mxu0  ;;  %6508 = vmatmul.mubr.bf16.gmra.mrb[56].mxu1 %v17400_v37  ;;  %7101 = vmatprep.subr.bf16.mxu0 %v15388_v35  ;;  %v15400_v38 = vld [vmem:[#allocation7 + $0x134] ss:$24 sps:$4 sm:$0xff]   ;;  %v18457_v35 = vld [vmem:[#allocation27_spill] sm:$0xff] }
 0x2e2   : > { %v4575_v24 = vmax.f32 %v13696_v22, 0.0  ;;  %v13698_v52 = vadd.f32 %v4032_v15, %v17261_v25  ;;  %v4034_v49 = vpop.f32.mrb[31].mxu1  ;;  %v4574_v63 = vmax.f32 %v13665_v4, 0.0  ;;  %v13667_v48 = vadd.f32 %v3582_v21, %v17264_v53  ;;  %6553 = vmatpush1.bf16.msra.mxu1 %v15383_v7  ;;  %v15395_v61 = vld [vmem:[#allocation7 + $0x5a0] ss:$24 sps:$4 sm:$0xff]  }
 0x2e3   : > { %v4576_v1 = vmax.f32 %v13697_v44, 0.0  ;;  %v13699_v62 = vadd.f32 %v4034_v49, %v17267_v32  ;;  %v4579_v23 = vmax.f32 %v13666_v10, 0.0  ;;  %4429 = vmatmul.mubr.bf16.gmra.mrb[40].mxu0 %v18456_v55  ;;  %6554 = vmatprep.subr.bf16.mxu1 %v15391_v14  ;;  %v15403_v53 = vld [vmem:[#allocation7 + $0x5d4] ss:$24 sps:$4 sm:$0xff]   ;;  %v15398_v15 = vld [vmem:[#allocation7 + $0x130] ss:$24 sps:$4 sm:$0xff]  }
 0x2e4   : > { %v4581_v22 = vmax.f32 %v13698_v52, 0.0  ;;  %v4580_v25 = vmax.f32 %v13667_v48, 0.0  ;;  %7102 = vmatpush1.bf16.msra.mxu0 %v15386_v29  ;;  %4438 = vmatprep.mubr.bf16.mxu0 %v18457_v35  ;;  %v15406_v14 = vld [vmem:[#allocation7 + $0x164] ss:$24 sps:$4 sm:$0xff]   ;;  %v15401_v29 = vld [vmem:[#allocation7 + $0x5d0] ss:$24 sps:$4 sm:$0xff]  }
 0x2e5   : > { %v4582_v17 = vmax.f32 %v13699_v62, 0.0  ;;  %v17420_v4 = vpack.c.bf16 %v4579_v23, %v4573_v13  ;;  %7103 = vmatprep.subr.bf16.mxu0 %v15394_v31  ;;  %v18458_v31 = vld [vmem:[#allocation28_spill] sm:$0xff]  ;;  %v15407_v21 = vld [vmem:[#allocation7 + $0x190] ss:$24 sps:$4 sm:$0xff]   ;;  %v18461_v48 = vld [vmem:[#allocation31_spill] sm:$0xff] }
 0x2e6   : > { %v17422_v44 = vpack.c.bf16 %v4581_v22, %v4575_v24  ;;  %v17424_v32 = vpack.c.bf16 %v4580_v25, %v4574_v63  ;;  %6555 = vmatpush1.bf16.msra.mxu1 %v15389_v60  ;;  %v15404_v13 = vld [vmem:[#allocation7 + $0x160] ss:$24 sps:$4 sm:$0xff]   ;;  %v18459_v24 = vld [vmem:[#allocation29_spill] sm:$0xff]  ;;  %v15481_v10 = vld [vmem:[#allocation7 + $0x604] ss:$24 sps:$4 sm:$0xff]  }
 0x2e7   : > { %v17426_v7 = vpack.c.bf16 %v4582_v17, %v4576_v1  ;;  %6556 = vmatprep.subr.bf16.mxu1 %v15397_v2  ;;  %v15409_v60 = vld [vmem:[#allocation7 + $0x194] ss:$24 sps:$4 sm:$0xff]   ;;  %v15479_v52 = vld [vmem:[#allocation7 + $0x600] ss:$24 sps:$4 sm:$0xff]   ;;  %v15412_v49 = vld [vmem:[#allocation7 + $0x1c4] ss:$24 sps:$4 sm:$0xff]  }
 0x2e8   : > { %6517 = vmatprep.mubr.bf16.mxu1 %v17424_v32  ;;  %7104 = vmatpush1.bf16.msra.mxu0 %v15392_v11  ;;  %v18460_v2 = vld [vmem:[#allocation30_spill] sm:$0xff]  ;;  %v15410_v1 = vld [vmem:[#allocation7 + $0x1c0] ss:$24 sps:$4 sm:$0xff]   ;;  %v15493_v22 = vld [vmem:[#allocation7 + $0x664] ss:$24 sps:$4 sm:$0xff]  }
 0x2e9   : > { %6518 = vmatmul.mubr.bf16.gmra.mrb[60].mxu1 %v17420_v4  ;;  %7105 = vmatprep.subr.bf16.mxu0 %v15400_v38  ;;  %v15487_v63 = vld [vmem:[#allocation7 + $0x634] ss:$24 sps:$4 sm:$0xff]   ;;  %v15485_v62 = vld [vmem:[#allocation7 + $0x630] ss:$24 sps:$4 sm:$0xff]   ;;  %v15491_v23 = vld [vmem:[#allocation7 + $0x660] ss:$24 sps:$4 sm:$0xff]  }
 0x2ea   : > { %6557 = vmatpush1.bf16.msra.mxu1 %v15395_v61  ;;  %6560 = vmatprep.mubr.bf16.mxu1 %v17286_v56  ;;  %v15415_v11 = vld [vmem:[#allocation7 + $0x1f4] ss:$24 sps:$4 sm:$0xff]   ;;  %v15413_v55 = vld [vmem:[#allocation7 + $0x1f0] ss:$24 sps:$4 sm:$0xff]   ;;  %v15418_v38 = vld [vmem:[#allocation7 + $0x224] ss:$24 sps:$4 sm:$0xff]  }
 0x2eb   : > { %4439 = vmatmul.mubr.bf16.gmra.mrb[44].mxu0 %v18458_v31  ;;  %6558 = vmatprep.subr.bf16.mxu1 %v15403_v53  ;;  %v18462_v25 = vld [vmem:[#allocation32_spill] sm:$0xff]  ;;  %v15499_v17 = vld [vmem:[#allocation7 + $0x694] ss:$24 sps:$4 sm:$0xff]   ;;  %v15497_v35 = vld [vmem:[#allocation7 + $0x690] ss:$24 sps:$4 sm:$0xff]  }
 0x2ec   : > { %7106 = vmatpush1.bf16.msra.mxu0 %v15398_v15  ;;  %4448 = vmatprep.mubr.bf16.mxu0 %v18459_v24  ;;  %v15416_v61 = vld [vmem:[#allocation7 + $0x220] ss:$24 sps:$4 sm:$0xff]   ;;  %v15421_v53 = vld [vmem:[#allocation7 + $0x254] ss:$24 sps:$4 sm:$0xff]   ;;  %v15424_v31 = vld [vmem:[#allocation7 + $0x284] ss:$24 sps:$4 sm:$0xff]  }
 0x2ed   : > { %7107 = vmatprep.subr.bf16.mxu0 %v15406_v14  ;;  %v15503_v15 = vld [vmem:[#allocation7 + $0x6c0] ss:$24 sps:$4 sm:$0xff]   ;;  %v15505_v14 = vld [vmem:[#allocation7 + $0x6c4] ss:$24 sps:$4 sm:$0xff]   ;;  %v15509_v24 = vld [vmem:[#allocation7 + $0x6f0] ss:$24 sps:$4 sm:$0xff]  }
 0x2ee   : > { %6559 = vmatpush1.bf16.msra.mxu1 %v15401_v29  ;;  %v15419_v29 = vld [vmem:[#allocation7 + $0x250] ss:$24 sps:$4 sm:$0xff]  }
 0x2ef   : > { %6641 = vmatprep.subr.bf16.mxu1 %v15481_v10  ;;  %v15515_v10 = vld [vmem:[#allocation7 + $0x720] ss:$24 sps:$4 sm:$0xff]  }
 0x2f0   : > { %7108 = vmatpush1.bf16.msra.mxu0 %v15404_v13  ;;  %v15422_v13 = vld [vmem:[#allocation7 + $0x280] ss:$24 sps:$4 sm:$0xff]  }
 0x2f1   : > { %6561 = vmatmul.mubr.bf16.vlgmr.msra.gmra.mrb[32].mxu1 %v17282_v20  ;;  %7109 = vmatprep.subr.bf16.mxu0 %v15409_v60  ;;  %v15427_v60 = vld [vmem:[#allocation7 + $0x2b4] ss:$24 sps:$4 sm:$0xff]  }
 0x2f2   : > { %6570 = vmatprep.mubr.bf16.mxu1 %v17306_v58  ;;  %6642 = vmatpush1.bf16.msra.mxu1 %v15479_v52  ;;  %v15517_v52 = vld [vmem:[#allocation7 + $0x724] ss:$24 sps:$4 sm:$0xff]  }
 0x2f3   : > { %4449 = vmatmul.mubr.bf16.gmra.mrb[48].mxu0 %v18460_v2  ;;  %6643 = vmatprep.subr.bf16.mxu1 %v15487_v63  ;;  %v15523_v2 = vld [vmem:[#allocation7 + $0x754] ss:$24 sps:$4 sm:$0xff]   ;;  %v15428_v63 = vld [vmem:[#allocation7 + $0x2e0] ss:$24 sps:$4 sm:$0xff]  }
 0x2f4   : > { %7110 = vmatpush1.bf16.msra.mxu0 %v15407_v21  ;;  %4458 = vmatprep.mubr.bf16.mxu0 %v18461_v48  ;;  %v15425_v21 = vld [vmem:[#allocation7 + $0x2b0] ss:$24 sps:$4 sm:$0xff]   ;;  %v15433_v48 = vld [vmem:[#allocation7 + $0x314] ss:$24 sps:$4 sm:$0xff]  }
 0x2f5   : > { %7111 = vmatprep.subr.bf16.mxu0 %v15412_v49  ;;  %v15430_v49 = vld [vmem:[#allocation7 + $0x2e4] ss:$24 sps:$4 sm:$0xff]  }
 0x2f6   : > { %6644 = vmatpush1.bf16.msra.mxu1 %v15485_v62  ;;  %v15527_v62 = vld [vmem:[#allocation7 + $0x780] ss:$24 sps:$4 sm:$0xff]  }
 0x2f7   : > { %6645 = vmatprep.subr.bf16.mxu1 %v15493_v22  ;;  %v15436_v22 = vld [vmem:[#allocation7 + $0x344] ss:$24 sps:$4 sm:$0xff]  }
 0x2f8   : > { %7112 = vmatpush1.bf16.msra.mxu0 %v15410_v1  ;;  %v15529_v1 = vld [vmem:[#allocation7 + $0x784] ss:$24 sps:$4 sm:$0xff]  }
 0x2f9   : > { %6571 = vmatmul.mubr.bf16.gmra.mrb[36].mxu1 %v17302_v12  ;;  %7113 = vmatprep.subr.bf16.mxu0 %v15415_v11  ;;  %v15535_v11 = vld [vmem:[#allocation7 + $0x7b4] ss:$24 sps:$4 sm:$0xff]  }
 0x2fa   : > { %6580 = vmatprep.mubr.bf16.mxu1 %v17326_v0  ;;  %6646 = vmatpush1.bf16.msra.mxu1 %v15491_v23  ;;  %v15431_v23 = vld [vmem:[#allocation7 + $0x310] ss:$24 sps:$4 sm:$0xff]  }
 0x2fb   : > { %4459 = vmatmul.mubr.bf16.gmra.mrb[52].mxu0 %v18462_v25  ;;  %6647 = vmatprep.subr.bf16.mxu1 %v15499_v17  ;;  %v15541_v25 = vld [vmem:[#allocation7 + $0x7e4] ss:$24 sps:$4 sm:$0xff]   ;;  %v15439_v17 = vld [vmem:[#allocation7 + $0x374] ss:$24 sps:$4 sm:$0xff]  }
 0x2fc   : > { %7114 = vmatpush1.bf16.msra.mxu0 %v15413_v55  ;;  %4468 = vmatprep.mubr.bf16.mxu0 %v17187_v27  ;;  %v15511_v27 = vld [vmem:[#allocation7 + $0x6f4] ss:$24 sps:$4 sm:$0xff]   ;;  %v15533_v55 = vld [vmem:[#allocation7 + $0x7b0] ss:$24 sps:$4 sm:$0xff]  }
 0x2fd   : > { %7115 = vmatprep.subr.bf16.mxu0 %v15418_v38  ;;  %v15434_v38 = vld [vmem:[#allocation7 + $0x340] ss:$24 sps:$4 sm:$0xff]  }
 0x2fe   : > { %6648 = vmatpush1.bf16.msra.mxu1 %v15497_v35  ;;  %v15547_v35 = vld [vmem:[#allocation7 + $0x814] ss:$24 sps:$4 sm:$0xff]  }
 0x2ff   : > { %6649 = vmatprep.subr.bf16.mxu1 %v15505_v14  ;;  %v15545_v14 = vld [vmem:[#allocation7 + $0x810] ss:$24 sps:$4 sm:$0xff]  }
 0x300   : > { %7116 = vmatpush1.bf16.msra.mxu0 %v15416_v61  ;;  %v15539_v61 = vld [vmem:[#allocation7 + $0x7e0] ss:$24 sps:$4 sm:$0xff]  }
 0x301   : > { %6581 = vmatmul.mubr.bf16.gmra.mrb[40].mxu1 %v17322_v5  ;;  %7117 = vmatprep.subr.bf16.mxu0 %v15421_v53  ;;  %v15437_v53 = vld [vmem:[#allocation7 + $0x370] ss:$24 sps:$4 sm:$0xff]  }
 0x302   : > { %6590 = vmatprep.mubr.bf16.mxu1 %v17346_v42  ;;  %6650 = vmatpush1.bf16.msra.mxu1 %v15503_v15  ;;  %v15442_v15 = vld [vmem:[#allocation7 + $0x3a4] ss:$24 sps:$4 sm:$0xff]  }
 0x303   : > { %4469 = vmatmul.mubr.bf16.gmra.mrb[56].mxu0 %v17195_v6  ;;  %6651 = vmatprep.subr.bf16.mxu1 %v15511_v27  ;;  %v18463_v6 = vld [vmem:[#allocation33_spill] sm:$0xff] }
 0x304   : > { %7118 = vmatpush1.bf16.msra.mxu0 %v15419_v29  ;;  %4478 = vmatprep.mubr.bf16.mxu0 %v17197_v28  ;;  %v15521_v28 = vld [vmem:[#allocation7 + $0x750] ss:$24 sps:$4 sm:$0xff]   ;;  %v15553_v29 = vld [vmem:[#allocation7 + $0x844] ss:$24 sps:$4 sm:$0xff]   ;;  %v15445_v27 = vld [vmem:[#allocation7 + $0x3d4] ss:$24 sps:$4 sm:$0xff]  }
 0x305   : > { %7119 = vmatprep.subr.bf16.mxu0 %v15424_v31  ;;  %v15440_v31 = vld [vmem:[#allocation7 + $0x3a0] ss:$24 sps:$4 sm:$0xff]  }
 0x306   : > { %6652 = vmatpush1.bf16.msra.mxu1 %v15509_v24  ;;  %v15559_v24 = vld [vmem:[#allocation7 + $0x874] ss:$24 sps:$4 sm:$0xff]  }
 0x307   : > { %6653 = vmatprep.subr.bf16.mxu1 %v15517_v52  ;;  %v15557_v52 = vld [vmem:[#allocation7 + $0x870] ss:$24 sps:$4 sm:$0xff]  }
 0x308   : > { %7120 = vmatpush1.bf16.msra.mxu0 %v15422_v13  ;;  %v15551_v13 = vld [vmem:[#allocation7 + $0x840] ss:$24 sps:$4 sm:$0xff]  }
 0x309   : > { %6591 = vmatmul.mubr.bf16.gmra.mrb[44].mxu1 %v17342_v57  ;;  %7121 = vmatprep.subr.bf16.mxu0 %v15427_v60  ;;  %v15443_v60 = vld [vmem:[#allocation7 + $0x3d0] ss:$24 sps:$4 sm:$0xff]  }
 0x30a   : > { %6600 = vmatprep.mubr.bf16.mxu1 %v17366_v59  ;;  %6654 = vmatpush1.bf16.msra.mxu1 %v15515_v10  ;;  %v15448_v10 = vld [vmem:[#allocation7 + $0x404] ss:$24 sps:$4 sm:$0xff]  }
 0x30b   : > { %4479 = vmatmul.mubr.bf16.gmra.mrb[60].mxu0 %v18463_v6  ;;  %6655 = vmatprep.subr.bf16.mxu1 %v15523_v2  ;;  %v15565_v6 = vld [vmem:[#allocation7 + $0x8a4] ss:$24 sps:$4 sm:$0xff]   ;;  %v15563_v2 = vld [vmem:[#allocation7 + $0x8a0] ss:$24 sps:$4 sm:$0xff]  }
 0x30c   : > { %7122 = vmatpush1.bf16.msra.mxu0 %v15425_v21  ;;  %7125 = vmatprep.mubr.bf16.mxu0 %v17284_v45  ;;  %v15446_v21 = vld [vmem:[#allocation7 + $0x400] ss:$24 sps:$4 sm:$0xff]  }
 0x30d   : > { %7123 = vmatprep.subr.bf16.mxu0 %v15430_v49  ;;  %v15451_v49 = vld [vmem:[#allocation7 + $0x434] ss:$24 sps:$4 sm:$0xff]  }
 0x30e   : > { %6656 = vmatpush1.bf16.msra.mxu1 %v15521_v28  ;;  %v15449_v28 = vld [vmem:[#allocation7 + $0x430] ss:$24 sps:$4 sm:$0xff]  }
 0x30f   : > { %6657 = vmatprep.subr.bf16.mxu1 %v15529_v1  ;;  %v15571_v1 = vld [vmem:[#allocation7 + $0x8d4] ss:$24 sps:$4 sm:$0xff]  }
 0x310   : > { %7124 = vmatpush1.bf16.msra.mxu0 %v15428_v63  ;;  %v15454_v63 = vld [vmem:[#allocation7 + $0x464] ss:$24 sps:$4 sm:$0xff]  }
 0x311   : > { %6601 = vmatmul.mubr.bf16.gmra.mrb[48].mxu1 %v17362_v19  ;;  %7206 = vmatprep.subr.bf16.mxu0 %v15433_v48  ;;  %v15452_v48 = vld [vmem:[#allocation7 + $0x460] ss:$24 sps:$4 sm:$0xff]  }
 0x312   : > { %6610 = vmatprep.mubr.bf16.mxu1 %v17386_v16  ;;  %6658 = vmatpush1.bf16.msra.mxu1 %v15527_v62  ;;  %v15569_v62 = vld [vmem:[#allocation7 + $0x8d0] ss:$24 sps:$4 sm:$0xff]  }
 0x313   : > { %7126 = vmatmul.mubr.bf16.vlgmr.msra.gmra.mrb[64].mxu0 %v17280_v34  ;;  %6659 = vmatprep.subr.bf16.mxu1 %v15535_v11  ;;  %v15457_v11 = vld [vmem:[#allocation7 + $0x494] ss:$24 sps:$4 sm:$0xff]  }
 0x314   : > { %7135 = vmatprep.mubr.bf16.mxu0 %v17304_v51  ;;  %7207 = vmatpush1.bf16.msra.mxu0 %v15431_v23  ;;  %v15577_v23 = vld [vmem:[#allocation7 + $0xc] ss:$24 sps:$4 sm:$0xff]  }
 0x315   : > { %7208 = vmatprep.subr.bf16.mxu0 %v15436_v22  ;;  %v15455_v22 = vld [vmem:[#allocation7 + $0x490] ss:$24 sps:$4 sm:$0xff]  }
 0x316   : > { %6660 = vmatpush1.bf16.msra.mxu1 %v15533_v55  ;;  %v15460_v55 = vld [vmem:[#allocation7 + $0x4c4] ss:$24 sps:$4 sm:$0xff]  }
 0x317   : > { %6661 = vmatprep.subr.bf16.mxu1 %v15541_v25  ;;  %v15463_v25 = vld [vmem:[#allocation7 + $0x4f4] ss:$24 sps:$4 sm:$0xff]  }
 0x318   : > { %7209 = vmatpush1.bf16.msra.mxu0 %v15434_v38  ;;  %v15458_v38 = vld [vmem:[#allocation7 + $0x4c0] ss:$24 sps:$4 sm:$0xff]  }
 0x319   : > { %6611 = vmatmul.mubr.bf16.gmra.mrb[52].mxu1 %v17382_v30  ;;  %7210 = vmatprep.subr.bf16.mxu0 %v15439_v17  ;;  %v15461_v17 = vld [vmem:[#allocation7 + $0x4f0] ss:$24 sps:$4 sm:$0xff]  }
 0x31a   : > { %6620 = vmatprep.mubr.bf16.mxu1 %v17406_v43  ;;  %6662 = vmatpush1.bf16.msra.mxu1 %v15539_v61  ;;  %v15466_v61 = vld [vmem:[#allocation7 + $0x524] ss:$24 sps:$4 sm:$0xff]  }
 0x31b   : > { %7136 = vmatmul.mubr.bf16.gmra.mrb[68].mxu0 %v17300_v40  ;;  %6663 = vmatprep.subr.bf16.mxu1 %v15547_v35  ;;  %v15464_v35 = vld [vmem:[#allocation7 + $0x520] ss:$24 sps:$4 sm:$0xff]  }
 0x31c   : > { %7145 = vmatprep.mubr.bf16.mxu0 %v17324_v41  ;;  %7211 = vmatpush1.bf16.msra.mxu0 %v15437_v53  ;;  %v15469_v53 = vld [vmem:[#allocation7 + $0x554] ss:$24 sps:$4 sm:$0xff]  }
 0x31d   : > { %7212 = vmatprep.subr.bf16.mxu0 %v15442_v15  ;;  %v15467_v15 = vld [vmem:[#allocation7 + $0x550] ss:$24 sps:$4 sm:$0xff]  }
 0x31e   : > { %6664 = vmatpush1.bf16.msra.mxu1 %v15545_v14  ;;  %v15472_v14 = vld [vmem:[#allocation7 + $0x584] ss:$24 sps:$4 sm:$0xff]  }
 0x31f   : > { %6665 = vmatprep.subr.bf16.mxu1 %v15553_v29  ;;  %v15470_v29 = vld [vmem:[#allocation7 + $0x580] ss:$24 sps:$4 sm:$0xff]  }
 0x320   : > { %7213 = vmatpush1.bf16.msra.mxu0 %v15440_v31  ;;  %v15475_v31 = vld [vmem:[#allocation7 + $0x5b4] ss:$24 sps:$4 sm:$0xff]  }
 0x321   : > { %6621 = vmatmul.mubr.bf16.gmra.mrb[56].mxu1 %v17402_v47  ;;  %7214 = vmatprep.subr.bf16.mxu0 %v15445_v27  ;;  %v15473_v27 = vld [vmem:[#allocation7 + $0x5b0] ss:$24 sps:$4 sm:$0xff]  }
 0x322   : > { %6630 = vmatprep.mubr.bf16.mxu1 %v17426_v7  ;;  %6666 = vmatpush1.bf16.msra.mxu1 %v15551_v13  ;;  %v15478_v13 = vld [vmem:[#allocation7 + $0x5e4] ss:$24 sps:$4 sm:$0xff]  }
 0x323   : > { %7146 = vmatmul.mubr.bf16.gmra.mrb[72].mxu0 %v17320_v36  ;;  %6667 = vmatprep.subr.bf16.mxu1 %v15559_v24  ;;  %v15476_v24 = vld [vmem:[#allocation7 + $0x5e0] ss:$24 sps:$4 sm:$0xff]  }
 0x324   : > { %7155 = vmatprep.mubr.bf16.mxu0 %v17344_v46  ;;  %7215 = vmatpush1.bf16.msra.mxu0 %v15443_v60  ;;  %v15484_v60 = vld [vmem:[#allocation7 + $0x614] ss:$24 sps:$4 sm:$0xff]  }
 0x325   : > { %7216 = vmatprep.subr.bf16.mxu0 %v15448_v10  ;;  %v15482_v10 = vld [vmem:[#allocation7 + $0x610] ss:$24 sps:$4 sm:$0xff]  }
 0x326   : > { %6668 = vmatpush1.bf16.msra.mxu1 %v15557_v52  ;;  %v15490_v52 = vld [vmem:[#allocation7 + $0x644] ss:$24 sps:$4 sm:$0xff]  }
 0x327   : > { %6669 = vmatprep.subr.bf16.mxu1 %v15565_v6  ;;  %v15494_v6 = vld [vmem:[#allocation7 + $0x670] ss:$24 sps:$4 sm:$0xff]  }
 0x328   : > { %7217 = vmatpush1.bf16.msra.mxu0 %v15446_v21  ;;  %v15488_v21 = vld [vmem:[#allocation7 + $0x640] ss:$24 sps:$4 sm:$0xff]  }
 0x329   : > { %6631 = vmatmul.mubr.bf16.gmra.mrb[60].mxu1 %v17422_v44  ;;  %7218 = vmatprep.subr.bf16.mxu0 %v15451_v49  ;;  %v15496_v49 = vld [vmem:[#allocation7 + $0x674] ss:$24 sps:$4 sm:$0xff]  }
 0x32a   : > { %6670 = vmatpush1.bf16.msra.mxu1 %v15563_v2  ;;  %v15500_v2 = vld [vmem:[#allocation7 + $0x6a0] ss:$24 sps:$4 sm:$0xff]  }
 0x32b   : > { %7156 = vmatmul.mubr.bf16.gmra.mrb[76].mxu0 %v17340_v39  ;;  %6671 = vmatprep.subr.bf16.mxu1 %v15571_v1  ;;  %v15506_v1 = vld [vmem:[#allocation7 + $0x6d0] ss:$24 sps:$4 sm:$0xff]  }
 0x32c   : > { %7165 = vmatprep.mubr.bf16.mxu0 %v17364_v50  ;;  %7219 = vmatpush1.bf16.msra.mxu0 %v15449_v28  ;;  %v15502_v28 = vld [vmem:[#allocation7 + $0x6a4] ss:$24 sps:$4 sm:$0xff]  }
 0x32d   : > { %7220 = vmatprep.subr.bf16.mxu0 %v15454_v63  ;;  %v15508_v63 = vld [vmem:[#allocation7 + $0x6d4] ss:$24 sps:$4 sm:$0xff]  }
 0x32e   : > { %6672 = vmatpush1.bf16.msra.mxu1 %v15569_v62  ;;  %v15512_v62 = vld [vmem:[#allocation7 + $0x700] ss:$24 sps:$4 sm:$0xff]  }
 0x32f   : > { %6754 = vmatprep.subr.bf16.mxu1 %v15577_v23  ;;  %v15518_v23 = vld [vmem:[#allocation7 + $0x730] ss:$24 sps:$4 sm:$0xff]  }
 0x330   : > { %7221 = vmatpush1.bf16.msra.mxu0 %v15452_v48  ;;  %v15514_v48 = vld [vmem:[#allocation7 + $0x704] ss:$24 sps:$4 sm:$0xff]  }
 0x331   : > { %7222 = vmatprep.subr.bf16.mxu0 %v15457_v11  ;;  %v15520_v11 = vld [vmem:[#allocation7 + $0x734] ss:$24 sps:$4 sm:$0xff]  }
 0x333   : > { %7166 = vmatmul.mubr.bf16.gmra.mrb[80].mxu0 %v17360_v26 }
 0x334   : > { %7175 = vmatprep.mubr.bf16.mxu0 %v17384_v8  ;;  %7223 = vmatpush1.bf16.msra.mxu0 %v15455_v22  ;;  %v15526_v22 = vld [vmem:[#allocation7 + $0x764] ss:$24 sps:$4 sm:$0xff]  }
 0x335   : > { %7224 = vmatprep.subr.bf16.mxu0 %v15460_v55  ;;  %v15524_v55 = vld [vmem:[#allocation7 + $0x760] ss:$24 sps:$4 sm:$0xff]  }
 0x338   : > { %7225 = vmatpush1.bf16.msra.mxu0 %v15458_v38  ;;  %v15532_v38 = vld [vmem:[#allocation7 + $0x794] ss:$24 sps:$4 sm:$0xff]  }
 0x339   : > { %7226 = vmatprep.subr.bf16.mxu0 %v15463_v25  ;;  %v15530_v25 = vld [vmem:[#allocation7 + $0x790] ss:$24 sps:$4 sm:$0xff]  }
 0x33b   : > { %7176 = vmatmul.mubr.bf16.gmra.mrb[84].mxu0 %v17380_v54 }
 0x33c   : > { %7185 = vmatprep.mubr.bf16.mxu0 %v17404_v9  ;;  %7227 = vmatpush1.bf16.msra.mxu0 %v15461_v17  ;;  %v15538_v17 = vld [vmem:[#allocation7 + $0x7c4] ss:$24 sps:$4 sm:$0xff]  }
 0x33d   : > { %7228 = vmatprep.subr.bf16.mxu0 %v15466_v61  ;;  %v15536_v61 = vld [vmem:[#allocation7 + $0x7c0] ss:$24 sps:$4 sm:$0xff]  }
 0x340   : > { %7229 = vmatpush1.bf16.msra.mxu0 %v15464_v35  ;;  %v15544_v35 = vld [vmem:[#allocation7 + $0x7f4] ss:$24 sps:$4 sm:$0xff]  }
 0x341   : > { %7230 = vmatprep.subr.bf16.mxu0 %v15469_v53  ;;  %v15542_v53 = vld [vmem:[#allocation7 + $0x7f0] ss:$24 sps:$4 sm:$0xff]  }
 0x343   : > { %7186 = vmatmul.mubr.bf16.gmra.mrb[88].mxu0 %v17400_v37 }
 0x344   : > { %7195 = vmatprep.mubr.bf16.mxu0 %v17424_v32  ;;  %7231 = vmatpush1.bf16.msra.mxu0 %v15467_v15  ;;  %v15550_v15 = vld [vmem:[#allocation7 + $0x824] ss:$24 sps:$4 sm:$0xff]  }
 0x345   : > { %7232 = vmatprep.subr.bf16.mxu0 %v15472_v14  ;;  %v15548_v14 = vld [vmem:[#allocation7 + $0x820] ss:$24 sps:$4 sm:$0xff]  }
 0x348   : > { %7233 = vmatpush1.bf16.msra.mxu0 %v15470_v29  ;;  %v15556_v29 = vld [vmem:[#allocation7 + $0x854] ss:$24 sps:$4 sm:$0xff]  }
 0x349   : > { %7234 = vmatprep.subr.bf16.mxu0 %v15475_v31  ;;  %v15554_v31 = vld [vmem:[#allocation7 + $0x850] ss:$24 sps:$4 sm:$0xff]  }
 0x34b   : > { %7196 = vmatmul.mubr.bf16.gmra.mrb[92].mxu0 %v17420_v4 }
 0x34c   : > { %7235 = vmatpush1.bf16.msra.mxu0 %v15473_v27  ;;  %7238 = vmatprep.mubr.bf16.mxu0 %v17286_v56  ;;  %v15562_v27 = vld [vmem:[#allocation7 + $0x884] ss:$24 sps:$4 sm:$0xff]  }
 0x34d   : > { %7236 = vmatprep.subr.bf16.mxu0 %v15478_v13  ;;  %v15560_v13 = vld [vmem:[#allocation7 + $0x880] ss:$24 sps:$4 sm:$0xff]  }
 0x350   : > { %7237 = vmatpush1.bf16.msra.mxu0 %v15476_v24  ;;  %v15568_v24 = vld [vmem:[#allocation7 + $0x8b4] ss:$24 sps:$4 sm:$0xff]  }
 0x351   : > { %7319 = vmatprep.subr.bf16.mxu0 %v15484_v60  ;;  %v15566_v60 = vld [vmem:[#allocation7 + $0x8b0] ss:$24 sps:$4 sm:$0xff]  }
 0x353   : > { %7239 = vmatmul.mubr.bf16.vlgmr.msra.gmra.mrb[64].mxu0 %v17282_v20 }
 0x354   : > { %7248 = vmatprep.mubr.bf16.mxu0 %v17306_v58  ;;  %7320 = vmatpush1.bf16.msra.mxu0 %v15482_v10  ;;  %v15574_v10 = vld [vmem:[#allocation7 + $0x8e4] ss:$24 sps:$4 sm:$0xff]  }
 0x355   : > { %7321 = vmatprep.subr.bf16.mxu0 %v15490_v52  ;;  %v15572_v52 = vld [vmem:[#allocation7 + $0x8e0] ss:$24 sps:$4 sm:$0xff]  }
 0x358   : > { %7322 = vmatpush1.bf16.msra.mxu0 %v15488_v21  ;;  %v17487_v21 = vld [vmem:[#allocation11 + $0x10] sm:$0x77] }
 0x359   : > { %7323 = vmatprep.subr.bf16.mxu0 %v15496_v49  ;;  %v858_v49 = vrot.slane %v17487_v21, %v17246_v18 }
 0x35b   : > { %7249 = vmatmul.mubr.bf16.gmra.mrb[68].mxu0 %v17302_v12 }
 0x35c   : > { %7258 = vmatprep.mubr.bf16.mxu0 %v17326_v0  ;;  %7324 = vmatpush1.bf16.msra.mxu0 %v15494_v6  ;;  %v862_v6 = vrot.slane %v17487_v21, %v17250_v3  ;;  %v15695_v3 = vld [vmem:[#allocation7 + $0x908] ss:$24 sps:$4 sm:$0xff]  }
 0x35d   : > { %7325 = vmatprep.subr.bf16.mxu0 %v15502_v28  ;;  %v17494_v28 = vrot.slane %v858_v49, %v17246_v18  ;;  %v15578_v49 = vld [vmem:[#allocation7 + $0x38] ss:$24 sps:$4 sm:$0xff]  }
 0x360   : > { %7326 = vmatpush1.bf16.msra.mxu0 %v15500_v2  ;;  %v17497_v2 = vrot.slane %v862_v6, %v17246_v18 }
 0x361   : > { %7327 = vmatprep.subr.bf16.mxu0 %v15508_v63 }
 0x363   : > { %7259 = vmatmul.mubr.bf16.gmra.mrb[72].mxu0 %v17322_v5 }
 0x364   : > { %7268 = vmatprep.mubr.bf16.mxu0 %v17346_v42  ;;  %7328 = vmatpush1.bf16.msra.mxu0 %v15506_v1 }
 0x365   : > { %7329 = vmatprep.subr.bf16.mxu0 %v15514_v48 }
 0x368   : > { %7330 = vmatpush1.bf16.msra.mxu0 %v15512_v62 }
 0x369   : > { %7331 = vmatprep.subr.bf16.mxu0 %v15520_v11 }
 0x36b   : > { %7269 = vmatmul.mubr.bf16.gmra.mrb[76].mxu0 %v17342_v57 }
 0x36c   : > { %7278 = vmatprep.mubr.bf16.mxu0 %v17366_v59  ;;  %7332 = vmatpush1.bf16.msra.mxu0 %v15518_v23 }
 0x36d   : > { %7333 = vmatprep.subr.bf16.mxu0 %v15526_v22 }
 0x370   : > { %7334 = vmatpush1.bf16.msra.mxu0 %v15524_v55 }
 0x371   : > { %7335 = vmatprep.subr.bf16.mxu0 %v15532_v38 }
 0x373   : > { %7279 = vmatmul.mubr.bf16.gmra.mrb[80].mxu0 %v17362_v19 }
 0x374   : > { %7288 = vmatprep.mubr.bf16.mxu0 %v17386_v16  ;;  %7336 = vmatpush1.bf16.msra.mxu0 %v15530_v25 }
 0x375   : > { %7337 = vmatprep.subr.bf16.mxu0 %v15538_v17 }
 0x378   : > { %7338 = vmatpush1.bf16.msra.mxu0 %v15536_v61 }
 0x379   : > { %7339 = vmatprep.subr.bf16.mxu0 %v15544_v35 }
 0x37b   : > { %7289 = vmatmul.mubr.bf16.gmra.mrb[84].mxu0 %v17382_v30 }
 0x37c   : > { %7298 = vmatprep.mubr.bf16.mxu0 %v17406_v43  ;;  %7340 = vmatpush1.bf16.msra.mxu0 %v15542_v53 }
 0x37d   : > { %7341 = vmatprep.subr.bf16.mxu0 %v15550_v15 }
 0x380   : > { %7342 = vmatpush1.bf16.msra.mxu0 %v15548_v14  ;;  %v15575_v14 = vld [vmem:[#allocation7 + $0x8] ss:$24 sps:$4 sm:$0xff]  }
 0x381   : > { %7343 = vmatprep.subr.bf16.mxu0 %v15556_v29 }
 0x383   : > { %7299 = vmatmul.mubr.bf16.gmra.mrb[88].mxu0 %v17402_v47 }
 0x384   : > { %7308 = vmatprep.mubr.bf16.mxu0 %v17426_v7  ;;  %7344 = vmatpush1.bf16.msra.mxu0 %v15554_v31 }
 0x385   : > { %7345 = vmatprep.subr.bf16.mxu0 %v15562_v27  ;;  %v15580_v27 = vld [vmem:[#allocation7 + $0x3c] ss:$24 sps:$4 sm:$0xff]  }
 0x388   : > { %7346 = vmatpush1.bf16.msra.mxu0 %v15560_v13 }
 0x389   : > { %7347 = vmatprep.subr.bf16.mxu0 %v15568_v24 }
 0x38b   : > { %7309 = vmatmul.mubr.bf16.gmra.mrb[92].mxu0 %v17422_v44 }
 0x38c   : > { %7348 = vmatpush1.bf16.msra.mxu0 %v15566_v60 }
 0x38d   : > { %7349 = vmatprep.subr.bf16.mxu0 %v15574_v10 }
 0x390   : > { %7350 = vmatpush1.bf16.msra.mxu0 %v15572_v52 }
 0x3a6   : > { %v4410_v63 = vpop.f32.mrb[32].mxu0 }
 0x3a7   : > { %v13700_v1 = vadd.f32 %v4410_v63, %v17494_v28  ;;  %v4412_v48 = vpop.f32.mrb[33].mxu0 }
 0x3a8   : > { %v13701_v62 = vadd.f32 %v4412_v48, %v17497_v2  ;;  %v4414_v11 = vpop.f32.mrb[34].mxu0 }
 0x3a9   : > { %v13702_v23 = vadd.f32 %v4414_v11, %v17494_v28  ;;  %v4416_v22 = vpop.f32.mrb[35].mxu0  ;;  %v4493_v38 = vmax.f32 %v13700_v1, 0.0  ;;  %v15583_v1 = vld [vmem:[#allocation7 + $0x6c] ss:$24 sps:$4 sm:$0xff]  }
 0x3aa   : > { %v13703_v55 = vadd.f32 %v4416_v22, %v17497_v2  ;;  %v4494_v17 = vmax.f32 %v13701_v62, 0.0 }
 0x3ab   : > { %v4499_v25 = vmax.f32 %v13702_v23, 0.0 }
 0x3ac   : > { %v4500_v61 = vmax.f32 %v13703_v55, 0.0  ;;  %v15581_v55 = vld [vmem:[#allocation7 + $0x68] ss:$24 sps:$4 sm:$0xff]  }
 0x3ad   : > { %v17503_v35 = vpack.c.bf16 %v4499_v25, %v4493_v38 }
 0x3ae   : > { %v17505_v53 = vpack.c.bf16 %v4500_v61, %v4494_v17  ;;  %v4420_v15 = vpop.f32.mrb[36].mxu0  ;;  %v15586_v17 = vld [vmem:[#allocation7 + $0x9c] ss:$24 sps:$4 sm:$0xff]  }
 0x3af   : > { %v13704_v29 = vadd.f32 %v4420_v15, %v17494_v28  ;;  %v4422_v31 = vpop.f32.mrb[37].mxu0 }
 0x3b0   : > { %v13705_v13 = vadd.f32 %v4422_v31, %v17497_v2  ;;  %v4424_v24 = vpop.f32.mrb[38].mxu0  ;;  %6673 = vmatprep.mubr.bf16.mxu1 %v17505_v53  ;;  %7351 = vmatprep.mubr.bf16.mxu0 %v17505_v53 }
 0x3b1   : > { %v13706_v60 = vadd.f32 %v4424_v24, %v17494_v28  ;;  %v4426_v10 = vpop.f32.mrb[39].mxu0  ;;  %6674 = vmatmul.mubr.bf16.vlgmr.msra.gmra.mrb[32].mxu1 %v17503_v35  ;;  %7352 = vmatmul.mubr.bf16.vlgmr.msra.gmra.mrb[64].mxu0 %v17503_v35  ;;  %v4505_v6 = vmax.f32 %v13704_v29, 0.0 }
 0x3b2   : > { %v13707_v52 = vadd.f32 %v4426_v10, %v17497_v2  ;;  %6755 = vmatpush1.bf16.msra.mxu1 %v15575_v14  ;;  %v4506_v48 = vmax.f32 %v13705_v13, 0.0 }
 0x3b3   : > { %v4511_v63 = vmax.f32 %v13706_v60, 0.0  ;;  %6756 = vmatprep.subr.bf16.mxu1 %v15580_v27  ;;  %v15584_v27 = vld [vmem:[#allocation7 + $0x98] ss:$24 sps:$4 sm:$0xff]   ;;  %v15589_v60 = vld [vmem:[#allocation7 + $0xcc] ss:$24 sps:$4 sm:$0xff]  }
 0x3b4   : > { %v4512_v62 = vmax.f32 %v13707_v52, 0.0 }
 0x3b5   : > { %v17515_v11 = vpack.c.bf16 %v4511_v63, %v4505_v6 }
 0x3b6   : > { %v17517_v23 = vpack.c.bf16 %v4512_v62, %v4506_v48  ;;  %v4430_v22 = vpop.f32.mrb[40].mxu0  ;;  %6757 = vmatpush1.bf16.msra.mxu1 %v15578_v49 }
 0x3b7   : > { %v13708_v38 = vadd.f32 %v4430_v22, %v17494_v28  ;;  %v4432_v25 = vpop.f32.mrb[41].mxu0  ;;  %6758 = vmatprep.subr.bf16.mxu1 %v15583_v1  ;;  %v15587_v1 = vld [vmem:[#allocation7 + $0xc8] ss:$24 sps:$4 sm:$0xff]   ;;  %v15592_v22 = vld [vmem:[#allocation7 + $0xfc] ss:$24 sps:$4 sm:$0xff]  }
 0x3b8   : > { %v13709_v61 = vadd.f32 %v4432_v25, %v17497_v2  ;;  %v4434_v15 = vpop.f32.mrb[42].mxu0  ;;  %6683 = vmatprep.mubr.bf16.mxu1 %v17517_v23  ;;  %7361 = vmatprep.mubr.bf16.mxu0 %v17517_v23 }
 0x3b9   : > { %v13710_v14 = vadd.f32 %v4434_v15, %v17494_v28  ;;  %v4436_v29 = vpop.f32.mrb[43].mxu0  ;;  %6684 = vmatmul.mubr.bf16.gmra.mrb[36].mxu1 %v17515_v11  ;;  %7362 = vmatmul.mubr.bf16.gmra.mrb[68].mxu0 %v17515_v11  ;;  %v4517_v13 = vmax.f32 %v13708_v38, 0.0  ;;  %v15590_v15 = vld [vmem:[#allocation7 + $0xf8] ss:$24 sps:$4 sm:$0xff]  }
 0x3ba   : > { %v13711_v31 = vadd.f32 %v4436_v29, %v17497_v2  ;;  %6759 = vmatpush1.bf16.msra.mxu1 %v15581_v55  ;;  %v4518_v10 = vmax.f32 %v13709_v61, 0.0 }
 0x3bb   : > { %v4523_v24 = vmax.f32 %v13710_v14, 0.0  ;;  %6760 = vmatprep.subr.bf16.mxu1 %v15586_v17 }
 0x3bc   : > { %v4524_v52 = vmax.f32 %v13711_v31, 0.0  ;;  %v15595_v31 = vld [vmem:[#allocation7 + $0x12c] ss:$24 sps:$4 sm:$0xff]  }
 0x3bd   : > { %v17527_v49 = vpack.c.bf16 %v4523_v24, %v4517_v13 }
 0x3be   : > { %v17529_v6 = vpack.c.bf16 %v4524_v52, %v4518_v10  ;;  %v4440_v63 = vpop.f32.mrb[44].mxu0  ;;  %6761 = vmatpush1.bf16.msra.mxu1 %v15584_v27  ;;  %v15593_v52 = vld [vmem:[#allocation7 + $0x128] ss:$24 sps:$4 sm:$0xff]  }
 0x3bf   : > { %v13712_v48 = vadd.f32 %v4440_v63, %v17494_v28  ;;  %v4442_v62 = vpop.f32.mrb[45].mxu0  ;;  %6762 = vmatprep.subr.bf16.mxu1 %v15589_v60 }
 0x3c0   : > { %v13713_v55 = vadd.f32 %v4442_v62, %v17497_v2  ;;  %v4444_v38 = vpop.f32.mrb[46].mxu0  ;;  %6693 = vmatprep.mubr.bf16.mxu1 %v17529_v6  ;;  %7371 = vmatprep.mubr.bf16.mxu0 %v17529_v6 }
 0x3c1   : > { %v13714_v25 = vadd.f32 %v4444_v38, %v17494_v28  ;;  %v4446_v17 = vpop.f32.mrb[47].mxu0  ;;  %6694 = vmatmul.mubr.bf16.gmra.mrb[40].mxu1 %v17527_v49  ;;  %7372 = vmatmul.mubr.bf16.gmra.mrb[72].mxu0 %v17527_v49  ;;  %v4529_v14 = vmax.f32 %v13712_v48, 0.0  ;;  %v15598_v38 = vld [vmem:[#allocation7 + $0x15c] ss:$24 sps:$4 sm:$0xff]  }
 0x3c2   : > { %v13715_v61 = vadd.f32 %v4446_v17, %v17497_v2  ;;  %6763 = vmatpush1.bf16.msra.mxu1 %v15587_v1  ;;  %v4530_v27 = vmax.f32 %v13713_v55, 0.0  ;;  %v15596_v17 = vld [vmem:[#allocation7 + $0x158] ss:$24 sps:$4 sm:$0xff]  }
 0x3c3   : > { %v4535_v29 = vmax.f32 %v13714_v25, 0.0  ;;  %6764 = vmatprep.subr.bf16.mxu1 %v15592_v22 }
 0x3c4   : > { %v4536_v13 = vmax.f32 %v13715_v61, 0.0 }
 0x3c5   : > { %v17539_v24 = vpack.c.bf16 %v4535_v29, %v4529_v14  ;;  %v15601_v14 = vld [vmem:[#allocation7 + $0x18c] ss:$24 sps:$4 sm:$0xff]  }
 0x3c6   : > { %v17541_v60 = vpack.c.bf16 %v4536_v13, %v4530_v27  ;;  %v4450_v10 = vpop.f32.mrb[48].mxu0  ;;  %6765 = vmatpush1.bf16.msra.mxu1 %v15590_v15  ;;  %v15697_v13 = vld [vmem:[#allocation7 + $0x90c] ss:$24 sps:$4 sm:$0xff]  }
 0x3c7   : > { %18464 = vst [vmem:[#allocation20_spill] sm:$0xff] %v17539_v24  ;;  %v13716_v63 = vadd.f32 %v4450_v10, %v17494_v28  ;;  %v4452_v62 = vpop.f32.mrb[49].mxu0  ;;  %6766 = vmatprep.subr.bf16.mxu1 %v15595_v31  ;;  %9698 = vmatprep.subr.bf16.mxu0 %v15697_v13 }
 0x3c8   : > { %v13717_v1 = vadd.f32 %v4452_v62, %v17497_v2  ;;  %v4454_v48 = vpop.f32.mrb[50].mxu0  ;;  %6703 = vmatprep.mubr.bf16.mxu1 %v17541_v60  ;;  %7381 = vmatprep.mubr.bf16.mxu0 %v17541_v60 }
 0x3c9   : > { %v13718_v22 = vadd.f32 %v4454_v48, %v17494_v28  ;;  %v4456_v55 = vpop.f32.mrb[51].mxu0  ;;  %6704 = vmatmul.mubr.bf16.gmra.mrb[44].mxu1 %v17539_v24  ;;  %7382 = vmatmul.mubr.bf16.gmra.mrb[76].mxu0 %v17539_v24  ;;  %v4541_v61 = vmax.f32 %v13716_v63, 0.0  ;;  %v15599_v48 = vld [vmem:[#allocation7 + $0x188] ss:$24 sps:$4 sm:$0xff]  }
 0x3ca   : > { %v13719_v25 = vadd.f32 %v4456_v55, %v17497_v2  ;;  %6767 = vmatpush1.bf16.msra.mxu1 %v15593_v52  ;;  %v4542_v29 = vmax.f32 %v13717_v1, 0.0  ;;  %v15604_v52 = vld [vmem:[#allocation7 + $0x1bc] ss:$24 sps:$4 sm:$0xff]   ;;  %9699 = vmatpush1.bf16.msra.mxu0 %v15695_v3  ;;  %v15605_v24 = vld [vmem:[#allocation7 + $0x1e8] ss:$24 sps:$4 sm:$0xff]  }
 0x3cb   : > { %v4547_v15 = vmax.f32 %v13718_v22, 0.0  ;;  %6768 = vmatprep.subr.bf16.mxu1 %v15598_v38 }
 0x3cc   : > { %v4548_v31 = vmax.f32 %v13719_v25, 0.0  ;;  %v15703_v25 = vld [vmem:[#allocation7 + $0x93c] ss:$24 sps:$4 sm:$0xff]  }
 0x3cd   : > { %v17551_v27 = vpack.c.bf16 %v4547_v15, %v4541_v61  ;;  %v15602_v61 = vld [vmem:[#allocation7 + $0x1b8] ss:$24 sps:$4 sm:$0xff]   ;;  %9700 = vmatprep.subr.bf16.mxu0 %v15703_v25 }
 0x3ce   : > { %v17553_v10 = vpack.c.bf16 %v4548_v31, %v4542_v29  ;;  %v4460_v62 = vpop.f32.mrb[52].mxu0  ;;  %6769 = vmatpush1.bf16.msra.mxu1 %v15596_v17  ;;  %v15701_v15 = vld [vmem:[#allocation7 + $0x938] ss:$24 sps:$4 sm:$0xff]   ;;  %v15607_v31 = vld [vmem:[#allocation7 + $0x1ec] ss:$24 sps:$4 sm:$0xff]  }
 0x3cf   : > { %18465 = vst [vmem:[#allocation21_spill] sm:$0xff] %v17551_v27  ;;  %v13720_v18 = vadd.f32 %v4460_v62, %v17494_v28  ;;  %v4462_v55 = vpop.f32.mrb[53].mxu0  ;;  %6770 = vmatprep.subr.bf16.mxu1 %v15601_v14  ;;  %9701 = vmatpush1.bf16.msra.mxu0 %v15701_v15  ;;  %v15713_v15 = vld [vmem:[#allocation7 + $0x998] ss:$24 sps:$4 sm:$0xff]  }
 0x3d0   : > { %18466 = vst [vmem:[#allocation22_spill] sm:$0xff] %v17553_v10  ;;  %v13721_v63 = vadd.f32 %v4462_v55, %v17497_v2  ;;  %v4464_v38 = vpop.f32.mrb[54].mxu0  ;;  %6713 = vmatprep.mubr.bf16.mxu1 %v17553_v10  ;;  %7391 = vmatprep.mubr.bf16.mxu0 %v17553_v10 }
 0x3d1   : > { %v13722_v1 = vadd.f32 %v4464_v38, %v17494_v28  ;;  %v4466_v22 = vpop.f32.mrb[55].mxu0  ;;  %6714 = vmatmul.mubr.bf16.gmra.mrb[48].mxu1 %v17551_v27  ;;  %7392 = vmatmul.mubr.bf16.gmra.mrb[80].mxu0 %v17551_v27  ;;  %v4553_v14 = vmax.f32 %v13720_v18, 0.0  ;;  %v15709_v38 = vld [vmem:[#allocation7 + $0x96c] ss:$24 sps:$4 sm:$0xff]   ;;  %v15610_v18 = vld [vmem:[#allocation7 + $0x21c] ss:$24 sps:$4 sm:$0xff]  }
 0x3d2   : > { %v13723_v17 = vadd.f32 %v4466_v22, %v17497_v2  ;;  %6771 = vmatpush1.bf16.msra.mxu1 %v15599_v48  ;;  %v4554_v13 = vmax.f32 %v13721_v63, 0.0  ;;  %v15707_v48 = vld [vmem:[#allocation7 + $0x968] ss:$24 sps:$4 sm:$0xff]   ;;  %9702 = vmatprep.subr.bf16.mxu0 %v15709_v38 }
 0x3d3   : > { %v4559_v29 = vmax.f32 %v13722_v1, 0.0  ;;  %6772 = vmatprep.subr.bf16.mxu1 %v15604_v52  ;;  %9703 = vmatpush1.bf16.msra.mxu0 %v15707_v48 }
 0x3d4   : > { %v4560_v62 = vmax.f32 %v13723_v17, 0.0  ;;  %v15715_v17 = vld [vmem:[#allocation7 + $0x99c] ss:$24 sps:$4 sm:$0xff]  }
 0x3d5   : > { %v17563_v55 = vpack.c.bf16 %v4559_v29, %v4553_v14  ;;  %9704 = vmatprep.subr.bf16.mxu0 %v15715_v17 }
 0x3d6   : > { %v17565_v10 = vpack.c.bf16 %v4560_v62, %v4554_v13  ;;  %v4470_v27 = vpop.f32.mrb[56].mxu0  ;;  %6773 = vmatpush1.bf16.msra.mxu1 %v15602_v61  ;;  %v15608_v61 = vld [vmem:[#allocation7 + $0x218] ss:$24 sps:$4 sm:$0xff]  }
 0x3d7   : > { %18467 = vst [vmem:[#allocation23_spill] sm:$0xff] %v17563_v55  ;;  %v13724_v3 = vadd.f32 %v4470_v27, %v17494_v28  ;;  %v4472_v22 = vpop.f32.mrb[57].mxu0  ;;  %6774 = vmatprep.subr.bf16.mxu1 %v15607_v31  ;;  %v15613_v31 = vld [vmem:[#allocation7 + $0x24c] ss:$24 sps:$4 sm:$0xff]   ;;  %9705 = vmatpush1.bf16.msra.mxu0 %v15713_v15  ;;  %v15725_v15 = vld [vmem:[#allocation7 + $0x9f8] ss:$24 sps:$4 sm:$0xff]  }
 0x3d8   : > { %18468 = vst [vmem:[#allocation24_spill] sm:$0xff] %v17565_v10  ;;  %v13725_v52 = vadd.f32 %v4472_v22, %v17497_v2  ;;  %v4474_v63 = vpop.f32.mrb[58].mxu0  ;;  %6723 = vmatprep.mubr.bf16.mxu1 %v17565_v10  ;;  %7401 = vmatprep.mubr.bf16.mxu0 %v17565_v10  ;;  %v15721_v22 = vld [vmem:[#allocation7 + $0x9cc] ss:$24 sps:$4 sm:$0xff]   ;;  %v15611_v10 = vld [vmem:[#allocation7 + $0x248] ss:$24 sps:$4 sm:$0xff]  }
 0x3d9   : > { %v13726_v1 = vadd.f32 %v4474_v63, %v17494_v28  ;;  %v4476_v25 = vpop.f32.mrb[59].mxu0  ;;  %6724 = vmatmul.mubr.bf16.gmra.mrb[52].mxu1 %v17563_v55  ;;  %7402 = vmatmul.mubr.bf16.gmra.mrb[84].mxu0 %v17563_v55  ;;  %v4565_v14 = vmax.f32 %v13724_v3, 0.0  ;;  %v15616_v3 = vld [vmem:[#allocation7 + $0x27c] ss:$24 sps:$4 sm:$0xff]  }
 0x3da   : > { %v13727_v27 = vadd.f32 %v4476_v25, %v17497_v2  ;;  %6775 = vmatpush1.bf16.msra.mxu1 %v15605_v24  ;;  %v4566_v13 = vmax.f32 %v13725_v52, 0.0  ;;  %v15719_v24 = vld [vmem:[#allocation7 + $0x9c8] ss:$24 sps:$4 sm:$0xff]   ;;  %9706 = vmatprep.subr.bf16.mxu0 %v15721_v22  ;;  %v15733_v22 = vld [vmem:[#allocation7 + $0xa2c] ss:$24 sps:$4 sm:$0xff]  }
 0x3db   : > { %v4571_v29 = vmax.f32 %v13726_v1, 0.0  ;;  %6776 = vmatprep.subr.bf16.mxu1 %v15610_v18  ;;  %9707 = vmatpush1.bf16.msra.mxu0 %v15719_v24  ;;  %v15739_v24 = vld [vmem:[#allocation7 + $0xa5c] ss:$24 sps:$4 sm:$0xff]  }
 0x3dc   : > { %v4572_v62 = vmax.f32 %v13727_v27, 0.0  ;;  %v15727_v27 = vld [vmem:[#allocation7 + $0x9fc] ss:$24 sps:$4 sm:$0xff]  }
 0x3dd   : > { %v17575_v38 = vpack.c.bf16 %v4571_v29, %v4565_v14  ;;  %9708 = vmatprep.subr.bf16.mxu0 %v15727_v27  ;;  %v15628_v27 = vld [vmem:[#allocation7 + $0x33c] ss:$24 sps:$4 sm:$0xff]  }
 0x3de   : > { %v17577_v63 = vpack.c.bf16 %v4572_v62, %v4566_v13  ;;  %v4480_v55 = vpop.f32.mrb[60].mxu0  ;;  %6777 = vmatpush1.bf16.msra.mxu1 %v15608_v61  ;;  %v15614_v61 = vld [vmem:[#allocation7 + $0x278] ss:$24 sps:$4 sm:$0xff]  }
 0x3df   : > { %v13728_v48 = vadd.f32 %v4480_v55, %v17494_v28  ;;  %v4482_v25 = vpop.f32.mrb[61].mxu0  ;;  %6778 = vmatprep.subr.bf16.mxu1 %v15613_v31  ;;  %v15619_v31 = vld [vmem:[#allocation7 + $0x2ac] ss:$24 sps:$4 sm:$0xff]   ;;  %9709 = vmatpush1.bf16.msra.mxu0 %v15725_v15 }
 0x3e0   : > { %v13729_v18 = vadd.f32 %v4482_v25, %v17497_v2  ;;  %v4484_v52 = vpop.f32.mrb[62].mxu0  ;;  %6733 = vmatprep.mubr.bf16.mxu1 %v17577_v63  ;;  %7411 = vmatprep.mubr.bf16.mxu0 %v17577_v63  ;;  %v15631_v15 = vld [vmem:[#allocation7 + $0x36c] ss:$24 sps:$4 sm:$0xff]  }
 0x3e1   : > { %v13730_v1 = vadd.f32 %v4484_v52, %v17494_v28  ;;  %v4486_v17 = vpop.f32.mrb[63].mxu0  ;;  %6734 = vmatmul.mubr.bf16.gmra.mrb[56].mxu1 %v17575_v38  ;;  %7412 = vmatmul.mubr.bf16.gmra.mrb[88].mxu0 %v17575_v38  ;;  %v4577_v14 = vmax.f32 %v13728_v48, 0.0  ;;  %v15617_v52 = vld [vmem:[#allocation7 + $0x2a8] ss:$24 sps:$4 sm:$0xff]   ;;  %v15620_v48 = vld [vmem:[#allocation7 + $0x2d8] ss:$24 sps:$4 sm:$0xff]  }
 0x3e2   : > { %v13731_v55 = vadd.f32 %v4486_v17, %v17497_v2  ;;  %6779 = vmatpush1.bf16.msra.mxu1 %v15611_v10  ;;  %v4578_v13 = vmax.f32 %v13729_v18, 0.0  ;;  %v15622_v2 = vld [vmem:[#allocation7 + $0x2dc] ss:$24 sps:$4 sm:$0xff]   ;;  %v15731_v10 = vld [vmem:[#allocation7 + $0xa28] ss:$24 sps:$4 sm:$0xff]   ;;  %9710 = vmatprep.subr.bf16.mxu0 %v15733_v22 }
 0x3e3   : > { %v4583_v29 = vmax.f32 %v13730_v1, 0.0  ;;  %6780 = vmatprep.subr.bf16.mxu1 %v15616_v3  ;;  %v15625_v3 = vld [vmem:[#allocation7 + $0x30c] ss:$24 sps:$4 sm:$0xff]   ;;  %9711 = vmatpush1.bf16.msra.mxu0 %v15731_v10  ;;  %v15737_v18 = vld [vmem:[#allocation7 + $0xa58] ss:$24 sps:$4 sm:$0xff]  }
 0x3e4   : > { %v4584_v62 = vmax.f32 %v13731_v55, 0.0  ;;  %9712 = vmatprep.subr.bf16.mxu0 %v15739_v24  ;;  %v15745_v1 = vld [vmem:[#allocation7 + $0xa8c] ss:$24 sps:$4 sm:$0xff]   ;;  %v15623_v17 = vld [vmem:[#allocation7 + $0x308] ss:$24 sps:$4 sm:$0xff]  }
 0x3e5   : > { %v17587_v28 = vpack.c.bf16 %v4583_v29, %v4577_v14  ;;  %v15743_v55 = vld [vmem:[#allocation7 + $0xa88] ss:$24 sps:$4 sm:$0xff]   ;;  %v15749_v14 = vld [vmem:[#allocation7 + $0xab8] ss:$24 sps:$4 sm:$0xff]   ;;  %v15757_v29 = vld [vmem:[#allocation7 + $0xaec] ss:$24 sps:$4 sm:$0xff]  }
 0x3e6   : > { %v17589_v25 = vpack.c.bf16 %v4584_v62, %v4578_v13  ;;  %6781 = vmatpush1.bf16.msra.mxu1 %v15614_v61  ;;  %v15751_v61 = vld [vmem:[#allocation7 + $0xabc] ss:$24 sps:$4 sm:$0xff]   ;;  %v15755_v62 = vld [vmem:[#allocation7 + $0xae8] ss:$24 sps:$4 sm:$0xff]   ;;  %v15637_v22 = vld [vmem:[#allocation7 + $0x3cc] ss:$24 sps:$4 sm:$0xff]  }
 0x3e7   : > { %6782 = vmatprep.subr.bf16.mxu1 %v15619_v31  ;;  %9713 = vmatpush1.bf16.msra.mxu0 %v15737_v18  ;;  %v15629_v31 = vld [vmem:[#allocation7 + $0x368] ss:$24 sps:$4 sm:$0xff]   ;;  %v15634_v13 = vld [vmem:[#allocation7 + $0x39c] ss:$24 sps:$4 sm:$0xff]   ;;  %v15773_v18 = vld [vmem:[#allocation7 + $0xb78] ss:$24 sps:$4 sm:$0xff]  }
 0x3e8   : > { %6743 = vmatprep.mubr.bf16.mxu1 %v17589_v25  ;;  %7421 = vmatprep.mubr.bf16.mxu0 %v17589_v25  ;;  %v15635_v10 = vld [vmem:[#allocation7 + $0x3c8] ss:$24 sps:$4 sm:$0xff]   ;;  %v15640_v24 = vld [vmem:[#allocation7 + $0x3fc] ss:$24 sps:$4 sm:$0xff]  }
 0x3e9   : > { %6744 = vmatmul.mubr.bf16.gmra.mrb[60].mxu1 %v17587_v28  ;;  %7422 = vmatmul.mubr.bf16.gmra.mrb[92].mxu0 %v17587_v28 }
 0x3ea   : > { %6783 = vmatpush1.bf16.msra.mxu1 %v15617_v52  ;;  %6786 = vmatprep.mubr.bf16.mxu1 %v17284_v45  ;;  %v15626_v45 = vld [vmem:[#allocation7 + $0x338] ss:$24 sps:$4 sm:$0xff]  }
 0x3eb   : > { %6784 = vmatprep.subr.bf16.mxu1 %v15622_v2  ;;  %9714 = vmatprep.subr.bf16.mxu0 %v15745_v1  ;;  %v15761_v52 = vld [vmem:[#allocation7 + $0xb18] ss:$24 sps:$4 sm:$0xff]   ;;  %v15769_v2 = vld [vmem:[#allocation7 + $0xb4c] ss:$24 sps:$4 sm:$0xff]  }
 0x3ec   : > { %9715 = vmatpush1.bf16.msra.mxu0 %v15743_v55  ;;  %v15781_v1 = vld [vmem:[#allocation7 + $0xbac] ss:$24 sps:$4 sm:$0xff]   ;;  %v15779_v55 = vld [vmem:[#allocation7 + $0xba8] ss:$24 sps:$4 sm:$0xff]  }
 0x3ed   : > { %9716 = vmatprep.subr.bf16.mxu0 %v15751_v61  ;;  %v15649_v61 = vld [vmem:[#allocation7 + $0x48c] ss:$24 sps:$4 sm:$0xff]  }
 0x3ee   : > { %6785 = vmatpush1.bf16.msra.mxu1 %v15620_v48  ;;  %v15767_v48 = vld [vmem:[#allocation7 + $0xb48] ss:$24 sps:$4 sm:$0xff]  }
 0x3ef   : > { %6867 = vmatprep.subr.bf16.mxu1 %v15625_v3  ;;  %v15643_v3 = vld [vmem:[#allocation7 + $0x42c] ss:$24 sps:$4 sm:$0xff]  }
 0x3f0   : > { %9717 = vmatpush1.bf16.msra.mxu0 %v15749_v14  ;;  %v15652_v14 = vld [vmem:[#allocation7 + $0x4bc] ss:$24 sps:$4 sm:$0xff]  }
 0x3f1   : > { %6787 = vmatmul.mubr.bf16.vlgmr.msra.gmra.mrb[64].mxu1 %v17280_v34  ;;  %9718 = vmatprep.subr.bf16.mxu0 %v15757_v29  ;;  %v15763_v34 = vld [vmem:[#allocation7 + $0xb1c] ss:$24 sps:$4 sm:$0xff]   ;;  %v15653_v29 = vld [vmem:[#allocation7 + $0x4e8] ss:$24 sps:$4 sm:$0xff]  }
 0x3f2   : > { %6796 = vmatprep.mubr.bf16.mxu1 %v17304_v51  ;;  %6868 = vmatpush1.bf16.msra.mxu1 %v15623_v17  ;;  %v15632_v51 = vld [vmem:[#allocation7 + $0x398] ss:$24 sps:$4 sm:$0xff]   ;;  %v15641_v17 = vld [vmem:[#allocation7 + $0x428] ss:$24 sps:$4 sm:$0xff]  }
 0x3f3   : > { %6869 = vmatprep.subr.bf16.mxu1 %v15628_v27  ;;  %v15646_v27 = vld [vmem:[#allocation7 + $0x45c] ss:$24 sps:$4 sm:$0xff]  }
 0x3f4   : > { %9719 = vmatpush1.bf16.msra.mxu0 %v15755_v62  ;;  %v15661_v62 = vld [vmem:[#allocation7 + $0x54c] ss:$24 sps:$4 sm:$0xff]  }
 0x3f5   : > { %9720 = vmatprep.subr.bf16.mxu0 %v15763_v34  ;;  %v15662_v34 = vld [vmem:[#allocation7 + $0x578] ss:$24 sps:$4 sm:$0xff]  }
 0x3f6   : > { %6870 = vmatpush1.bf16.msra.mxu1 %v15626_v45  ;;  %v15785_v45 = vld [vmem:[#allocation7 + $0xbd8] ss:$24 sps:$4 sm:$0xff]  }
 0x3f7   : > { %6871 = vmatprep.subr.bf16.mxu1 %v15631_v15  ;;  %v15647_v15 = vld [vmem:[#allocation7 + $0x488] ss:$24 sps:$4 sm:$0xff]  }
 0x3f8   : > { %9721 = vmatpush1.bf16.msra.mxu0 %v15761_v52  ;;  %v15673_v52 = vld [vmem:[#allocation7 + $0x60c] ss:$24 sps:$4 sm:$0xff]  }
 0x3f9   : > { %6797 = vmatmul.mubr.bf16.gmra.mrb[68].mxu1 %v17300_v40  ;;  %9722 = vmatprep.subr.bf16.mxu0 %v15769_v2  ;;  %v15775_v40 = vld [vmem:[#allocation7 + $0xb7c] ss:$24 sps:$4 sm:$0xff]   ;;  %v15674_v2 = vld [vmem:[#allocation7 + $0x638] ss:$24 sps:$4 sm:$0xff]  }
 0x3fa   : > { %6806 = vmatprep.mubr.bf16.mxu1 %v17324_v41  ;;  %6872 = vmatpush1.bf16.msra.mxu1 %v15629_v31  ;;  %v15638_v41 = vld [vmem:[#allocation7 + $0x3f8] ss:$24 sps:$4 sm:$0xff]   ;;  %v15658_v31 = vld [vmem:[#allocation7 + $0x51c] ss:$24 sps:$4 sm:$0xff]  }
 0x3fb   : > { %6873 = vmatprep.subr.bf16.mxu1 %v15634_v13  ;;  %v15656_v13 = vld [vmem:[#allocation7 + $0x518] ss:$24 sps:$4 sm:$0xff]  }
 0x3fc   : > { %9723 = vmatpush1.bf16.msra.mxu0 %v15767_v48  ;;  %v15685_v48 = vld [vmem:[#allocation7 + $0x6cc] ss:$24 sps:$4 sm:$0xff]  }
 0x3fd   : > { %9724 = vmatprep.subr.bf16.mxu0 %v15775_v40  ;;  %v15686_v40 = vld [vmem:[#allocation7 + $0x6f8] ss:$24 sps:$4 sm:$0xff]  }
 0x3fe   : > { %6874 = vmatpush1.bf16.msra.mxu1 %v15632_v51  ;;  %v15667_v51 = vld [vmem:[#allocation7 + $0x5ac] ss:$24 sps:$4 sm:$0xff]  }
 0x3ff   : > { %6875 = vmatprep.subr.bf16.mxu1 %v15637_v22  ;;  %v15668_v22 = vld [vmem:[#allocation7 + $0x5d8] ss:$24 sps:$4 sm:$0xff]  }
 0x400   : > { %9725 = vmatpush1.bf16.msra.mxu0 %v15773_v18  ;;  %v15700_v18 = vld [vmem:[#allocation7 + $0x78c] ss:$24 sps:$4 sm:$0xff]  }
 0x401   : > { %6807 = vmatmul.mubr.bf16.gmra.mrb[72].mxu1 %v17320_v36  ;;  %9726 = vmatprep.subr.bf16.mxu0 %v15781_v1  ;;  %v15787_v36 = vld [vmem:[#allocation7 + $0xbdc] ss:$24 sps:$4 sm:$0xff]   ;;  %v15704_v1 = vld [vmem:[#allocation7 + $0x7b8] ss:$24 sps:$4 sm:$0xff]  }
 0x402   : > { %6816 = vmatprep.mubr.bf16.mxu1 %v17344_v46  ;;  %6876 = vmatpush1.bf16.msra.mxu1 %v15635_v10  ;;  %v15644_v46 = vld [vmem:[#allocation7 + $0x458] ss:$24 sps:$4 sm:$0xff]   ;;  %v15679_v10 = vld [vmem:[#allocation7 + $0x66c] ss:$24 sps:$4 sm:$0xff]  }
 0x403   : > { %6877 = vmatprep.subr.bf16.mxu1 %v15640_v24  ;;  %v15682_v24 = vld [vmem:[#allocation7 + $0x69c] ss:$24 sps:$4 sm:$0xff]  }
 0x404   : > { %9727 = vmatpush1.bf16.msra.mxu0 %v15779_v55  ;;  %v15724_v55 = vld [vmem:[#allocation7 + $0x84c] ss:$24 sps:$4 sm:$0xff]  }
 0x405   : > { %9728 = vmatprep.subr.bf16.mxu0 %v15787_v36  ;;  %v15728_v36 = vld [vmem:[#allocation7 + $0x878] ss:$24 sps:$4 sm:$0xff]  }
 0x406   : > { %6878 = vmatpush1.bf16.msra.mxu1 %v15638_v41  ;;  %v15691_v41 = vld [vmem:[#allocation7 + $0x72c] ss:$24 sps:$4 sm:$0xff]  }
 0x407   : > { %6879 = vmatprep.subr.bf16.mxu1 %v15643_v3  ;;  %v15692_v3 = vld [vmem:[#allocation7 + $0x758] ss:$24 sps:$4 sm:$0xff]  }
 0x408   : > { %9729 = vmatpush1.bf16.msra.mxu0 %v15785_v45  ;;  %v15820_v45 = vld [vmem:[#allocation7 + $0xc0c] ss:$24 sps:$4 sm:$0xff]  }
 0x409   : > { %6817 = vmatmul.mubr.bf16.gmra.mrb[76].mxu1 %v17340_v39  ;;  %v15650_v39 = vld [vmem:[#allocation7 + $0x4b8] ss:$24 sps:$4 sm:$0xff]   ;;  %9811 = vmatprep.subr.bf16.mxu0 %v15820_v45 }
 0x40a   : > { %6826 = vmatprep.mubr.bf16.mxu1 %v17364_v50  ;;  %6880 = vmatpush1.bf16.msra.mxu1 %v15641_v17  ;;  %v15655_v50 = vld [vmem:[#allocation7 + $0x4ec] ss:$24 sps:$4 sm:$0xff]  }
 0x40b   : > { %6881 = vmatprep.subr.bf16.mxu1 %v15646_v27  ;;  %v15712_v17 = vld [vmem:[#allocation7 + $0x7ec] ss:$24 sps:$4 sm:$0xff]   ;;  %v15716_v27 = vld [vmem:[#allocation7 + $0x818] ss:$24 sps:$4 sm:$0xff]  }
 0x40e   : > { %6882 = vmatpush1.bf16.msra.mxu1 %v15644_v46  ;;  %v15736_v46 = vld [vmem:[#allocation7 + $0x8ac] ss:$24 sps:$4 sm:$0xff]  }
 0x40f   : > { %6883 = vmatprep.subr.bf16.mxu1 %v15649_v61  ;;  %v15740_v61 = vld [vmem:[#allocation7 + $0x8d8] ss:$24 sps:$4 sm:$0xff]  }
 0x411   : > { %6827 = vmatmul.mubr.bf16.gmra.mrb[80].mxu1 %v17360_v26  ;;  %v15659_v26 = vld [vmem:[#allocation7 + $0x548] ss:$24 sps:$4 sm:$0xff]  }
 0x412   : > { %6836 = vmatprep.mubr.bf16.mxu1 %v17384_v8  ;;  %6884 = vmatpush1.bf16.msra.mxu1 %v15647_v15  ;;  %v15664_v8 = vld [vmem:[#allocation7 + $0x57c] ss:$24 sps:$4 sm:$0xff]  }
 0x413   : > { %6885 = vmatprep.subr.bf16.mxu1 %v15652_v14  ;;  %v15748_v15 = vld [vmem:[#allocation7 + $0x904] ss:$24 sps:$4 sm:$0xff]   ;;  %v15752_v14 = vld [vmem:[#allocation7 + $0x930] ss:$24 sps:$4 sm:$0xff]  }
 0x416   : > { %6886 = vmatpush1.bf16.msra.mxu1 %v15650_v39  ;;  %v15758_v39 = vld [vmem:[#allocation7 + $0x960] ss:$24 sps:$4 sm:$0xff]  }
 0x417   : > { %6887 = vmatprep.subr.bf16.mxu1 %v15655_v50  ;;  %v17632_v50 = vsub.s32 1, %v17242_v33 }
 0x419   : > { %6837 = vmatmul.mubr.bf16.gmra.mrb[84].mxu1 %v17380_v54  ;;  %v15665_v54 = vld [vmem:[#allocation7 + $0x5a8] ss:$24 sps:$4 sm:$0xff]   ;;  %18469 = vst [vmem:[#allocation25_spill] sm:$0xff] %v17632_v50 }
 0x41a   : > { %6846 = vmatprep.mubr.bf16.mxu1 %v17404_v9  ;;  %6888 = vmatpush1.bf16.msra.mxu1 %v15653_v29  ;;  %v15670_v9 = vld [vmem:[#allocation7 + $0x5dc] ss:$24 sps:$4 sm:$0xff]   ;;  %v15764_v29 = vld [vmem:[#allocation7 + $0x990] ss:$24 sps:$4 sm:$0xff]  }
 0x41b   : > { %6889 = vmatprep.subr.bf16.mxu1 %v15658_v31  ;;  %v16263_v31 = vld [vmem:[#allocation11] sm:$0x77] }
 0x41e   : > { %6890 = vmatpush1.bf16.msra.mxu1 %v15656_v13  ;;  %v4924_v13 = vrot.slane %v16263_v31, %v17632_v50 }
 0x41f   : > { %6891 = vmatprep.subr.bf16.mxu1 %v15661_v62  ;;  %v4940_v62 = vrot.slane %v17487_v21, %v17632_v50 }
 0x421   : > { %6847 = vmatmul.mubr.bf16.gmra.mrb[88].mxu1 %v17400_v37  ;;  %v15671_v37 = vld [vmem:[#allocation7 + $0x608] ss:$24 sps:$4 sm:$0xff]  }
 0x422   : > { %6856 = vmatprep.mubr.bf16.mxu1 %v17424_v32  ;;  %6892 = vmatpush1.bf16.msra.mxu1 %v15659_v26  ;;  %v15676_v32 = vld [vmem:[#allocation7 + $0x63c] ss:$24 sps:$4 sm:$0xff]  }
 0x423   : > { %6893 = vmatprep.subr.bf16.mxu1 %v15664_v8  ;;  %v15778_v8 = vld [vmem:[#allocation7 + $0x9f4] ss:$24 sps:$4 sm:$0xff]  }
 0x426   : > { %6894 = vmatpush1.bf16.msra.mxu1 %v15662_v34  ;;  %v17646_v34 = vrot.slane %v4924_v13, %v17632_v50 }
 0x427   : > { %6895 = vmatprep.subr.bf16.mxu1 %v15667_v51  ;;  %v17649_v51 = vrot.slane %v4940_v62, %v17632_v50  ;;  %v15791_v62 = vld [vmem:[#allocation7 + $0xa80] ss:$24 sps:$4 sm:$0xff]  }
 0x429   : > { %6857 = vmatmul.mubr.bf16.gmra.mrb[92].mxu1 %v17420_v4  ;;  %v15677_v4 = vld [vmem:[#allocation7 + $0x668] ss:$24 sps:$4 sm:$0xff]  }
 0x42a   : > { %6896 = vmatpush1.bf16.msra.mxu1 %v15665_v54  ;;  %6899 = vmatprep.mubr.bf16.mxu1 %v17286_v56  ;;  %v15680_v56 = vld [vmem:[#allocation7 + $0x698] ss:$24 sps:$4 sm:$0xff]  }
 0x42b   : > { %6897 = vmatprep.subr.bf16.mxu1 %v15670_v9 }
 0x42e   : > { %6898 = vmatpush1.bf16.msra.mxu1 %v15668_v22  ;;  %v15784_v22 = vld [vmem:[#allocation7 + $0xa24] ss:$24 sps:$4 sm:$0xff]  }
 0x42f   : > { %6980 = vmatprep.subr.bf16.mxu1 %v15673_v52 }
 0x431   : > { %6900 = vmatmul.mubr.bf16.vlgmr.msra.gmra.mrb[64].mxu1 %v17282_v20  ;;  %v15683_v20 = vld [vmem:[#allocation7 + $0x6c8] ss:$24 sps:$4 sm:$0xff]  }
 0x432   : > { %6909 = vmatprep.mubr.bf16.mxu1 %v17306_v58  ;;  %6981 = vmatpush1.bf16.msra.mxu1 %v15671_v37  ;;  %v15688_v58 = vld [vmem:[#allocation7 + $0x6fc] ss:$24 sps:$4 sm:$0xff]  }
 0x433   : > { %6982 = vmatprep.subr.bf16.mxu1 %v15676_v32 }
 0x436   : > { %6983 = vmatpush1.bf16.msra.mxu1 %v15674_v2 }
 0x437   : > { %6984 = vmatprep.subr.bf16.mxu1 %v15679_v10 }
 0x439   : > { %6910 = vmatmul.mubr.bf16.gmra.mrb[68].mxu1 %v17302_v12  ;;  %v15689_v12 = vld [vmem:[#allocation7 + $0x728] ss:$24 sps:$4 sm:$0xff]  }
 0x43a   : > { %6919 = vmatprep.mubr.bf16.mxu1 %v17326_v0  ;;  %6985 = vmatpush1.bf16.msra.mxu1 %v15677_v4  ;;  %v15694_v0 = vld [vmem:[#allocation7 + $0x75c] ss:$24 sps:$4 sm:$0xff]  }
 0x43b   : > { %6986 = vmatprep.subr.bf16.mxu1 %v15682_v24 }
 0x43e   : > { %6987 = vmatpush1.bf16.msra.mxu1 %v15680_v56 }
 0x43f   : > { %6988 = vmatprep.subr.bf16.mxu1 %v15685_v48  ;;  %v15782_v48 = vld [vmem:[#allocation7 + $0xa20] ss:$24 sps:$4 sm:$0xff]  }
 0x441   : > { %6920 = vmatmul.mubr.bf16.gmra.mrb[72].mxu1 %v17322_v5  ;;  %v15698_v5 = vld [vmem:[#allocation7 + $0x788] ss:$24 sps:$4 sm:$0xff]  }
 0x442   : > { %6929 = vmatprep.mubr.bf16.mxu1 %v17346_v42  ;;  %6989 = vmatpush1.bf16.msra.mxu1 %v15683_v20  ;;  %v15706_v42 = vld [vmem:[#allocation7 + $0x7bc] ss:$24 sps:$4 sm:$0xff]  }
 0x443   : > { %6990 = vmatprep.subr.bf16.mxu1 %v15688_v58 }
 0x446   : > { %6991 = vmatpush1.bf16.msra.mxu1 %v15686_v40 }
 0x447   : > { %6992 = vmatprep.subr.bf16.mxu1 %v15691_v41 }
 0x449   : > { %6930 = vmatmul.mubr.bf16.gmra.mrb[76].mxu1 %v17342_v57  ;;  %v15710_v57 = vld [vmem:[#allocation7 + $0x7e8] ss:$24 sps:$4 sm:$0xff]  }
 0x44a   : > { %6939 = vmatprep.mubr.bf16.mxu1 %v17366_v59  ;;  %6993 = vmatpush1.bf16.msra.mxu1 %v15689_v12  ;;  %v15718_v59 = vld [vmem:[#allocation7 + $0x81c] ss:$24 sps:$4 sm:$0xff]  }
 0x44b   : > { %6994 = vmatprep.subr.bf16.mxu1 %v15694_v0  ;;  %v15790_v12 = vld [vmem:[#allocation7 + $0xa54] ss:$24 sps:$4 sm:$0xff]  }
 0x44e   : > { %6995 = vmatpush1.bf16.msra.mxu1 %v15692_v3 }
 0x44f   : > { %6996 = vmatprep.subr.bf16.mxu1 %v15700_v18 }
 0x451   : > { %6940 = vmatmul.mubr.bf16.gmra.mrb[80].mxu1 %v17362_v19  ;;  %v15722_v19 = vld [vmem:[#allocation7 + $0x848] ss:$24 sps:$4 sm:$0xff]  }
 0x452   : > { %6949 = vmatprep.mubr.bf16.mxu1 %v17386_v16  ;;  %6997 = vmatpush1.bf16.msra.mxu1 %v15698_v5  ;;  %v15730_v16 = vld [vmem:[#allocation7 + $0x87c] ss:$24 sps:$4 sm:$0xff]  }
 0x453   : > { %6998 = vmatprep.subr.bf16.mxu1 %v15706_v42 }
 0x456   : > { %6999 = vmatpush1.bf16.msra.mxu1 %v15704_v1 }
 0x457   : > { %7000 = vmatprep.subr.bf16.mxu1 %v15712_v17  ;;  %v18470_v17 = vld [vmem:[#allocation20_spill] sm:$0xff] }
 0x459   : > { %6950 = vmatmul.mubr.bf16.gmra.mrb[84].mxu1 %v17382_v30  ;;  %v15734_v30 = vld [vmem:[#allocation7 + $0x8a8] ss:$24 sps:$4 sm:$0xff]  }
 0x45a   : > { %6959 = vmatprep.mubr.bf16.mxu1 %v17406_v43  ;;  %7001 = vmatpush1.bf16.msra.mxu1 %v15710_v57  ;;  %v15742_v43 = vld [vmem:[#allocation7 + $0x8dc] ss:$24 sps:$4 sm:$0xff]  }
 0x45b   : > { %7002 = vmatprep.subr.bf16.mxu1 %v15718_v59 }
 0x45e   : > { %7003 = vmatpush1.bf16.msra.mxu1 %v15716_v27 }
 0x45f   : > { %7004 = vmatprep.subr.bf16.mxu1 %v15724_v55 }
 0x461   : > { %6960 = vmatmul.mubr.bf16.gmra.mrb[88].mxu1 %v17402_v47  ;;  %v15746_v47 = vld [vmem:[#allocation7 + $0x900] ss:$24 sps:$4 sm:$0xff]  }
 0x462   : > { %6969 = vmatprep.mubr.bf16.mxu1 %v17426_v7  ;;  %7005 = vmatpush1.bf16.msra.mxu1 %v15722_v19  ;;  %v15754_v7 = vld [vmem:[#allocation7 + $0x934] ss:$24 sps:$4 sm:$0xff]  }
 0x463   : > { %7006 = vmatprep.subr.bf16.mxu1 %v15730_v16  ;;  %v18471_v19 = vld [vmem:[#allocation22_spill] sm:$0xff] }
 0x464   : > { %v15788_v16 = vld [vmem:[#allocation7 + $0xa50] ss:$24 sps:$4 sm:$0xff]  }
 0x466   : > { %7007 = vmatpush1.bf16.msra.mxu1 %v15728_v36 }
 0x467   : > { %7008 = vmatprep.subr.bf16.mxu1 %v15736_v46 }
 0x469   : > { %6970 = vmatmul.mubr.bf16.gmra.mrb[92].mxu1 %v17422_v44  ;;  %v15760_v44 = vld [vmem:[#allocation7 + $0x964] ss:$24 sps:$4 sm:$0xff]  }
 0x46a   : > { %7009 = vmatpush1.bf16.msra.mxu1 %v15734_v30  ;;  %7012 = vmatprep.mubr.bf16.mxu1 %v17505_v53  ;;  %v15766_v53 = vld [vmem:[#allocation7 + $0x994] ss:$24 sps:$4 sm:$0xff]   ;;  %v15793_v30 = vld [vmem:[#allocation7 + $0xa84] ss:$24 sps:$4 sm:$0xff]  }
 0x46b   : > { %7010 = vmatprep.subr.bf16.mxu1 %v15742_v43 }
 0x46e   : > { %7011 = vmatpush1.bf16.msra.mxu1 %v15740_v61 }
 0x46f   : > { %9359 = vmatprep.subr.bf16.mxu1 %v15748_v15 }
 0x471   : > { %7013 = vmatmul.mubr.bf16.vlgmr.msra.gmra.mrb[64].mxu1 %v17503_v35  ;;  %v17636_v35 = vsub.s32 5, %v17242_v33 }
 0x472   : > { %7022 = vmatprep.mubr.bf16.mxu1 %v17517_v23  ;;  %9360 = vmatpush1.bf16.msra.mxu1 %v15746_v47  ;;  %v15772_v23 = vld [vmem:[#allocation7 + $0x9c4] ss:$24 sps:$4 sm:$0xff]   ;;  %v15818_v47 = vld [vmem:[#allocation7 + $0xc08] ss:$24 sps:$4 sm:$0xff]  }
 0x473   : > { %9361 = vmatprep.subr.bf16.mxu1 %v15754_v7  ;;  %v4928_v26 = vrot.slane %v16263_v31, %v17636_v35 }
 0x475   : > { %v17653_v54 = vrot.slane %v4928_v26, %v17632_v50 }
 0x476   : > { %9362 = vmatpush1.bf16.msra.mxu1 %v15752_v14 }
 0x477   : > { %9363 = vmatprep.subr.bf16.mxu1 %v15760_v44 }
 0x479   : > { %7023 = vmatmul.mubr.bf16.gmra.mrb[68].mxu1 %v17515_v11  ;;  %v15770_v11 = vld [vmem:[#allocation7 + $0x9c0] ss:$24 sps:$4 sm:$0xff]  }
 0x47a   : > { %7032 = vmatprep.mubr.bf16.mxu1 %v17529_v6  ;;  %9364 = vmatpush1.bf16.msra.mxu1 %v15758_v39  ;;  %v4944_v6 = vrot.slane %v17487_v21, %v17636_v35  ;;  %v15776_v21 = vld [vmem:[#allocation7 + $0x9f0] ss:$24 sps:$4 sm:$0xff]  }
 0x47b   : > { %9365 = vmatprep.subr.bf16.mxu1 %v15766_v53  ;;  %v15826_v53 = vld [vmem:[#allocation7 + $0xc3c] ss:$24 sps:$4 sm:$0xff]  }
 0x47c   : > { %v17656_v9 = vrot.slane %v4944_v6, %v17632_v50 }
 0x47e   : > { %9366 = vmatpush1.bf16.msra.mxu1 %v15764_v29 }
 0x47f   : > { %9367 = vmatprep.subr.bf16.mxu1 %v15772_v23 }
 0x481   : > { %7033 = vmatmul.mubr.bf16.gmra.mrb[72].mxu1 %v17527_v49 }
 0x482   : > { %7042 = vmatprep.mubr.bf16.mxu1 %v17541_v60  ;;  %9368 = vmatpush1.bf16.msra.mxu1 %v15770_v11 }
 0x483   : > { %9369 = vmatprep.subr.bf16.mxu1 %v15778_v8 }
 0x484   : > { %v6675_v52 = vpop.f32.mrb[32].mxu1  ;;  %v7353_v49 = vpop.f32.mrb[64].mxu0 }
 0x485   : > { %v13732_v37 = vadd.f32 %v6675_v52, %v17646_v34  ;;  %v13796_v32 = vadd.f32 %v7353_v49, %v17649_v51  ;;  %v6677_v2 = vpop.f32.mrb[33].mxu1  ;;  %v7355_v10 = vpop.f32.mrb[65].mxu0  ;;  %v15824_v49 = vld [vmem:[#allocation7 + $0xc38] ss:$24 sps:$4 sm:$0xff]  }
 0x486   : > { %v13733_v60 = vadd.f32 %v6677_v2, %v17653_v54  ;;  %v13797_v4 = vadd.f32 %v7355_v10, %v17656_v9  ;;  %v6679_v24 = vpop.f32.mrb[34].mxu1  ;;  %v7357_v56 = vpop.f32.mrb[66].mxu0  ;;  %9370 = vmatpush1.bf16.msra.mxu1 %v15776_v21  ;;  %v15796_v21 = vld [vmem:[#allocation7 + $0xab4] ss:$24 sps:$4 sm:$0xff]  }
 0x487   : > { %v13734_v20 = vadd.f32 %v6679_v24, %v17646_v34  ;;  %v13798_v58 = vadd.f32 %v7357_v56, %v17649_v51  ;;  %v6681_v40 = vpop.f32.mrb[35].mxu1  ;;  %v7359_v41 = vpop.f32.mrb[67].mxu0  ;;  %9371 = vmatprep.subr.bf16.mxu1 %v15784_v22  ;;  %v7432_v18 = vmax.f32 %v13732_v37, 0.0  ;;  %v7436_v5 = vmax.f32 %v13796_v32, 0.0 }
 0x488   : > { %v13735_v0 = vadd.f32 %v6681_v40, %v17653_v54  ;;  %v13799_v3 = vadd.f32 %v7359_v41, %v17656_v9  ;;  %v7433_v57 = vmax.f32 %v13733_v60, 0.0  ;;  %v7437_v59 = vmax.f32 %v13797_v4, 0.0  ;;  %v18472_v60 = vld [vmem:[#allocation21_spill] sm:$0xff] }
 0x489   : > { %v7438_v42 = vmax.f32 %v13734_v20, 0.0  ;;  %v7442_v1 = vmax.f32 %v13798_v58, 0.0  ;;  %7043 = vmatmul.mubr.bf16.gmra.mrb[76].mxu1 %v18470_v17  ;;  %v15832_v4 = vld [vmem:[#allocation7 + $0xc6c] ss:$24 sps:$4 sm:$0xff]   ;;  %v15794_v40 = vld [vmem:[#allocation7 + $0xab0] ss:$24 sps:$4 sm:$0xff]  }
 0x48a   : > { %v7439_v27 = vmax.f32 %v13735_v0, 0.0  ;;  %v7443_v55 = vmax.f32 %v13799_v3, 0.0  ;;  %7052 = vmatprep.mubr.bf16.mxu1 %v18471_v19  ;;  %9372 = vmatpush1.bf16.msra.mxu1 %v15782_v48  ;;  %v18473_v58 = vld [vmem:[#allocation24_spill] sm:$0xff] }
 0x48b   : > { %v17668_v36 = vpack.c.bf16 %v7438_v42, %v7432_v18  ;;  %v17670_v46 = vpack.c.bf16 %v7442_v1, %v7436_v5  ;;  %9373 = vmatprep.subr.bf16.mxu1 %v15790_v12  ;;  %v15799_v0 = vld [vmem:[#allocation7 + $0xae4] ss:$24 sps:$4 sm:$0xff]   ;;  %v15830_v1 = vld [vmem:[#allocation7 + $0xc68] ss:$24 sps:$4 sm:$0xff]  }
 0x48c   : > { %v17672_v43 = vpack.c.bf16 %v7439_v27, %v7433_v57  ;;  %v17674_v61 = vpack.c.bf16 %v7443_v55, %v7437_v59  ;;  %v6685_v45 = vpop.f32.mrb[36].mxu1  ;;  %v7363_v15 = vpop.f32.mrb[68].mxu0  ;;  %v15838_v55 = vld [vmem:[#allocation7 + $0xc9c] ss:$24 sps:$4 sm:$0xff]  }
 0x48d   : > { %v13736_v7 = vadd.f32 %v6685_v45, %v17646_v34  ;;  %v13800_v14 = vadd.f32 %v7363_v15, %v17649_v51  ;;  %v6687_v44 = vpop.f32.mrb[37].mxu1  ;;  %v7365_v39 = vpop.f32.mrb[69].mxu0  ;;  %v15797_v15 = vld [vmem:[#allocation7 + $0xae0] ss:$24 sps:$4 sm:$0xff]  }
 0x48e   : > { %v13737_v29 = vadd.f32 %v6687_v44, %v17653_v54  ;;  %v13801_v23 = vadd.f32 %v7365_v39, %v17656_v9  ;;  %v6689_v31 = vpop.f32.mrb[38].mxu1  ;;  %v7367_v13 = vpop.f32.mrb[70].mxu0  ;;  %9374 = vmatpush1.bf16.msra.mxu1 %v15788_v16  ;;  %9730 = vmatprep.mubr.bf16.mxu0 %v17672_v43  ;;  %v15802_v39 = vld [vmem:[#allocation7 + $0xb14] ss:$24 sps:$4 sm:$0xff]  }
 0x48f   : > { %v13738_v11 = vadd.f32 %v6689_v31, %v17646_v34  ;;  %v13802_v26 = vadd.f32 %v7367_v13, %v17649_v51  ;;  %v6691_v6 = vpop.f32.mrb[39].mxu1  ;;  %v7369_v8 = vpop.f32.mrb[71].mxu0  ;;  %9731 = vmatmul.mubr.bf16.vlgmr.msra.gmra.mrb[96].mxu0 %v17668_v36  ;;  %9375 = vmatprep.subr.bf16.mxu1 %v15793_v30  ;;  %v7444_v37 = vmax.f32 %v13736_v7, 0.0  ;;  %v7448_v32 = vmax.f32 %v13800_v14, 0.0 }
 0x490   : > { %v13739_v22 = vadd.f32 %v6691_v6, %v17653_v54  ;;  %v13803_v52 = vadd.f32 %v7369_v8, %v17656_v9  ;;  %9812 = vmatpush1.bf16.msra.mxu0 %v15818_v47  ;;  %v7445_v24 = vmax.f32 %v13737_v29, 0.0  ;;  %v7449_v56 = vmax.f32 %v13801_v23, 0.0  ;;  %v15836_v23 = vld [vmem:[#allocation7 + $0xc98] ss:$24 sps:$4 sm:$0xff]   ;;  %v15844_v6 = vld [vmem:[#allocation7 + $0xccc] ss:$24 sps:$4 sm:$0xff]  }
 0x491   : > { %v7450_v2 = vmax.f32 %v13738_v11, 0.0  ;;  %v7454_v10 = vmax.f32 %v13802_v26, 0.0  ;;  %7053 = vmatmul.mubr.bf16.gmra.mrb[80].mxu1 %v18472_v60  ;;  %9813 = vmatprep.subr.bf16.mxu0 %v15826_v53  ;;  %v18474_v26 = vld [vmem:[#allocation23_spill] sm:$0xff] }
 0x492   : > { %v7451_v48 = vmax.f32 %v13739_v22, 0.0  ;;  %v7455_v20 = vmax.f32 %v13803_v52, 0.0  ;;  %7062 = vmatprep.mubr.bf16.mxu1 %v18473_v58  ;;  %9376 = vmatpush1.bf16.msra.mxu1 %v15791_v62 }
 0x493   : > { %v17688_v41 = vpack.c.bf16 %v7450_v2, %v7444_v37  ;;  %v17690_v12 = vpack.c.bf16 %v7454_v10, %v7448_v32  ;;  %9377 = vmatprep.subr.bf16.mxu1 %v15796_v21  ;;  %v15805_v2 = vld [vmem:[#allocation7 + $0xb44] ss:$24 sps:$4 sm:$0xff]  }
 0x494   : > { %v17692_v3 = vpack.c.bf16 %v7451_v48, %v7445_v24  ;;  %v17694_v18 = vpack.c.bf16 %v7455_v20, %v7449_v56  ;;  %v6695_v5 = vpop.f32.mrb[40].mxu1  ;;  %v7373_v42 = vpop.f32.mrb[72].mxu0  ;;  %9814 = vmatpush1.bf16.msra.mxu0 %v15824_v49  ;;  %v15800_v49 = vld [vmem:[#allocation7 + $0xb10] ss:$24 sps:$4 sm:$0xff]  }
 0x495   : > { %v13740_v17 = vadd.f32 %v6695_v5, %v17646_v34  ;;  %v13804_v57 = vadd.f32 %v7373_v42, %v17649_v51  ;;  %v6697_v59 = vpop.f32.mrb[41].mxu1  ;;  %v7375_v27 = vpop.f32.mrb[73].mxu0  ;;  %9815 = vmatprep.subr.bf16.mxu0 %v15832_v4  ;;  %v15842_v56 = vld [vmem:[#allocation7 + $0xcc8] ss:$24 sps:$4 sm:$0xff]  }
 0x496   : > { %v13741_v19 = vadd.f32 %v6697_v59, %v17653_v54  ;;  %v13805_v16 = vadd.f32 %v7375_v27, %v17656_v9  ;;  %v6699_v30 = vpop.f32.mrb[42].mxu1  ;;  %v7377_v45 = vpop.f32.mrb[74].mxu0  ;;  %9378 = vmatpush1.bf16.msra.mxu1 %v15794_v40  ;;  %9740 = vmatprep.mubr.bf16.mxu0 %v17692_v3  ;;  %v15850_v40 = vld [vmem:[#allocation7 + $0xcfc] ss:$24 sps:$4 sm:$0xff]  }
 0x497   : > { %v13742_v47 = vadd.f32 %v6699_v30, %v17646_v34  ;;  %v13806_v7 = vadd.f32 %v7377_v45, %v17649_v51  ;;  %v6701_v14 = vpop.f32.mrb[43].mxu1  ;;  %v7379_v44 = vpop.f32.mrb[75].mxu0  ;;  %9741 = vmatmul.mubr.bf16.gmra.mrb[100].mxu0 %v17688_v41  ;;  %9379 = vmatprep.subr.bf16.mxu1 %v15799_v0  ;;  %v7456_v31 = vmax.f32 %v13740_v17, 0.0  ;;  %v7460_v13 = vmax.f32 %v13804_v57, 0.0  ;;  %v15803_v17 = vld [vmem:[#allocation7 + $0xb40] ss:$24 sps:$4 sm:$0xff]  }
 0x498   : > { %v13743_v53 = vadd.f32 %v6701_v14, %v17653_v54  ;;  %v13807_v29 = vadd.f32 %v7379_v44, %v17656_v9  ;;  %9816 = vmatpush1.bf16.msra.mxu0 %v15830_v1  ;;  %v7457_v8 = vmax.f32 %v13741_v19, 0.0  ;;  %v7461_v21 = vmax.f32 %v13805_v16, 0.0  ;;  %v15808_v19 = vld [vmem:[#allocation7 + $0xb74] ss:$24 sps:$4 sm:$0xff]   ;;  %v15848_v45 = vld [vmem:[#allocation7 + $0xcf8] ss:$24 sps:$4 sm:$0xff]  }
 0x499   : > { %v7462_v62 = vmax.f32 %v13742_v47, 0.0  ;;  %v7466_v11 = vmax.f32 %v13806_v7, 0.0  ;;  %7063 = vmatmul.mubr.bf16.gmra.mrb[84].mxu1 %v18474_v26  ;;  %9817 = vmatprep.subr.bf16.mxu0 %v15838_v55  ;;  %v15856_v44 = vld [vmem:[#allocation7 + $0xd2c] ss:$24 sps:$4 sm:$0xff]  }
 0x49a   : > { %v7463_v22 = vmax.f32 %v13743_v53, 0.0  ;;  %v7467_v52 = vmax.f32 %v13807_v29, 0.0  ;;  %7072 = vmatprep.mubr.bf16.mxu1 %v17577_v63  ;;  %9380 = vmatpush1.bf16.msra.mxu1 %v15797_v15 }
 0x49b   : > { %v17708_v37 = vpack.c.bf16 %v7462_v62, %v7456_v31  ;;  %v17710_v32 = vpack.c.bf16 %v7466_v11, %v7460_v13  ;;  %9381 = vmatprep.subr.bf16.mxu1 %v15802_v39  ;;  %v15806_v31 = vld [vmem:[#allocation7 + $0xb70] ss:$24 sps:$4 sm:$0xff]   ;;  %v15811_v11 = vld [vmem:[#allocation7 + $0xba4] ss:$24 sps:$4 sm:$0xff]  }
 0x49c   : > { %v17712_v10 = vpack.c.bf16 %v7463_v22, %v7457_v8  ;;  %v17714_v60 = vpack.c.bf16 %v7467_v52, %v7461_v21  ;;  %v6705_v4 = vpop.f32.mrb[44].mxu1  ;;  %v7383_v24 = vpop.f32.mrb[76].mxu0  ;;  %9818 = vmatpush1.bf16.msra.mxu0 %v15836_v23  ;;  %v15854_v21 = vld [vmem:[#allocation7 + $0xd28] ss:$24 sps:$4 sm:$0xff]  }
 0x49d   : > { %v13744_v48 = vadd.f32 %v6705_v4, %v17646_v34  ;;  %v13808_v63 = vadd.f32 %v7383_v24, %v17649_v51  ;;  %v6707_v20 = vpop.f32.mrb[45].mxu1  ;;  %v7385_v58 = vpop.f32.mrb[77].mxu0  ;;  %9819 = vmatprep.subr.bf16.mxu0 %v15844_v6 }
 0x49e   : > { %v13745_v0 = vadd.f32 %v6707_v20, %v17653_v54  ;;  %v13809_v5 = vadd.f32 %v7385_v58, %v17656_v9  ;;  %v6709_v42 = vpop.f32.mrb[46].mxu1  ;;  %v7387_v1 = vpop.f32.mrb[78].mxu0  ;;  %9382 = vmatpush1.bf16.msra.mxu1 %v15800_v49  ;;  %9750 = vmatprep.mubr.bf16.mxu0 %v17712_v10 }
 0x49f   : > { %v13746_v57 = vadd.f32 %v6709_v42, %v17646_v34  ;;  %v13810_v59 = vadd.f32 %v7387_v1, %v17649_v51  ;;  %v6711_v27 = vpop.f32.mrb[47].mxu1  ;;  %v7389_v55 = vpop.f32.mrb[79].mxu0  ;;  %9751 = vmatmul.mubr.bf16.gmra.mrb[104].mxu0 %v17708_v37  ;;  %9383 = vmatprep.subr.bf16.mxu1 %v15805_v2  ;;  %v7468_v15 = vmax.f32 %v13744_v48, 0.0  ;;  %v7472_v47 = vmax.f32 %v13808_v63, 0.0  ;;  %v15862_v2 = vld [vmem:[#allocation7 + $0xd5c] ss:$24 sps:$4 sm:$0xff]  }
 0x4a0   : > { %v13747_v16 = vadd.f32 %v6711_v27, %v17653_v54  ;;  %v13811_v30 = vadd.f32 %v7389_v55, %v17656_v9  ;;  %9820 = vmatpush1.bf16.msra.mxu0 %v15842_v56  ;;  %v7469_v39 = vmax.f32 %v13745_v0, 0.0  ;;  %v7473_v53 = vmax.f32 %v13809_v5, 0.0  ;;  %v15809_v63 = vld [vmem:[#allocation7 + $0xba0] ss:$24 sps:$4 sm:$0xff]   ;;  %v15814_v5 = vld [vmem:[#allocation7 + $0xbd4] ss:$24 sps:$4 sm:$0xff]  }
 0x4a1   : > { %v7474_v7 = vmax.f32 %v13746_v57, 0.0  ;;  %v7478_v14 = vmax.f32 %v13810_v59, 0.0  ;;  %7073 = vmatmul.mubr.bf16.gmra.mrb[88].mxu1 %v17575_v38  ;;  %9821 = vmatprep.subr.bf16.mxu0 %v15850_v40 }
 0x4a2   : > { %v7475_v29 = vmax.f32 %v13747_v16, 0.0  ;;  %v7479_v23 = vmax.f32 %v13811_v30, 0.0  ;;  %7082 = vmatprep.mubr.bf16.mxu1 %v17589_v25  ;;  %9384 = vmatpush1.bf16.msra.mxu1 %v15803_v17  ;;  %v15860_v17 = vld [vmem:[#allocation7 + $0xd58] ss:$24 sps:$4 sm:$0xff]  }
 0x4a3   : > { %v17728_v13 = vpack.c.bf16 %v7474_v7, %v7468_v15  ;;  %v17730_v62 = vpack.c.bf16 %v7478_v14, %v7472_v47  ;;  %9385 = vmatprep.subr.bf16.mxu1 %v15808_v19  ;;  %v15868_v19 = vld [vmem:[#allocation7 + $0xd8c] ss:$24 sps:$4 sm:$0xff]   ;;  %v15812_v47 = vld [vmem:[#allocation7 + $0xbd0] ss:$24 sps:$4 sm:$0xff]  }
 0x4a4   : > { %v17732_v26 = vpack.c.bf16 %v7475_v29, %v7469_v39  ;;  %v17734_v6 = vpack.c.bf16 %v7479_v23, %v7473_v53  ;;  %v6715_v38 = vpop.f32.mrb[48].mxu1  ;;  %v7393_v8 = vpop.f32.mrb[80].mxu0  ;;  %9822 = vmatpush1.bf16.msra.mxu0 %v15848_v45  ;;  %v15866_v23 = vld [vmem:[#allocation7 + $0xd88] ss:$24 sps:$4 sm:$0xff]  }
 0x4a5   : > { %v13748_v22 = vadd.f32 %v6715_v38, %v17646_v34  ;;  %v13812_v25 = vadd.f32 %v7393_v8, %v17649_v51  ;;  %v6717_v52 = vpop.f32.mrb[49].mxu1  ;;  %v7395_v49 = vpop.f32.mrb[81].mxu0  ;;  %9823 = vmatprep.subr.bf16.mxu0 %v15856_v44  ;;  %v15817_v44 = vld [vmem:[#allocation7 + $0xc04] ss:$24 sps:$4 sm:$0xff]  }
 0x4a6   : > { %v13749_v4 = vadd.f32 %v6717_v52, %v17653_v54  ;;  %v13813_v24 = vadd.f32 %v7395_v49, %v17656_v9  ;;  %v6719_v56 = vpop.f32.mrb[50].mxu1  ;;  %v7397_v48 = vpop.f32.mrb[82].mxu0  ;;  %9386 = vmatpush1.bf16.msra.mxu1 %v15806_v31  ;;  %9760 = vmatprep.mubr.bf16.mxu0 %v17732_v26 }
 0x4a7   : > { %v13750_v20 = vadd.f32 %v6719_v56, %v17646_v34  ;;  %v13814_v58 = vadd.f32 %v7397_v48, %v17649_v51  ;;  %v6721_v40 = vpop.f32.mrb[51].mxu1  ;;  %v7399_v0 = vpop.f32.mrb[83].mxu0  ;;  %9761 = vmatmul.mubr.bf16.gmra.mrb[108].mxu0 %v17728_v13  ;;  %9387 = vmatprep.subr.bf16.mxu1 %v15811_v11  ;;  %v7480_v57 = vmax.f32 %v13748_v22, 0.0  ;;  %v7484_v59 = vmax.f32 %v13812_v25, 0.0 }
 0x4a8   : > { %v13751_v42 = vadd.f32 %v6721_v40, %v17653_v54  ;;  %v13815_v1 = vadd.f32 %v7399_v0, %v17656_v9  ;;  %9824 = vmatpush1.bf16.msra.mxu0 %v15854_v21  ;;  %v7481_v16 = vmax.f32 %v13749_v4, 0.0  ;;  %v7485_v30 = vmax.f32 %v13813_v24, 0.0  ;;  %v15874_v21 = vld [vmem:[#allocation7 + $0xdbc] ss:$24 sps:$4 sm:$0xff]   ;;  %v15872_v40 = vld [vmem:[#allocation7 + $0xdb8] ss:$24 sps:$4 sm:$0xff]  }
 0x4a9   : > { %v7486_v27 = vmax.f32 %v13750_v20, 0.0  ;;  %v7490_v55 = vmax.f32 %v13814_v58, 0.0  ;;  %7083 = vmatmul.mubr.bf16.gmra.mrb[92].mxu1 %v17587_v28  ;;  %9825 = vmatprep.subr.bf16.mxu0 %v15862_v2  ;;  %v15815_v2 = vld [vmem:[#allocation7 + $0xc00] ss:$24 sps:$4 sm:$0xff]  }
 0x4aa   : > { %v7487_v45 = vmax.f32 %v13751_v42, 0.0  ;;  %v7491_v15 = vmax.f32 %v13815_v1, 0.0  ;;  %9388 = vmatpush1.bf16.msra.mxu1 %v15809_v63  ;;  %9391 = vmatprep.mubr.bf16.mxu1 %v17672_v43  ;;  %v15823_v63 = vld [vmem:[#allocation7 + $0xc34] ss:$24 sps:$4 sm:$0xff]  }
 0x4ab   : > { %v17748_v7 = vpack.c.bf16 %v7486_v27, %v7480_v57  ;;  %v17750_v14 = vpack.c.bf16 %v7490_v55, %v7484_v59  ;;  %9389 = vmatprep.subr.bf16.mxu1 %v15814_v5 }
 0x4ac   : > { %v17752_v39 = vpack.c.bf16 %v7487_v45, %v7481_v16  ;;  %v17754_v53 = vpack.c.bf16 %v7491_v15, %v7485_v30  ;;  %v6725_v28 = vpop.f32.mrb[52].mxu1  ;;  %v7403_v29 = vpop.f32.mrb[84].mxu0  ;;  %9826 = vmatpush1.bf16.msra.mxu0 %v15860_v17  ;;  %v15880_v17 = vld [vmem:[#allocation7 + $0xdec] ss:$24 sps:$4 sm:$0xff]  }
 0x4ad   : > { %v13752_v31 = vadd.f32 %v6725_v28, %v17646_v34  ;;  %v13816_v11 = vadd.f32 %v7403_v29, %v17649_v51  ;;  %v6727_v38 = vpop.f32.mrb[53].mxu1  ;;  %v7405_v8 = vpop.f32.mrb[85].mxu0  ;;  %9827 = vmatprep.subr.bf16.mxu0 %v15868_v19  ;;  %v15821_v19 = vld [vmem:[#allocation7 + $0xc30] ss:$24 sps:$4 sm:$0xff]   ;;  %v15829_v45 = vld [vmem:[#allocation7 + $0xc64] ss:$24 sps:$4 sm:$0xff]  }
 0x4ae   : > { %v13753_v22 = vadd.f32 %v6727_v38, %v17653_v54  ;;  %v13817_v25 = vadd.f32 %v7405_v8, %v17656_v9  ;;  %v6729_v52 = vpop.f32.mrb[54].mxu1  ;;  %v7407_v49 = vpop.f32.mrb[86].mxu0  ;;  %9390 = vmatpush1.bf16.msra.mxu1 %v15812_v47  ;;  %9770 = vmatprep.mubr.bf16.mxu0 %v17752_v39  ;;  %v15878_v29 = vld [vmem:[#allocation7 + $0xde8] ss:$24 sps:$4 sm:$0xff]   ;;  %v15886_v8 = vld [vmem:[#allocation7 + $0xe1c] ss:$24 sps:$4 sm:$0xff]  }
 0x4af   : > { %v13754_v4 = vadd.f32 %v6729_v52, %v17646_v34  ;;  %v13818_v24 = vadd.f32 %v7407_v49, %v17649_v51  ;;  %v6731_v56 = vpop.f32.mrb[55].mxu1  ;;  %v7409_v48 = vpop.f32.mrb[87].mxu0  ;;  %9771 = vmatmul.mubr.bf16.gmra.mrb[112].mxu0 %v17748_v7  ;;  %9472 = vmatprep.subr.bf16.mxu1 %v15817_v44  ;;  %v7492_v0 = vmax.f32 %v13752_v31, 0.0  ;;  %v7496_v5 = vmax.f32 %v13816_v11, 0.0  ;;  %v15827_v49 = vld [vmem:[#allocation7 + $0xc60] ss:$24 sps:$4 sm:$0xff]  }
 0x4b0   : > { %v13755_v20 = vadd.f32 %v6731_v56, %v17653_v54  ;;  %v13819_v58 = vadd.f32 %v7409_v48, %v17656_v9  ;;  %9828 = vmatpush1.bf16.msra.mxu0 %v15866_v23  ;;  %v7493_v57 = vmax.f32 %v13753_v22, 0.0  ;;  %v7497_v59 = vmax.f32 %v13817_v25, 0.0  ;;  %v15835_v48 = vld [vmem:[#allocation7 + $0xc94] ss:$24 sps:$4 sm:$0xff]  }
 0x4b1   : > { %v7498_v42 = vmax.f32 %v13754_v4, 0.0  ;;  %v7502_v1 = vmax.f32 %v13818_v24, 0.0  ;;  %9392 = vmatmul.mubr.bf16.vlgmr.msra.gmra.mrb[96].mxu1 %v17668_v36  ;;  %9829 = vmatprep.subr.bf16.mxu0 %v15874_v21 }
 0x4b2   : > { %v7499_v27 = vmax.f32 %v13755_v20, 0.0  ;;  %v7503_v55 = vmax.f32 %v13819_v58, 0.0  ;;  %9401 = vmatprep.mubr.bf16.mxu1 %v17692_v3  ;;  %9473 = vmatpush1.bf16.msra.mxu1 %v15815_v2  ;;  %v15884_v58 = vld [vmem:[#allocation7 + $0xe18] ss:$24 sps:$4 sm:$0xff]  }
 0x4b3   : > { %v17768_v16 = vpack.c.bf16 %v7498_v42, %v7492_v0  ;;  %v17770_v30 = vpack.c.bf16 %v7502_v1, %v7496_v5  ;;  %9474 = vmatprep.subr.bf16.mxu1 %v15823_v63  ;;  %v15892_v1 = vld [vmem:[#allocation7 + $0xe4c] ss:$24 sps:$4 sm:$0xff]  }
 0x4b4   : > { %v17772_v15 = vpack.c.bf16 %v7499_v27, %v7493_v57  ;;  %v17774_v47 = vpack.c.bf16 %v7503_v55, %v7497_v59  ;;  %v6735_v44 = vpop.f32.mrb[56].mxu1  ;;  %v7413_v28 = vpop.f32.mrb[88].mxu0  ;;  %9830 = vmatpush1.bf16.msra.mxu0 %v15872_v40  ;;  %v15833_v55 = vld [vmem:[#allocation7 + $0xc90] ss:$24 sps:$4 sm:$0xff]  }
 0x4b5   : > { %v13756_v23 = vadd.f32 %v6735_v44, %v17646_v34  ;;  %v13820_v31 = vadd.f32 %v7413_v28, %v17649_v51  ;;  %v6737_v11 = vpop.f32.mrb[57].mxu1  ;;  %v7415_v38 = vpop.f32.mrb[89].mxu0  ;;  %9831 = vmatprep.subr.bf16.mxu0 %v15880_v17  ;;  %v15841_v44 = vld [vmem:[#allocation7 + $0xcc4] ss:$24 sps:$4 sm:$0xff]  }
 0x4b6   : > { %v13757_v21 = vadd.f32 %v6737_v11, %v17653_v54  ;;  %v13821_v22 = vadd.f32 %v7415_v38, %v17656_v9  ;;  %v6739_v25 = vpop.f32.mrb[58].mxu1  ;;  %v7417_v52 = vpop.f32.mrb[90].mxu0  ;;  %9780 = vmatprep.mubr.bf16.mxu0 %v17772_v15  ;;  %9475 = vmatpush1.bf16.msra.mxu1 %v15821_v19  ;;  %v15890_v11 = vld [vmem:[#allocation7 + $0xe48] ss:$24 sps:$4 sm:$0xff]  }
 0x4b7   : > { %v13758_v2 = vadd.f32 %v6739_v25, %v17646_v34  ;;  %v13822_v4 = vadd.f32 %v7417_v52, %v17649_v51  ;;  %v6741_v24 = vpop.f32.mrb[59].mxu1  ;;  %v7419_v56 = vpop.f32.mrb[91].mxu0  ;;  %9781 = vmatmul.mubr.bf16.gmra.mrb[116].mxu0 %v17768_v16  ;;  %9476 = vmatprep.subr.bf16.mxu1 %v15829_v45  ;;  %v7504_v40 = vmax.f32 %v13756_v23, 0.0  ;;  %v7508_v0 = vmax.f32 %v13820_v31, 0.0  ;;  %v15898_v25 = vld [vmem:[#allocation7 + $0xe7c] ss:$24 sps:$4 sm:$0xff]  }
 0x4b8   : > { %v13759_v63 = vadd.f32 %v6741_v24, %v17653_v54  ;;  %v13823_v20 = vadd.f32 %v7419_v56, %v17656_v9  ;;  %9832 = vmatpush1.bf16.msra.mxu0 %v15878_v29  ;;  %v7505_v17 = vmax.f32 %v13757_v21, 0.0  ;;  %v7509_v57 = vmax.f32 %v13821_v22, 0.0  ;;  %v15839_v24 = vld [vmem:[#allocation7 + $0xcc0] ss:$24 sps:$4 sm:$0xff]  }
 0x4b9   : > { %v7510_v5 = vmax.f32 %v13758_v2, 0.0  ;;  %v7514_v42 = vmax.f32 %v13822_v4, 0.0  ;;  %9402 = vmatmul.mubr.bf16.gmra.mrb[100].mxu1 %v17688_v41  ;;  %9833 = vmatprep.subr.bf16.mxu0 %v15886_v8 }
 0x4ba   : > { %v7511_v59 = vmax.f32 %v13759_v63, 0.0  ;;  %v7515_v27 = vmax.f32 %v13823_v20, 0.0  ;;  %9411 = vmatprep.mubr.bf16.mxu1 %v17712_v10  ;;  %9477 = vmatpush1.bf16.msra.mxu1 %v15827_v49 }
 0x4bb   : > { %v17788_v19 = vpack.c.bf16 %v7510_v5, %v7504_v40  ;;  %v17790_v45 = vpack.c.bf16 %v7514_v42, %v7508_v0  ;;  %9478 = vmatprep.subr.bf16.mxu1 %v15835_v48  ;;  %v15896_v5 = vld [vmem:[#allocation7 + $0xe78] ss:$24 sps:$4 sm:$0xff]  }
 0x4bc   : > { %v17792_v28 = vpack.c.bf16 %v7511_v59, %v7505_v17  ;;  %v17794_v29 = vpack.c.bf16 %v7515_v27, %v7509_v57  ;;  %v6745_v23 = vpop.f32.mrb[60].mxu1  ;;  %v7423_v31 = vpop.f32.mrb[92].mxu0  ;;  %9834 = vmatpush1.bf16.msra.mxu0 %v15884_v58  ;;  %v15847_v58 = vld [vmem:[#allocation7 + $0xcf4] ss:$24 sps:$4 sm:$0xff]  }
 0x4bd   : > { %v13760_v38 = vadd.f32 %v6745_v23, %v17646_v34  ;;  %v13824_v8 = vadd.f32 %v7423_v31, %v17649_v51  ;;  %v6747_v21 = vpop.f32.mrb[61].mxu1  ;;  %v7425_v22 = vpop.f32.mrb[93].mxu0  ;;  %9835 = vmatprep.subr.bf16.mxu0 %v15892_v1 }
 0x4be   : > { %v13761_v52 = vadd.f32 %v6747_v21, %v17653_v54  ;;  %v13825_v49 = vadd.f32 %v7425_v22, %v17656_v9  ;;  %v6749_v2 = vpop.f32.mrb[62].mxu1  ;;  %v7427_v4 = vpop.f32.mrb[94].mxu0  ;;  %9790 = vmatprep.mubr.bf16.mxu0 %v17792_v28  ;;  %9479 = vmatpush1.bf16.msra.mxu1 %v15833_v55  ;;  %v15845_v55 = vld [vmem:[#allocation7 + $0xcf0] ss:$24 sps:$4 sm:$0xff]   ;;  %v15859_v21 = vld [vmem:[#allocation7 + $0xd54] ss:$24 sps:$4 sm:$0xff]  }
 0x4bf   : > { %v13762_v56 = vadd.f32 %v6749_v2, %v17646_v34  ;;  %v13826_v48 = vadd.f32 %v7427_v4, %v17649_v51  ;;  %v6751_v63 = vpop.f32.mrb[63].mxu1  ;;  %v7429_v20 = vpop.f32.mrb[95].mxu0  ;;  %9791 = vmatmul.mubr.bf16.gmra.mrb[120].mxu0 %v17788_v19  ;;  %9480 = vmatprep.subr.bf16.mxu1 %v15841_v44  ;;  %v7516_v42 = vmax.f32 %v13760_v38, 0.0  ;;  %v7520_v1 = vmax.f32 %v13824_v8, 0.0  ;;  %v15853_v44 = vld [vmem:[#allocation7 + $0xd24] ss:$24 sps:$4 sm:$0xff]  }
 0x4c0   : > { %v13763_v40 = vadd.f32 %v6751_v63, %v17653_v54  ;;  %v13827_v0 = vadd.f32 %v7429_v20, %v17656_v9  ;;  %9836 = vmatpush1.bf16.msra.mxu0 %v15890_v11  ;;  %v7517_v34 = vmax.f32 %v13761_v52, 0.0  ;;  %v7521_v51 = vmax.f32 %v13825_v49, 0.0  ;;  %v15904_v11 = vld [vmem:[#allocation7 + $0xeac] ss:$24 sps:$4 sm:$0xff]   ;;  %v15851_v38 = vld [vmem:[#allocation7 + $0xd20] ss:$24 sps:$4 sm:$0xff]  }
 0x4c1   : > { %v7522_v17 = vmax.f32 %v13762_v56, 0.0  ;;  %v7526_v57 = vmax.f32 %v13826_v48, 0.0  ;;  %9412 = vmatmul.mubr.bf16.gmra.mrb[104].mxu1 %v17708_v37  ;;  %9837 = vmatprep.subr.bf16.mxu0 %v15898_v25  ;;  %v15902_v8 = vld [vmem:[#allocation7 + $0xea8] ss:$24 sps:$4 sm:$0xff]   ;;  %v15910_v22 = vld [vmem:[#allocation7 + $0xedc] ss:$24 sps:$4 sm:$0xff]  }
 0x4c2   : > { %v7523_v59 = vmax.f32 %v13763_v40, 0.0  ;;  %v7527_v27 = vmax.f32 %v13827_v0, 0.0  ;;  %9421 = vmatprep.mubr.bf16.mxu1 %v17732_v26  ;;  %9481 = vmatpush1.bf16.msra.mxu1 %v15839_v24  ;;  %v15857_v25 = vld [vmem:[#allocation7 + $0xd50] ss:$24 sps:$4 sm:$0xff]   ;;  %v15865_v49 = vld [vmem:[#allocation7 + $0xd84] ss:$24 sps:$4 sm:$0xff]  }
 0x4c3   : > { %v17808_v54 = vpack.c.bf16 %v7522_v17, %v7516_v42  ;;  %v17810_v9 = vpack.c.bf16 %v7526_v57, %v7520_v1  ;;  %9482 = vmatprep.subr.bf16.mxu1 %v15847_v58  ;;  %v15908_v52 = vld [vmem:[#allocation7 + $0xed8] ss:$24 sps:$4 sm:$0xff]   ;;  %v15916_v2 = vld [vmem:[#allocation7 + $0xf0c] ss:$24 sps:$4 sm:$0xff]  }
 0x4c4   : > { %v17812_v23 = vpack.c.bf16 %v7523_v59, %v7517_v34  ;;  %v17814_v31 = vpack.c.bf16 %v7527_v27, %v7521_v51  ;;  %9838 = vmatpush1.bf16.msra.mxu0 %v15896_v5  ;;  %v15863_v4 = vld [vmem:[#allocation7 + $0xd80] ss:$24 sps:$4 sm:$0xff]   ;;  %v15871_v24 = vld [vmem:[#allocation7 + $0xdb4] ss:$24 sps:$4 sm:$0xff]   ;;  %v15869_v56 = vld [vmem:[#allocation7 + $0xdb0] ss:$24 sps:$4 sm:$0xff]  }
 0x4c5   : > { %9839 = vmatprep.subr.bf16.mxu0 %v15904_v11  ;;  %v15877_v48 = vld [vmem:[#allocation7 + $0xde4] ss:$24 sps:$4 sm:$0xff]   ;;  %v15875_v63 = vld [vmem:[#allocation7 + $0xde0] ss:$24 sps:$4 sm:$0xff]   ;;  %v15883_v20 = vld [vmem:[#allocation7 + $0xe14] ss:$24 sps:$4 sm:$0xff]  }
 0x4c6   : > { %9800 = vmatprep.mubr.bf16.mxu0 %v17812_v23  ;;  %9483 = vmatpush1.bf16.msra.mxu1 %v15845_v55  ;;  %v15881_v58 = vld [vmem:[#allocation7 + $0xe10] ss:$24 sps:$4 sm:$0xff]   ;;  %v15889_v40 = vld [vmem:[#allocation7 + $0xe44] ss:$24 sps:$4 sm:$0xff]   ;;  %v15887_v0 = vld [vmem:[#allocation7 + $0xe40] ss:$24 sps:$4 sm:$0xff]  }
 0x4c7   : > { %9801 = vmatmul.mubr.bf16.gmra.mrb[124].mxu0 %v17808_v54  ;;  %9484 = vmatprep.subr.bf16.mxu1 %v15853_v44  ;;  %v15895_v5 = vld [vmem:[#allocation7 + $0xe74] ss:$24 sps:$4 sm:$0xff]   ;;  %v15893_v42 = vld [vmem:[#allocation7 + $0xe70] ss:$24 sps:$4 sm:$0xff]   ;;  %v15901_v1 = vld [vmem:[#allocation7 + $0xea4] ss:$24 sps:$4 sm:$0xff]  }
 0x4c8   : > { %9840 = vmatpush1.bf16.msra.mxu0 %v15902_v8  ;;  %v15899_v17 = vld [vmem:[#allocation7 + $0xea0] ss:$24 sps:$4 sm:$0xff]   ;;  %v15907_v57 = vld [vmem:[#allocation7 + $0xed4] ss:$24 sps:$4 sm:$0xff]   ;;  %v15905_v34 = vld [vmem:[#allocation7 + $0xed0] ss:$24 sps:$4 sm:$0xff]  }
 0x4c9   : > { %9422 = vmatmul.mubr.bf16.gmra.mrb[108].mxu1 %v17728_v13  ;;  %9841 = vmatprep.subr.bf16.mxu0 %v15910_v22  ;;  %v15913_v51 = vld [vmem:[#allocation7 + $0xf04] ss:$24 sps:$4 sm:$0xff]   ;;  %v16264_v59 = vld [vmem:[#allocation11 + $0x8] sm:$0x77] }
 0x4ca   : > { %9431 = vmatprep.mubr.bf16.mxu1 %v17752_v39  ;;  %9485 = vmatpush1.bf16.msra.mxu1 %v15851_v38  ;;  %v4932_v27 = vrot.slane %v16264_v59, %v17632_v50  ;;  %v4936_v55 = vrot.slane %v16264_v59, %v17636_v35 }
 0x4cb   : > { %9486 = vmatprep.subr.bf16.mxu1 %v15859_v21 }
 0x4cc   : > { %9842 = vmatpush1.bf16.msra.mxu0 %v15908_v52  ;;  %v17830_v44 = vrot.slane %v4932_v27, %v17632_v50  ;;  %v17833_v11 = vrot.slane %v4936_v55, %v17632_v50  ;;  %v15917_v27 = vld [vmem:[#allocation7 + $0xf30] ss:$24 sps:$4 sm:$0xff]  }
 0x4cd   : > { %9924 = vmatprep.subr.bf16.mxu0 %v15916_v2  ;;  %v15920_v55 = vld [vmem:[#allocation7 + $0xf38] ss:$24 sps:$4 sm:$0xff]  }
 0x4ce   : > { %9487 = vmatpush1.bf16.msra.mxu1 %v15857_v25 }
 0x4cf   : > { %9488 = vmatprep.subr.bf16.mxu1 %v15865_v49 }
 0x4d1   : > { %9432 = vmatmul.mubr.bf16.gmra.mrb[112].mxu1 %v17748_v7 }
 0x4d2   : > { %9441 = vmatprep.mubr.bf16.mxu1 %v17772_v15  ;;  %9489 = vmatpush1.bf16.msra.mxu1 %v15863_v4 }
 0x4d3   : > { %9490 = vmatprep.subr.bf16.mxu1 %v15871_v24 }
 0x4d6   : > { %9491 = vmatpush1.bf16.msra.mxu1 %v15869_v56 }
 0x4d7   : > { %9492 = vmatprep.subr.bf16.mxu1 %v15877_v48 }
 0x4d9   : > { %9442 = vmatmul.mubr.bf16.gmra.mrb[116].mxu1 %v17768_v16 }
 0x4da   : > { %9451 = vmatprep.mubr.bf16.mxu1 %v17792_v28  ;;  %9493 = vmatpush1.bf16.msra.mxu1 %v15875_v63 }
 0x4db   : > { %9494 = vmatprep.subr.bf16.mxu1 %v15883_v20 }
 0x4de   : > { %9495 = vmatpush1.bf16.msra.mxu1 %v15881_v58  ;;  %v15911_v58 = vld [vmem:[#allocation7 + $0xf00] ss:$24 sps:$4 sm:$0xff]  }
 0x4df   : > { %9496 = vmatprep.subr.bf16.mxu1 %v15889_v40  ;;  %v15914_v40 = vld [vmem:[#allocation7 + $0xf08] ss:$24 sps:$4 sm:$0xff]  }
 0x4e1   : > { %9452 = vmatmul.mubr.bf16.gmra.mrb[120].mxu1 %v17788_v19 }
 0x4e2   : > { %9461 = vmatprep.mubr.bf16.mxu1 %v17812_v23  ;;  %9497 = vmatpush1.bf16.msra.mxu1 %v15887_v0 }
 0x4e3   : > { %9498 = vmatprep.subr.bf16.mxu1 %v15895_v5 }
 0x4e6   : > { %9499 = vmatpush1.bf16.msra.mxu1 %v15893_v42  ;;  %v15919_v42 = vld [vmem:[#allocation7 + $0xf34] ss:$24 sps:$4 sm:$0xff]  }
 0x4e7   : > { %9500 = vmatprep.subr.bf16.mxu1 %v15901_v1  ;;  %v15922_v1 = vld [vmem:[#allocation7 + $0xf3c] ss:$24 sps:$4 sm:$0xff]  }
 0x4e9   : > { %9462 = vmatmul.mubr.bf16.gmra.mrb[124].mxu1 %v17808_v54 }
 0x4ea   : > { %9501 = vmatpush1.bf16.msra.mxu1 %v15899_v17 }
 0x4eb   : > { %9502 = vmatprep.subr.bf16.mxu1 %v15907_v57 }
 0x4ee   : > { %9503 = vmatpush1.bf16.msra.mxu1 %v15905_v34 }
 0x4ef   : > { %9585 = vmatprep.subr.bf16.mxu1 %v15913_v51 }
 0x544   : > { %v7014_v38 = vpop.f32.mrb[64].mxu1 }
 0x545   : > { %v13764_v8 = vadd.f32 %v7014_v38, %v17830_v44  ;;  %v7016_v21 = vpop.f32.mrb[65].mxu1 }
 0x546   : > { %v13765_v22 = vadd.f32 %v7016_v21, %v17833_v11  ;;  %v7018_v25 = vpop.f32.mrb[66].mxu1  ;;  %v15925_v21 = vld [vmem:[#allocation7 + $0xf64] ss:$24 sps:$4 sm:$0xff]  }
 0x547   : > { %v13766_v52 = vadd.f32 %v7018_v25, %v17830_v44  ;;  %v7020_v49 = vpop.f32.mrb[67].mxu1  ;;  %v7434_v4 = vmax.f32 %v13764_v8, 0.0 }
 0x548   : > { %v13767_v2 = vadd.f32 %v7020_v49, %v17833_v11  ;;  %v7435_v24 = vmax.f32 %v13765_v22, 0.0  ;;  %v15928_v22 = vld [vmem:[#allocation7 + $0xf6c] ss:$24 sps:$4 sm:$0xff]  }
 0x549   : > { %v7440_v35 = vmax.f32 %v13766_v52, 0.0 }
 0x54a   : > { %v7441_v56 = vmax.f32 %v13767_v2, 0.0 }
 0x54b   : > { %v17839_v48 = vpack.c.bf16 %v7440_v35, %v7434_v4  ;;  %v15923_v35 = vld [vmem:[#allocation7 + $0xf60] ss:$24 sps:$4 sm:$0xff]  }
 0x54c   : > { %v17841_v63 = vpack.c.bf16 %v7441_v56, %v7435_v24  ;;  %v7024_v20 = vpop.f32.mrb[68].mxu1  ;;  %v15926_v24 = vld [vmem:[#allocation7 + $0xf68] ss:$24 sps:$4 sm:$0xff]  }
 0x54d   : > { %v13768_v0 = vadd.f32 %v7024_v20, %v17830_v44  ;;  %v7026_v5 = vpop.f32.mrb[69].mxu1 }
 0x54e   : > { %v13769_v17 = vadd.f32 %v7026_v5, %v17833_v11  ;;  %v7028_v57 = vpop.f32.mrb[70].mxu1  ;;  %9504 = vmatprep.mubr.bf16.mxu1 %v17841_v63  ;;  %9843 = vmatprep.mubr.bf16.mxu0 %v17841_v63 }
 0x54f   : > { %v13770_v34 = vadd.f32 %v7028_v57, %v17830_v44  ;;  %v7030_v51 = vpop.f32.mrb[71].mxu1  ;;  %9505 = vmatmul.mubr.bf16.vlgmr.msra.gmra.mrb[96].mxu1 %v17839_v48  ;;  %9844 = vmatmul.mubr.bf16.vlgmr.msra.gmra.mrb[96].mxu0 %v17839_v48  ;;  %v7446_v38 = vmax.f32 %v13768_v0, 0.0  ;;  %v15929_v57 = vld [vmem:[#allocation7 + $0xf90] ss:$24 sps:$4 sm:$0xff]  }
 0x550   : > { %v13771_v59 = vadd.f32 %v7030_v51, %v17833_v11  ;;  %9586 = vmatpush1.bf16.msra.mxu1 %v15911_v58  ;;  %9925 = vmatpush1.bf16.msra.mxu0 %v15914_v40  ;;  %v7447_v25 = vmax.f32 %v13769_v17, 0.0  ;;  %v15931_v58 = vld [vmem:[#allocation7 + $0xf94] ss:$24 sps:$4 sm:$0xff]  }
 0x551   : > { %v7452_v8 = vmax.f32 %v13770_v34, 0.0  ;;  %9587 = vmatprep.subr.bf16.mxu1 %v15919_v42  ;;  %9926 = vmatprep.subr.bf16.mxu0 %v15922_v1  ;;  %v15934_v40 = vld [vmem:[#allocation7 + $0xf9c] ss:$24 sps:$4 sm:$0xff]   ;;  %v15932_v34 = vld [vmem:[#allocation7 + $0xf98] ss:$24 sps:$4 sm:$0xff]  }
 0x552   : > { %v7453_v52 = vmax.f32 %v13771_v59, 0.0 }
 0x553   : > { %v17851_v49 = vpack.c.bf16 %v7452_v8, %v7446_v38 }
 0x554   : > { %v17853_v2 = vpack.c.bf16 %v7453_v52, %v7447_v25  ;;  %v7034_v4 = vpop.f32.mrb[72].mxu1  ;;  %9588 = vmatpush1.bf16.msra.mxu1 %v15917_v27  ;;  %9927 = vmatpush1.bf16.msra.mxu0 %v15920_v55  ;;  %v15937_v27 = vld [vmem:[#allocation7 + $0xfc4] ss:$24 sps:$4 sm:$0xff]   ;;  %v15935_v52 = vld [vmem:[#allocation7 + $0xfc0] ss:$24 sps:$4 sm:$0xff]  }
 0x555   : > { %v13772_v56 = vadd.f32 %v7034_v4, %v17830_v44  ;;  %v7036_v20 = vpop.f32.mrb[73].mxu1  ;;  %9589 = vmatprep.subr.bf16.mxu1 %v15925_v21  ;;  %9928 = vmatprep.subr.bf16.mxu0 %v15928_v22  ;;  %v15940_v55 = vld [vmem:[#allocation7 + $0xfcc] ss:$24 sps:$4 sm:$0xff]   ;;  %v15938_v4 = vld [vmem:[#allocation7 + $0xfc8] ss:$24 sps:$4 sm:$0xff]  }
 0x556   : > { %v13773_v0 = vadd.f32 %v7036_v20, %v17833_v11  ;;  %v7038_v5 = vpop.f32.mrb[74].mxu1  ;;  %9514 = vmatprep.mubr.bf16.mxu1 %v17853_v2  ;;  %9853 = vmatprep.mubr.bf16.mxu0 %v17853_v2  ;;  %v15946_v20 = vld [vmem:[#allocation7 + $0xffc] ss:$24 sps:$4 sm:$0xff]  }
 0x557   : > { %v13774_v42 = vadd.f32 %v7038_v5, %v17830_v44  ;;  %v7040_v1 = vpop.f32.mrb[75].mxu1  ;;  %9515 = vmatmul.mubr.bf16.gmra.mrb[100].mxu1 %v17851_v49  ;;  %9854 = vmatmul.mubr.bf16.gmra.mrb[100].mxu0 %v17851_v49  ;;  %v7458_v51 = vmax.f32 %v13772_v56, 0.0  ;;  %v15943_v56 = vld [vmem:[#allocation7 + $0xff4] ss:$24 sps:$4 sm:$0xff]  }
 0x558   : > { %v13775_v17 = vadd.f32 %v7040_v1, %v17833_v11  ;;  %9590 = vmatpush1.bf16.msra.mxu1 %v15923_v35  ;;  %9929 = vmatpush1.bf16.msra.mxu0 %v15926_v24  ;;  %v7459_v38 = vmax.f32 %v13773_v0, 0.0  ;;  %v15941_v1 = vld [vmem:[#allocation7 + $0xff0] ss:$24 sps:$4 sm:$0xff]  }
 0x559   : > { %v7464_v59 = vmax.f32 %v13774_v42, 0.0  ;;  %9591 = vmatprep.subr.bf16.mxu1 %v15931_v58  ;;  %9930 = vmatprep.subr.bf16.mxu0 %v15934_v40 }
 0x55a   : > { %v7465_v8 = vmax.f32 %v13775_v17, 0.0  ;;  %v15944_v17 = vld [vmem:[#allocation7 + $0xff8] ss:$24 sps:$4 sm:$0xff]  }
 0x55b   : > { %v17863_v21 = vpack.c.bf16 %v7464_v59, %v7458_v51  ;;  %v15949_v51 = vld [vmem:[#allocation7 + $0x1024] ss:$24 sps:$4 sm:$0xff]  }
 0x55c   : > { %v17865_v22 = vpack.c.bf16 %v7465_v8, %v7459_v38  ;;  %v7044_v25 = vpop.f32.mrb[76].mxu1  ;;  %9592 = vmatpush1.bf16.msra.mxu1 %v15929_v57  ;;  %9931 = vmatpush1.bf16.msra.mxu0 %v15932_v34  ;;  %v15952_v59 = vld [vmem:[#allocation7 + $0x102c] ss:$24 sps:$4 sm:$0xff]  }
 0x55d   : > { %v13776_v35 = vadd.f32 %v7044_v25, %v17830_v44  ;;  %v7046_v24 = vpop.f32.mrb[77].mxu1  ;;  %9593 = vmatprep.subr.bf16.mxu1 %v15937_v27  ;;  %9932 = vmatprep.subr.bf16.mxu0 %v15940_v55 }
 0x55e   : > { %v13777_v58 = vadd.f32 %v7046_v24, %v17833_v11  ;;  %v7048_v40 = vpop.f32.mrb[78].mxu1  ;;  %9524 = vmatprep.mubr.bf16.mxu1 %v17865_v22  ;;  %9863 = vmatprep.mubr.bf16.mxu0 %v17865_v22  ;;  %v15947_v24 = vld [vmem:[#allocation7 + $0x1020] ss:$24 sps:$4 sm:$0xff]  }
 0x55f   : > { %v13778_v0 = vadd.f32 %v7048_v40, %v17830_v44  ;;  %v7050_v5 = vpop.f32.mrb[79].mxu1  ;;  %9525 = vmatmul.mubr.bf16.gmra.mrb[104].mxu1 %v17863_v21  ;;  %9864 = vmatmul.mubr.bf16.gmra.mrb[104].mxu0 %v17863_v21  ;;  %v7470_v57 = vmax.f32 %v13776_v35, 0.0  ;;  %v15955_v35 = vld [vmem:[#allocation7 + $0x1054] ss:$24 sps:$4 sm:$0xff]  }
 0x560   : > { %v13779_v42 = vadd.f32 %v7050_v5, %v17833_v11  ;;  %9594 = vmatpush1.bf16.msra.mxu1 %v15935_v52  ;;  %9933 = vmatpush1.bf16.msra.mxu0 %v15938_v4  ;;  %v7471_v27 = vmax.f32 %v13777_v58, 0.0  ;;  %v15950_v52 = vld [vmem:[#allocation7 + $0x1028] ss:$24 sps:$4 sm:$0xff]  }
 0x561   : > { %v7476_v34 = vmax.f32 %v13778_v0, 0.0  ;;  %9595 = vmatprep.subr.bf16.mxu1 %v15943_v56  ;;  %9934 = vmatprep.subr.bf16.mxu0 %v15946_v20  ;;  %v15958_v56 = vld [vmem:[#allocation7 + $0x105c] ss:$24 sps:$4 sm:$0xff]  }
 0x562   : > { %v7477_v55 = vmax.f32 %v13779_v42, 0.0 }
 0x563   : > { %v17875_v38 = vpack.c.bf16 %v7476_v34, %v7470_v57 }
 0x564   : > { %v17877_v8 = vpack.c.bf16 %v7477_v55, %v7471_v27  ;;  %v7054_v25 = vpop.f32.mrb[80].mxu1  ;;  %9596 = vmatpush1.bf16.msra.mxu1 %v15941_v1  ;;  %9935 = vmatpush1.bf16.msra.mxu0 %v15944_v17  ;;  %v15953_v1 = vld [vmem:[#allocation7 + $0x1050] ss:$24 sps:$4 sm:$0xff]  }
 0x565   : > { %v13780_v4 = vadd.f32 %v7054_v25, %v17830_v44  ;;  %v7056_v40 = vpop.f32.mrb[81].mxu1  ;;  %9597 = vmatprep.subr.bf16.mxu1 %v15949_v51  ;;  %9936 = vmatprep.subr.bf16.mxu0 %v15952_v59  ;;  %v15956_v17 = vld [vmem:[#allocation7 + $0x1058] ss:$24 sps:$4 sm:$0xff]   ;;  %v15961_v51 = vld [vmem:[#allocation7 + $0x1084] ss:$24 sps:$4 sm:$0xff]  }
 0x566   : > { %v13781_v20 = vadd.f32 %v7056_v40, %v17833_v11  ;;  %v7058_v58 = vpop.f32.mrb[82].mxu1  ;;  %9534 = vmatprep.mubr.bf16.mxu1 %v17877_v8  ;;  %9873 = vmatprep.mubr.bf16.mxu0 %v17877_v8  ;;  %v15964_v59 = vld [vmem:[#allocation7 + $0x108c] ss:$24 sps:$4 sm:$0xff]  }
 0x567   : > { %v13782_v0 = vadd.f32 %v7058_v58, %v17830_v44  ;;  %v7060_v5 = vpop.f32.mrb[83].mxu1  ;;  %9535 = vmatmul.mubr.bf16.gmra.mrb[108].mxu1 %v17875_v38  ;;  %9874 = vmatmul.mubr.bf16.gmra.mrb[108].mxu0 %v17875_v38  ;;  %v7482_v57 = vmax.f32 %v13780_v4, 0.0  ;;  %v15967_v4 = vld [vmem:[#allocation7 + $0x10b4] ss:$24 sps:$4 sm:$0xff]  }
 0x568   : > { %v13783_v42 = vadd.f32 %v7060_v5, %v17833_v11  ;;  %9598 = vmatpush1.bf16.msra.mxu1 %v15947_v24  ;;  %9937 = vmatpush1.bf16.msra.mxu0 %v15950_v52  ;;  %v7483_v27 = vmax.f32 %v13781_v20, 0.0  ;;  %v15959_v5 = vld [vmem:[#allocation7 + $0x1080] ss:$24 sps:$4 sm:$0xff]  }
 0x569   : > { %v7488_v34 = vmax.f32 %v13782_v0, 0.0  ;;  %9599 = vmatprep.subr.bf16.mxu1 %v15955_v35  ;;  %9938 = vmatprep.subr.bf16.mxu0 %v15958_v56  ;;  %v15962_v24 = vld [vmem:[#allocation7 + $0x1088] ss:$24 sps:$4 sm:$0xff]   ;;  %v15970_v35 = vld [vmem:[#allocation7 + $0x10bc] ss:$24 sps:$4 sm:$0xff]  }
 0x56a   : > { %v7489_v55 = vmax.f32 %v13783_v42, 0.0 }
 0x56b   : > { %v17887_v25 = vpack.c.bf16 %v7488_v34, %v7482_v57  ;;  %v15968_v57 = vld [vmem:[#allocation7 + $0x10b8] ss:$24 sps:$4 sm:$0xff]  }
 0x56c   : > { %v17889_v40 = vpack.c.bf16 %v7489_v55, %v7483_v27  ;;  %v7064_v58 = vpop.f32.mrb[84].mxu1  ;;  %9600 = vmatpush1.bf16.msra.mxu1 %v15953_v1  ;;  %9939 = vmatpush1.bf16.msra.mxu0 %v15956_v17  ;;  %v15965_v17 = vld [vmem:[#allocation7 + $0x10b0] ss:$24 sps:$4 sm:$0xff]  }
 0x56d   : > { %18475 = vst [vmem:[#allocation26_spill] sm:$0xff] %v17887_v25  ;;  %v13784_v52 = vadd.f32 %v7064_v58, %v17830_v44  ;;  %v7066_v50 = vpop.f32.mrb[85].mxu1  ;;  %9601 = vmatprep.subr.bf16.mxu1 %v15961_v51  ;;  %9940 = vmatprep.subr.bf16.mxu0 %v15964_v59  ;;  %v15973_v51 = vld [vmem:[#allocation7 + $0x10e4] ss:$24 sps:$4 sm:$0xff]  }
 0x56e   : > { %v13785_v56 = vadd.f32 %v7066_v50, %v17833_v11  ;;  %v7068_v20 = vpop.f32.mrb[86].mxu1  ;;  %9544 = vmatprep.mubr.bf16.mxu1 %v17889_v40  ;;  %9883 = vmatprep.mubr.bf16.mxu0 %v17889_v40  ;;  %v15976_v59 = vld [vmem:[#allocation7 + $0x10ec] ss:$24 sps:$4 sm:$0xff]  }
 0x56f   : > { %v13786_v0 = vadd.f32 %v7068_v20, %v17830_v44  ;;  %v7070_v42 = vpop.f32.mrb[87].mxu1  ;;  %9545 = vmatmul.mubr.bf16.gmra.mrb[112].mxu1 %v17887_v25  ;;  %9884 = vmatmul.mubr.bf16.gmra.mrb[112].mxu0 %v17887_v25  ;;  %v7494_v34 = vmax.f32 %v13784_v52, 0.0  ;;  %v15979_v52 = vld [vmem:[#allocation7 + $0x1114] ss:$24 sps:$4 sm:$0xff]  }
 0x570   : > { %v13787_v1 = vadd.f32 %v7070_v42, %v17833_v11  ;;  %9602 = vmatpush1.bf16.msra.mxu1 %v15959_v5  ;;  %9941 = vmatpush1.bf16.msra.mxu0 %v15962_v24  ;;  %v7495_v27 = vmax.f32 %v13785_v56, 0.0  ;;  %v15971_v42 = vld [vmem:[#allocation7 + $0x10e0] ss:$24 sps:$4 sm:$0xff]  }
 0x571   : > { %v7500_v50 = vmax.f32 %v13786_v0, 0.0  ;;  %9603 = vmatprep.subr.bf16.mxu1 %v15967_v4  ;;  %9942 = vmatprep.subr.bf16.mxu0 %v15970_v35  ;;  %v15974_v5 = vld [vmem:[#allocation7 + $0x10e8] ss:$24 sps:$4 sm:$0xff]   ;;  %v15982_v4 = vld [vmem:[#allocation7 + $0x111c] ss:$24 sps:$4 sm:$0xff]  }
 0x572   : > { %v7501_v55 = vmax.f32 %v13787_v1, 0.0 }
 0x573   : > { %v17899_v58 = vpack.c.bf16 %v7500_v50, %v7494_v34  ;;  %v15985_v50 = vld [vmem:[#allocation7 + $0x1144] ss:$24 sps:$4 sm:$0xff]  }
 0x574   : > { %v17901_v20 = vpack.c.bf16 %v7501_v55, %v7495_v27  ;;  %v7074_v33 = vpop.f32.mrb[88].mxu1  ;;  %9604 = vmatpush1.bf16.msra.mxu1 %v15965_v17  ;;  %9943 = vmatpush1.bf16.msra.mxu0 %v15968_v57  ;;  %v15977_v17 = vld [vmem:[#allocation7 + $0x1110] ss:$24 sps:$4 sm:$0xff]  }
 0x575   : > { %18476 = vst [vmem:[#allocation27_spill] sm:$0xff] %v17899_v58  ;;  %v13788_v24 = vadd.f32 %v7074_v33, %v17830_v44  ;;  %v7076_v25 = vpop.f32.mrb[89].mxu1  ;;  %9605 = vmatprep.subr.bf16.mxu1 %v15973_v51  ;;  %9944 = vmatprep.subr.bf16.mxu0 %v15976_v59  ;;  %v15980_v57 = vld [vmem:[#allocation7 + $0x1118] ss:$24 sps:$4 sm:$0xff]   ;;  %v15988_v51 = vld [vmem:[#allocation7 + $0x114c] ss:$24 sps:$4 sm:$0xff]  }
 0x576   : > { %18477 = vst [vmem:[#allocation28_spill] sm:$0xff] %v17901_v20  ;;  %v13789_v35 = vadd.f32 %v7076_v25, %v17833_v11  ;;  %v7078_v56 = vpop.f32.mrb[90].mxu1  ;;  %9554 = vmatprep.mubr.bf16.mxu1 %v17901_v20  ;;  %9893 = vmatprep.mubr.bf16.mxu0 %v17901_v20 }
 0x577   : > { %v13790_v0 = vadd.f32 %v7078_v56, %v17830_v44  ;;  %v7080_v1 = vpop.f32.mrb[91].mxu1  ;;  %9555 = vmatmul.mubr.bf16.gmra.mrb[116].mxu1 %v17899_v58  ;;  %9894 = vmatmul.mubr.bf16.gmra.mrb[116].mxu0 %v17899_v58  ;;  %v7506_v34 = vmax.f32 %v13788_v24, 0.0  ;;  %v15991_v24 = vld [vmem:[#allocation7 + $0x1174] ss:$24 sps:$4 sm:$0xff]  }
 0x578   : > { %v13791_v33 = vadd.f32 %v7080_v1, %v17833_v11  ;;  %9606 = vmatpush1.bf16.msra.mxu1 %v15971_v42  ;;  %9945 = vmatpush1.bf16.msra.mxu0 %v15974_v5  ;;  %v7507_v59 = vmax.f32 %v13789_v35, 0.0  ;;  %v15983_v1 = vld [vmem:[#allocation7 + $0x1140] ss:$24 sps:$4 sm:$0xff]  }
 0x579   : > { %v7512_v25 = vmax.f32 %v13790_v0, 0.0  ;;  %9607 = vmatprep.subr.bf16.mxu1 %v15979_v52  ;;  %9946 = vmatprep.subr.bf16.mxu0 %v15982_v4  ;;  %v15986_v42 = vld [vmem:[#allocation7 + $0x1148] ss:$24 sps:$4 sm:$0xff]   ;;  %v15994_v52 = vld [vmem:[#allocation7 + $0x117c] ss:$24 sps:$4 sm:$0xff]  }
 0x57a   : > { %v7513_v27 = vmax.f32 %v13791_v33, 0.0 }
 0x57b   : > { %v17911_v55 = vpack.c.bf16 %v7512_v25, %v7506_v34  ;;  %v15997_v25 = vld [vmem:[#allocation7 + $0x11a4] ss:$24 sps:$4 sm:$0xff]  }
 0x57c   : > { %v17913_v56 = vpack.c.bf16 %v7513_v27, %v7507_v59  ;;  %v7084_v20 = vpop.f32.mrb[92].mxu1  ;;  %9608 = vmatpush1.bf16.msra.mxu1 %v15977_v17  ;;  %9947 = vmatpush1.bf16.msra.mxu0 %v15980_v57  ;;  %v15989_v17 = vld [vmem:[#allocation7 + $0x1170] ss:$24 sps:$4 sm:$0xff]  }
 0x57d   : > { %v13792_v5 = vadd.f32 %v7084_v20, %v17830_v44  ;;  %v7086_v58 = vpop.f32.mrb[93].mxu1  ;;  %9609 = vmatprep.subr.bf16.mxu1 %v15985_v50  ;;  %9948 = vmatprep.subr.bf16.mxu0 %v15988_v51  ;;  %v15992_v57 = vld [vmem:[#allocation7 + $0x1178] ss:$24 sps:$4 sm:$0xff]   ;;  %v16000_v50 = vld [vmem:[#allocation7 + $0x11ac] ss:$24 sps:$4 sm:$0xff]  }
 0x57e   : > { %v13793_v4 = vadd.f32 %v7086_v58, %v17833_v11  ;;  %v7088_v35 = vpop.f32.mrb[94].mxu1  ;;  %9564 = vmatprep.mubr.bf16.mxu1 %v17913_v56  ;;  %9903 = vmatprep.mubr.bf16.mxu0 %v17913_v56 }
 0x57f   : > { %v13794_v0 = vadd.f32 %v7088_v35, %v17830_v44  ;;  %v7090_v33 = vpop.f32.mrb[95].mxu1  ;;  %9565 = vmatmul.mubr.bf16.gmra.mrb[120].mxu1 %v17911_v55  ;;  %9904 = vmatmul.mubr.bf16.gmra.mrb[120].mxu0 %v17911_v55  ;;  %v7518_v34 = vmax.f32 %v13792_v5, 0.0  ;;  %v15995_v35 = vld [vmem:[#allocation7 + $0x11a0] ss:$24 sps:$4 sm:$0xff]   ;;  %v16001_v5 = vld [vmem:[#allocation7 + $0x11d0] ss:$24 sps:$4 sm:$0xff]  }
 0x580   : > { %v13795_v20 = vadd.f32 %v7090_v33, %v17833_v11  ;;  %9610 = vmatpush1.bf16.msra.mxu1 %v15983_v1  ;;  %9949 = vmatpush1.bf16.msra.mxu0 %v15986_v42  ;;  %v7519_v51 = vmax.f32 %v13793_v4, 0.0  ;;  %v15998_v11 = vld [vmem:[#allocation7 + $0x11a8] ss:$24 sps:$4 sm:$0xff]   ;;  %v16003_v1 = vld [vmem:[#allocation7 + $0x11d4] ss:$24 sps:$4 sm:$0xff]  }
 0x581   : > { %v7524_v58 = vmax.f32 %v13794_v0, 0.0  ;;  %9611 = vmatprep.subr.bf16.mxu1 %v15991_v24  ;;  %9950 = vmatprep.subr.bf16.mxu0 %v15994_v52  ;;  %v16006_v42 = vld [vmem:[#allocation7 + $0x11dc] ss:$24 sps:$4 sm:$0xff]   ;;  %v16004_v24 = vld [vmem:[#allocation7 + $0x11d8] ss:$24 sps:$4 sm:$0xff]  }
 0x582   : > { %v7525_v59 = vmax.f32 %v13795_v20, 0.0  ;;  %v16009_v52 = vld [vmem:[#allocation7 + $0x914] ss:$24 sps:$4 sm:$0xff]   ;;  %v16007_v4 = vld [vmem:[#allocation7 + $0x910] ss:$24 sps:$4 sm:$0xff]  }
 0x583   : > { %v17923_v44 = vpack.c.bf16 %v7524_v58, %v7518_v34  ;;  %v16012_v0 = vld [vmem:[#allocation7 + $0x944] ss:$24 sps:$4 sm:$0xff]   ;;  %v16010_v33 = vld [vmem:[#allocation7 + $0x940] ss:$24 sps:$4 sm:$0xff]   ;;  %v16015_v20 = vld [vmem:[#allocation7 + $0x974] ss:$24 sps:$4 sm:$0xff]  }
 0x584   : > { %v17925_v27 = vpack.c.bf16 %v7525_v59, %v7519_v51  ;;  %9612 = vmatpush1.bf16.msra.mxu1 %v15989_v17  ;;  %9951 = vmatpush1.bf16.msra.mxu0 %v15992_v57  ;;  %v16013_v17 = vld [vmem:[#allocation7 + $0x970] ss:$24 sps:$4 sm:$0xff]   ;;  %v16018_v57 = vld [vmem:[#allocation7 + $0x9a4] ss:$24 sps:$4 sm:$0xff]   ;;  %v16016_v34 = vld [vmem:[#allocation7 + $0x9a0] ss:$24 sps:$4 sm:$0xff]  }
 0x585   : > { %9613 = vmatprep.subr.bf16.mxu1 %v15997_v25  ;;  %9952 = vmatprep.subr.bf16.mxu0 %v16000_v50  ;;  %v16021_v58 = vld [vmem:[#allocation7 + $0x9d4] ss:$24 sps:$4 sm:$0xff]   ;;  %v16019_v25 = vld [vmem:[#allocation7 + $0x9d0] ss:$24 sps:$4 sm:$0xff]   ;;  %v16024_v50 = vld [vmem:[#allocation7 + $0xa04] ss:$24 sps:$4 sm:$0xff]  }
 0x586   : > { %9574 = vmatprep.mubr.bf16.mxu1 %v17925_v27  ;;  %9913 = vmatprep.mubr.bf16.mxu0 %v17925_v27  ;;  %v16022_v51 = vld [vmem:[#allocation7 + $0xa00] ss:$24 sps:$4 sm:$0xff]   ;;  %v16027_v59 = vld [vmem:[#allocation7 + $0xa34] ss:$24 sps:$4 sm:$0xff]  }
 0x587   : > { %9575 = vmatmul.mubr.bf16.gmra.mrb[124].mxu1 %v17923_v44  ;;  %9914 = vmatmul.mubr.bf16.gmra.mrb[124].mxu0 %v17923_v44 }
 0x588   : > { %9614 = vmatpush1.bf16.msra.mxu1 %v15995_v35  ;;  %9617 = vmatprep.mubr.bf16.mxu1 %v17674_v61  ;;  %v16025_v35 = vld [vmem:[#allocation7 + $0xa30] ss:$24 sps:$4 sm:$0xff]  }
 0x589   : > { %9953 = vmatpush1.bf16.msra.mxu0 %v15998_v11  ;;  %9956 = vmatprep.mubr.bf16.mxu0 %v17674_v61  ;;  %v16030_v11 = vld [vmem:[#allocation7 + $0xa64] ss:$24 sps:$4 sm:$0xff]  }
 0x58a   : > { %9615 = vmatprep.subr.bf16.mxu1 %v16003_v1  ;;  %9954 = vmatprep.subr.bf16.mxu0 %v16006_v42  ;;  %v16028_v1 = vld [vmem:[#allocation7 + $0xa60] ss:$24 sps:$4 sm:$0xff]   ;;  %v16033_v42 = vld [vmem:[#allocation7 + $0xa94] ss:$24 sps:$4 sm:$0xff]  }
 0x58c   : > { %9616 = vmatpush1.bf16.msra.mxu1 %v16001_v5  ;;  %v16031_v5 = vld [vmem:[#allocation7 + $0xa90] ss:$24 sps:$4 sm:$0xff]  }
 0x58d   : > { %9955 = vmatpush1.bf16.msra.mxu0 %v16004_v24  ;;  %10037 = vmatprep.subr.bf16.mxu1 %v16009_v52  ;;  %v16036_v24 = vld [vmem:[#allocation7 + $0xac4] ss:$24 sps:$4 sm:$0xff]   ;;  %v16034_v52 = vld [vmem:[#allocation7 + $0xac0] ss:$24 sps:$4 sm:$0xff]  }
 0x58f   : > { %9618 = vmatmul.mubr.bf16.vlgmr.msra.gmra.mrb[96].mxu1 %v17670_v46 }
 0x590   : > { %9957 = vmatmul.mubr.bf16.vlgmr.msra.gmra.mrb[96].mxu0 %v17670_v46  ;;  %9627 = vmatprep.mubr.bf16.mxu1 %v17694_v18 }
 0x591   : > { %9966 = vmatprep.mubr.bf16.mxu0 %v17694_v18  ;;  %10038 = vmatpush1.bf16.msra.mxu1 %v16007_v4  ;;  %v16039_v4 = vld [vmem:[#allocation7 + $0xaf4] ss:$24 sps:$4 sm:$0xff]  }
 0x592   : > { %10039 = vmatprep.subr.bf16.mxu1 %v16012_v0  ;;  %v16037_v0 = vld [vmem:[#allocation7 + $0xaf0] ss:$24 sps:$4 sm:$0xff]  }
 0x595   : > { %10040 = vmatpush1.bf16.msra.mxu1 %v16010_v33  ;;  %v16042_v33 = vld [vmem:[#allocation7 + $0xb24] ss:$24 sps:$4 sm:$0xff]  }
 0x596   : > { %10041 = vmatprep.subr.bf16.mxu1 %v16015_v20  ;;  %v16040_v20 = vld [vmem:[#allocation7 + $0xb20] ss:$24 sps:$4 sm:$0xff]  }
 0x597   : > { %9628 = vmatmul.mubr.bf16.gmra.mrb[100].mxu1 %v17690_v12 }
 0x598   : > { %9967 = vmatmul.mubr.bf16.gmra.mrb[100].mxu0 %v17690_v12  ;;  %9637 = vmatprep.mubr.bf16.mxu1 %v17714_v60 }
 0x599   : > { %9976 = vmatprep.mubr.bf16.mxu0 %v17714_v60  ;;  %10042 = vmatpush1.bf16.msra.mxu1 %v16013_v17  ;;  %v16045_v17 = vld [vmem:[#allocation7 + $0xb54] ss:$24 sps:$4 sm:$0xff]  }
 0x59a   : > { %10043 = vmatprep.subr.bf16.mxu1 %v16018_v57  ;;  %v16043_v57 = vld [vmem:[#allocation7 + $0xb50] ss:$24 sps:$4 sm:$0xff]  }
 0x59d   : > { %10044 = vmatpush1.bf16.msra.mxu1 %v16016_v34  ;;  %v16048_v34 = vld [vmem:[#allocation7 + $0xb84] ss:$24 sps:$4 sm:$0xff]  }
 0x59e   : > { %10045 = vmatprep.subr.bf16.mxu1 %v16021_v58  ;;  %v16046_v58 = vld [vmem:[#allocation7 + $0xb80] ss:$24 sps:$4 sm:$0xff]  }
 0x59f   : > { %9638 = vmatmul.mubr.bf16.gmra.mrb[104].mxu1 %v17710_v32 }
 0x5a0   : > { %9977 = vmatmul.mubr.bf16.gmra.mrb[104].mxu0 %v17710_v32  ;;  %9647 = vmatprep.mubr.bf16.mxu1 %v17734_v6 }
 0x5a1   : > { %9986 = vmatprep.mubr.bf16.mxu0 %v17734_v6  ;;  %10046 = vmatpush1.bf16.msra.mxu1 %v16019_v25  ;;  %v16051_v25 = vld [vmem:[#allocation7 + $0xbb4] ss:$24 sps:$4 sm:$0xff]  }
 0x5a2   : > { %10047 = vmatprep.subr.bf16.mxu1 %v16024_v50  ;;  %v16049_v50 = vld [vmem:[#allocation7 + $0xbb0] ss:$24 sps:$4 sm:$0xff]  }
 0x5a5   : > { %10048 = vmatpush1.bf16.msra.mxu1 %v16022_v51  ;;  %v16054_v51 = vld [vmem:[#allocation7 + $0xbe4] ss:$24 sps:$4 sm:$0xff]  }
 0x5a6   : > { %10049 = vmatprep.subr.bf16.mxu1 %v16027_v59  ;;  %v16052_v59 = vld [vmem:[#allocation7 + $0xbe0] ss:$24 sps:$4 sm:$0xff]  }
 0x5a7   : > { %9648 = vmatmul.mubr.bf16.gmra.mrb[108].mxu1 %v17730_v62 }
 0x5a8   : > { %9987 = vmatmul.mubr.bf16.gmra.mrb[108].mxu0 %v17730_v62  ;;  %9657 = vmatprep.mubr.bf16.mxu1 %v17754_v53 }
 0x5a9   : > { %9996 = vmatprep.mubr.bf16.mxu0 %v17754_v53  ;;  %10050 = vmatpush1.bf16.msra.mxu1 %v16025_v35  ;;  %v16057_v35 = vld [vmem:[#allocation7 + $0xc14] ss:$24 sps:$4 sm:$0xff]  }
 0x5aa   : > { %10051 = vmatprep.subr.bf16.mxu1 %v16030_v11  ;;  %v16151_v11 = vld [vmem:[#allocation8 + $0x40] sm:$0xff]  }
 0x5ab   : > { %13252 = vmatprep.subr.bf16.mxu0 %v16151_v11  ;;  %v16163_v11 = vld [vmem:[#allocation8 + $0x70] sm:$0xff]  }
 0x5ad   : > { %10052 = vmatpush1.bf16.msra.mxu1 %v16028_v1  ;;  %v16055_v1 = vld [vmem:[#allocation7 + $0xc10] ss:$24 sps:$4 sm:$0xff]  }
 0x5ae   : > { %10053 = vmatprep.subr.bf16.mxu1 %v16033_v42  ;;  %v16152_v42 = vld [vmem:[#allocation8] sm:$0xff]  }
 0x5af   : > { %9658 = vmatmul.mubr.bf16.gmra.mrb[112].mxu1 %v17750_v14  ;;  %13253 = vmatpush3.bf16.msra.mxu0 %v16152_v42  ;;  %v16164_v42 = vld [vmem:[#allocation8 + $0x30] sm:$0xff]  }
 0x5b0   : > { %9997 = vmatmul.mubr.bf16.gmra.mrb[112].mxu0 %v17750_v14  ;;  %9667 = vmatprep.mubr.bf16.mxu1 %v17774_v47 }
 0x5b1   : > { %10006 = vmatprep.mubr.bf16.mxu0 %v17774_v47  ;;  %10054 = vmatpush1.bf16.msra.mxu1 %v16031_v5  ;;  %v16060_v5 = vld [vmem:[#allocation7 + $0xc44] ss:$24 sps:$4 sm:$0xff]  }
 0x5b2   : > { %10055 = vmatprep.subr.bf16.mxu1 %v16036_v24  ;;  %v16153_v24 = vld [vmem:[#allocation8 + $0x48] sm:$0xff]  }
 0x5b3   : > { %13254 = vmatprep.subr.bf16.mxu0 %v16153_v24  ;;  %v16166_v24 = vld [vmem:[#allocation8 + $0x38] sm:$0xff]  }
 0x5b5   : > { %10056 = vmatpush1.bf16.msra.mxu1 %v16034_v52  ;;  %v16058_v52 = vld [vmem:[#allocation7 + $0xc40] ss:$24 sps:$4 sm:$0xff]  }
 0x5b6   : > { %10057 = vmatprep.subr.bf16.mxu1 %v16039_v4  ;;  %v16155_v4 = vld [vmem:[#allocation8 + $0x50] sm:$0xff]  }
 0x5b7   : > { %9668 = vmatmul.mubr.bf16.gmra.mrb[116].mxu1 %v17770_v30 }
 0x5b8   : > { %10007 = vmatmul.mubr.bf16.gmra.mrb[116].mxu0 %v17770_v30  ;;  %9677 = vmatprep.mubr.bf16.mxu1 %v17794_v29 }
 0x5b9   : > { %10016 = vmatprep.mubr.bf16.mxu0 %v17794_v29  ;;  %10058 = vmatpush1.bf16.msra.mxu1 %v16037_v0  ;;  %v16063_v0 = vld [vmem:[#allocation7 + $0xc74] ss:$24 sps:$4 sm:$0xff]  }
 0x5ba   : > { %10059 = vmatprep.subr.bf16.mxu1 %v16042_v33  ;;  %v16156_v33 = vld [vmem:[#allocation8 + $0x10] sm:$0xff]  }
 0x5bd   : > { %10060 = vmatpush1.bf16.msra.mxu1 %v16040_v20  ;;  %v16061_v20 = vld [vmem:[#allocation7 + $0xc70] ss:$24 sps:$4 sm:$0xff]  }
 0x5be   : > { %10061 = vmatprep.subr.bf16.mxu1 %v16045_v17  ;;  %v16066_v17 = vld [vmem:[#allocation7 + $0xca4] ss:$24 sps:$4 sm:$0xff]  }
 0x5bf   : > { %9678 = vmatmul.mubr.bf16.gmra.mrb[120].mxu1 %v17790_v45 }
 0x5c0   : > { %10017 = vmatmul.mubr.bf16.gmra.mrb[120].mxu0 %v17790_v45  ;;  %9687 = vmatprep.mubr.bf16.mxu1 %v17814_v31 }
 0x5c1   : > { %10026 = vmatprep.mubr.bf16.mxu0 %v17814_v31  ;;  %10062 = vmatpush1.bf16.msra.mxu1 %v16043_v57  ;;  %v16158_v57 = vld [vmem:[#allocation8 + $0x18] sm:$0xff]  }
 0x5c2   : > { %10063 = vmatprep.subr.bf16.mxu1 %v16048_v34  ;;  %v16159_v34 = vld [vmem:[#allocation8 + $0x60] sm:$0xff]  }
 0x5c5   : > { %10064 = vmatpush1.bf16.msra.mxu1 %v16046_v58  ;;  %v16069_v58 = vld [vmem:[#allocation7 + $0xcd4] ss:$24 sps:$4 sm:$0xff]  }
 0x5c6   : > { %10065 = vmatprep.subr.bf16.mxu1 %v16051_v25  ;;  %v16160_v25 = vld [vmem:[#allocation8 + $0x20] sm:$0xff]  }
 0x5c7   : > { %9688 = vmatmul.mubr.bf16.gmra.mrb[124].mxu1 %v17810_v9 }
 0x5c8   : > { %10027 = vmatmul.mubr.bf16.gmra.mrb[124].mxu0 %v17810_v9  ;;  %10069 = vmatprep.mubr.bf16.mxu1 %v17672_v43  ;;  %v16154_v43 = vld [vmem:[#allocation8 + $0x8] sm:$0xff]  }
 0x5c9   : > { %10066 = vmatpush1.bf16.msra.mxu1 %v16049_v50  ;;  %13255 = vmatpush3.bf16.msra.mxu0 %v16154_v43  ;;  %v16067_v50 = vld [vmem:[#allocation7 + $0xcd0] ss:$24 sps:$4 sm:$0xff]  }
 0x5ca   : > { %10067 = vmatprep.subr.bf16.mxu1 %v16054_v51  ;;  %13256 = vmatprep.subr.bf16.mxu0 %v16155_v4  ;;  %v16072_v51 = vld [vmem:[#allocation7 + $0xd04] ss:$24 sps:$4 sm:$0xff]   ;;  %v16079_v43 = vld [vmem:[#allocation7 + $0xd90] ss:$24 sps:$4 sm:$0xff]  }
 0x5cb   : > { %v16084_v4 = vld [vmem:[#allocation7 + $0xdc4] ss:$24 sps:$4 sm:$0xff]  }
 0x5cd   : > { %10068 = vmatpush1.bf16.msra.mxu1 %v16052_v59  ;;  %13257 = vmatpush3.bf16.msra.mxu0 %v16156_v33  ;;  %v16162_v59 = vld [vmem:[#allocation8 + $0x28] sm:$0xff]   ;;  %v16090_v33 = vld [vmem:[#allocation7 + $0xe24] ss:$24 sps:$4 sm:$0xff]  }
 0x5ce   : > { %10150 = vmatprep.subr.bf16.mxu1 %v16057_v35  ;;  %v16075_v35 = vld [vmem:[#allocation7 + $0xd34] ss:$24 sps:$4 sm:$0xff]  }
 0x5d0   : > { %10070 = vmatmul.mubr.bf16.vlgmr.msra.gmra.mrb[128].mxu1 %v17668_v36  ;;  %v16157_v36 = vld [vmem:[#allocation8 + $0x58] sm:$0xff]  }
 0x5d1   : > { %10079 = vmatprep.mubr.bf16.mxu1 %v17692_v3  ;;  %10151 = vmatpush1.bf16.msra.mxu1 %v16055_v1  ;;  %v16064_v3 = vld [vmem:[#allocation7 + $0xca0] ss:$24 sps:$4 sm:$0xff]   ;;  %v16073_v1 = vld [vmem:[#allocation7 + $0xd30] ss:$24 sps:$4 sm:$0xff]  }
 0x5d2   : > { %10152 = vmatprep.subr.bf16.mxu1 %v16060_v5  ;;  %13258 = vmatprep.subr.bf16.mxu0 %v16157_v36  ;;  %v16078_v5 = vld [vmem:[#allocation7 + $0xd64] ss:$24 sps:$4 sm:$0xff]   ;;  %v16094_v36 = vld [vmem:[#allocation7 + $0xe80] ss:$24 sps:$4 sm:$0xff]  }
 0x5d3   : > { %13259 = vmatpush3.bf16.msra.mxu0 %v16158_v57  ;;  %v16100_v57 = vld [vmem:[#allocation7 + $0xee0] ss:$24 sps:$4 sm:$0xff]  }
 0x5d4   : > { %13260 = vmatprep.subr.bf16.mxu0 %v16159_v34  ;;  %v16105_v34 = vld [vmem:[#allocation7 + $0xf14] ss:$24 sps:$4 sm:$0xff]  }
 0x5d5   : > { %10153 = vmatpush1.bf16.msra.mxu1 %v16058_v52  ;;  %v16081_v52 = vld [vmem:[#allocation7 + $0xd94] ss:$24 sps:$4 sm:$0xff]  }
 0x5d6   : > { %10154 = vmatprep.subr.bf16.mxu1 %v16063_v0  ;;  %v16087_v0 = vld [vmem:[#allocation7 + $0xdf4] ss:$24 sps:$4 sm:$0xff]  }
 0x5d7   : > { %13261 = vmatpush3.bf16.msra.mxu0 %v16160_v25  ;;  %v16106_v25 = vld [vmem:[#allocation7 + $0xf40] ss:$24 sps:$4 sm:$0xff]  }
 0x5d8   : > { %10080 = vmatmul.mubr.bf16.gmra.mrb[132].mxu1 %v17688_v41  ;;  %v16161_v41 = vld [vmem:[#allocation8 + $0x68] sm:$0xff]  }
 0x5d9   : > { %10089 = vmatprep.mubr.bf16.mxu1 %v17712_v10  ;;  %10155 = vmatpush1.bf16.msra.mxu1 %v16061_v20  ;;  %v16070_v10 = vld [vmem:[#allocation7 + $0xd00] ss:$24 sps:$4 sm:$0xff]  }
 0x5da   : > { %10156 = vmatprep.subr.bf16.mxu1 %v16066_v17  ;;  %13262 = vmatprep.subr.bf16.mxu0 %v16161_v41  ;;  %v16088_v20 = vld [vmem:[#allocation7 + $0xe20] ss:$24 sps:$4 sm:$0xff]   ;;  %v16093_v17 = vld [vmem:[#allocation7 + $0xe54] ss:$24 sps:$4 sm:$0xff]  }
 0x5db   : > { %13263 = vmatpush3.bf16.msra.mxu0 %v16162_v59  ;;  %v16117_v41 = vld [vmem:[#allocation7 + $0xfd4] ss:$24 sps:$4 sm:$0xff]  }
 0x5dc   : > { %13264 = vmatprep.subr.bf16.mxu0 %v16163_v11  ;;  %v16123_v59 = vld [vmem:[#allocation7 + $0x1034] ss:$24 sps:$4 sm:$0xff]  }
 0x5dd   : > { %10157 = vmatpush1.bf16.msra.mxu1 %v16064_v3  ;;  %v16099_v3 = vld [vmem:[#allocation7 + $0xeb4] ss:$24 sps:$4 sm:$0xff]  }
 0x5de   : > { %10158 = vmatprep.subr.bf16.mxu1 %v16069_v58  ;;  %v16167_v58 = vld [vmem:[#allocation8 + $0xc0] sm:$0xff]   ;;  %v16129_v11 = vld [vmem:[#allocation7 + $0x1094] ss:$24 sps:$4 sm:$0xff]  }
 0x5df   : > { %13265 = vmatpush3.bf16.msra.mxu0 %v16164_v42  ;;  %v18479_v42 = vld [vmem:[#allocation28_spill] sm:$0xff] }
 0x5e0   : > { %10090 = vmatmul.mubr.bf16.gmra.mrb[136].mxu1 %v17708_v37  ;;  %v16165_v37 = vld [vmem:[#allocation8 + $0x78] sm:$0xff]  }
 0x5e1   : > { %10099 = vmatprep.mubr.bf16.mxu1 %v17732_v26  ;;  %10159 = vmatpush1.bf16.msra.mxu1 %v16067_v50  ;;  %v16076_v26 = vld [vmem:[#allocation7 + $0xd60] ss:$24 sps:$4 sm:$0xff]   ;;  %v16109_v50 = vld [vmem:[#allocation7 + $0xf70] ss:$24 sps:$4 sm:$0xff]  }
 0x5e2   : > { %10160 = vmatprep.subr.bf16.mxu1 %v16072_v51  ;;  %13266 = vmatprep.subr.bf16.mxu0 %v16165_v37  ;;  %v16112_v51 = vld [vmem:[#allocation7 + $0xfa0] ss:$24 sps:$4 sm:$0xff]   ;;  %v16135_v37 = vld [vmem:[#allocation7 + $0x10f4] ss:$24 sps:$4 sm:$0xff]  }
 0x5e3   : > { %13267 = vmatpush3.bf16.msra.mxu0 %v16166_v24  ;;  %v16136_v24 = vld [vmem:[#allocation7 + $0x1120] ss:$24 sps:$4 sm:$0xff]  }
 0x5e4   : > { %13316 = vmatprep.subr.bf16.mxu0 %v16167_v58 }
 0x5e5   : > { %10161 = vmatpush1.bf16.msra.mxu1 %v16070_v10  ;;  %v16118_v10 = vld [vmem:[#allocation7 + $0x1000] ss:$24 sps:$4 sm:$0xff]  }
 0x5e6   : > { %10162 = vmatprep.subr.bf16.mxu1 %v16075_v35  ;;  %v16124_v35 = vld [vmem:[#allocation7 + $0x1060] ss:$24 sps:$4 sm:$0xff]  }
 0x5e8   : > { %10100 = vmatmul.mubr.bf16.gmra.mrb[140].mxu1 %v17728_v13  ;;  %v16082_v13 = vld [vmem:[#allocation7 + $0xdc0] ss:$24 sps:$4 sm:$0xff]  }
 0x5e9   : > { %10109 = vmatprep.mubr.bf16.mxu1 %v17752_v39  ;;  %10163 = vmatpush1.bf16.msra.mxu1 %v16073_v1  ;;  %v16085_v39 = vld [vmem:[#allocation7 + $0xdf0] ss:$24 sps:$4 sm:$0xff]  }
 0x5ea   : > { %10164 = vmatprep.subr.bf16.mxu1 %v16078_v5  ;;  %v18478_v1 = vld [vmem:[#allocation26_spill] sm:$0xff]  ;;  %v16130_v5 = vld [vmem:[#allocation7 + $0x10c0] ss:$24 sps:$4 sm:$0xff]  }
 0x5ed   : > { %10165 = vmatpush1.bf16.msra.mxu1 %v16076_v26  ;;  %v18480_v26 = vld [vmem:[#allocation27_spill] sm:$0xff] }
 0x5ee   : > { %10166 = vmatprep.subr.bf16.mxu1 %v16081_v52  ;;  %v16141_v52 = vld [vmem:[#allocation7 + $0x1154] ss:$24 sps:$4 sm:$0xff]  }
 0x5f0   : > { %10110 = vmatmul.mubr.bf16.gmra.mrb[144].mxu1 %v17748_v7  ;;  %v16091_v7 = vld [vmem:[#allocation7 + $0xe50] ss:$24 sps:$4 sm:$0xff]  }
 0x5f1   : > { %10119 = vmatprep.mubr.bf16.mxu1 %v17772_v15  ;;  %10167 = vmatpush1.bf16.msra.mxu1 %v16079_v43  ;;  %v16096_v15 = vld [vmem:[#allocation7 + $0xe84] ss:$24 sps:$4 sm:$0xff]   ;;  %v16139_v43 = vld [vmem:[#allocation7 + $0x1150] ss:$24 sps:$4 sm:$0xff]  }
 0x5f2   : > { %10168 = vmatprep.subr.bf16.mxu1 %v16084_v4  ;;  %v16144_v4 = vld [vmem:[#allocation7 + $0x1184] ss:$24 sps:$4 sm:$0xff]  }
 0x5f5   : > { %10169 = vmatpush1.bf16.msra.mxu1 %v16082_v13  ;;  %v16142_v13 = vld [vmem:[#allocation7 + $0x1180] ss:$24 sps:$4 sm:$0xff]  }
 0x5f6   : > { %10170 = vmatprep.subr.bf16.mxu1 %v16087_v0  ;;  %v16147_v0 = vld [vmem:[#allocation7 + $0x11b4] ss:$24 sps:$4 sm:$0xff]  }
 0x5f8   : > { %10120 = vmatmul.mubr.bf16.gmra.mrb[148].mxu1 %v17768_v16  ;;  %v16097_v16 = vld [vmem:[#allocation7 + $0xeb0] ss:$24 sps:$4 sm:$0xff]  }
 0x5f9   : > { %10129 = vmatprep.mubr.bf16.mxu1 %v17792_v28  ;;  %10171 = vmatpush1.bf16.msra.mxu1 %v16085_v39  ;;  %v16102_v28 = vld [vmem:[#allocation7 + $0xee4] ss:$24 sps:$4 sm:$0xff]   ;;  %v16145_v39 = vld [vmem:[#allocation7 + $0x11b0] ss:$24 sps:$4 sm:$0xff]  }
 0x5fa   : > { %10172 = vmatprep.subr.bf16.mxu1 %v16090_v33  ;;  %v16148_v33 = vld [vmem:[#allocation7 + $0x11e0] ss:$24 sps:$4 sm:$0xff]  }
 0x5fd   : > { %10173 = vmatpush1.bf16.msra.mxu1 %v16088_v20 }
 0x5fe   : > { %10174 = vmatprep.subr.bf16.mxu1 %v16093_v17  ;;  %v16266_v17 = vld [vmem:[#allocation11 + $0x8] sm:$0x77] }
 0x600   : > { %10130 = vmatmul.mubr.bf16.gmra.mrb[152].mxu1 %v17788_v19  ;;  %v16103_v19 = vld [vmem:[#allocation7 + $0xf10] ss:$24 sps:$4 sm:$0xff]  }
 0x601   : > { %10139 = vmatprep.mubr.bf16.mxu1 %v17812_v23  ;;  %10175 = vmatpush1.bf16.msra.mxu1 %v16091_v7  ;;  %v16108_v23 = vld [vmem:[#allocation7 + $0xf44] ss:$24 sps:$4 sm:$0xff]  }
 0x602   : > { %10176 = vmatprep.subr.bf16.mxu1 %v16096_v15 }
 0x605   : > { %10177 = vmatpush1.bf16.msra.mxu1 %v16094_v36 }
 0x606   : > { %10178 = vmatprep.subr.bf16.mxu1 %v16099_v3 }
 0x608   : > { %10140 = vmatmul.mubr.bf16.gmra.mrb[156].mxu1 %v17808_v54  ;;  %v16111_v54 = vld [vmem:[#allocation7 + $0xf74] ss:$24 sps:$4 sm:$0xff]  }
 0x609   : > { %10179 = vmatpush1.bf16.msra.mxu1 %v16097_v16  ;;  %10182 = vmatprep.mubr.bf16.mxu1 %v17841_v63  ;;  %v16114_v63 = vld [vmem:[#allocation7 + $0xfa4] ss:$24 sps:$4 sm:$0xff]  }
 0x60a   : > { %10180 = vmatprep.subr.bf16.mxu1 %v16102_v28 }
 0x60d   : > { %10181 = vmatpush1.bf16.msra.mxu1 %v16100_v57 }
 0x60e   : > { %10263 = vmatprep.subr.bf16.mxu1 %v16105_v34 }
 0x610   : > { %10183 = vmatmul.mubr.bf16.vlgmr.msra.gmra.mrb[128].mxu1 %v17839_v48  ;;  %v16115_v48 = vld [vmem:[#allocation7 + $0xfd0] ss:$24 sps:$4 sm:$0xff]  }
 0x611   : > { %10192 = vmatprep.mubr.bf16.mxu1 %v17853_v2  ;;  %10264 = vmatpush1.bf16.msra.mxu1 %v16103_v19  ;;  %v16120_v2 = vld [vmem:[#allocation7 + $0x1004] ss:$24 sps:$4 sm:$0xff]  }
 0x612   : > { %10265 = vmatprep.subr.bf16.mxu1 %v16108_v23 }
 0x615   : > { %10266 = vmatpush1.bf16.msra.mxu1 %v16106_v25 }
 0x616   : > { %10267 = vmatprep.subr.bf16.mxu1 %v16111_v54 }
 0x618   : > { %10193 = vmatmul.mubr.bf16.gmra.mrb[132].mxu1 %v17851_v49  ;;  %v16121_v49 = vld [vmem:[#allocation7 + $0x1030] ss:$24 sps:$4 sm:$0xff]  }
 0x619   : > { %10202 = vmatprep.mubr.bf16.mxu1 %v17865_v22  ;;  %10268 = vmatpush1.bf16.msra.mxu1 %v16109_v50  ;;  %v16126_v22 = vld [vmem:[#allocation7 + $0x1064] ss:$24 sps:$4 sm:$0xff]  }
 0x61a   : > { %10269 = vmatprep.subr.bf16.mxu1 %v16114_v63 }
 0x61d   : > { %10270 = vmatpush1.bf16.msra.mxu1 %v16112_v51 }
 0x61e   : > { %10271 = vmatprep.subr.bf16.mxu1 %v16117_v41 }
 0x620   : > { %10203 = vmatmul.mubr.bf16.gmra.mrb[136].mxu1 %v17863_v21  ;;  %v16127_v21 = vld [vmem:[#allocation7 + $0x1090] ss:$24 sps:$4 sm:$0xff]  }
 0x621   : > { %10212 = vmatprep.mubr.bf16.mxu1 %v17877_v8  ;;  %10272 = vmatpush1.bf16.msra.mxu1 %v16115_v48  ;;  %v16132_v8 = vld [vmem:[#allocation7 + $0x10c4] ss:$24 sps:$4 sm:$0xff]  }
 0x622   : > { %10273 = vmatprep.subr.bf16.mxu1 %v16120_v2 }
 0x625   : > { %10274 = vmatpush1.bf16.msra.mxu1 %v16118_v10 }
 0x626   : > { %10275 = vmatprep.subr.bf16.mxu1 %v16123_v59 }
 0x628   : > { %10213 = vmatmul.mubr.bf16.gmra.mrb[140].mxu1 %v17875_v38  ;;  %v16133_v38 = vld [vmem:[#allocation7 + $0x10f0] ss:$24 sps:$4 sm:$0xff]  }
 0x629   : > { %10222 = vmatprep.mubr.bf16.mxu1 %v17889_v40  ;;  %10276 = vmatpush1.bf16.msra.mxu1 %v16121_v49  ;;  %v16138_v40 = vld [vmem:[#allocation7 + $0x1124] ss:$24 sps:$4 sm:$0xff]  }
 0x62a   : > { %10277 = vmatprep.subr.bf16.mxu1 %v16126_v22 }
 0x62d   : > { %10278 = vmatpush1.bf16.msra.mxu1 %v16124_v35 }
 0x62e   : > { %10279 = vmatprep.subr.bf16.mxu1 %v16129_v11 }
 0x630   : > { %10223 = vmatmul.mubr.bf16.gmra.mrb[144].mxu1 %v18478_v1 }
 0x631   : > { %10232 = vmatprep.mubr.bf16.mxu1 %v18479_v42  ;;  %10280 = vmatpush1.bf16.msra.mxu1 %v16127_v21 }
 0x632   : > { %10281 = vmatprep.subr.bf16.mxu1 %v16132_v8 }
 0x635   : > { %10282 = vmatpush1.bf16.msra.mxu1 %v16130_v5  ;;  %v16168_v5 = vld [vmem:[#allocation8 + $0x80] sm:$0xff]  }
 0x636   : > { %10283 = vmatprep.subr.bf16.mxu1 %v16135_v37 }
 0x638   : > { %10233 = vmatmul.mubr.bf16.gmra.mrb[148].mxu1 %v18480_v26 }
 0x639   : > { %10242 = vmatprep.mubr.bf16.mxu1 %v17913_v56  ;;  %10284 = vmatpush1.bf16.msra.mxu1 %v16133_v38  ;;  %v16150_v56 = vld [vmem:[#allocation7 + $0x11e4] ss:$24 sps:$4 sm:$0xff]  }
 0x63a   : > { %10285 = vmatprep.subr.bf16.mxu1 %v16138_v40 }
 0x63d   : > { %10286 = vmatpush1.bf16.msra.mxu1 %v16136_v24  ;;  %v16169_v24 = vld [vmem:[#allocation8 + $0xc8] sm:$0xff]  }
 0x63e   : > { %10287 = vmatprep.subr.bf16.mxu1 %v16141_v52 }
 0x640   : > { %10243 = vmatmul.mubr.bf16.gmra.mrb[152].mxu1 %v17911_v55  ;;  %v18481_v55 = vld [vmem:[#allocation34_spill] sm:$0xff] }
 0x641   : > { %10252 = vmatprep.mubr.bf16.mxu1 %v17925_v27  ;;  %10288 = vmatpush1.bf16.msra.mxu1 %v16139_v43  ;;  %v17999_v27 = vsub.s32 2, %v18481_v55  ;;  %v18003_v20 = vsub.s32 6, %v18481_v55 }
 0x642   : > { %10289 = vmatprep.subr.bf16.mxu1 %v16144_v4 }
 0x643   : > { %v7876_v7 = vrot.slane %v16266_v17, %v17999_v27 }
 0x645   : > { %10290 = vmatpush1.bf16.msra.mxu1 %v16142_v13 }
 0x646   : > { %10291 = vmatprep.subr.bf16.mxu1 %v16147_v0 }
 0x648   : > { %10253 = vmatmul.mubr.bf16.gmra.mrb[156].mxu1 %v17923_v44  ;;  %v16265_v44 = vld [vmem:[#allocation11] sm:$0x77] }
 0x649   : > { %10292 = vmatpush1.bf16.msra.mxu1 %v16145_v39  ;;  %10295 = vmatprep.mubr.bf16.mxu1 %v17674_v61  ;;  %v7868_v61 = vrot.slane %v16265_v44, %v17999_v27 }
 0x64a   : > { %10293 = vmatprep.subr.bf16.mxu1 %v16150_v56 }
 0x64b   : > { %v18011_v15 = vrot.slane %v7868_v61, %v17999_v27  ;;  %v16170_v61 = vld [vmem:[#allocation8 + $0x88] sm:$0xff]  }
 0x64d   : > { %10294 = vmatpush1.bf16.msra.mxu1 %v16148_v33 }
 0x650   : > { %10296 = vmatmul.mubr.bf16.vlgmr.msra.gmra.mrb[128].mxu1 %v17670_v46  ;;  %v7872_v46 = vrot.slane %v16265_v44, %v18003_v20 }
 0x651   : > { %10305 = vmatprep.mubr.bf16.mxu1 %v17694_v18  ;;  %v7880_v18 = vrot.slane %v16266_v17, %v18003_v20 }
 0x653   : > { %v18022_v36 = vrot.slane %v7880_v18, %v17999_v27  ;;  %v16171_v18 = vld [vmem:[#allocation8 + $0xd0] sm:$0xff]  }
 0x658   : > { %10306 = vmatmul.mubr.bf16.gmra.mrb[132].mxu1 %v17690_v12  ;;  %v18015_v12 = vrot.slane %v7876_v7, %v17999_v27 }
 0x659   : > { %10315 = vmatprep.mubr.bf16.mxu1 %v17714_v60  ;;  %v18018_v60 = vrot.slane %v7872_v46, %v17999_v27 }
 0x660   : > { %10316 = vmatmul.mubr.bf16.gmra.mrb[136].mxu1 %v17710_v32 }
 0x661   : > { %10325 = vmatprep.mubr.bf16.mxu1 %v17734_v6 }
 0x662   : > { %v9619_v3 = vpop.f32.mrb[96].mxu1 }
 0x663   : > { %v13828_v16 = vadd.f32 %v9619_v3, %v18011_v15  ;;  %v9958_v28 = vpop.f32.mrb[96].mxu0  ;;  %v9621_v57 = vpop.f32.mrb[97].mxu1 }
 0x664   : > { %v13860_v34 = vadd.f32 %v9958_v28, %v18015_v12  ;;  %v13829_v32 = vadd.f32 %v9621_v57, %v18018_v60  ;;  %v9960_v58 = vpop.f32.mrb[97].mxu0  ;;  %v9623_v19 = vpop.f32.mrb[98].mxu1 }
 0x665   : > { %v13861_v23 = vadd.f32 %v9960_v58, %v18022_v36  ;;  %v13830_v25 = vadd.f32 %v9623_v19, %v18011_v15  ;;  %v9962_v54 = vpop.f32.mrb[98].mxu0  ;;  %v9625_v6 = vpop.f32.mrb[99].mxu1  ;;  %v10376_v41 = vmax.f32 %v13828_v16, 0.0 }
 0x666   : > { %v13862_v50 = vadd.f32 %v9962_v54, %v18015_v12  ;;  %v13831_v63 = vadd.f32 %v9625_v6, %v18018_v60  ;;  %v9964_v51 = vpop.f32.mrb[99].mxu0  ;;  %v10378_v10 = vmax.f32 %v13860_v34, 0.0  ;;  %v10377_v59 = vmax.f32 %v13829_v32, 0.0  ;;  %v16172_v54 = vld [vmem:[#allocation8 + $0x90] sm:$0xff]  }
 0x667   : > { %v10382_v48 = vmax.f32 %v13830_v25, 0.0  ;;  %v13863_v2 = vadd.f32 %v9964_v51, %v18022_v36  ;;  %v10379_v35 = vmax.f32 %v13861_v23, 0.0 }
 0x668   : > { %v10384_v49 = vmax.f32 %v13862_v50, 0.0  ;;  %v10383_v22 = vmax.f32 %v13831_v63, 0.0  ;;  %10326 = vmatmul.mubr.bf16.gmra.mrb[140].mxu1 %v17730_v62 }
 0x669   : > { %v10568_v11 = vpack.c.bf16 %v10382_v48, %v10376_v41  ;;  %v10385_v21 = vmax.f32 %v13863_v2, 0.0  ;;  %10335 = vmatprep.mubr.bf16.mxu1 %v17754_v53  ;;  %v16173_v41 = vld [vmem:[#allocation8 + $0xd8] sm:$0xff]  }
 0x66a   : > { %v18034_v8 = vpack.c.bf16 %v10384_v49, %v10378_v10  ;;  %v10569_v1 = vpack.c.bf16 %v10383_v22, %v10377_v59  ;;  %v9629_v42 = vpop.f32.mrb[100].mxu1 }
 0x66b   : > { %v18036_v37 = vpack.c.bf16 %v10385_v21, %v10379_v35  ;;  %v13832_v38 = vadd.f32 %v9629_v42, %v18011_v15  ;;  %v9968_v40 = vpop.f32.mrb[100].mxu0  ;;  %v9631_v26 = vpop.f32.mrb[101].mxu1 }
 0x66c   : > { %v13864_v52 = vadd.f32 %v9968_v40, %v18015_v12  ;;  %v13833_v62 = vadd.f32 %v9631_v26, %v18018_v60  ;;  %v9970_v43 = vpop.f32.mrb[101].mxu0  ;;  %v9633_v4 = vpop.f32.mrb[102].mxu1  ;;  %10940 = vmatprep.mubr.bf16.mxu0 %v10569_v1  ;;  %v16174_v1 = vld [vmem:[#allocation8 + $0x98] sm:$0xff]   ;;  %v16175_v40 = vld [vmem:[#allocation8 + $0xe0] sm:$0xff]  }
 0x66d   : > { %v13865_v53 = vadd.f32 %v9970_v43, %v18022_v36  ;;  %v13834_v13 = vadd.f32 %v9633_v4, %v18011_v15  ;;  %v9972_v0 = vpop.f32.mrb[102].mxu0  ;;  %v9635_v39 = vpop.f32.mrb[103].mxu1  ;;  %10941 = vmatmul.mubr.bf16.vlgmr.msra.gmra.mrb[128].mxu0 %v10568_v11  ;;  %v10388_v17 = vmax.f32 %v13832_v38, 0.0 }
 0x66e   : > { %v13866_v56 = vadd.f32 %v9972_v0, %v18015_v12  ;;  %v13835_v33 = vadd.f32 %v9635_v39, %v18018_v60  ;;  %v9974_v44 = vpop.f32.mrb[103].mxu0  ;;  %13317 = vmatpush3.bf16.msra.mxu0 %v16168_v5  ;;  %v10390_v3 = vmax.f32 %v13864_v52, 0.0  ;;  %v10389_v16 = vmax.f32 %v13833_v62, 0.0 }
 0x66f   : > { %v10394_v7 = vmax.f32 %v13834_v13, 0.0  ;;  %v13867_v46 = vadd.f32 %v9974_v44, %v18022_v36  ;;  %13318 = vmatprep.subr.bf16.mxu0 %v16169_v24  ;;  %v10391_v34 = vmax.f32 %v13865_v53, 0.0 }
 0x670   : > { %v10396_v28 = vmax.f32 %v13866_v56, 0.0  ;;  %v10395_v57 = vmax.f32 %v13835_v33, 0.0  ;;  %10336 = vmatmul.mubr.bf16.gmra.mrb[144].mxu1 %v17750_v14  ;;  %v16176_v56 = vld [vmem:[#allocation8 + $0xa0] sm:$0xff]  }
 0x671   : > { %v10574_v32 = vpack.c.bf16 %v10394_v7, %v10388_v17  ;;  %v10397_v58 = vmax.f32 %v13867_v46, 0.0  ;;  %10345 = vmatprep.mubr.bf16.mxu1 %v17774_v47  ;;  %v16177_v7 = vld [vmem:[#allocation8 + $0xe8] sm:$0xff]  }
 0x672   : > { %v18048_v19 = vpack.c.bf16 %v10396_v28, %v10390_v3  ;;  %v10575_v23 = vpack.c.bf16 %v10395_v57, %v10389_v16  ;;  %v9639_v25 = vpop.f32.mrb[104].mxu1  ;;  %13319 = vmatpush3.bf16.msra.mxu0 %v16170_v61 }
 0x673   : > { %v18050_v6 = vpack.c.bf16 %v10397_v58, %v10391_v34  ;;  %v13836_v50 = vadd.f32 %v9639_v25, %v18011_v15  ;;  %v9978_v63 = vpop.f32.mrb[104].mxu0  ;;  %v9641_v51 = vpop.f32.mrb[105].mxu1  ;;  %13320 = vmatprep.subr.bf16.mxu0 %v16171_v18 }
 0x674   : > { %v13868_v14 = vadd.f32 %v9978_v63, %v18015_v12  ;;  %v13837_v48 = vadd.f32 %v9641_v51, %v18018_v60  ;;  %v9980_v2 = vpop.f32.mrb[105].mxu0  ;;  %v9643_v47 = vpop.f32.mrb[106].mxu1  ;;  %10948 = vmatprep.mubr.bf16.mxu0 %v10575_v23  ;;  %v16178_v23 = vld [vmem:[#allocation8 + $0xa8] sm:$0xff]   ;;  %v16179_v63 = vld [vmem:[#allocation8 + $0xf0] sm:$0xff]  }
 0x675   : > { %v13869_v10 = vadd.f32 %v9980_v2, %v18022_v36  ;;  %v13838_v59 = vadd.f32 %v9643_v47, %v18011_v15  ;;  %v9982_v49 = vpop.f32.mrb[106].mxu0  ;;  %v9645_v22 = vpop.f32.mrb[107].mxu1  ;;  %10949 = vmatmul.mubr.bf16.gmra.mrb[132].mxu0 %v10574_v32  ;;  %v10400_v42 = vmax.f32 %v13836_v50, 0.0 }
 0x676   : > { %v13870_v35 = vadd.f32 %v9982_v49, %v18015_v12  ;;  %v13839_v11 = vadd.f32 %v9645_v22, %v18018_v60  ;;  %v9984_v21 = vpop.f32.mrb[107].mxu0  ;;  %13321 = vmatpush3.bf16.msra.mxu0 %v16172_v54  ;;  %v10402_v26 = vmax.f32 %v13868_v14, 0.0  ;;  %v10401_v24 = vmax.f32 %v13837_v48, 0.0 }
 0x677   : > { %v10406_v5 = vmax.f32 %v13838_v59, 0.0  ;;  %v13871_v38 = vadd.f32 %v9984_v21, %v18022_v36  ;;  %13322 = vmatprep.subr.bf16.mxu0 %v16173_v41  ;;  %v10403_v43 = vmax.f32 %v13869_v10, 0.0 }
 0x678   : > { %v10408_v52 = vmax.f32 %v13870_v35, 0.0  ;;  %v10407_v62 = vmax.f32 %v13839_v11, 0.0  ;;  %10346 = vmatmul.mubr.bf16.gmra.mrb[148].mxu1 %v17770_v30  ;;  %v16180_v35 = vld [vmem:[#allocation8 + $0xb0] sm:$0xff]  }
 0x679   : > { %v10580_v4 = vpack.c.bf16 %v10406_v5, %v10400_v42  ;;  %v10409_v53 = vmax.f32 %v13871_v38, 0.0  ;;  %10355 = vmatprep.mubr.bf16.mxu1 %v17794_v29  ;;  %v16181_v5 = vld [vmem:[#allocation8 + $0xf8] sm:$0xff]  }
 0x67a   : > { %v18062_v13 = vpack.c.bf16 %v10408_v52, %v10402_v26  ;;  %v10581_v0 = vpack.c.bf16 %v10407_v62, %v10401_v24  ;;  %v9649_v39 = vpop.f32.mrb[108].mxu1  ;;  %13323 = vmatpush3.bf16.msra.mxu0 %v16174_v1 }
 0x67b   : > { %v18064_v33 = vpack.c.bf16 %v10409_v53, %v10403_v43  ;;  %v13840_v44 = vadd.f32 %v9649_v39, %v18011_v15  ;;  %v9988_v61 = vpop.f32.mrb[108].mxu0  ;;  %v9651_v17 = vpop.f32.mrb[109].mxu1  ;;  %13324 = vmatprep.subr.bf16.mxu0 %v16175_v40 }
 0x67c   : > { %v13872_v30 = vadd.f32 %v9988_v61, %v18015_v12  ;;  %v13841_v46 = vadd.f32 %v9651_v17, %v18018_v60  ;;  %v9990_v18 = vpop.f32.mrb[109].mxu0  ;;  %v9653_v29 = vpop.f32.mrb[110].mxu1  ;;  %10956 = vmatprep.mubr.bf16.mxu0 %v10581_v0  ;;  %v16182_v0 = vld [vmem:[#allocation8 + $0xb8] sm:$0xff]   ;;  %v16183_v61 = vld [vmem:[#allocation8 + $0x140] sm:$0xff]  }
 0x67d   : > { %v13873_v3 = vadd.f32 %v9990_v18, %v18022_v36  ;;  %v13842_v16 = vadd.f32 %v9653_v29, %v18011_v15  ;;  %v9992_v28 = vpop.f32.mrb[110].mxu0  ;;  %v9655_v57 = vpop.f32.mrb[111].mxu1  ;;  %10957 = vmatmul.mubr.bf16.gmra.mrb[136].mxu0 %v10580_v4  ;;  %v10412_v25 = vmax.f32 %v13840_v44, 0.0 }
 0x67e   : > { %v13874_v34 = vadd.f32 %v9992_v28, %v18015_v12  ;;  %v13843_v32 = vadd.f32 %v9655_v57, %v18018_v60  ;;  %v9994_v58 = vpop.f32.mrb[111].mxu0  ;;  %13325 = vmatpush3.bf16.msra.mxu0 %v16176_v56  ;;  %v10414_v51 = vmax.f32 %v13872_v30, 0.0  ;;  %v10413_v41 = vmax.f32 %v13841_v46, 0.0 }
 0x67f   : > { %v10418_v54 = vmax.f32 %v13842_v16, 0.0  ;;  %v13875_v50 = vadd.f32 %v9994_v58, %v18022_v36  ;;  %13326 = vmatprep.subr.bf16.mxu0 %v16177_v7  ;;  %v10415_v2 = vmax.f32 %v13873_v3, 0.0 }
 0x680   : > { %v10420_v14 = vmax.f32 %v13874_v34, 0.0  ;;  %v10419_v48 = vmax.f32 %v13843_v32, 0.0  ;;  %10356 = vmatmul.mubr.bf16.gmra.mrb[152].mxu1 %v17790_v45 }
 0x681   : > { %v10586_v47 = vpack.c.bf16 %v10418_v54, %v10412_v25  ;;  %v10421_v10 = vmax.f32 %v13875_v50, 0.0  ;;  %10365 = vmatprep.mubr.bf16.mxu1 %v17814_v31 }
 0x682   : > { %v18076_v59 = vpack.c.bf16 %v10420_v14, %v10414_v51  ;;  %v10587_v49 = vpack.c.bf16 %v10419_v48, %v10413_v41  ;;  %v9659_v22 = vpop.f32.mrb[112].mxu1  ;;  %13327 = vmatpush3.bf16.msra.mxu0 %v16178_v23 }
 0x683   : > { %v18078_v11 = vpack.c.bf16 %v10421_v10, %v10415_v2  ;;  %v13844_v21 = vadd.f32 %v9659_v22, %v18011_v15  ;;  %v9998_v1 = vpop.f32.mrb[112].mxu0  ;;  %v9661_v42 = vpop.f32.mrb[113].mxu1  ;;  %13328 = vmatprep.subr.bf16.mxu0 %v16179_v63 }
 0x684   : > { %v13876_v45 = vadd.f32 %v9998_v1, %v18015_v12  ;;  %v13845_v38 = vadd.f32 %v9661_v42, %v18018_v60  ;;  %v10000_v40 = vpop.f32.mrb[113].mxu0  ;;  %v9663_v31 = vpop.f32.mrb[114].mxu1  ;;  %10964 = vmatprep.mubr.bf16.mxu0 %v10587_v49 }
 0x685   : > { %v13877_v26 = vadd.f32 %v10000_v40, %v18022_v36  ;;  %v13846_v24 = vadd.f32 %v9663_v31, %v18011_v15  ;;  %v10002_v52 = vpop.f32.mrb[114].mxu0  ;;  %v9665_v62 = vpop.f32.mrb[115].mxu1  ;;  %10965 = vmatmul.mubr.bf16.gmra.mrb[140].mxu0 %v10586_v47  ;;  %v10424_v39 = vmax.f32 %v13844_v21, 0.0 }
 0x686   : > { %v13878_v43 = vadd.f32 %v10002_v52, %v18015_v12  ;;  %v13847_v4 = vadd.f32 %v9665_v62, %v18018_v60  ;;  %v10004_v53 = vpop.f32.mrb[115].mxu0  ;;  %13329 = vmatpush3.bf16.msra.mxu0 %v16180_v35  ;;  %v10426_v17 = vmax.f32 %v13876_v45, 0.0  ;;  %v10425_v7 = vmax.f32 %v13845_v38, 0.0 }
 0x687   : > { %v10430_v56 = vmax.f32 %v13846_v24, 0.0  ;;  %v13879_v44 = vadd.f32 %v10004_v53, %v18022_v36  ;;  %13330 = vmatprep.subr.bf16.mxu0 %v16181_v5  ;;  %v10427_v18 = vmax.f32 %v13877_v26, 0.0 }
 0x688   : > { %v10432_v30 = vmax.f32 %v13878_v43, 0.0  ;;  %v10431_v46 = vmax.f32 %v13847_v4, 0.0  ;;  %10366 = vmatmul.mubr.bf16.gmra.mrb[156].mxu1 %v17810_v9 }
 0x689   : > { %v10592_v29 = vpack.c.bf16 %v10430_v56, %v10424_v39  ;;  %v10433_v3 = vmax.f32 %v13879_v44, 0.0 }
 0x68a   : > { %v18089_v16 = vpack.c.bf16 %v10432_v30, %v10426_v17  ;;  %v10593_v28 = vpack.c.bf16 %v10431_v46, %v10425_v7  ;;  %v9669_v57 = vpop.f32.mrb[116].mxu1  ;;  %13331 = vmatpush3.bf16.msra.mxu0 %v16182_v0 }
 0x68b   : > { %v18091_v34 = vpack.c.bf16 %v10433_v3, %v10427_v18  ;;  %v13848_v32 = vadd.f32 %v9669_v57, %v18011_v15  ;;  %v10008_v58 = vpop.f32.mrb[116].mxu0  ;;  %v9671_v23 = vpop.f32.mrb[117].mxu1  ;;  %13380 = vmatprep.subr.bf16.mxu0 %v16183_v61 }
 0x68c   : > { %v13880_v25 = vadd.f32 %v10008_v58, %v18015_v12  ;;  %v13849_v54 = vadd.f32 %v9671_v23, %v18018_v60  ;;  %v10010_v9 = vpop.f32.mrb[117].mxu0  ;;  %v9673_v50 = vpop.f32.mrb[118].mxu1  ;;  %10972 = vmatprep.mubr.bf16.mxu0 %v10593_v28 }
 0x68d   : > { %v13881_v63 = vadd.f32 %v10010_v9, %v18022_v36  ;;  %v13850_v51 = vadd.f32 %v9673_v50, %v18011_v15  ;;  %v10012_v41 = vpop.f32.mrb[118].mxu0  ;;  %v9675_v14 = vpop.f32.mrb[119].mxu1  ;;  %10973 = vmatmul.mubr.bf16.gmra.mrb[144].mxu0 %v10592_v29  ;;  %v10436_v10 = vmax.f32 %v13848_v32, 0.0 }
 0x68e   : > { %v13882_v48 = vadd.f32 %v10012_v41, %v18015_v12  ;;  %v13851_v2 = vadd.f32 %v9675_v14, %v18018_v60  ;;  %v10014_v47 = vpop.f32.mrb[119].mxu0  ;;  %v10438_v35 = vmax.f32 %v13880_v25, 0.0  ;;  %v10437_v21 = vmax.f32 %v13849_v54, 0.0 }
 0x68f   : > { %v10442_v49 = vmax.f32 %v13850_v51, 0.0  ;;  %v13883_v22 = vadd.f32 %v10014_v47, %v18022_v36  ;;  %v10439_v5 = vmax.f32 %v13881_v63, 0.0 }
 0x690   : > { %v10444_v1 = vmax.f32 %v13882_v48, 0.0  ;;  %v10443_v42 = vmax.f32 %v13851_v2, 0.0 }
 0x691   : > { %v10598_v45 = vpack.c.bf16 %v10442_v49, %v10436_v10  ;;  %v10445_v38 = vmax.f32 %v13883_v22, 0.0 }
 0x692   : > { %v18101_v40 = vpack.c.bf16 %v10444_v1, %v10438_v35  ;;  %v10599_v31 = vpack.c.bf16 %v10443_v42, %v10437_v21  ;;  %v9679_v26 = vpop.f32.mrb[120].mxu1 }
 0x693   : > { %v18103_v24 = vpack.c.bf16 %v10445_v38, %v10439_v5  ;;  %v13852_v52 = vadd.f32 %v9679_v26, %v18011_v15  ;;  %v10018_v62 = vpop.f32.mrb[120].mxu0  ;;  %v9681_v43 = vpop.f32.mrb[121].mxu1 }
 0x694   : > { %v13884_v4 = vadd.f32 %v10018_v62, %v18015_v12  ;;  %v13853_v53 = vadd.f32 %v9681_v43, %v18018_v60  ;;  %v10020_v0 = vpop.f32.mrb[121].mxu0  ;;  %v9683_v39 = vpop.f32.mrb[122].mxu1  ;;  %10980 = vmatprep.mubr.bf16.mxu0 %v10599_v31 }
 0x695   : > { %v13885_v56 = vadd.f32 %v10020_v0, %v18022_v36  ;;  %v13854_v44 = vadd.f32 %v9683_v39, %v18011_v15  ;;  %v10022_v61 = vpop.f32.mrb[122].mxu0  ;;  %v9685_v17 = vpop.f32.mrb[123].mxu1  ;;  %10981 = vmatmul.mubr.bf16.gmra.mrb[148].mxu0 %v10598_v45  ;;  %v10448_v18 = vmax.f32 %v13852_v52, 0.0 }
 0x696   : > { %v13886_v7 = vadd.f32 %v10022_v61, %v18015_v12  ;;  %v13855_v30 = vadd.f32 %v9685_v17, %v18018_v60  ;;  %v10024_v46 = vpop.f32.mrb[123].mxu0  ;;  %v10450_v28 = vmax.f32 %v13884_v4, 0.0  ;;  %v10449_v57 = vmax.f32 %v13853_v53, 0.0  ;;  %v16187_v61 = vld [vmem:[#allocation8 + $0x150] sm:$0xff]  }
 0x697   : > { %v10454_v29 = vmax.f32 %v13854_v44, 0.0  ;;  %v13887_v3 = vadd.f32 %v10024_v46, %v18022_v36  ;;  %v10451_v23 = vmax.f32 %v13885_v56, 0.0  ;;  %v16188_v17 = vld [vmem:[#allocation8 + $0x110] sm:$0xff]   ;;  %v16194_v46 = vld [vmem:[#allocation8 + $0x128] sm:$0xff]  }
 0x698   : > { %v10456_v32 = vmax.f32 %v13886_v7, 0.0  ;;  %v10455_v58 = vmax.f32 %v13855_v30, 0.0  ;;  %v16189_v7 = vld [vmem:[#allocation8 + $0x158] sm:$0xff]   ;;  %v16191_v30 = vld [vmem:[#allocation8 + $0x160] sm:$0xff]  }
 0x699   : > { %v10604_v25 = vpack.c.bf16 %v10454_v29, %v10448_v18  ;;  %v10457_v54 = vmax.f32 %v13887_v3, 0.0  ;;  %v16195_v18 = vld [vmem:[#allocation8 + $0x170] sm:$0xff]   ;;  %v16198_v29 = vld [vmem:[#allocation8 + $0x138] sm:$0xff]  }
 0x69a   : > { %v18113_v9 = vpack.c.bf16 %v10456_v32, %v10450_v28  ;;  %v10605_v50 = vpack.c.bf16 %v10455_v58, %v10449_v57  ;;  %v9689_v63 = vpop.f32.mrb[124].mxu1 }
 0x69b   : > { %v18115_v51 = vpack.c.bf16 %v10457_v54, %v10451_v23  ;;  %v13856_v41 = vadd.f32 %v9689_v63, %v18011_v15  ;;  %v10028_v14 = vpop.f32.mrb[124].mxu0  ;;  %v9691_v48 = vpop.f32.mrb[125].mxu1 }
 0x69c   : > { %v13888_v2 = vadd.f32 %v10028_v14, %v18015_v12  ;;  %v13857_v47 = vadd.f32 %v9691_v48, %v18018_v60  ;;  %v10030_v10 = vpop.f32.mrb[125].mxu0  ;;  %v9693_v49 = vpop.f32.mrb[126].mxu1  ;;  %10988 = vmatprep.mubr.bf16.mxu0 %v10605_v50 }
 0x69d   : > { %v13889_v22 = vadd.f32 %v10030_v10, %v18022_v36  ;;  %v13858_v35 = vadd.f32 %v9693_v49, %v18011_v15  ;;  %v10032_v21 = vpop.f32.mrb[126].mxu0  ;;  %v9695_v1 = vpop.f32.mrb[127].mxu1  ;;  %10989 = vmatmul.mubr.bf16.gmra.mrb[152].mxu0 %v10604_v25  ;;  %v10460_v38 = vmax.f32 %v13856_v41, 0.0 }
 0x69e   : > { %v13890_v42 = vadd.f32 %v10032_v21, %v18015_v12  ;;  %v13859_v5 = vadd.f32 %v9695_v1, %v18018_v60  ;;  %v10034_v45 = vpop.f32.mrb[127].mxu0  ;;  %v10462_v52 = vmax.f32 %v13888_v2, 0.0  ;;  %v10461_v62 = vmax.f32 %v13857_v47, 0.0  ;;  %v16184_v12 = vld [vmem:[#allocation8 + $0x100] sm:$0xff]   ;;  %v16185_v60 = vld [vmem:[#allocation8 + $0x148] sm:$0xff]  }
 0x69f   : > { %v10466_v31 = vmax.f32 %v13858_v35, 0.0  ;;  %v13891_v26 = vadd.f32 %v10034_v45, %v18022_v36  ;;  %v10463_v53 = vmax.f32 %v13889_v22, 0.0  ;;  %v16186_v36 = vld [vmem:[#allocation8 + $0x108] sm:$0xff]  }
 0x6a0   : > { %v10468_v43 = vmax.f32 %v13890_v42, 0.0  ;;  %v10467_v4 = vmax.f32 %v13859_v5, 0.0 }
 0x6a1   : > { %v10610_v0 = vpack.c.bf16 %v10466_v31, %v10460_v38  ;;  %v10469_v39 = vmax.f32 %v13891_v26, 0.0 }
 0x6a2   : > { %v10612_v15 = vpack.c.bf16 %v10468_v43, %v10462_v52  ;;  %v10611_v56 = vpack.c.bf16 %v10467_v4, %v10461_v62 }
 0x6a3   : > { %v10613_v44 = vpack.c.bf16 %v10469_v39, %v10463_v53 }
 0x6a4   : > { %10996 = vmatprep.mubr.bf16.mxu0 %v10611_v56 }
 0x6a5   : > { %10997 = vmatmul.mubr.bf16.gmra.mrb[156].mxu0 %v10610_v0 }
 0x6a6   : > { %11037 = vmatprep.mubr.bf16.mxu0 %v18036_v37  ;;  %v16190_v37 = vld [vmem:[#allocation8 + $0x118] sm:$0xff]  }
 0x6ad   : > { %11038 = vmatmul.mubr.bf16.vlgmr.msra.gmra.mrb[160].mxu0 %v18034_v8  ;;  %v16192_v8 = vld [vmem:[#allocation8 + $0x120] sm:$0xff]  }
 0x6ae   : > { %11045 = vmatprep.mubr.bf16.mxu0 %v18050_v6  ;;  %13381 = vmatpush3.bf16.msra.mxu0 %v16184_v12  ;;  %v16193_v6 = vld [vmem:[#allocation8 + $0x168] sm:$0xff]  }
 0x6af   : > { %13382 = vmatprep.subr.bf16.mxu0 %v16185_v60 }
 0x6b2   : > { %13383 = vmatpush3.bf16.msra.mxu0 %v16186_v36 }
 0x6b3   : > { %13384 = vmatprep.subr.bf16.mxu0 %v16187_v61 }
 0x6b5   : > { %11046 = vmatmul.mubr.bf16.gmra.mrb[164].mxu0 %v18048_v19  ;;  %v16196_v19 = vld [vmem:[#allocation8 + $0x130] sm:$0xff]  }
 0x6b6   : > { %11053 = vmatprep.mubr.bf16.mxu0 %v18064_v33  ;;  %13385 = vmatpush3.bf16.msra.mxu0 %v16188_v17  ;;  %v16197_v33 = vld [vmem:[#allocation8 + $0x178] sm:$0xff]  }
 0x6b7   : > { %13386 = vmatprep.subr.bf16.mxu0 %v16189_v7 }
 0x6ba   : > { %13387 = vmatpush3.bf16.msra.mxu0 %v16190_v37 }
 0x6bb   : > { %13388 = vmatprep.subr.bf16.mxu0 %v16191_v30  ;;  %v16199_v30 = vld [vmem:[#allocation10] sm:$0xff]  }
 0x6bc   : > { %13508 = vmatprep.subr.bf16.mxu1 %v16199_v30 }
 0x6bd   : > { %11054 = vmatmul.mubr.bf16.gmra.mrb[168].mxu0 %v18062_v13  ;;  %v16267_v13 = vld [vmem:[#allocation11 + $0x10] sm:$0x77]  ;;  %13509 = vmatpush3.bf16.msra.mxu1 %v16199_v30 }
 0x6be   : > { %11061 = vmatprep.mubr.bf16.mxu0 %v18078_v11  ;;  %13389 = vmatpush3.bf16.msra.mxu0 %v16192_v8  ;;  %v7888_v11 = vrot.slane %v16267_v13, %v18003_v20  ;;  %v16200_v8 = vld [vmem:[#allocation10 + $0x8] sm:$0xff]  }
 0x6bf   : > { %13390 = vmatprep.subr.bf16.mxu0 %v16193_v6  ;;  %13510 = vmatprep.subr.bf16.mxu1 %v16200_v8 }
 0x6c1   : > { %13511 = vmatpush3.bf16.msra.mxu1 %v16200_v8 }
 0x6c2   : > { %13391 = vmatpush3.bf16.msra.mxu0 %v16194_v46 }
 0x6c3   : > { %13392 = vmatprep.subr.bf16.mxu0 %v16195_v18 }
 0x6c5   : > { %11062 = vmatmul.mubr.bf16.gmra.mrb[172].mxu0 %v18076_v59  ;;  %v7884_v59 = vrot.slane %v16267_v13, %v17999_v27 }
 0x6c6   : > { %11069 = vmatprep.mubr.bf16.mxu0 %v18091_v34  ;;  %13393 = vmatpush3.bf16.msra.mxu0 %v16196_v19 }
 0x6c7   : > { %13394 = vmatprep.subr.bf16.mxu0 %v16197_v33  ;;  %v18142_v34 = vrot.slane %v7884_v59, %v17999_v27 }
 0x6ca   : > { %13395 = vmatpush3.bf16.msra.mxu0 %v16198_v29 }
 0x6cd   : > { %11070 = vmatmul.mubr.bf16.gmra.mrb[176].mxu0 %v18089_v16  ;;  %v18145_v16 = vrot.slane %v7888_v11, %v17999_v27 }
 0x6ce   : > { %11077 = vmatprep.mubr.bf16.mxu0 %v18103_v24 }
 0x6d5   : > { %11078 = vmatmul.mubr.bf16.gmra.mrb[180].mxu0 %v18101_v40 }
 0x6d6   : > { %11085 = vmatprep.mubr.bf16.mxu0 %v18115_v51 }
 0x6dd   : > { %11086 = vmatmul.mubr.bf16.gmra.mrb[184].mxu0 %v18113_v9 }
 0x6de   : > { %11093 = vmatprep.mubr.bf16.mxu0 %v10613_v44 }
 0x6e5   : > { %11094 = vmatmul.mubr.bf16.gmra.mrb[188].mxu0 %v10612_v15 }
 0x723   : > { %v10297_v24 = vpop.f32.mrb[128].mxu1 }
 0x724   : > { %v13892_v40 = vadd.f32 %v10297_v24, %v18142_v34  ;;  %v10299_v3 = vpop.f32.mrb[129].mxu1 }
 0x725   : > { %v13893_v28 = vadd.f32 %v10299_v3, %v18145_v16  ;;  %v10301_v57 = vpop.f32.mrb[130].mxu1 }
 0x726   : > { %v13894_v32 = vadd.f32 %v10301_v57, %v18142_v34  ;;  %v10303_v58 = vpop.f32.mrb[131].mxu1  ;;  %v10380_v25 = vmax.f32 %v13892_v40, 0.0 }
 0x727   : > { %v13895_v23 = vadd.f32 %v10303_v58, %v18145_v16  ;;  %v10381_v54 = vmax.f32 %v13893_v28, 0.0 }
 0x728   : > { %v10386_v20 = vmax.f32 %v13894_v32, 0.0 }
 0x729   : > { %v10387_v9 = vmax.f32 %v13895_v23, 0.0 }
 0x72a   : > { %v10572_v50 = vpack.c.bf16 %v10386_v20, %v10380_v25 }
 0x72b   : > { %v10573_v63 = vpack.c.bf16 %v10387_v9, %v10381_v54  ;;  %v10307_v51 = vpop.f32.mrb[132].mxu1 }
 0x72c   : > { %v13896_v41 = vadd.f32 %v10307_v51, %v18142_v34  ;;  %v10309_v14 = vpop.f32.mrb[133].mxu1 }
 0x72d   : > { %v13897_v48 = vadd.f32 %v10309_v14, %v18145_v16  ;;  %v10311_v2 = vpop.f32.mrb[134].mxu1  ;;  %11134 = vmatprep.mubr.bf16.mxu0 %v10573_v63 }
 0x72e   : > { %v13898_v47 = vadd.f32 %v10311_v2, %v18142_v34  ;;  %v10313_v10 = vpop.f32.mrb[135].mxu1  ;;  %11135 = vmatmul.mubr.bf16.vlgmr.msra.gmra.mrb[192].mxu0 %v10572_v50  ;;  %v10392_v22 = vmax.f32 %v13896_v41, 0.0 }
 0x72f   : > { %v13899_v49 = vadd.f32 %v10313_v10, %v18145_v16  ;;  %v10393_v21 = vmax.f32 %v13897_v48, 0.0 }
 0x730   : > { %v10398_v35 = vmax.f32 %v13898_v47, 0.0 }
 0x731   : > { %v10399_v1 = vmax.f32 %v13899_v49, 0.0 }
 0x732   : > { %v10578_v42 = vpack.c.bf16 %v10398_v35, %v10392_v22 }
 0x733   : > { %v10579_v5 = vpack.c.bf16 %v10399_v1, %v10393_v21  ;;  %v10317_v45 = vpop.f32.mrb[136].mxu1 }
 0x734   : > { %v13900_v38 = vadd.f32 %v10317_v45, %v18142_v34  ;;  %v10319_v31 = vpop.f32.mrb[137].mxu1 }
 0x735   : > { %v13901_v26 = vadd.f32 %v10319_v31, %v18145_v16  ;;  %v10321_v52 = vpop.f32.mrb[138].mxu1  ;;  %11142 = vmatprep.mubr.bf16.mxu0 %v10579_v5 }
 0x736   : > { %v13902_v62 = vadd.f32 %v10321_v52, %v18142_v34  ;;  %v10323_v43 = vpop.f32.mrb[139].mxu1  ;;  %11143 = vmatmul.mubr.bf16.gmra.mrb[196].mxu0 %v10578_v42  ;;  %v10404_v53 = vmax.f32 %v13900_v38, 0.0 }
 0x737   : > { %v13903_v4 = vadd.f32 %v10323_v43, %v18145_v16  ;;  %v10405_v39 = vmax.f32 %v13901_v26, 0.0 }
 0x738   : > { %v10410_v0 = vmax.f32 %v13902_v62, 0.0 }
 0x739   : > { %v10411_v15 = vmax.f32 %v13903_v4, 0.0 }
 0x73a   : > { %v10584_v56 = vpack.c.bf16 %v10410_v0, %v10404_v53 }
 0x73b   : > { %v10585_v44 = vpack.c.bf16 %v10411_v15, %v10405_v39  ;;  %v10327_v12 = vpop.f32.mrb[140].mxu1 }
 0x73c   : > { %v13904_v60 = vadd.f32 %v10327_v12, %v18142_v34  ;;  %v10329_v36 = vpop.f32.mrb[141].mxu1 }
 0x73d   : > { %v13905_v61 = vadd.f32 %v10329_v36, %v18145_v16  ;;  %v10331_v17 = vpop.f32.mrb[142].mxu1  ;;  %11150 = vmatprep.mubr.bf16.mxu0 %v10585_v44 }
 0x73e   : > { %v13906_v7 = vadd.f32 %v10331_v17, %v18142_v34  ;;  %v10333_v37 = vpop.f32.mrb[143].mxu1  ;;  %11151 = vmatmul.mubr.bf16.gmra.mrb[200].mxu0 %v10584_v56  ;;  %v10416_v46 = vmax.f32 %v13904_v60, 0.0 }
 0x73f   : > { %v13907_v6 = vadd.f32 %v10333_v37, %v18145_v16  ;;  %v10417_v33 = vmax.f32 %v13905_v61, 0.0 }
 0x740   : > { %v10422_v18 = vmax.f32 %v13906_v7, 0.0  ;;  %v13268_v19 = vpop.f32.mrb[128].mxu0 }
 0x741   : > { %v10423_v29 = vmax.f32 %v13907_v6, 0.0  ;;  %v13269_v13 = vpop.f32.mrb[129].mxu0 }
 0x742   : > { %v10590_v59 = vpack.c.bf16 %v10422_v18, %v10416_v46  ;;  %v18163_v11 = vadd.f32 %v13269_v13, %v13268_v19  ;;  %v13271_v24 = vpop.f32.mrb[130].mxu0 }
 0x743   : > { %v10591_v40 = vpack.c.bf16 %v10423_v29, %v10417_v33  ;;  %v10337_v3 = vpop.f32.mrb[144].mxu1  ;;  %v13272_v28 = vpop.f32.mrb[131].mxu0 }
 0x744   : > { %v13908_v57 = vadd.f32 %v10337_v3, %v18142_v34  ;;  %v10339_v32 = vpop.f32.mrb[145].mxu1  ;;  %v18166_v58 = vadd.f32 %v13272_v28, %v13271_v24 }
 0x745   : > { %v13909_v23 = vadd.f32 %v10339_v32, %v18145_v16  ;;  %v10341_v25 = vpop.f32.mrb[146].mxu1  ;;  %11158 = vmatprep.mubr.bf16.mxu0 %v10591_v40 }
 0x746   : > { %v13910_v20 = vadd.f32 %v10341_v25, %v18142_v34  ;;  %v10343_v54 = vpop.f32.mrb[147].mxu1  ;;  %11159 = vmatmul.mubr.bf16.gmra.mrb[204].mxu0 %v10590_v59  ;;  %v10428_v50 = vmax.f32 %v13908_v57, 0.0 }
 0x747   : > { %v13911_v9 = vadd.f32 %v10343_v54, %v18145_v16  ;;  %v10429_v41 = vmax.f32 %v13909_v23, 0.0 }
 0x748   : > { %v10434_v63 = vmax.f32 %v13910_v20, 0.0  ;;  %v13274_v51 = vpop.f32.mrb[132].mxu0 }
 0x749   : > { %v10435_v14 = vmax.f32 %v13911_v9, 0.0  ;;  %v13275_v48 = vpop.f32.mrb[133].mxu0 }
 0x74a   : > { %v10596_v2 = vpack.c.bf16 %v10434_v63, %v10428_v50  ;;  %v18171_v47 = vadd.f32 %v13275_v48, %v13274_v51  ;;  %v13277_v10 = vpop.f32.mrb[134].mxu0 }
 0x74b   : > { %v10597_v49 = vpack.c.bf16 %v10435_v14, %v10429_v41  ;;  %v10347_v22 = vpop.f32.mrb[148].mxu1  ;;  %v13278_v35 = vpop.f32.mrb[135].mxu0 }
 0x74c   : > { %v13912_v21 = vadd.f32 %v10347_v22, %v18142_v34  ;;  %v10349_v1 = vpop.f32.mrb[149].mxu1  ;;  %v18174_v42 = vadd.f32 %v13278_v35, %v13277_v10 }
 0x74d   : > { %v13913_v5 = vadd.f32 %v10349_v1, %v18145_v16  ;;  %v10351_v45 = vpop.f32.mrb[150].mxu1  ;;  %11166 = vmatprep.mubr.bf16.mxu0 %v10597_v49 }
 0x74e   : > { %v13914_v38 = vadd.f32 %v10351_v45, %v18142_v34  ;;  %v10353_v31 = vpop.f32.mrb[151].mxu1  ;;  %11167 = vmatmul.mubr.bf16.gmra.mrb[208].mxu0 %v10596_v2  ;;  %v10440_v52 = vmax.f32 %v13912_v21, 0.0 }
 0x74f   : > { %v13915_v26 = vadd.f32 %v10353_v31, %v18145_v16  ;;  %v10441_v4 = vmax.f32 %v13913_v5, 0.0 }
 0x750   : > { %v10446_v62 = vmax.f32 %v13914_v38, 0.0  ;;  %v13280_v43 = vpop.f32.mrb[136].mxu0 }
 0x751   : > { %v10447_v53 = vmax.f32 %v13915_v26, 0.0  ;;  %v13281_v0 = vpop.f32.mrb[137].mxu0 }
 0x752   : > { %v10602_v39 = vpack.c.bf16 %v10446_v62, %v10440_v52  ;;  %v18179_v15 = vadd.f32 %v13281_v0, %v13280_v43  ;;  %v13283_v56 = vpop.f32.mrb[138].mxu0 }
 0x753   : > { %v10603_v44 = vpack.c.bf16 %v10447_v53, %v10441_v4  ;;  %v10357_v12 = vpop.f32.mrb[152].mxu1  ;;  %v13284_v60 = vpop.f32.mrb[139].mxu0 }
 0x754   : > { %v13916_v36 = vadd.f32 %v10357_v12, %v18142_v34  ;;  %v10359_v61 = vpop.f32.mrb[153].mxu1  ;;  %v18182_v17 = vadd.f32 %v13284_v60, %v13283_v56  ;;  %v18209_v60 = vld [vmem:[#allocation13] sm:$0x1f] }
 0x755   : > { %v13917_v7 = vadd.f32 %v10359_v61, %v18145_v16  ;;  %v10361_v37 = vpop.f32.mrb[154].mxu1  ;;  %11174 = vmatprep.mubr.bf16.mxu0 %v10603_v44 }
 0x756   : > { %v13918_v30 = vadd.f32 %v10361_v37, %v18142_v34  ;;  %v10363_v8 = vpop.f32.mrb[155].mxu1  ;;  %11175 = vmatmul.mubr.bf16.gmra.mrb[212].mxu0 %v10602_v39  ;;  %v10452_v46 = vmax.f32 %v13916_v36, 0.0 }
 0x757   : > { %v13919_v6 = vadd.f32 %v10363_v8, %v18145_v16  ;;  %v10453_v33 = vmax.f32 %v13917_v7, 0.0  ;;  %v18482_v7 = vld [vmem:[#allocation35_spill] sm:$0xff] }
 0x758   : > { %v10458_v18 = vmax.f32 %v13918_v30, 0.0  ;;  %v13286_v19 = vpop.f32.mrb[140].mxu0  ;;  %v18215_v37 = vrot.slane %v18209_v60, %v18482_v7 }
 0x759   : > { %v10459_v29 = vmax.f32 %v13919_v6, 0.0  ;;  %v13287_v13 = vpop.f32.mrb[141].mxu0 }
 0x75a   : > { %v10608_v59 = vpack.c.bf16 %v10458_v18, %v10452_v46  ;;  %v18187_v24 = vadd.f32 %v13287_v13, %v13286_v19  ;;  %v13289_v40 = vpop.f32.mrb[142].mxu0  ;;  %v10943_v6 = vadd.f32 %v18163_v11, %v18215_v37  ;;  %v10951_v11 = vadd.f32 %v18171_v47, %v18215_v37 }
 0x75b   : > { %v10609_v3 = vpack.c.bf16 %v10459_v29, %v10453_v33  ;;  %v10367_v28 = vpop.f32.mrb[156].mxu1  ;;  %v13290_v57 = vpop.f32.mrb[143].mxu0  ;;  %v10946_v33 = vadd.f32 %v18166_v58, %v18215_v37  ;;  %v10954_v58 = vadd.f32 %v18174_v42, %v18215_v37  ;;  %v10959_v47 = vadd.f32 %v18179_v15, %v18215_v37 }
 0x75c   : > { %v13920_v32 = vadd.f32 %v10367_v28, %v18142_v34  ;;  %v10369_v23 = vpop.f32.mrb[157].mxu1  ;;  %v18190_v25 = vadd.f32 %v13290_v57, %v13289_v40  ;;  %v16202_v28 = vld [vmem:[#allocation10 + $0x18] sm:$0xff]   ;;  %v10962_v42 = vadd.f32 %v18182_v17, %v18215_v37  ;;  %v10967_v15 = vadd.f32 %v18187_v24, %v18215_v37 }
 0x75d   : > { %v13921_v20 = vadd.f32 %v10369_v23, %v18145_v16  ;;  %v10371_v54 = vpop.f32.mrb[158].mxu1  ;;  %11182 = vmatprep.mubr.bf16.mxu0 %v10609_v3 }
 0x75e   : > { %v13922_v9 = vadd.f32 %v10371_v54, %v18142_v34  ;;  %v10373_v50 = vpop.f32.mrb[159].mxu1  ;;  %11183 = vmatmul.mubr.bf16.gmra.mrb[216].mxu0 %v10608_v59  ;;  %v10464_v51 = vmax.f32 %v13920_v32, 0.0  ;;  %v16201_v59 = vld [vmem:[#allocation10 + $0x10] sm:$0xff]   ;;  %v10970_v17 = vadd.f32 %v18190_v25, %v18215_v37 }
 0x75f   : > { %v13923_v63 = vadd.f32 %v10373_v50, %v18145_v16  ;;  %v10465_v48 = vmax.f32 %v13921_v20, 0.0  ;;  %13512 = vmatprep.subr.bf16.mxu1 %v16201_v59  ;;  %v16203_v50 = vld [vmem:[#allocation10 + $0x20] sm:$0xff]  }
 0x760   : > { %v10470_v41 = vmax.f32 %v13922_v9, 0.0  ;;  %v13292_v14 = vpop.f32.mrb[144].mxu0  ;;  %13513 = vmatpush3.bf16.msra.mxu1 %v16201_v59 }
 0x761   : > { %v10471_v2 = vmax.f32 %v13923_v63, 0.0  ;;  %v13293_v10 = vpop.f32.mrb[145].mxu0  ;;  %13514 = vmatprep.subr.bf16.mxu1 %v16202_v28 }
 0x762   : > { %v10614_v49 = vpack.c.bf16 %v10470_v41, %v10464_v51  ;;  %v18195_v22 = vadd.f32 %v13293_v10, %v13292_v14  ;;  %v13295_v35 = vpop.f32.mrb[146].mxu0  ;;  %v16204_v41 = vld [vmem:[#allocation10 + $0x28] sm:$0xff]  }
 0x763   : > { %v10615_v21 = vpack.c.bf16 %v10471_v2, %v10465_v48  ;;  %v13296_v1 = vpop.f32.mrb[147].mxu0 }
 0x764   : > { %v18197_v5 = vadd.f32 %v13296_v1, %v13295_v35  ;;  %13515 = vmatpush3.bf16.msra.mxu1 %v16202_v28 }
 0x765   : > { %11190 = vmatprep.mubr.bf16.mxu0 %v10615_v21  ;;  %13516 = vmatprep.subr.bf16.mxu1 %v16203_v50  ;;  %v16205_v21 = vld [vmem:[#allocation10 + $0x30] sm:$0xff]  }
 0x766   : > { %11191 = vmatmul.mubr.bf16.gmra.mrb[220].mxu0 %v10614_v49 }
 0x768   : > { %v13298_v34 = vpop.f32.mrb[148].mxu0  ;;  %13517 = vmatpush3.bf16.msra.mxu1 %v16203_v50 }
 0x769   : > { %v13299_v45 = vpop.f32.mrb[149].mxu0  ;;  %13518 = vmatprep.subr.bf16.mxu1 %v16204_v41 }
 0x76a   : > { %v18199_v38 = vadd.f32 %v13299_v45, %v13298_v34  ;;  %v13301_v16 = vpop.f32.mrb[150].mxu0  ;;  %v16206_v45 = vld [vmem:[#allocation10 + $0x38] sm:$0xff]  }
 0x76b   : > { %v13302_v31 = vpop.f32.mrb[151].mxu0 }
 0x76c   : > { %v18201_v26 = vadd.f32 %v13302_v31, %v13301_v16  ;;  %13519 = vmatpush3.bf16.msra.mxu1 %v16204_v41 }
 0x76d   : > { %13520 = vmatprep.subr.bf16.mxu1 %v16205_v21 }
 0x770   : > { %v13304_v52 = vpop.f32.mrb[152].mxu0  ;;  %13521 = vmatpush3.bf16.msra.mxu1 %v16205_v21  ;;  %v16207_v21 = vld [vmem:[#allocation10 + $0x40] sm:$0xff]  }
 0x771   : > { %v13305_v62 = vpop.f32.mrb[153].mxu0  ;;  %13522 = vmatprep.subr.bf16.mxu1 %v16206_v45 }
 0x772   : > { %v18203_v43 = vadd.f32 %v13305_v62, %v13304_v52  ;;  %v13307_v4 = vpop.f32.mrb[154].mxu0 }
 0x773   : > { %v13308_v53 = vpop.f32.mrb[155].mxu0 }
 0x774   : > { %v18205_v0 = vadd.f32 %v13308_v53, %v13307_v4  ;;  %13523 = vmatpush3.bf16.msra.mxu1 %v16206_v45 }
 0x775   : > { %13540 = vmatprep.subr.bf16.mxu1 %v16207_v21 }
 0x778   : > { %v13310_v39 = vpop.f32.mrb[156].mxu0 }
 0x779   : > { %v13311_v56 = vpop.f32.mrb[157].mxu0 }
 0x77a   : > { %v18207_v44 = vadd.f32 %v13311_v56, %v13310_v39  ;;  %v13313_v12 = vpop.f32.mrb[158].mxu0 }
 0x77b   : > { %v13314_v36 = vpop.f32.mrb[159].mxu0 }
 0x77c   : > { %v18211_v61 = vadd.f32 %v13314_v36, %v13313_v12  ;;  %v10975_v36 = vadd.f32 %v18195_v22, %v18215_v37  ;;  %v10986_v22 = vadd.f32 %v18201_v26, %v18215_v37 }
 0x780   : > { %v13332_v30 = vpop.f32.mrb[160].mxu0 }
 0x781   : > { %v13333_v8 = vpop.f32.mrb[161].mxu0 }
 0x782   : > { %v13334_v46 = vadd.f32 %v13333_v8, %v13332_v30  ;;  %v13335_v18 = vpop.f32.mrb[162].mxu0  ;;  %v10978_v8 = vadd.f32 %v18197_v5, %v18215_v37 }
 0x783   : > { %v13336_v19 = vpop.f32.mrb[163].mxu0 }
 0x784   : > { %v18221_v29 = vadd.f32 %v13334_v46, %v10943_v6  ;;  %v13337_v13 = vadd.f32 %v13336_v19, %v13335_v18 }
 0x786   : > { %v18223_v40 = vadd.f32 %v13337_v13, %v10946_v33  ;;  %v10983_v33 = vadd.f32 %v18199_v38, %v18215_v37  ;;  %v10994_v38 = vadd.f32 %v18205_v0, %v18215_v37 }
 0x788   : > { %v13338_v3 = vpop.f32.mrb[164].mxu0 }
 0x789   : > { %v13339_v57 = vpop.f32.mrb[165].mxu0 }
 0x78a   : > { %v13340_v32 = vadd.f32 %v13339_v57, %v13338_v3  ;;  %v13341_v23 = vpop.f32.mrb[166].mxu0 }
 0x78b   : > { %v13342_v20 = vpop.f32.mrb[167].mxu0 }
 0x78c   : > { %v18229_v54 = vadd.f32 %v13340_v32, %v10951_v11  ;;  %v13343_v9 = vadd.f32 %v13342_v20, %v13341_v23  ;;  %v10991_v23 = vadd.f32 %v18203_v43, %v18215_v37  ;;  %v11002_v43 = vadd.f32 %v18211_v61, %v18215_v37 }
 0x78e   : > { %v18231_v63 = vadd.f32 %v13343_v9, %v10954_v58 }
 0x790   : > { %v13344_v51 = vpop.f32.mrb[168].mxu0 }
 0x791   : > { %v13345_v14 = vpop.f32.mrb[169].mxu0 }
 0x792   : > { %v13346_v48 = vadd.f32 %v13345_v14, %v13344_v51  ;;  %v13347_v2 = vpop.f32.mrb[170].mxu0 }
 0x793   : > { %v13348_v10 = vpop.f32.mrb[171].mxu0 }
 0x794   : > { %v18237_v49 = vadd.f32 %v13346_v48, %v10959_v47  ;;  %v13349_v35 = vadd.f32 %v13348_v10, %v13347_v2  ;;  %v10999_v47 = vadd.f32 %v18207_v44, %v18215_v37 }
 0x796   : > { %v18239_v1 = vadd.f32 %v13349_v35, %v10962_v42 }
 0x798   : > { %v13350_v34 = vpop.f32.mrb[172].mxu0 }
 0x799   : > { %v13351_v16 = vpop.f32.mrb[173].mxu0 }
 0x79a   : > { %v13352_v31 = vadd.f32 %v13351_v16, %v13350_v34  ;;  %v13353_v52 = vpop.f32.mrb[174].mxu0 }
 0x79b   : > { %v13354_v62 = vpop.f32.mrb[175].mxu0 }
 0x79c   : > { %v18245_v4 = vadd.f32 %v13352_v31, %v10967_v15  ;;  %v13355_v53 = vadd.f32 %v13354_v62, %v13353_v52 }
 0x79e   : > { %v18247_v39 = vadd.f32 %v13355_v53, %v10970_v17 }
 0x7a0   : > { %v13356_v56 = vpop.f32.mrb[176].mxu0 }
 0x7a1   : > { %v13357_v12 = vpop.f32.mrb[177].mxu0 }
 0x7a2   : > { %v13358_v7 = vadd.f32 %v13357_v12, %v13356_v56  ;;  %v13359_v24 = vpop.f32.mrb[178].mxu0 }
 0x7a3   : > { %v13360_v30 = vpop.f32.mrb[179].mxu0 }
 0x7a4   : > { %v18253_v6 = vadd.f32 %v13358_v7, %v10975_v36  ;;  %v13361_v46 = vadd.f32 %v13360_v30, %v13359_v24 }
 0x7a6   : > { %v18255_v25 = vadd.f32 %v13361_v46, %v10978_v8 }
 0x7a8   : > { %v13362_v18 = vpop.f32.mrb[180].mxu0 }
 0x7a9   : > { %v13363_v19 = vpop.f32.mrb[181].mxu0 }
 0x7aa   : > { %v13364_v13 = vadd.f32 %v13363_v19, %v13362_v18  ;;  %v13365_v59 = vpop.f32.mrb[182].mxu0 }
 0x7ab   : > { %v13366_v3 = vpop.f32.mrb[183].mxu0 }
 0x7ac   : > { %v18261_v28 = vadd.f32 %v13364_v13, %v10983_v33  ;;  %v13367_v57 = vadd.f32 %v13366_v3, %v13365_v59 }
 0x7ae   : > { %v18263_v5 = vadd.f32 %v13367_v57, %v10986_v22 }
 0x7b0   : > { %v13368_v11 = vpop.f32.mrb[184].mxu0 }
 0x7b1   : > { %v13369_v32 = vpop.f32.mrb[185].mxu0 }
 0x7b2   : > { %v13370_v20 = vadd.f32 %v13369_v32, %v13368_v11  ;;  %v13371_v58 = vpop.f32.mrb[186].mxu0 }
 0x7b3   : > { %v13372_v9 = vpop.f32.mrb[187].mxu0 }
 0x7b4   : > { %v18269_v50 = vadd.f32 %v13370_v20, %v10991_v23  ;;  %v13373_v51 = vadd.f32 %v13372_v9, %v13371_v58  ;;  %v16208_v20 = vld [vmem:[#allocation10 + $0x48] sm:$0xff]  }
 0x7b6   : > { %v18271_v26 = vadd.f32 %v13373_v51, %v10994_v38 }
 0x7b8   : > { %v13374_v41 = vpop.f32.mrb[188].mxu0 }
 0x7b9   : > { %v13375_v14 = vpop.f32.mrb[189].mxu0 }
 0x7ba   : > { %v13376_v48 = vadd.f32 %v13375_v14, %v13374_v41  ;;  %v13377_v2 = vpop.f32.mrb[190].mxu0 }
 0x7bb   : > { %v13378_v10 = vpop.f32.mrb[191].mxu0 }
 0x7bc   : > { %v18277_v42 = vadd.f32 %v13376_v48, %v10999_v47  ;;  %v13379_v35 = vadd.f32 %v13378_v10, %v13377_v2 }
 0x7be   : > { %v18279_v0 = vadd.f32 %v13379_v35, %v11002_v43 }
 0x801   : > { %v13396_v34 = vpop.f32.mrb[192].mxu0 }
 0x802   : > { %v13397_v45 = vpop.f32.mrb[193].mxu0 }
 0x803   : > { %v13398_v16 = vadd.f32 %v13397_v45, %v13396_v34  ;;  %v13399_v15 = vpop.f32.mrb[194].mxu0 }
 0x804   : > { %v13400_v31 = vpop.f32.mrb[195].mxu0 }
 0x805   : > { %v11137_v44 = vadd.f32 %v13398_v16, %v18221_v29  ;;  %v13401_v52 = vadd.f32 %v13400_v31, %v13399_v15 }
 0x807   : > { %v11140_v62 = vadd.f32 %v13401_v52, %v18223_v40  ;;  %16231 = vtanh.f32 %v11137_v44 }
 0x809   : > { %16233 = vtanh.f32 %v11140_v62  ;;  %v13402_v61 = vpop.f32.mrb[196].mxu0 }
 0x80a   : > { %v13403_v37 = vpop.f32.mrb[197].mxu0 }
 0x80b   : > { %v13404_v17 = vadd.f32 %v13403_v37, %v13402_v61  ;;  %v13405_v53 = vpop.f32.mrb[198].mxu0 }
 0x80c   : > { %v13406_v56 = vpop.f32.mrb[199].mxu0 }
 0x80d   : > { %v11145_v12 = vadd.f32 %v13404_v17, %v18229_v54  ;;  %v13407_v36 = vadd.f32 %v13406_v56, %v13405_v53 }
 0x80f   : > { %v11148_v7 = vadd.f32 %v13407_v36, %v18231_v63  ;;  %16235 = vtanh.f32 %v11145_v12 }
 0x811   : > { %16237 = vtanh.f32 %v11148_v7  ;;  %v13408_v24 = vpop.f32.mrb[200].mxu0  ;;  %v16232_v30 = vpop.eup %16231 }
 0x812   : > { %v13409_v29 = vpop.f32.mrb[201].mxu0 }
 0x813   : > { %v16234_v8 = vpop.eup %16233  ;;  %v13410_v46 = vadd.f32 %v13409_v29, %v13408_v24  ;;  %v13411_v40 = vpop.f32.mrb[202].mxu0 }
 0x814   : > { %v13412_v18 = vpop.f32.mrb[203].mxu0  ;;  %v11231_v19 = vpack.c.bf16 %v16234_v8, %v16232_v30 }
 0x815   : > { %v11153_v33 = vadd.f32 %v13410_v46, %v18237_v49  ;;  %v13413_v13 = vadd.f32 %v13412_v18, %v13411_v40 }
 0x816   : > { %13524 = vmatprep.mubr.bf16.mxu1 %v11231_v19 }
 0x817   : > { %v11156_v59 = vadd.f32 %v13413_v13, %v18239_v1  ;;  %16239 = vtanh.f32 %v11153_v33  ;;  %v16209_v1 = vld [vmem:[#allocation10 + $0x50] sm:$0xff]  }
 0x819   : > { %16241 = vtanh.f32 %v11156_v59  ;;  %v13414_v54 = vpop.f32.mrb[204].mxu0  ;;  %v16236_v63 = vpop.eup %16235 }
 0x81a   : > { %v13415_v3 = vpop.f32.mrb[205].mxu0 }
 0x81b   : > { %v16238_v22 = vpop.eup %16237  ;;  %v13416_v57 = vadd.f32 %v13415_v3, %v13414_v54  ;;  %v13417_v11 = vpop.f32.mrb[206].mxu0 }
 0x81c   : > { %v13418_v32 = vpop.f32.mrb[207].mxu0  ;;  %v11232_v23 = vpack.c.bf16 %v16238_v22, %v16236_v63 }
 0x81d   : > { %v11161_v58 = vadd.f32 %v13416_v57, %v18245_v4  ;;  %v13419_v9 = vadd.f32 %v13418_v32, %v13417_v11  ;;  %v16210_v4 = vld [vmem:[#allocation10 + $0x58] sm:$0xff]  }
 0x81e   : > { %13525 = vmatmul.mubr.bf16.vlgmr.msra.gmra.mrb[160].mxu1 %v11232_v23  ;;  %v16213_v23 = vld [vmem:[#allocation10 + $0x70] sm:$0xff]  }
 0x81f   : > { %v11164_v49 = vadd.f32 %v13419_v9, %v18247_v39  ;;  %13541 = vmatpush3.bf16.msra.mxu1 %v16207_v21  ;;  %16243 = vtanh.f32 %v11161_v58  ;;  %v16211_v21 = vld [vmem:[#allocation10 + $0x60] sm:$0xff]   ;;  %v16216_v58 = vld [vmem:[#allocation10 + $0x88] sm:$0xff]   ;;  %v16218_v9 = vld [vmem:[#allocation10 + $0x98] sm:$0xff]  }
 0x820   : > { %13542 = vmatprep.subr.bf16.mxu1 %v16208_v20 }
 0x821   : > { %16245 = vtanh.f32 %v11164_v49  ;;  %v13420_v38 = vpop.f32.mrb[208].mxu0  ;;  %v16240_v51 = vpop.eup %16239  ;;  %v16219_v49 = vld [vmem:[#allocation10 + $0xa0] sm:$0xff]  }
 0x822   : > { %v13421_v41 = vpop.f32.mrb[209].mxu0 }
 0x823   : > { %v16242_v14 = vpop.eup %16241  ;;  %v13422_v47 = vadd.f32 %v13421_v41, %v13420_v38  ;;  %v13423_v48 = vpop.f32.mrb[210].mxu0  ;;  %13543 = vmatpush3.bf16.msra.mxu1 %v16208_v20  ;;  %v16214_v20 = vld [vmem:[#allocation10 + $0x78] sm:$0xff]   ;;  %v18483_v38 = vld [vmem:[#allocation25_spill] sm:$0xff] }
 0x824   : > { %v13424_v2 = vpop.f32.mrb[211].mxu0  ;;  %v11233_v10 = vpack.c.bf16 %v16242_v14, %v16240_v51  ;;  %13544 = vmatprep.subr.bf16.mxu1 %v16209_v1  ;;  %v11242_v51 = vrot.slane %v18209_v60, %v18483_v38  ;;  %v16224_v38 = vld [vmem:[#allocation10 + $0xc8] sm:$0xff]  }
 0x825   : > { %v11169_v43 = vadd.f32 %v13422_v47, %v18253_v6  ;;  %v13425_v35 = vadd.f32 %v13424_v2, %v13423_v48  ;;  %v16212_v6 = vld [vmem:[#allocation10 + $0x68] sm:$0xff]  }
 0x826   : > { %13528 = vmatprep.mubr.bf16.mxu1 %v11233_v10 }
 0x827   : > { %v11172_v39 = vadd.f32 %v13425_v35, %v18255_v25  ;;  %13545 = vmatpush3.bf16.msra.mxu1 %v16209_v1  ;;  %16247 = vtanh.f32 %v11169_v43  ;;  %v16220_v1 = vld [vmem:[#allocation10 + $0xa8] sm:$0xff]  }
 0x828   : > { %13546 = vmatprep.subr.bf16.mxu1 %v16210_v4 }
 0x829   : > { %16249 = vtanh.f32 %v11172_v39  ;;  %v13426_v34 = vpop.f32.mrb[212].mxu0  ;;  %v16244_v45 = vpop.eup %16243 }
 0x82a   : > { %v13427_v16 = vpop.f32.mrb[213].mxu0 }
 0x82b   : > { %v16246_v15 = vpop.eup %16245  ;;  %v13428_v31 = vadd.f32 %v13427_v16, %v13426_v34  ;;  %v13429_v44 = vpop.f32.mrb[214].mxu0  ;;  %13547 = vmatpush3.bf16.msra.mxu1 %v16210_v4 }
 0x82c   : > { %v13430_v52 = vpop.f32.mrb[215].mxu0  ;;  %v11234_v62 = vpack.c.bf16 %v16246_v15, %v16244_v45  ;;  %13548 = vmatprep.subr.bf16.mxu1 %v16211_v21 }
 0x82d   : > { %v11177_v61 = vadd.f32 %v13428_v31, %v18261_v28  ;;  %v13431_v37 = vadd.f32 %v13430_v52, %v13429_v44 }
 0x82e   : > { %13529 = vmatmul.mubr.bf16.gmra.mrb[164].mxu1 %v11234_v62 }
 0x82f   : > { %v11180_v25 = vadd.f32 %v13431_v37, %v18263_v5  ;;  %13549 = vmatpush3.bf16.msra.mxu1 %v16211_v21  ;;  %16251 = vtanh.f32 %v11177_v61 }
 0x830   : > { %13550 = vmatprep.subr.bf16.mxu1 %v16212_v6 }
 0x831   : > { %16253 = vtanh.f32 %v11180_v25  ;;  %v13432_v17 = vpop.f32.mrb[216].mxu0  ;;  %v16248_v53 = vpop.eup %16247 }
 0x832   : > { %v13433_v56 = vpop.f32.mrb[217].mxu0 }
 0x833   : > { %v16250_v12 = vpop.eup %16249  ;;  %v13434_v36 = vadd.f32 %v13433_v56, %v13432_v17  ;;  %v13435_v7 = vpop.f32.mrb[218].mxu0  ;;  %13551 = vmatpush3.bf16.msra.mxu1 %v16212_v6 }
 0x834   : > { %v13436_v24 = vpop.f32.mrb[219].mxu0  ;;  %v11235_v30 = vpack.c.bf16 %v16250_v12, %v16248_v53  ;;  %13552 = vmatprep.subr.bf16.mxu1 %v16213_v23 }
 0x835   : > { %v11185_v29 = vadd.f32 %v13434_v36, %v18269_v50  ;;  %v13437_v28 = vadd.f32 %v13436_v24, %v13435_v7 }
 0x836   : > { %13532 = vmatprep.mubr.bf16.mxu1 %v11235_v30 }
 0x837   : > { %v11188_v8 = vadd.f32 %v13437_v28, %v18271_v26  ;;  %16255 = vtanh.f32 %v11185_v29  ;;  %13553 = vmatpush3.bf16.msra.mxu1 %v16213_v23 }
 0x838   : > { %13554 = vmatprep.subr.bf16.mxu1 %v16214_v20 }
 0x839   : > { %16257 = vtanh.f32 %v11188_v8  ;;  %v13438_v5 = vpop.f32.mrb[220].mxu0  ;;  %v16252_v46 = vpop.eup %16251 }
 0x83a   : > { %v13439_v40 = vpop.f32.mrb[221].mxu0 }
 0x83b   : > { %v16254_v18 = vpop.eup %16253  ;;  %v13440_v19 = vadd.f32 %v13439_v40, %v13438_v5  ;;  %v13441_v33 = vpop.f32.mrb[222].mxu0  ;;  %13555 = vmatpush3.bf16.msra.mxu1 %v16214_v20 }
 0x83c   : > { %v13442_v13 = vpop.f32.mrb[223].mxu0  ;;  %v11236_v59 = vpack.c.bf16 %v16254_v18, %v16252_v46 }
 0x83d   : > { %v11193_v54 = vadd.f32 %v13440_v19, %v18277_v42  ;;  %v13443_v63 = vadd.f32 %v13442_v13, %v13441_v33  ;;  %v16215_v42 = vld [vmem:[#allocation10 + $0x80] sm:$0xff]  }
 0x83e   : > { %13533 = vmatmul.mubr.bf16.gmra.mrb[168].mxu1 %v11236_v59  ;;  %13572 = vmatprep.subr.bf16.mxu0 %v16215_v42 }
 0x83f   : > { %v11196_v50 = vadd.f32 %v13443_v63, %v18279_v0  ;;  %16259 = vtanh.f32 %v11193_v54  ;;  %13573 = vmatpush3.bf16.msra.mxu0 %v16215_v42  ;;  %v16217_v0 = vld [vmem:[#allocation10 + $0x90] sm:$0xff]  }
 0x840   : > { %13574 = vmatprep.subr.bf16.mxu0 %v16216_v58 }
 0x841   : > { %16261 = vtanh.f32 %v11196_v50  ;;  %v16256_v3 = vpop.eup %16255 }
 0x843   : > { %v16258_v26 = vpop.eup %16257  ;;  %13575 = vmatpush3.bf16.msra.mxu0 %v16216_v58 }
 0x844   : > { %v11237_v22 = vpack.c.bf16 %v16258_v26, %v16256_v3  ;;  %13576 = vmatprep.subr.bf16.mxu0 %v16217_v0 }
 0x846   : > { %13536 = vmatprep.mubr.bf16.mxu1 %v11237_v22 }
 0x847   : > { %13577 = vmatpush3.bf16.msra.mxu0 %v16217_v0 }
 0x848   : > { %13578 = vmatprep.subr.bf16.mxu0 %v16218_v9 }
 0x849   : > { %v16260_v57 = vpop.eup %16259 }
 0x84b   : > { %v16262_v11 = vpop.eup %16261  ;;  %13579 = vmatpush3.bf16.msra.mxu0 %v16218_v9  ;;  %v16221_v9 = vld [vmem:[#allocation10 + $0xb0] sm:$0xff]  }
 0x84c   : > { %v11238_v32 = vpack.c.bf16 %v16262_v11, %v16260_v57  ;;  %13580 = vmatprep.subr.bf16.mxu0 %v16219_v49 }
 0x84e   : > { %13537 = vmatmul.mubr.bf16.gmra.mrb[172].mxu1 %v11238_v32 }
 0x84f   : > { %13581 = vmatpush3.bf16.msra.mxu0 %v16219_v49  ;;  %v16222_v49 = vld [vmem:[#allocation10 + $0xb8] sm:$0xff]  }
 0x850   : > { %13582 = vmatprep.subr.bf16.mxu0 %v16220_v1 }
 0x853   : > { %13583 = vmatpush3.bf16.msra.mxu0 %v16220_v1  ;;  %v16223_v1 = vld [vmem:[#allocation10 + $0xc0] sm:$0xff]  }
 0x854   : > { %13584 = vmatprep.subr.bf16.mxu0 %v16221_v9  ;;  %13604 = vmatprep.subr.bf16.mxu1 %v16223_v1 }
 0x857   : > { %13585 = vmatpush3.bf16.msra.mxu0 %v16221_v9 }
 0x858   : > { %13586 = vmatprep.subr.bf16.mxu0 %v16222_v49 }
 0x85b   : > { %13587 = vmatpush3.bf16.msra.mxu0 %v16222_v49 }
 0x8f1   : > { %v13526_v41 = vpop.f32.mrb[160].mxu1 }
 0x8f2   : > { %v11334_v14 = vadd.f32 %v13526_v41, %v11242_v51  ;;  %v11325_v47 = vpop.f32.mrb[161].mxu1  ;;  %v16226_v41 = vld [vmem:[#allocation10 + $0xd8] sm:$0xff]  }
 0x8f3   : > { %v11326_v48 = vadd.f32 %v11325_v47, %v11242_v51  ;;  %v13527_v2 = vpop.f32.mrb[162].mxu1  ;;  %v16228_v47 = vld [vmem:[#allocation10 + $0xe8] sm:$0xff]  }
 0x8f4   : > { %v11337_v10 = vadd.f32 %v13527_v2, %v11242_v51  ;;  %v11328_v4 = vpop.f32.mrb[163].mxu1  ;;  %v11390_v35 = vmax.f32 %v11334_v14, 0.0  ;;  %v16227_v14 = vld [vmem:[#allocation10 + $0xe0] sm:$0xff]  }
 0x8f5   : > { %v11329_v43 = vadd.f32 %v11328_v4, %v11242_v51  ;;  %v11388_v21 = vmax.f32 %v11326_v48, 0.0  ;;  %v11432_v48 = vrot.slane %v18209_v60, %v17999_v27 }
 0x8f6   : > { %v11391_v39 = vmax.f32 %v11337_v10, 0.0 }
 0x8f7   : > { %v11389_v34 = vmax.f32 %v11329_v43, 0.0 }
 0x8f8   : > { %v11422_v45 = vpack.c.bf16 %v11391_v39, %v11390_v35 }
 0x8f9   : > { %v11421_v16 = vpack.c.bf16 %v11389_v34, %v11388_v21 }
 0x8fb   : > { %13556 = vmatprep.mubr.bf16.mxu1 %v11421_v16 }
 0x8fc   : > { %13557 = vmatmul.mubr.bf16.vlgmr.msra.gmra.mrb[176].mxu1 %v11422_v45 }
 0x8fd   : > { %13605 = vmatpush3.bf16.msra.mxu1 %v16223_v1 }
 0x8fe   : > { %13606 = vmatprep.subr.bf16.mxu1 %v16224_v38 }
 0x901   : > { %v13530_v15 = vpop.f32.mrb[164].mxu1  ;;  %13607 = vmatpush3.bf16.msra.mxu1 %v16224_v38  ;;  %v16229_v38 = vld [vmem:[#allocation10 + $0xf0] sm:$0xff]  }
 0x902   : > { %v11350_v31 = vadd.f32 %v13530_v15, %v11242_v51  ;;  %v11341_v44 = vpop.f32.mrb[165].mxu1 }
 0x903   : > { %v11342_v52 = vadd.f32 %v11341_v44, %v11242_v51  ;;  %v13531_v62 = vpop.f32.mrb[166].mxu1 }
 0x904   : > { %v11353_v6 = vadd.f32 %v13531_v62, %v11242_v51  ;;  %v11344_v61 = vpop.f32.mrb[167].mxu1  ;;  %v11394_v25 = vmax.f32 %v11350_v31, 0.0 }
 0x905   : > { %v11345_v37 = vadd.f32 %v11344_v61, %v11242_v51  ;;  %v11392_v53 = vmax.f32 %v11342_v52, 0.0 }
 0x906   : > { %v11395_v17 = vmax.f32 %v11353_v6, 0.0 }
 0x907   : > { %v11393_v56 = vmax.f32 %v11345_v37, 0.0 }
 0x908   : > { %v11424_v12 = vpack.c.bf16 %v11395_v17, %v11394_v25 }
 0x909   : > { %v11423_v36 = vpack.c.bf16 %v11393_v56, %v11392_v53 }
 0x90b   : > { %13560 = vmatprep.mubr.bf16.mxu1 %v11423_v36 }
 0x90c   : > { %13561 = vmatmul.mubr.bf16.gmra.mrb[180].mxu1 %v11424_v12 }
 0x911   : > { %v13534_v7 = vpop.f32.mrb[168].mxu1 }
 0x912   : > { %v11366_v24 = vadd.f32 %v13534_v7, %v11242_v51  ;;  %v11357_v30 = vpop.f32.mrb[169].mxu1 }
 0x913   : > { %v11358_v29 = vadd.f32 %v11357_v30, %v11242_v51  ;;  %v13535_v28 = vpop.f32.mrb[170].mxu1 }
 0x914   : > { %v11369_v8 = vadd.f32 %v13535_v28, %v11242_v51  ;;  %v11360_v5 = vpop.f32.mrb[171].mxu1  ;;  %v11398_v40 = vmax.f32 %v11366_v24, 0.0 }
 0x915   : > { %v11361_v46 = vadd.f32 %v11360_v5, %v11242_v51  ;;  %v11396_v19 = vmax.f32 %v11358_v29, 0.0 }
 0x916   : > { %v11399_v18 = vmax.f32 %v11369_v8, 0.0 }
 0x917   : > { %v11397_v33 = vmax.f32 %v11361_v46, 0.0 }
 0x918   : > { %v11426_v13 = vpack.c.bf16 %v11399_v18, %v11398_v40 }
 0x919   : > { %v11425_v59 = vpack.c.bf16 %v11397_v33, %v11396_v19 }
 0x91b   : > { %13564 = vmatprep.mubr.bf16.mxu1 %v11425_v59 }
 0x91c   : > { %13565 = vmatmul.mubr.bf16.gmra.mrb[184].mxu1 %v11426_v13 }
 0x921   : > { %v13538_v54 = vpop.f32.mrb[172].mxu1 }
 0x922   : > { %v11382_v63 = vadd.f32 %v13538_v54, %v11242_v51  ;;  %v11373_v50 = vpop.f32.mrb[173].mxu1 }
 0x923   : > { %v11374_v3 = vadd.f32 %v11373_v50, %v11242_v51  ;;  %v13539_v26 = vpop.f32.mrb[174].mxu1 }
 0x924   : > { %v11385_v22 = vadd.f32 %v13539_v26, %v11242_v51  ;;  %v11376_v57 = vpop.f32.mrb[175].mxu1  ;;  %v11402_v32 = vmax.f32 %v11382_v63, 0.0 }
 0x925   : > { %v11377_v11 = vadd.f32 %v11376_v57, %v11242_v51  ;;  %v11400_v20 = vmax.f32 %v11374_v3, 0.0  ;;  %v16225_v51 = vld [vmem:[#allocation10 + $0xd0] sm:$0xff]  }
 0x926   : > { %v11403_v23 = vmax.f32 %v11385_v22, 0.0  ;;  %13608 = vmatprep.subr.bf16.mxu1 %v16225_v51 }
 0x927   : > { %v11401_v42 = vmax.f32 %v11377_v11, 0.0  ;;  %13609 = vmatpush3.bf16.msra.mxu1 %v16225_v51  ;;  %v16230_v51 = vld [vmem:[#allocation10 + $0xf8] sm:$0xff]  }
 0x928   : > { %v11428_v58 = vpack.c.bf16 %v11403_v23, %v11402_v32  ;;  %13610 = vmatprep.subr.bf16.mxu1 %v16226_v41 }
 0x929   : > { %v11427_v0 = vpack.c.bf16 %v11401_v42, %v11400_v20 }
 0x92b   : > { %13568 = vmatprep.mubr.bf16.mxu1 %v11427_v0  ;;  %13611 = vmatpush3.bf16.msra.mxu1 %v16226_v41  ;;  %v11621_v41 = vsub.s32 3, %v18481_v55 }
 0x92c   : > { %13569 = vmatmul.mubr.bf16.gmra.mrb[188].mxu1 %v11428_v58  ;;  %13612 = vmatprep.subr.bf16.mxu1 %v16227_v14 }
 0x92f   : > { %13613 = vmatpush3.bf16.msra.mxu1 %v16227_v14  ;;  %v11622_v14 = vrot.slane %v18209_v60, %v11621_v41 }
 0x930   : > { %13614 = vmatprep.subr.bf16.mxu1 %v16228_v47 }
 0x933   : > { %13615 = vmatpush3.bf16.msra.mxu1 %v16228_v47 }
 0x934   : > { %13616 = vmatprep.subr.bf16.mxu1 %v16229_v38 }
 0x937   : > { %13617 = vmatpush3.bf16.msra.mxu1 %v16229_v38 }
 0x938   : > { %13618 = vmatprep.subr.bf16.mxu1 %v16230_v51 }
 0x93b   : > { %13619 = vmatpush3.bf16.msra.mxu1 %v16230_v51 }
 0x9cf   : > { %v13558_v2 = vpop.f32.mrb[176].mxu1 }
 0x9d0   : > { %v11524_v10 = vadd.f32 %v13558_v2, %v11432_v48  ;;  %v11515_v4 = vpop.f32.mrb[177].mxu1 }
 0x9d1   : > { %v11516_v43 = vadd.f32 %v11515_v4, %v11432_v48  ;;  %v13559_v35 = vpop.f32.mrb[178].mxu1 }
 0x9d2   : > { %v11527_v39 = vadd.f32 %v13559_v35, %v11432_v48  ;;  %v11518_v21 = vpop.f32.mrb[179].mxu1  ;;  %v11580_v45 = vmax.f32 %v11524_v10, 0.0 }
 0x9d3   : > { %v11519_v34 = vadd.f32 %v11518_v21, %v11432_v48  ;;  %v11578_v15 = vmax.f32 %v11516_v43, 0.0 }
 0x9d4   : > { %v11581_v16 = vmax.f32 %v11527_v39, 0.0 }
 0x9d5   : > { %v11579_v31 = vmax.f32 %v11519_v34, 0.0 }
 0x9d6   : > { %v11612_v44 = vpack.c.bf16 %v11581_v16, %v11580_v45 }
 0x9d7   : > { %v11611_v52 = vpack.c.bf16 %v11579_v31, %v11578_v15 }
 0x9d9   : > { %13588 = vmatprep.mubr.bf16.mxu0 %v11611_v52 }
 0x9da   : > { %13589 = vmatmul.mubr.bf16.vlgmr.msra.gmra.mrb[224].mxu0 %v11612_v44 }
 0x9df   : > { %v13562_v62 = vpop.f32.mrb[180].mxu1 }
 0x9e0   : > { %v11540_v6 = vadd.f32 %v13562_v62, %v11432_v48  ;;  %v11531_v61 = vpop.f32.mrb[181].mxu1 }
 0x9e1   : > { %v11532_v27 = vadd.f32 %v11531_v61, %v11432_v48  ;;  %v13563_v37 = vpop.f32.mrb[182].mxu1 }
 0x9e2   : > { %v11543_v25 = vadd.f32 %v13563_v37, %v11432_v48  ;;  %v11534_v17 = vpop.f32.mrb[183].mxu1  ;;  %v11584_v56 = vmax.f32 %v11540_v6, 0.0 }
 0x9e3   : > { %v11535_v53 = vadd.f32 %v11534_v17, %v11432_v48  ;;  %v11582_v36 = vmax.f32 %v11532_v27, 0.0 }
 0x9e4   : > { %v11585_v12 = vmax.f32 %v11543_v25, 0.0 }
 0x9e5   : > { %v11583_v7 = vmax.f32 %v11535_v53, 0.0 }
 0x9e6   : > { %v11614_v24 = vpack.c.bf16 %v11585_v12, %v11584_v56 }
 0x9e7   : > { %v11613_v30 = vpack.c.bf16 %v11583_v7, %v11582_v36 }
 0x9e9   : > { %13592 = vmatprep.mubr.bf16.mxu0 %v11613_v30 }
 0x9ea   : > { %13593 = vmatmul.mubr.bf16.gmra.mrb[228].mxu0 %v11614_v24 }
 0x9ef   : > { %v13566_v29 = vpop.f32.mrb[184].mxu1 }
 0x9f0   : > { %v11556_v28 = vadd.f32 %v13566_v29, %v11432_v48  ;;  %v11547_v8 = vpop.f32.mrb[185].mxu1 }
 0x9f1   : > { %v11548_v5 = vadd.f32 %v11547_v8, %v11432_v48  ;;  %v13567_v46 = vpop.f32.mrb[186].mxu1 }
 0x9f2   : > { %v11559_v40 = vadd.f32 %v13567_v46, %v11432_v48  ;;  %v11550_v18 = vpop.f32.mrb[187].mxu1  ;;  %v11588_v33 = vmax.f32 %v11556_v28, 0.0 }
 0x9f3   : > { %v11551_v19 = vadd.f32 %v11550_v18, %v11432_v48  ;;  %v11586_v59 = vmax.f32 %v11548_v5, 0.0 }
 0x9f4   : > { %v11589_v13 = vmax.f32 %v11559_v40, 0.0 }
 0x9f5   : > { %v11587_v54 = vmax.f32 %v11551_v19, 0.0 }
 0x9f6   : > { %v11616_v63 = vpack.c.bf16 %v11589_v13, %v11588_v33 }
 0x9f7   : > { %v11615_v50 = vpack.c.bf16 %v11587_v54, %v11586_v59 }
 0x9f9   : > { %13596 = vmatprep.mubr.bf16.mxu0 %v11615_v50 }
 0x9fa   : > { %13597 = vmatmul.mubr.bf16.gmra.mrb[232].mxu0 %v11616_v63 }
 0x9ff   : > { %v13570_v3 = vpop.f32.mrb[188].mxu1 }
 0xa00   : > { %v11572_v26 = vadd.f32 %v13570_v3, %v11432_v48  ;;  %v11563_v22 = vpop.f32.mrb[189].mxu1 }
 0xa01   : > { %v11564_v57 = vadd.f32 %v11563_v22, %v11432_v48  ;;  %v13571_v11 = vpop.f32.mrb[190].mxu1 }
 0xa02   : > { %v11575_v32 = vadd.f32 %v13571_v11, %v11432_v48  ;;  %v11566_v23 = vpop.f32.mrb[191].mxu1  ;;  %v11592_v42 = vmax.f32 %v11572_v26, 0.0 }
 0xa03   : > { %v11567_v20 = vadd.f32 %v11566_v23, %v11432_v48  ;;  %v11590_v0 = vmax.f32 %v11564_v57, 0.0 }
 0xa04   : > { %v11593_v58 = vmax.f32 %v11575_v32, 0.0 }
 0xa05   : > { %v11591_v9 = vmax.f32 %v11567_v20, 0.0 }
 0xa06   : > { %v11618_v49 = vpack.c.bf16 %v11593_v58, %v11592_v42 }
 0xa07   : > { %v11617_v1 = vpack.c.bf16 %v11591_v9, %v11590_v0  ;;  %v18484_v9 = vld [vmem:[#allocation36_spill] sm:$0xff] }
 0xa09   : > { %13600 = vmatprep.mubr.bf16.mxu0 %v11617_v1 }
 0xa0a   : > { %13601 = vmatmul.mubr.bf16.gmra.mrb[236].mxu0 %v11618_v49  ;;  %v11812_v49 = vrot.slane %v18209_v60, %v18484_v9 }
 0xaad   : > { %v13590_v47 = vpop.f32.mrb[224].mxu0 }
 0xaae   : > { %v11714_v48 = vadd.f32 %v13590_v47, %v11622_v14  ;;  %v11705_v2 = vpop.f32.mrb[225].mxu0 }
 0xaaf   : > { %v11706_v10 = vadd.f32 %v11705_v2, %v11622_v14  ;;  %v13591_v4 = vpop.f32.mrb[226].mxu0 }
 0xab0   : > { %v11717_v43 = vadd.f32 %v13591_v4, %v11622_v14  ;;  %v11708_v35 = vpop.f32.mrb[227].mxu0  ;;  %v11770_v21 = vmax.f32 %v11714_v48, 0.0 }
 0xab1   : > { %v11709_v39 = vadd.f32 %v11708_v35, %v11622_v14  ;;  %v11768_v45 = vmax.f32 %v11706_v10, 0.0 }
 0xab2   : > { %v11771_v34 = vmax.f32 %v11717_v43, 0.0 }
 0xab3   : > { %v11769_v16 = vmax.f32 %v11709_v39, 0.0 }
 0xab4   : > { %v11802_v15 = vpack.c.bf16 %v11771_v34, %v11770_v21 }
 0xab5   : > { %v11801_v31 = vpack.c.bf16 %v11769_v16, %v11768_v45 }
 0xab7   : > { %13620 = vmatprep.mubr.bf16.mxu1 %v11801_v31 }
 0xab8   : > { %13621 = vmatmul.mubr.bf16.vlgmr.msra.gmra.mrb[192].mxu1 %v11802_v15 }
 0xabd   : > { %v13594_v44 = vpop.f32.mrb[228].mxu0 }
 0xabe   : > { %v11730_v55 = vadd.f32 %v13594_v44, %v11622_v14  ;;  %v11721_v52 = vpop.f32.mrb[229].mxu0 }
 0xabf   : > { %v11722_v62 = vadd.f32 %v11721_v52, %v11622_v14  ;;  %v13595_v6 = vpop.f32.mrb[230].mxu0 }
 0xac0   : > { %v11733_v61 = vadd.f32 %v13595_v6, %v11622_v14  ;;  %v11724_v27 = vpop.f32.mrb[231].mxu0  ;;  %v11774_v25 = vmax.f32 %v11730_v55, 0.0 }
 0xac1   : > { %v11725_v37 = vadd.f32 %v11724_v27, %v11622_v14  ;;  %v11772_v53 = vmax.f32 %v11722_v62, 0.0 }
 0xac2   : > { %v11775_v17 = vmax.f32 %v11733_v61, 0.0 }
 0xac3   : > { %v11773_v56 = vmax.f32 %v11725_v37, 0.0 }
 0xac4   : > { %v11804_v12 = vpack.c.bf16 %v11775_v17, %v11774_v25 }
 0xac5   : > { %v11803_v36 = vpack.c.bf16 %v11773_v56, %v11772_v53 }
 0xac7   : > { %13624 = vmatprep.mubr.bf16.mxu1 %v11803_v36 }
 0xac8   : > { %13625 = vmatmul.mubr.bf16.gmra.mrb[196].mxu1 %v11804_v12 }
 0xacd   : > { %v13598_v7 = vpop.f32.mrb[232].mxu0 }
 0xace   : > { %v11746_v24 = vadd.f32 %v13598_v7, %v11622_v14  ;;  %v11737_v30 = vpop.f32.mrb[233].mxu0 }
 0xacf   : > { %v11738_v29 = vadd.f32 %v11737_v30, %v11622_v14  ;;  %v13599_v28 = vpop.f32.mrb[234].mxu0 }
 0xad0   : > { %v11749_v8 = vadd.f32 %v13599_v28, %v11622_v14  ;;  %v11740_v5 = vpop.f32.mrb[235].mxu0  ;;  %v11778_v40 = vmax.f32 %v11746_v24, 0.0 }
 0xad1   : > { %v11741_v46 = vadd.f32 %v11740_v5, %v11622_v14  ;;  %v11776_v19 = vmax.f32 %v11738_v29, 0.0 }
 0xad2   : > { %v11779_v18 = vmax.f32 %v11749_v8, 0.0 }
 0xad3   : > { %v11777_v33 = vmax.f32 %v11741_v46, 0.0 }
 0xad4   : > { %v11806_v13 = vpack.c.bf16 %v11779_v18, %v11778_v40 }
 0xad5   : > { %v11805_v59 = vpack.c.bf16 %v11777_v33, %v11776_v19 }
 0xad7   : > { %13628 = vmatprep.mubr.bf16.mxu1 %v11805_v59 }
 0xad8   : > { %13629 = vmatmul.mubr.bf16.gmra.mrb[200].mxu1 %v11806_v13 }
 0xadd   : > { %v13602_v54 = vpop.f32.mrb[236].mxu0 }
 0xade   : > { %v11762_v63 = vadd.f32 %v13602_v54, %v11622_v14  ;;  %v11753_v50 = vpop.f32.mrb[237].mxu0 }
 0xadf   : > { %v11754_v3 = vadd.f32 %v11753_v50, %v11622_v14  ;;  %v13603_v26 = vpop.f32.mrb[238].mxu0 }
 0xae0   : > { %v11765_v22 = vadd.f32 %v13603_v26, %v11622_v14  ;;  %v11756_v57 = vpop.f32.mrb[239].mxu0  ;;  %v11782_v32 = vmax.f32 %v11762_v63, 0.0 }
 0xae1   : > { %v11757_v11 = vadd.f32 %v11756_v57, %v11622_v14  ;;  %v11780_v20 = vmax.f32 %v11754_v3, 0.0 }
 0xae2   : > { %v11783_v23 = vmax.f32 %v11765_v22, 0.0 }
 0xae3   : > { %v11781_v42 = vmax.f32 %v11757_v11, 0.0 }
 0xae4   : > { %v11808_v58 = vpack.c.bf16 %v11783_v23, %v11782_v32 }
 0xae5   : > { %v11807_v0 = vpack.c.bf16 %v11781_v42, %v11780_v20 }
 0xae7   : > { %13632 = vmatprep.mubr.bf16.mxu1 %v11807_v0 }
 0xae8   : > { %13633 = vmatmul.mubr.bf16.gmra.mrb[204].mxu1 %v11808_v58 }
 0xb8b   : > { %v13622_v1 = vpop.f32.mrb[192].mxu1 }
 0xb8c   : > { %v11904_v38 = vadd.f32 %v13622_v1, %v11812_v49  ;;  %v11895_v51 = vpop.f32.mrb[193].mxu1 }
 0xb8d   : > { %v11896_v41 = vadd.f32 %v11895_v51, %v11812_v49  ;;  %v13623_v47 = vpop.f32.mrb[194].mxu1 }
 0xb8e   : > { %11960 = vst [vmem:[%s18306_s9 + $0x10] sm:$0xff] %v11904_v38  ;;  %v11907_v14 = vadd.f32 %v13623_v47, %v11812_v49  ;;  %v11898_v48 = vpop.f32.mrb[195].mxu1 }
 0xb8f   : > { %11958 = vst [vmem:[%s18306_s9] sm:$0xff] %v11896_v41  ;;  %v11899_v60 = vadd.f32 %v11898_v48, %v11812_v49 }
 0xb90   : > { %11961 = vst [vmem:[%s18306_s9 + $0x18] sm:$0xff] %v11907_v14 }
 0xb91   : > { %11959 = vst [vmem:[%s18306_s9 + $0x8] sm:$0xff] %v11899_v60 }
 0xb9b   : > { %v13626_v2 = vpop.f32.mrb[196].mxu1 }
 0xb9c   : > { %v11920_v10 = vadd.f32 %v13626_v2, %v11812_v49  ;;  %v11911_v4 = vpop.f32.mrb[197].mxu1 }
 0xb9d   : > { %v11912_v43 = vadd.f32 %v11911_v4, %v11812_v49  ;;  %v13627_v35 = vpop.f32.mrb[198].mxu1 }
 0xb9e   : > { %11964 = vst [vmem:[%s18306_s9 + $0x30] sm:$0xff] %v11920_v10  ;;  %v11923_v39 = vadd.f32 %v13627_v35, %v11812_v49  ;;  %v11914_v21 = vpop.f32.mrb[199].mxu1 }
 0xb9f   : > { %11962 = vst [vmem:[%s18306_s9 + $0x20] sm:$0xff] %v11912_v43  ;;  %v11915_v34 = vadd.f32 %v11914_v21, %v11812_v49 }
 0xba0   : > { %11965 = vst [vmem:[%s18306_s9 + $0x38] sm:$0xff] %v11923_v39 }
 0xba1   : > { %11963 = vst [vmem:[%s18306_s9 + $0x28] sm:$0xff] %v11915_v34 }
 0xbab   : > { %v13630_v45 = vpop.f32.mrb[200].mxu1 }
 0xbac   : > { %v11936_v16 = vadd.f32 %v13630_v45, %v11812_v49  ;;  %v11927_v15 = vpop.f32.mrb[201].mxu1 }
 0xbad   : > { %v11928_v31 = vadd.f32 %v11927_v15, %v11812_v49  ;;  %v13631_v44 = vpop.f32.mrb[202].mxu1 }
 0xbae   : > { %11968 = vst [vmem:[%s18306_s9 + $0x50] sm:$0xff] %v11936_v16  ;;  %v11939_v55 = vadd.f32 %v13631_v44, %v11812_v49  ;;  %v11930_v52 = vpop.f32.mrb[203].mxu1 }
 0xbaf   : > { %11966 = vst [vmem:[%s18306_s9 + $0x40] sm:$0xff] %v11928_v31  ;;  %v11931_v62 = vadd.f32 %v11930_v52, %v11812_v49 }
 0xbb0   : > { %11969 = vst [vmem:[%s18306_s9 + $0x58] sm:$0xff] %v11939_v55 }
 0xbb1   : > { %11967 = vst [vmem:[%s18306_s9 + $0x48] sm:$0xff] %v11931_v62 }
 0xbbb   : > { %v13634_v6 = vpop.f32.mrb[204].mxu1 }
 0xbbc   : > { %v11952_v61 = vadd.f32 %v13634_v6, %v11812_v49  ;;  %v11943_v27 = vpop.f32.mrb[205].mxu1 }
 0xbbd   : > { %v11944_v37 = vadd.f32 %v11943_v27, %v11812_v49  ;;  %v13635_v25 = vpop.f32.mrb[206].mxu1 }
 0xbbe   : > { %11972 = vst [vmem:[%s18306_s9 + $0x70] sm:$0xff] %v11952_v61  ;;  %v11955_v17 = vadd.f32 %v13635_v25, %v11812_v49  ;;  %v11946_v53 = vpop.f32.mrb[207].mxu1 }
 0xbbf   : > { %11970 = vst [vmem:[%s18306_s9 + $0x60] sm:$0xff] %v11944_v37  ;;  %v11947_v56 = vadd.f32 %v11946_v53, %v11812_v49 }
 0xbc0   : > { %11973 = vst [vmem:[%s18306_s9 + $0x78] sm:$0xff] %v11955_v17 }
 0xbc1   : > { %11971 = vst [vmem:[%s18306_s9 + $0x68] sm:$0xff] %v11947_v56 }
 0xbc2   : > { %16479 = shalt.err (!%p16476_p8)
}
 0xbc3   : > { %s16480_s14 = scalar_lea.hbm %s18326_s20, 2048  ;;  %s16484_s9 = scalar_lea.hbm %s18382_s7, 4096 }
 0xbc4   : > { %p16481_p7 = scmp.ne.s32.totalorder %s18326_s20, %s16480_s14  ;;  %p16485_p3 = scmp.lt.u32.totalorder %s18326_s20, %s18382_s7 }
 0xbc5   : > { %p16486_p0 = scmp.lt.u32.totalorder %s16484_s9, %s16480_s14  ;;  %p16488_p6 = scmp.lt.u32.totalorder %s16480_s14, %s18326_s20 }
 0xbc6   : > { %p16482_p9 = pnand %p16481_p7, %p18485_p5 }
 0xbc7   : > { %p16487_p2 = por %p16486_p0, %p16485_p3 }
 0xbc8   : > { %p16483_p4 = pneg %p16482_p9 }
 0xbc9   : > { %p16489_p10 = por %p16488_p6, %p16487_p2 }
 0xbcb   : > { %p16490_p1 = pnand %p16489_p10, %p16483_p4 }
 0xbcd   : > { %16493 = shalt.err (!%p16490_p1)
}
 0xbce   : > { %s16560_s28 = smov 128   ;;  %s16561_s21 = smov 8  }
 0xbcf   : > { %14622 = dma.vmem_to_hbm [thread:$0]  (%p18485_p5), %s18328_s23, 2048, %s18326_s20, %s11975_s30, %s16560_s28, %s16560_s28, %s16561_s21  }
 0xbd0 PF: > { %s12003_s16 = sand.u32 1, %s16532_s24   ;;  %p18486_p11 = scmp.ne.s32.totalorder %s18424_s17, 0 }
 0xbd1   : > { %p18487_p12 = scmp.ge.s32.totalorder %s16544_s27, 2  ;;  %s12004_s22 = scalar_lea.sflag [#allocation4], %s12003_s16 }
 0xbd3   : > { %p14648_p13 = pnand %p18487_p12, %p18486_p11 }
 0xbd5   : > { %16527 = dma.done.wait (!%p14648_p13), %s12004_s22, 2048  }
 0xbd6   : > { %16529 = vsyncadd (!%p14648_p13), %s12004_s22, 4294965248  ;;  %p23_p8 = scmp.ge.s32.totalorder %s16786_s11, 4   ;;  %s18488_s24 = smov %s16536_s25 }
 0xbd7   : > { %s18489_s25 = smov %s16540_s26  ;;  %s18490_s26 = smov %s16797_s13 }
 0xbd8   : > { %s18491_s27 = smov %s16786_s11  ;;  %25 = sbr.rel (!%p23_p8) target bundleno = 8 (0x8), region = 121 }
 0xbdf   :  { %12009 = vsyncpa [#allocation3], 1 }
 0xbe0   :  { %12011 = vsyncpa [#allocation3 + $0x1], 1 }
 0xbe1   :  { %12012 = vsyncpa [#allocation6], 1 }
 0xbe2   :  { %12013 = vsyncpa [#allocation9], 1 }
 0xbe3   :  { %12014 = vsyncpa [#allocation12], 1 }
 0xbe4   :  { %12015 = vsyncpa [#allocation4], 1 }
 0xbe5   :  { %12017 = vsyncpa [#allocation4 + $0x1], 1 }

</bundles_post_ra>
